<compile_context>
chip_gen: v7x
topology: tpu7x:2x2x1
jax: 0.10.0
libtpu: 0.0.40
codegen_flags: <defaults>
</compile_context>

<pallas_src>
import jax
import jax.numpy as jnp
from jax.experimental import pallas as pl
from jax.experimental.pallas import tpu as pltpu


# -----------------------------------------------------------------------------
# Kernel A: fused attention branch
#   acc   = sum_k  tanh(x @ W1q_k * s1_k + b1_k) @ W2q_k          (K streamed)
#   out   = softmax(acc * s2 + b2) + x                            (last step)
# Output block index is constant across the grid -> resident accumulator path.
# -----------------------------------------------------------------------------
def _attn_kernel(x_ref, w1_ref, s1_ref, b1_ref, w2_ref, s2_ref, b2_ref,
                 o_ref, acc_ref):
    k = pl.program_id(0)

    @pl.when(k == 0)
    def _():
        acc_ref[...] = jnp.zeros_like(acc_ref)

    x_bf = x_ref[...].astype(jnp.bfloat16)
    # h_tile = tanh(x @ W1^T[:, tile]) * s1[tile] + b1[tile]   (rows, K_TILE)
    h = jnp.tanh(
        jnp.dot(x_bf, w1_ref[...].astype(jnp.bfloat16),
                preferred_element_type=jnp.float32)
        * s1_ref[...] + b1_ref[...])
    # acc += h_tile @ W2^T[tile, :]   (per-output-channel scale s2 applied once
    # in the epilogue: exact, since it is constant across K tiles)
    acc_ref[...] += jnp.dot(h.astype(jnp.bfloat16),
                            w2_ref[...].astype(jnp.bfloat16),
                            preferred_element_type=jnp.float32)

    @pl.when(k == pl.num_programs(0) - 1)
    def _():
        a = acc_ref[...] * s2_ref[...] + b2_ref[...]
        a = a - jnp.max(a, axis=-1, keepdims=True)
        e = jnp.exp(a)
        inv = pl.reciprocal(jnp.sum(e, axis=-1, keepdims=True), approx=True)
        o_ref[...] = (e * inv + x_ref[...]).astype(o_ref.dtype)


def attention_branch(x_rows, w1_q, s1, b1, w2_q, s2, b2, *, k_tile=3584):
    """x_rows: (M, 224) f32; w1_q: (224, 21504) int8; w2_q: (21504, 224) int8."""
    M, D = x_rows.shape
    Kh = w1_q.shape[1]
    assert Kh % k_tile == 0
    n_k = Kh // k_tile

    cost = pl.CostEstimate(
        flops=4 * M * D * Kh,
        transcendentals=M * Kh + M * D,
        bytes_accessed=(M * D * 4            # x (resident, loaded once)
                        + 2 * D * Kh * 1     # int8 W1 + W2
                        + Kh * 8 + D * 8     # scales + biases (fp32)
                        + M * D * 4),        # output
    )

    return pl.pallas_call(
        _attn_kernel,
        out_shape=jax.ShapeDtypeStruct((M, D), jnp.float32),
        grid=(n_k,),
        in_specs=[
            pl.BlockSpec((M, D), lambda k: (0, 0)),        # x (resident)
            pl.BlockSpec((D, k_tile), lambda k: (0, k)),   # W1^T int8 tile
            pl.BlockSpec((1, k_tile), lambda k: (0, k)),   # s1 tile
            pl.BlockSpec((1, k_tile), lambda k: (0, k)),   # b1 tile
            pl.BlockSpec((k_tile, D), lambda k: (k, 0)),   # W2^T int8 tile
            pl.BlockSpec((1, D), lambda k: (0, 0)),        # s2 (resident)
            pl.BlockSpec((1, D), lambda k: (0, 0)),        # b2 (resident)
        ],
        out_specs=pl.BlockSpec((M, D), lambda k: (0, 0)),
        scratch_shapes=[pltpu.VMEM((M, D), jnp.float32)],
        compiler_params=pltpu.CompilerParams(
            dimension_semantics=("arbitrary",)),
        cost_estimate=cost,
    )(x_rows, w1_q, s1, b1, w2_q, s2, b2)


# -----------------------------------------------------------------------------
# Kernel B: Linear(int8 weight) + bias + ReLU, tiled over (N, K).
# Used for 9216 -> 4096.  Input/output activations in bf16, fp32 accumulation.
# -----------------------------------------------------------------------------
def _linear_relu_kernel(x_ref, w_ref, s_ref, b_ref, o_ref, acc_ref):
    k = pl.program_id(1)

    @pl.when(k == 0)
    def _():
        acc_ref[...] = jnp.zeros_like(acc_ref)

    acc_ref[...] += jnp.dot(x_ref[...], w_ref[...].astype(jnp.bfloat16),
                            preferred_element_type=jnp.float32)

    @pl.when(k == pl.num_programs(1) - 1)
    def _():
        r = acc_ref[...] * s_ref[...] + b_ref[...]
        o_ref[...] = jnp.maximum(r, 0.0).astype(o_ref.dtype)


def linear_relu(x_bf16, w_q, s, b, *, tn=2048, tk=4608,
                vmem_limit_bytes=48 << 20):
    """x: (M, K) bf16; w_q: (K, N) int8 (torch weight transposed); s,b: (1, N) f32."""
    M, K = x_bf16.shape
    N = w_q.shape[1]
    tn = min(tn, N)
    tk = min(tk, K)
    assert K % tk == 0 and N % tn == 0
    grid = (N // tn, K // tk)

    cost = pl.CostEstimate(
        flops=2 * M * K * N,
        transcendentals=0,
        bytes_accessed=M * K * 2 + K * N * 1 + N * 8 + M * N * 2,
    )

    return pl.pallas_call(
        _linear_relu_kernel,
        out_shape=jax.ShapeDtypeStruct((M, N), jnp.bfloat16),
        grid=grid,
        in_specs=[
            pl.BlockSpec((M, tk), lambda n, k: (0, k)),
            pl.BlockSpec((tk, tn), lambda n, k: (k, n)),
            pl.BlockSpec((1, tn), lambda n, k: (0, n)),
            pl.BlockSpec((1, tn), lambda n, k: (0, n)),
        ],
        out_specs=pl.BlockSpec((M, tn), lambda n, k: (0, n)),
        scratch_shapes=[pltpu.VMEM((M, tn), jnp.float32)],
        compiler_params=pltpu.CompilerParams(
            dimension_semantics=("parallel", "arbitrary"),
            vmem_limit_bytes=vmem_limit_bytes,
        ),
        cost_estimate=cost,
    )(x_bf16, w_q, s, b)


# -----------------------------------------------------------------------------
# Kernel C: fused Linear(4096->4096, int8) + ReLU + Linear(4096->code_len) + Tanh.
# Streams W2 over the N axis; each n-block's ReLU output is immediately folded
# into a tiny resident (M, code_length) head accumulator, so the 4096-wide
# intermediate never touches HBM and the separate head launch disappears.
# -----------------------------------------------------------------------------
def _linear_relu_head_kernel(x_ref, w2_ref, s2_ref, b2_ref, w3_ref, b3_ref,
                             o_ref, acc_ref):
    n = pl.program_id(0)

    @pl.when(n == 0)
    def _():
        acc_ref[...] = jnp.zeros_like(acc_ref)

    r = jnp.dot(x_ref[...], w2_ref[...].astype(jnp.bfloat16),
                preferred_element_type=jnp.float32)
    r = jnp.maximum(r * s2_ref[...] + b2_ref[...], 0.0)
    acc_ref[...] += jnp.dot(r.astype(jnp.bfloat16), w3_ref[...],
                            preferred_element_type=jnp.float32)

    @pl.when(n == pl.num_programs(0) - 1)
    def _():
        o_ref[...] = jnp.tanh(acc_ref[...] + b3_ref[...]).astype(o_ref.dtype)


def linear_relu_head(x_bf16, w2_q, s2, b2, w3_t, b3, *, tn=2048,
                     vmem_limit_bytes=48 << 20):
    """x: (M, 4096) bf16; w2_q: (4096, 4096) int8; w3_t: (4096, CL) bf16."""
    M, K = x_bf16.shape
    N = w2_q.shape[1]
    CL = w3_t.shape[1]
    tn = min(tn, N)
    assert N % tn == 0
    grid = (N // tn,)

    cost = pl.CostEstimate(
        flops=2 * M * K * N + 2 * M * N * CL,
        transcendentals=M * CL,
        bytes_accessed=(M * K * 2 + K * N * 1 + N * 8
                        + N * CL * 2 + CL * 4 + M * CL * 4),
    )

    return pl.pallas_call(
        _linear_relu_head_kernel,
        out_shape=jax.ShapeDtypeStruct((M, CL), jnp.float32),
        grid=grid,
        in_specs=[
            pl.BlockSpec((M, K), lambda n: (0, 0)),      # x (resident, full K)
            pl.BlockSpec((K, tn), lambda n: (0, n)),     # W2^T int8 tile
            pl.BlockSpec((1, tn), lambda n: (0, n)),     # s2 tile
            pl.BlockSpec((1, tn), lambda n: (0, n)),     # b2 tile
            pl.BlockSpec((tn, CL), lambda n: (n, 0)),    # W3^T bf16 row-block
            pl.BlockSpec((1, CL), lambda n: (0, 0)),     # b3 (resident)
        ],
        out_specs=pl.BlockSpec((M, CL), lambda n: (0, 0)),
        scratch_shapes=[pltpu.VMEM((M, CL), jnp.float32)],
        compiler_params=pltpu.CompilerParams(
            dimension_semantics=("arbitrary",),
            vmem_limit_bytes=vmem_limit_bytes,
        ),
        cost_estimate=cost,
    )(x_bf16, w2_q, s2, b2, w3_t, b3)


# -----------------------------------------------------------------------------
# Parameters (deterministic, synthetic — shapes from CNNNet.__init__).
# Big streamed weights: int8 + per-output-channel fp32 scale; fp32 accumulation
# inside the kernels.
# -----------------------------------------------------------------------------
def quantize_int8(w):
    """Symmetric per-output-channel (last axis) int8 quantization of (K, N) w."""
    amax = jnp.max(jnp.abs(w), axis=0, keepdims=True)
    scale = jnp.maximum(amax, 1e-8) / 127.0
    q = jnp.clip(jnp.round(w / scale), -127.0, 127.0).astype(jnp.int8)
    return q, scale.astype(jnp.float32)


def make_params(key, code_length=16):
    ks = jax.random.split(key, 5)

    def init_w(k, fan_in, fan_out):
        # stored already transposed: (in_features, out_features)
        scale = 1.0 / jnp.sqrt(jnp.float32(fan_in))
        return jax.random.normal(k, (fan_in, fan_out), jnp.float32) * scale

    # fc_encode1: Linear(224, 21504), fc_encode2: Linear(21504, 224)
    w1_q, s1 = quantize_int8(init_w(ks[0], 224, 21504))
    w2_q, s2 = quantize_int8(init_w(ks[1], 21504, 224))
    # classifier: Linear(9216, 4096) -> ReLU -> Linear(4096, 4096) -> ReLU
    #             -> Linear(4096, code_length) -> Tanh   (Dropouts = identity)
    wc1_q, sc1 = quantize_int8(init_w(ks[2], 256 * 6 * 6, 4096))
    wc2_q, sc2 = quantize_int8(init_w(ks[3], 4096, 4096))

    return {
        "w1_q": w1_q, "s1": s1, "b1": jnp.zeros((1, 21504), jnp.float32),
        "w2_q": w2_q, "s2": s2, "b2": jnp.zeros((1, 224), jnp.float32),
        "wc1_q": wc1_q, "sc1": sc1, "bc1": jnp.zeros((1, 4096), jnp.float32),
        "wc2_q": wc2_q, "sc2": sc2, "bc2": jnp.zeros((1, 4096), jnp.float32),
        "wc3_t": init_w(ks[4], 4096, code_length).astype(jnp.bfloat16),
        "bc3": jnp.zeros((1, code_length), jnp.float32),
    }


# -----------------------------------------------------------------------------
# Forward
# -----------------------------------------------------------------------------
def cnn_net_forward(x, params, f_bridge):
    B, C, H, W = x.shape  # NCHW, W == 224
    x_rows = x.reshape(B * C * H, W)

    # attn = softmax(fc_encode2(tanh(fc_encode1(x)))); x2 = attn + x
    x2_rows = attention_branch(
        x_rows, params["w1_q"], params["s1"], params["b1"],
        params["w2_q"], params["s2"], params["b2"])
    x2 = x2_rows.reshape(B, C, H, W)

    # TODO(synk): `self.vgg19_bn.features(x2)` uses an attribute never defined in
    # __init__, and `self.features(x4)` applies AlexNet conv layers to a flattened
    # 2-D tensor (shape-invalid in PyTorch). No faithful Pallas equivalent exists;
    # the classifier is fed an externally supplied (B, 256*6*6) feature tensor.
    f = f_bridge.astype(jnp.bfloat16)

    h = linear_relu(f, params["wc1_q"], params["sc1"], params["bc1"],
                    tn=2048, tk=4608)
    y = linear_relu_head(h, params["wc2_q"], params["sc2"], params["bc2"],
                         params["wc3_t"], params["bc3"], tn=2048)
    return x2, y


if __name__ == "__main__":
    key = jax.random.PRNGKey(0)
    kx, kf, kp = jax.random.split(key, 3)

    B, C, H, W = 2, 3, 8, 224      # small batch/spatial; W fixed at 224 by the module
    code_length = 16

    x = jax.random.normal(kx, (B, C, H, W), jnp.float32)
    f_bridge = jax.random.normal(kf, (B, 256 * 6 * 6), jnp.float32)
    params = make_params(kp, code_length=code_length)

    x2, y = cnn_net_forward(x, params, f_bridge)
    jax.block_until_ready((x2, y))

    assert x2.shape == (B, C, H, W)
    assert y.shape == (B, code_length)
    print("KERNEL_OK")
</pallas_src>

<mosaic_0001>
module attributes {stable_mosaic.version = 11 : i64} {
  func.func @_attn_kernel(%arg0: i32, %arg1: memref<48x224xf32, #tpu.memory_space<vmem>>, %arg2: memref<224x3584xi8, #tpu.memory_space<vmem>>, %arg3: memref<1x3584xf32, #tpu.memory_space<vmem>>, %arg4: memref<1x3584xf32, #tpu.memory_space<vmem>>, %arg5: memref<3584x224xi8, #tpu.memory_space<vmem>>, %arg6: memref<1x224xf32, #tpu.memory_space<vmem>>, %arg7: memref<1x224xf32, #tpu.memory_space<vmem>>, %arg8: memref<48x224xf32, #tpu.memory_space<vmem>>, %arg9: memref<48x224xf32, #tpu.memory_space<vmem>>) attributes {dimension_semantics = [#tpu.dimension_semantics<arbitrary>], iteration_bounds = array<i64: 6>, scalar_prefetch = 0 : i64, scratch_operands = 1 : i64, tpu.core_type = #tpu.core_type<tc>, window_params = [{pipeline_mode = #tpu.pipeline_mode<synchronous>, transform_indices = @transform_0, window_bounds = array<i64: 48, 224>}, {transform_indices = @transform_1, window_bounds = array<i64: 224, 3584>}, {transform_indices = @transform_2, window_bounds = array<i64: 1, 3584>}, {transform_indices = @transform_3, window_bounds = array<i64: 1, 3584>}, {transform_indices = @transform_4, window_bounds = array<i64: 3584, 224>}, {pipeline_mode = #tpu.pipeline_mode<synchronous>, transform_indices = @transform_5, window_bounds = array<i64: 1, 224>}, {pipeline_mode = #tpu.pipeline_mode<synchronous>, transform_indices = @transform_6, window_bounds = array<i64: 1, 224>}, {pipeline_mode = #tpu.pipeline_mode<synchronous>, transform_indices = @transform_7, window_bounds = array<i64: 48, 224>}]} {
    %c0_i32 = arith.constant 0 : i32
    %0 = arith.cmpi eq, %arg0, %c0_i32 : i32
    %1 = arith.extui %0 : i1 to i32
    %c0_i32_0 = arith.constant 0 : i32
    %2 = arith.cmpi ne, %1, %c0_i32_0 : i32
    scf.if %2 {
      %cst_16 = arith.constant 0.000000e+00 : f32
      %25 = vector.broadcast %cst_16 : f32 to vector<48x224xf32>
      %c0_17 = arith.constant 0 : index
      %c0_18 = arith.constant 0 : index
      %26 = vector.load %arg9[%c0_17, %c0_18] : memref<48x224xf32, #tpu.memory_space<vmem>>, vector<48x224xf32>
      tpu.vector_store %arg9[%c0_17, %c0_18], %25 {strides = array<i32>} : memref<48x224xf32, #tpu.memory_space<vmem>>, vector<48x224xf32>,
    } else {
    }
    %c0 = arith.constant 0 : index
    %c0_1 = arith.constant 0 : index
    %3 = vector.load %arg1[%c0, %c0_1] : memref<48x224xf32, #tpu.memory_space<vmem>>, vector<48x224xf32>
    %4 = arith.truncf %3 : vector<48x224xf32> to vector<48x224xbf16>
    %c0_2 = arith.constant 0 : index
    %c0_3 = arith.constant 0 : index
    %5 = vector.load %arg2[%c0_2, %c0_3] : memref<224x3584xi8, #tpu.memory_space<vmem>>, vector<224x3584xi8>
    %6 = arith.sitofp %5 : vector<224x3584xi8> to vector<224x3584xbf16>
    %cst = arith.constant dense<0.000000e+00> : vector<48x3584xf32>
    %7 = tpu.matmul %4, %6, %cst {dimension_numbers = #tpu.dot_dimension_numbers<[1], [0], [0], [1], [0, 0, 1, 1], [], []>} : vector<48x224xbf16>, vector<224x3584xbf16>, vector<48x3584xf32> -> vector<48x3584xf32>
    %c0_4 = arith.constant 0 : index
    %c0_5 = arith.constant 0 : index
    %8 = vector.load %arg3[%c0_4, %c0_5] : memref<1x3584xf32, #tpu.memory_space<vmem>>, vector<1x3584xf32>
    %9 = vector.broadcast %8 : vector<1x3584xf32> to vector<48x3584xf32>
    %10 = arith.mulf %7, %9 : vector<48x3584xf32>
    %c0_6 = arith.constant 0 : index
    %c0_7 = arith.constant 0 : index
    %11 = vector.load %arg4[%c0_6, %c0_7] : memref<1x3584xf32, #tpu.memory_space<vmem>>, vector<1x3584xf32>
    %12 = vector.broadcast %11 : vector<1x3584xf32> to vector<48x3584xf32>
    %13 = arith.addf %10, %12 : vector<48x3584xf32>
    %14 = math.tanh %13 : vector<48x3584xf32>
    %c0_8 = arith.constant 0 : index
    %c0_9 = arith.constant 0 : index
    %15 = vector.load %arg9[%c0_8, %c0_9] : memref<48x224xf32, #tpu.memory_space<vmem>>, vector<48x224xf32>
    %16 = arith.truncf %14 : vector<48x3584xf32> to vector<48x3584xbf16>
    %c0_10 = arith.constant 0 : index
    %c0_11 = arith.constant 0 : index
    %17 = vector.load %arg5[%c0_10, %c0_11] : memref<3584x224xi8, #tpu.memory_space<vmem>>, vector<3584x224xi8>
    %18 = arith.sitofp %17 : vector<3584x224xi8> to vector<3584x224xbf16>
    %cst_12 = arith.constant dense<0.000000e+00> : vector<48x224xf32>
    %19 = tpu.matmul %16, %18, %cst_12 {dimension_numbers = #tpu.dot_dimension_numbers<[1], [0], [0], [1], [0, 0, 1, 1], [], []>} : vector<48x3584xbf16>, vector<3584x224xbf16>, vector<48x224xf32> -> vector<48x224xf32>
    %20 = arith.addf %15, %19 : vector<48x224xf32>
    %c0_13 = arith.constant 0 : index
    %c0_14 = arith.constant 0 : index
    %21 = vector.load %arg9[%c0_13, %c0_14] : memref<48x224xf32, #tpu.memory_space<vmem>>, vector<48x224xf32>
    tpu.vector_store %arg9[%c0_13, %c0_14], %20 {strides = array<i32>} : memref<48x224xf32, #tpu.memory_space<vmem>>, vector<48x224xf32>,
    %c5_i32 = arith.constant 5 : i32
    %22 = arith.cmpi eq, %arg0, %c5_i32 : i32
    %23 = arith.extui %22 : i1 to i32
    %c0_i32_15 = arith.constant 0 : i32
    %24 = arith.cmpi ne, %23, %c0_i32_15 : i32
    scf.if %24 {
      %c0_16 = arith.constant 0 : index
      %c0_17 = arith.constant 0 : index
      %25 = vector.load %arg9[%c0_16, %c0_17] : memref<48x224xf32, #tpu.memory_space<vmem>>, vector<48x224xf32>
      %c0_18 = arith.constant 0 : index
      %c0_19 = arith.constant 0 : index
      %26 = vector.load %arg6[%c0_18, %c0_19] : memref<1x224xf32, #tpu.memory_space<vmem>>, vector<1x224xf32>
      %27 = vector.broadcast %26 : vector<1x224xf32> to vector<48x224xf32>
      %28 = arith.mulf %25, %27 : vector<48x224xf32>
      %c0_20 = arith.constant 0 : index
      %c0_21 = arith.constant 0 : index
      %29 = vector.load %arg7[%c0_20, %c0_21] : memref<1x224xf32, #tpu.memory_space<vmem>>, vector<1x224xf32>
      %30 = vector.broadcast %29 : vector<1x224xf32> to vector<48x224xf32>
      %31 = arith.addf %28, %30 : vector<48x224xf32>
      %cst_22 = arith.constant dense<0xFF800000> : vector<48xf32>
      %32 = vector.multi_reduction <maximumf>, %31, %cst_22 [1] : vector<48x224xf32> to vector<48xf32>
      %33 = vector.shape_cast %32 : vector<48xf32> to vector<48x1xf32>
      %34 = vector.broadcast %33 : vector<48x1xf32> to vector<48x224xf32>
      %35 = arith.subf %31, %34 : vector<48x224xf32>
      %36 = math.exp %35 : vector<48x224xf32>
      %cst_23 = arith.constant dense<0.000000e+00> : vector<48xf32>
      %37 = vector.multi_reduction <add>, %36, %cst_23 [1] : vector<48x224xf32> to vector<48xf32>
      %38 = vector.shape_cast %37 : vector<48xf32> to vector<48x1xf32>
      %39 = tpu.reciprocal %38 {approx = true} : vector<48x1xf32> -> vector<48x1xf32>
      %40 = vector.broadcast %39 : vector<48x1xf32> to vector<48x224xf32>
      %41 = arith.mulf %36, %40 : vector<48x224xf32>
      %c0_24 = arith.constant 0 : index
      %c0_25 = arith.constant 0 : index
      %42 = vector.load %arg1[%c0_24, %c0_25] : memref<48x224xf32, #tpu.memory_space<vmem>>, vector<48x224xf32>
      %43 = arith.addf %41, %42 : vector<48x224xf32>
      %c0_26 = arith.constant 0 : index
      %c0_27 = arith.constant 0 : index
      %44 = vector.load %arg8[%c0_26, %c0_27] : memref<48x224xf32, #tpu.memory_space<vmem>>, vector<48x224xf32>
      tpu.vector_store %arg8[%c0_26, %c0_27], %43 {strides = array<i32>} : memref<48x224xf32, #tpu.memory_space<vmem>>, vector<48x224xf32>,
    } else {
    }
    return
  }
  func.func @transform_0(%arg0: i32) -> (i32, i32) {
    %c0_i32 = arith.constant 0 : i32
    %c0_i32_0 = arith.constant 0 : i32
    %c0_i32_1 = arith.constant 0 : i32
    return %c0_i32, %c0_i32_0 : i32, i32
  }
  func.func @transform_1(%arg0: i32) -> (i32, i32) {
    %c0_i32 = arith.constant 0 : i32
    %c0_i32_0 = arith.constant 0 : i32
    return %c0_i32, %arg0 : i32, i32
  }
  func.func @transform_2(%arg0: i32) -> (i32, i32) {
    %c0_i32 = arith.constant 0 : i32
    %c0_i32_0 = arith.constant 0 : i32
    return %c0_i32, %arg0 : i32, i32
  }
  func.func @transform_3(%arg0: i32) -> (i32, i32) {
    %c0_i32 = arith.constant 0 : i32
    %c0_i32_0 = arith.constant 0 : i32
    return %c0_i32, %arg0 : i32, i32
  }
  func.func @transform_4(%arg0: i32) -> (i32, i32) {
    %c0_i32 = arith.constant 0 : i32
    %c0_i32_0 = arith.constant 0 : i32
    return %arg0, %c0_i32 : i32, i32
  }
  func.func @transform_5(%arg0: i32) -> (i32, i32) {
    %c0_i32 = arith.constant 0 : i32
    %c0_i32_0 = arith.constant 0 : i32
    %c0_i32_1 = arith.constant 0 : i32
    return %c0_i32, %c0_i32_0 : i32, i32
  }
  func.func @transform_6(%arg0: i32) -> (i32, i32) {
    %c0_i32 = arith.constant 0 : i32
    %c0_i32_0 = arith.constant 0 : i32
    %c0_i32_1 = arith.constant 0 : i32
    return %c0_i32, %c0_i32_0 : i32, i32
  }
  func.func @transform_7(%arg0: i32) -> (i32, i32) {
    %c0_i32 = arith.constant 0 : i32
    %c0_i32_0 = arith.constant 0 : i32
    %c0_i32_1 = arith.constant 0 : i32
    return %c0_i32, %c0_i32_0 : i32, i32
  }
}

</mosaic_0001>

<bundles_post_ra>
// kernel: tpu_custom_call.1
= control target key start
LH: loop header
LB: loop body
LE: loop exit
PB: predicated region body
PF: predicated region fallthrough
CT: control target
= control target key end

     0   :  { %12 = vsyncpa [#allocation5], 0  ;;  %s5734_s24 = smov 0   ;;  %s5736_s25 = smov 0   ;;  %s8545_s0 = inlined_call_operand.vmem [shape: f32[48,224], index: 0, kind: input, shape index: {}]   ;;  %s8546_s1 = inlined_call_operand.vmem [shape: s8[224,21504], index: 1, kind: input, shape index: {}]   ;;  %s8547_s2 = inlined_call_operand.vmem [shape: f32[1,21504], index: 2, kind: input, shape index: {}]   ;;  %s8548_s3 = inlined_call_operand.vmem [shape: f32[1,21504], index: 3, kind: input, shape index: {}]   ;;  %s8549_s4 = inlined_call_operand.vmem [shape: s8[21504,224], index: 4, kind: input, shape index: {}]   ;;  %s8550_s5 = inlined_call_operand.vmem [shape: f32[1,224], index: 5, kind: input, shape index: {}]   ;;  %s8551_s6 = inlined_call_operand.vmem [shape: f32[1,224], index: 6, kind: input, shape index: {}]   ;;  %s8552_s7 = inlined_call_operand.hbm [shape: f32[48,224], index: 7, kind: output, shape index: {}]  }
   0x1   :  { %s5738_s26 = smov 0  }
   0x2 LB: > { %s5750_s27 = sadd.s32 4294967295, %s5688_s26   ;;  %s5753_s28 = sadd.s32 1, %s5688_s26   ;;  %s5688_s26 = sphi %s5738_s26, %s8862_s26   ;;  %s5684_s25 = sphi %s5736_s25, %s8861_s25   ;;  %s5680_s24 = sphi %s5734_s24, %s8860_s24  }
   0x3   : > { %s43_s29 = ssub.s32 %s5688_s26, %s5753_s28  ;;  %s46_s30 = sadd.s32 1, %s5684_s25 }
   0x4   : > { %p44_p0 = scmp.eq.s32.totalorder %s43_s29, 0  ;;  %p53_p1 = scmp.ne.s32.totalorder %s5684_s25, %s5680_s24 }
   0x5   : > { %p54_p2 = scmp.eq.s32.totalorder %s5688_s26, 0  ;;  %p5017_p4 = scmp.ge.s32.totalorder %s5688_s26, 6 }
   0x6   : > { %s5762_s8 = scalar_select %p44_p0, %s5684_s25, %s46_s30  }
   0x7   : > { %p55_p3 = por %p54_p2, %p53_p1  ;;  %229 = sbr.rel (%p5017_p4) target bundleno = 117 (0x75), region = 28 }
   0xe   : > { %232 = sbr.rel (!%p55_p3) target bundleno = 117 (0x75), region = 32  ;;  %s234_s9 = sand.u32 (%p55_p3), 1, %s5684_s25  }
   0xf   : > { %s5070_s10 = smul.u32 (%p55_p3), 224, %s5688_s26 }
  0x10   : > { %s5228_s11 = smul.u32 (%p55_p3), 1568, %s234_s9 }
  0x11   : > { %s5770_s14 = scalar_lea.vmem (%p55_p3), %s8546_s1, %s5070_s10 }
  0x12   : > { %v252_v0 = vld [vmem:[%s5770_s14] sm:$0xff] (%p55_p3)  ;;  %v254_v1 = vld [vmem:[%s5770_s14 + $0x8] sm:$0xff] (%p55_p3)  ;;  %v256_v2 = vld [vmem:[%s5770_s14 + $0x10] sm:$0xff] (%p55_p3)  ;;  %s5775_s15 = scalar_lea.vmem (%p55_p3), [#allocation3], %s5228_s11 }
  0x13   : > { %253 = vst [vmem:[%s5775_s15] sm:$0xff] (%p55_p3), %v252_v0  ;;  %255 = vst [vmem:[%s5775_s15 + $0x8] sm:$0xff] (%p55_p3), %v254_v1  ;;  %v258_v3 = vld [vmem:[%s5770_s14 + $0x18] sm:$0xff] (%p55_p3)  ;;  %v260_v4 = vld [vmem:[%s5770_s14 + $0x20] sm:$0xff] (%p55_p3) }
  0x14   : > { %257 = vst [vmem:[%s5775_s15 + $0x10] sm:$0xff] (%p55_p3), %v256_v2  ;;  %v262_v5 = vld [vmem:[%s5770_s14 + $0x28] sm:$0xff] (%p55_p3)  ;;  %259 = vst [vmem:[%s5775_s15 + $0x18] sm:$0xff] (%p55_p3), %v258_v3  ;;  %v264_v6 = vld [vmem:[%s5770_s14 + $0x30] sm:$0xff] (%p55_p3) }
  0x15   : > { %261 = vst [vmem:[%s5775_s15 + $0x20] sm:$0xff] %v260_v4  ;;  %263 = vst [vmem:[%s5775_s15 + $0x28] sm:$0xff] %v262_v5  ;;  %v266_v7 = vld [vmem:[%s5770_s14 + $0x38] sm:$0xff]  ;;  %v268_v8 = vld [vmem:[%s5770_s14 + $0x40] sm:$0xff] }
  0x16   : > { %265 = vst [vmem:[%s5775_s15 + $0x30] sm:$0xff] %v264_v6  ;;  %267 = vst [vmem:[%s5775_s15 + $0x38] sm:$0xff] %v266_v7  ;;  %v270_v9 = vld [vmem:[%s5770_s14 + $0x48] sm:$0xff]  ;;  %v272_v10 = vld [vmem:[%s5770_s14 + $0x50] sm:$0xff] }
  0x17   : > { %269 = vst [vmem:[%s5775_s15 + $0x40] sm:$0xff] %v268_v8  ;;  %v274_v11 = vld [vmem:[%s5770_s14 + $0x58] sm:$0xff]  ;;  %271 = vst [vmem:[%s5775_s15 + $0x48] sm:$0xff] %v270_v9  ;;  %v276_v12 = vld [vmem:[%s5770_s14 + $0x60] sm:$0xff] }
  0x18   : > { %273 = vst [vmem:[%s5775_s15 + $0x50] sm:$0xff] %v272_v10  ;;  %275 = vst [vmem:[%s5775_s15 + $0x58] sm:$0xff] %v274_v11  ;;  %v278_v13 = vld [vmem:[%s5770_s14 + $0x68] sm:$0xff]  ;;  %v280_v14 = vld [vmem:[%s5770_s14 + $0x70] sm:$0xff] }
  0x19   : > { %277 = vst [vmem:[%s5775_s15 + $0x60] sm:$0xff] %v276_v12  ;;  %279 = vst [vmem:[%s5775_s15 + $0x68] sm:$0xff] %v278_v13  ;;  %v282_v15 = vld [vmem:[%s5770_s14 + $0x78] sm:$0xff]  ;;  %v284_v16 = vld [vmem:[%s5770_s14 + $0x80] sm:$0xff] }
  0x1a   : > { %281 = vst [vmem:[%s5775_s15 + $0x70] sm:$0xff] %v280_v14  ;;  %v286_v17 = vld [vmem:[%s5770_s14 + $0x88] sm:$0xff]  ;;  %283 = vst [vmem:[%s5775_s15 + $0x78] sm:$0xff] %v282_v15  ;;  %v288_v18 = vld [vmem:[%s5770_s14 + $0x90] sm:$0xff] }
  0x1b   : > { %285 = vst [vmem:[%s5775_s15 + $0x80] sm:$0xff] %v284_v16  ;;  %287 = vst [vmem:[%s5775_s15 + $0x88] sm:$0xff] %v286_v17  ;;  %v290_v19 = vld [vmem:[%s5770_s14 + $0x98] sm:$0xff]  ;;  %v292_v20 = vld [vmem:[%s5770_s14 + $0xa0] sm:$0xff] }
  0x1c   : > { %289 = vst [vmem:[%s5775_s15 + $0x90] sm:$0xff] %v288_v18  ;;  %291 = vst [vmem:[%s5775_s15 + $0x98] sm:$0xff] %v290_v19  ;;  %v294_v21 = vld [vmem:[%s5770_s14 + $0xa8] sm:$0xff]  ;;  %v296_v22 = vld [vmem:[%s5770_s14 + $0xb0] sm:$0xff] }
  0x1d   : > { %293 = vst [vmem:[%s5775_s15 + $0xa0] sm:$0xff] %v292_v20  ;;  %v298_v23 = vld [vmem:[%s5770_s14 + $0xb8] sm:$0xff]  ;;  %295 = vst [vmem:[%s5775_s15 + $0xa8] sm:$0xff] %v294_v21  ;;  %v300_v24 = vld [vmem:[%s5770_s14 + $0xc0] sm:$0xff] }
  0x1e   : > { %297 = vst [vmem:[%s5775_s15 + $0xb0] sm:$0xff] %v296_v22  ;;  %299 = vst [vmem:[%s5775_s15 + $0xb8] sm:$0xff] %v298_v23  ;;  %v302_v25 = vld [vmem:[%s5770_s14 + $0xc8] sm:$0xff]  ;;  %v304_v26 = vld [vmem:[%s5770_s14 + $0xd0] sm:$0xff] }
  0x1f   : > { %301 = vst [vmem:[%s5775_s15 + $0xc0] sm:$0xff] %v300_v24  ;;  %303 = vst [vmem:[%s5775_s15 + $0xc8] sm:$0xff] %v302_v25  ;;  %v306_v27 = vld [vmem:[%s5770_s14 + $0xd8] sm:$0xff]  ;;  %v308_v28 = vld [vmem:[%s5770_s14 + $0x540] sm:$0xff] }
  0x20   : > { %305 = vst [vmem:[%s5775_s15 + $0xd0] sm:$0xff] %v304_v26  ;;  %v310_v29 = vld [vmem:[%s5770_s14 + $0x548] sm:$0xff]  ;;  %307 = vst [vmem:[%s5775_s15 + $0xd8] sm:$0xff] %v306_v27  ;;  %v312_v30 = vld [vmem:[%s5770_s14 + $0x550] sm:$0xff] }
  0x21   : > { %309 = vst [vmem:[%s5775_s15 + $0xe0] sm:$0xff] %v308_v28  ;;  %311 = vst [vmem:[%s5775_s15 + $0xe8] sm:$0xff] %v310_v29  ;;  %v314_v31 = vld [vmem:[%s5770_s14 + $0x558] sm:$0xff]  ;;  %v316_v32 = vld [vmem:[%s5770_s14 + $0x560] sm:$0xff] }
  0x22   : > { %313 = vst [vmem:[%s5775_s15 + $0xf0] sm:$0xff] %v312_v30  ;;  %315 = vst [vmem:[%s5775_s15 + $0xf8] sm:$0xff] %v314_v31  ;;  %v318_v33 = vld [vmem:[%s5770_s14 + $0x568] sm:$0xff]  ;;  %v320_v34 = vld [vmem:[%s5770_s14 + $0x570] sm:$0xff] }
  0x23   : > { %317 = vst [vmem:[%s5775_s15 + $0x100] sm:$0xff] %v316_v32  ;;  %v322_v35 = vld [vmem:[%s5770_s14 + $0x578] sm:$0xff]  ;;  %319 = vst [vmem:[%s5775_s15 + $0x108] sm:$0xff] %v318_v33  ;;  %v324_v36 = vld [vmem:[%s5770_s14 + $0x580] sm:$0xff] }
  0x24   : > { %321 = vst [vmem:[%s5775_s15 + $0x110] sm:$0xff] %v320_v34  ;;  %323 = vst [vmem:[%s5775_s15 + $0x118] sm:$0xff] %v322_v35  ;;  %v326_v37 = vld [vmem:[%s5770_s14 + $0x588] sm:$0xff]  ;;  %v328_v38 = vld [vmem:[%s5770_s14 + $0x590] sm:$0xff] }
  0x25   : > { %325 = vst [vmem:[%s5775_s15 + $0x120] sm:$0xff] %v324_v36  ;;  %327 = vst [vmem:[%s5775_s15 + $0x128] sm:$0xff] %v326_v37  ;;  %v330_v39 = vld [vmem:[%s5770_s14 + $0x598] sm:$0xff]  ;;  %v332_v40 = vld [vmem:[%s5770_s14 + $0x5a0] sm:$0xff] }
  0x26   : > { %329 = vst [vmem:[%s5775_s15 + $0x130] sm:$0xff] %v328_v38  ;;  %v334_v41 = vld [vmem:[%s5770_s14 + $0x5a8] sm:$0xff]  ;;  %331 = vst [vmem:[%s5775_s15 + $0x138] sm:$0xff] %v330_v39  ;;  %v336_v42 = vld [vmem:[%s5770_s14 + $0x5b0] sm:$0xff] }
  0x27   : > { %333 = vst [vmem:[%s5775_s15 + $0x140] sm:$0xff] %v332_v40  ;;  %335 = vst [vmem:[%s5775_s15 + $0x148] sm:$0xff] %v334_v41  ;;  %v338_v43 = vld [vmem:[%s5770_s14 + $0x5b8] sm:$0xff]  ;;  %v340_v44 = vld [vmem:[%s5770_s14 + $0x5c0] sm:$0xff] }
  0x28   : > { %337 = vst [vmem:[%s5775_s15 + $0x150] sm:$0xff] %v336_v42  ;;  %339 = vst [vmem:[%s5775_s15 + $0x158] sm:$0xff] %v338_v43  ;;  %v342_v45 = vld [vmem:[%s5770_s14 + $0x5c8] sm:$0xff]  ;;  %v344_v46 = vld [vmem:[%s5770_s14 + $0x5d0] sm:$0xff] }
  0x29   : > { %341 = vst [vmem:[%s5775_s15 + $0x160] sm:$0xff] %v340_v44  ;;  %v346_v47 = vld [vmem:[%s5770_s14 + $0x5d8] sm:$0xff]  ;;  %343 = vst [vmem:[%s5775_s15 + $0x168] sm:$0xff] %v342_v45  ;;  %v348_v48 = vld [vmem:[%s5770_s14 + $0x5e0] sm:$0xff] }
  0x2a   : > { %345 = vst [vmem:[%s5775_s15 + $0x170] sm:$0xff] %v344_v46  ;;  %347 = vst [vmem:[%s5775_s15 + $0x178] sm:$0xff] %v346_v47  ;;  %v350_v49 = vld [vmem:[%s5770_s14 + $0x5e8] sm:$0xff]  ;;  %v352_v50 = vld [vmem:[%s5770_s14 + $0x5f0] sm:$0xff] }
  0x2b   : > { %349 = vst [vmem:[%s5775_s15 + $0x180] sm:$0xff] %v348_v48  ;;  %351 = vst [vmem:[%s5775_s15 + $0x188] sm:$0xff] %v350_v49  ;;  %v354_v51 = vld [vmem:[%s5770_s14 + $0x5f8] sm:$0xff]  ;;  %v356_v52 = vld [vmem:[%s5770_s14 + $0x600] sm:$0xff] }
  0x2c   : > { %353 = vst [vmem:[%s5775_s15 + $0x190] sm:$0xff] %v352_v50  ;;  %v358_v53 = vld [vmem:[%s5770_s14 + $0x608] sm:$0xff]  ;;  %355 = vst [vmem:[%s5775_s15 + $0x198] sm:$0xff] %v354_v51  ;;  %v360_v54 = vld [vmem:[%s5770_s14 + $0x610] sm:$0xff] }
  0x2d   : > { %357 = vst [vmem:[%s5775_s15 + $0x1a0] sm:$0xff] %v356_v52  ;;  %359 = vst [vmem:[%s5775_s15 + $0x1a8] sm:$0xff] %v358_v53  ;;  %v362_v55 = vld [vmem:[%s5770_s14 + $0x618] sm:$0xff]  ;;  %v364_v56 = vld [vmem:[%s5770_s14 + $0xa80] sm:$0xff] }
  0x2e   : > { %361 = vst [vmem:[%s5775_s15 + $0x1b0] sm:$0xff] %v360_v54  ;;  %363 = vst [vmem:[%s5775_s15 + $0x1b8] sm:$0xff] %v362_v55  ;;  %v366_v57 = vld [vmem:[%s5770_s14 + $0xa88] sm:$0xff]  ;;  %v368_v58 = vld [vmem:[%s5770_s14 + $0xa90] sm:$0xff] }
  0x2f   : > { %365 = vst [vmem:[%s5775_s15 + $0x1c0] sm:$0xff] %v364_v56  ;;  %v370_v59 = vld [vmem:[%s5770_s14 + $0xa98] sm:$0xff]  ;;  %367 = vst [vmem:[%s5775_s15 + $0x1c8] sm:$0xff] %v366_v57  ;;  %v372_v60 = vld [vmem:[%s5770_s14 + $0xaa0] sm:$0xff] }
  0x30   : > { %369 = vst [vmem:[%s5775_s15 + $0x1d0] sm:$0xff] %v368_v58  ;;  %371 = vst [vmem:[%s5775_s15 + $0x1d8] sm:$0xff] %v370_v59  ;;  %v374_v61 = vld [vmem:[%s5770_s14 + $0xaa8] sm:$0xff]  ;;  %v376_v62 = vld [vmem:[%s5770_s14 + $0xab0] sm:$0xff] }
  0x31   : > { %373 = vst [vmem:[%s5775_s15 + $0x1e0] sm:$0xff] %v372_v60  ;;  %375 = vst [vmem:[%s5775_s15 + $0x1e8] sm:$0xff] %v374_v61  ;;  %v378_v63 = vld [vmem:[%s5770_s14 + $0xab8] sm:$0xff]  ;;  %v380_v0 = vld [vmem:[%s5770_s14 + $0xac0] sm:$0xff] }
  0x32   : > { %377 = vst [vmem:[%s5775_s15 + $0x1f0] sm:$0xff] %v376_v62  ;;  %v382_v1 = vld [vmem:[%s5770_s14 + $0xac8] sm:$0xff]  ;;  %379 = vst [vmem:[%s5775_s15 + $0x1f8] sm:$0xff] %v378_v63  ;;  %v384_v2 = vld [vmem:[%s5770_s14 + $0xad0] sm:$0xff] }
  0x33   : > { %381 = vst [vmem:[%s5775_s15 + $0x200] sm:$0xff] %v380_v0  ;;  %383 = vst [vmem:[%s5775_s15 + $0x208] sm:$0xff] %v382_v1  ;;  %v386_v3 = vld [vmem:[%s5770_s14 + $0xad8] sm:$0xff]  ;;  %v388_v4 = vld [vmem:[%s5770_s14 + $0xae0] sm:$0xff] }
  0x34   : > { %385 = vst [vmem:[%s5775_s15 + $0x210] sm:$0xff] %v384_v2  ;;  %387 = vst [vmem:[%s5775_s15 + $0x218] sm:$0xff] %v386_v3  ;;  %v390_v5 = vld [vmem:[%s5770_s14 + $0xae8] sm:$0xff]  ;;  %v392_v6 = vld [vmem:[%s5770_s14 + $0xaf0] sm:$0xff] }
  0x35   : > { %389 = vst [vmem:[%s5775_s15 + $0x220] sm:$0xff] %v388_v4  ;;  %v394_v7 = vld [vmem:[%s5770_s14 + $0xaf8] sm:$0xff]  ;;  %391 = vst [vmem:[%s5775_s15 + $0x228] sm:$0xff] %v390_v5  ;;  %v396_v8 = vld [vmem:[%s5770_s14 + $0xb00] sm:$0xff] }
  0x36   : > { %393 = vst [vmem:[%s5775_s15 + $0x230] sm:$0xff] %v392_v6  ;;  %395 = vst [vmem:[%s5775_s15 + $0x238] sm:$0xff] %v394_v7  ;;  %v398_v9 = vld [vmem:[%s5770_s14 + $0xb08] sm:$0xff]  ;;  %v400_v10 = vld [vmem:[%s5770_s14 + $0xb10] sm:$0xff] }
  0x37   : > { %397 = vst [vmem:[%s5775_s15 + $0x240] sm:$0xff] %v396_v8  ;;  %399 = vst [vmem:[%s5775_s15 + $0x248] sm:$0xff] %v398_v9  ;;  %v402_v11 = vld [vmem:[%s5770_s14 + $0xb18] sm:$0xff]  ;;  %v404_v12 = vld [vmem:[%s5770_s14 + $0xb20] sm:$0xff] }
  0x38   : > { %401 = vst [vmem:[%s5775_s15 + $0x250] sm:$0xff] %v400_v10  ;;  %v406_v13 = vld [vmem:[%s5770_s14 + $0xb28] sm:$0xff]  ;;  %403 = vst [vmem:[%s5775_s15 + $0x258] sm:$0xff] %v402_v11  ;;  %v408_v14 = vld [vmem:[%s5770_s14 + $0xb30] sm:$0xff] }
  0x39   : > { %405 = vst [vmem:[%s5775_s15 + $0x260] sm:$0xff] %v404_v12  ;;  %407 = vst [vmem:[%s5775_s15 + $0x268] sm:$0xff] %v406_v13  ;;  %v410_v15 = vld [vmem:[%s5770_s14 + $0xb38] sm:$0xff]  ;;  %v412_v16 = vld [vmem:[%s5770_s14 + $0xb40] sm:$0xff] }
  0x3a   : > { %409 = vst [vmem:[%s5775_s15 + $0x270] sm:$0xff] %v408_v14  ;;  %411 = vst [vmem:[%s5775_s15 + $0x278] sm:$0xff] %v410_v15  ;;  %v414_v17 = vld [vmem:[%s5770_s14 + $0xb48] sm:$0xff]  ;;  %v416_v18 = vld [vmem:[%s5770_s14 + $0xb50] sm:$0xff] }
  0x3b   : > { %413 = vst [vmem:[%s5775_s15 + $0x280] sm:$0xff] %v412_v16  ;;  %v418_v19 = vld [vmem:[%s5770_s14 + $0xb58] sm:$0xff]  ;;  %415 = vst [vmem:[%s5775_s15 + $0x288] sm:$0xff] %v414_v17  ;;  %v420_v20 = vld [vmem:[%s5770_s14 + $0xfc0] sm:$0xff] }
  0x3c   : > { %417 = vst [vmem:[%s5775_s15 + $0x290] sm:$0xff] %v416_v18  ;;  %419 = vst [vmem:[%s5775_s15 + $0x298] sm:$0xff] %v418_v19  ;;  %v422_v21 = vld [vmem:[%s5770_s14 + $0xfc8] sm:$0xff]  ;;  %v424_v22 = vld [vmem:[%s5770_s14 + $0xfd0] sm:$0xff] }
  0x3d   : > { %421 = vst [vmem:[%s5775_s15 + $0x2a0] sm:$0xff] %v420_v20  ;;  %423 = vst [vmem:[%s5775_s15 + $0x2a8] sm:$0xff] %v422_v21  ;;  %v426_v23 = vld [vmem:[%s5770_s14 + $0xfd8] sm:$0xff]  ;;  %v428_v24 = vld [vmem:[%s5770_s14 + $0xfe0] sm:$0xff] }
  0x3e   : > { %425 = vst [vmem:[%s5775_s15 + $0x2b0] sm:$0xff] %v424_v22  ;;  %v430_v25 = vld [vmem:[%s5770_s14 + $0xfe8] sm:$0xff]  ;;  %427 = vst [vmem:[%s5775_s15 + $0x2b8] sm:$0xff] %v426_v23  ;;  %v432_v26 = vld [vmem:[%s5770_s14 + $0xff0] sm:$0xff] }
  0x3f   : > { %429 = vst [vmem:[%s5775_s15 + $0x2c0] sm:$0xff] %v428_v24  ;;  %431 = vst [vmem:[%s5775_s15 + $0x2c8] sm:$0xff] %v430_v25  ;;  %v434_v27 = vld [vmem:[%s5770_s14 + $0xff8] sm:$0xff]  ;;  %v436_v28 = vld [vmem:[%s5770_s14 + $0x1000] sm:$0xff] }
  0x40   : > { %433 = vst [vmem:[%s5775_s15 + $0x2d0] sm:$0xff] %v432_v26  ;;  %435 = vst [vmem:[%s5775_s15 + $0x2d8] sm:$0xff] %v434_v27  ;;  %v438_v29 = vld [vmem:[%s5770_s14 + $0x1008] sm:$0xff]  ;;  %v440_v30 = vld [vmem:[%s5770_s14 + $0x1010] sm:$0xff] }
  0x41   : > { %437 = vst [vmem:[%s5775_s15 + $0x2e0] sm:$0xff] %v436_v28  ;;  %v442_v31 = vld [vmem:[%s5770_s14 + $0x1018] sm:$0xff]  ;;  %439 = vst [vmem:[%s5775_s15 + $0x2e8] sm:$0xff] %v438_v29  ;;  %v444_v32 = vld [vmem:[%s5770_s14 + $0x1020] sm:$0xff] }
  0x42   : > { %441 = vst [vmem:[%s5775_s15 + $0x2f0] sm:$0xff] %v440_v30  ;;  %443 = vst [vmem:[%s5775_s15 + $0x2f8] sm:$0xff] %v442_v31  ;;  %v446_v33 = vld [vmem:[%s5770_s14 + $0x1028] sm:$0xff]  ;;  %v448_v34 = vld [vmem:[%s5770_s14 + $0x1030] sm:$0xff] }
  0x43   : > { %445 = vst [vmem:[%s5775_s15 + $0x300] sm:$0xff] %v444_v32  ;;  %447 = vst [vmem:[%s5775_s15 + $0x308] sm:$0xff] %v446_v33  ;;  %v450_v35 = vld [vmem:[%s5770_s14 + $0x1038] sm:$0xff]  ;;  %v452_v36 = vld [vmem:[%s5770_s14 + $0x1040] sm:$0xff] }
  0x44   : > { %449 = vst [vmem:[%s5775_s15 + $0x310] sm:$0xff] %v448_v34  ;;  %v454_v37 = vld [vmem:[%s5770_s14 + $0x1048] sm:$0xff]  ;;  %451 = vst [vmem:[%s5775_s15 + $0x318] sm:$0xff] %v450_v35  ;;  %v456_v38 = vld [vmem:[%s5770_s14 + $0x1050] sm:$0xff] }
  0x45   : > { %453 = vst [vmem:[%s5775_s15 + $0x320] sm:$0xff] %v452_v36  ;;  %455 = vst [vmem:[%s5775_s15 + $0x328] sm:$0xff] %v454_v37  ;;  %v458_v39 = vld [vmem:[%s5770_s14 + $0x1058] sm:$0xff]  ;;  %v460_v40 = vld [vmem:[%s5770_s14 + $0x1060] sm:$0xff] }
  0x46   : > { %457 = vst [vmem:[%s5775_s15 + $0x330] sm:$0xff] %v456_v38  ;;  %459 = vst [vmem:[%s5775_s15 + $0x338] sm:$0xff] %v458_v39  ;;  %v462_v41 = vld [vmem:[%s5770_s14 + $0x1068] sm:$0xff]  ;;  %v464_v42 = vld [vmem:[%s5770_s14 + $0x1070] sm:$0xff] }
  0x47   : > { %461 = vst [vmem:[%s5775_s15 + $0x340] sm:$0xff] %v460_v40  ;;  %v466_v43 = vld [vmem:[%s5770_s14 + $0x1078] sm:$0xff]  ;;  %463 = vst [vmem:[%s5775_s15 + $0x348] sm:$0xff] %v462_v41  ;;  %v468_v44 = vld [vmem:[%s5770_s14 + $0x1080] sm:$0xff] }
  0x48   : > { %465 = vst [vmem:[%s5775_s15 + $0x350] sm:$0xff] %v464_v42  ;;  %467 = vst [vmem:[%s5775_s15 + $0x358] sm:$0xff] %v466_v43  ;;  %v470_v45 = vld [vmem:[%s5770_s14 + $0x1088] sm:$0xff]  ;;  %v472_v46 = vld [vmem:[%s5770_s14 + $0x1090] sm:$0xff] }
  0x49   : > { %469 = vst [vmem:[%s5775_s15 + $0x360] sm:$0xff] %v468_v44  ;;  %471 = vst [vmem:[%s5775_s15 + $0x368] sm:$0xff] %v470_v45  ;;  %v474_v47 = vld [vmem:[%s5770_s14 + $0x1098] sm:$0xff]  ;;  %v476_v48 = vld [vmem:[%s5770_s14 + $0x1500] sm:$0xff] }
  0x4a   : > { %473 = vst [vmem:[%s5775_s15 + $0x370] sm:$0xff] %v472_v46  ;;  %v478_v49 = vld [vmem:[%s5770_s14 + $0x1508] sm:$0xff]  ;;  %475 = vst [vmem:[%s5775_s15 + $0x378] sm:$0xff] %v474_v47  ;;  %v480_v50 = vld [vmem:[%s5770_s14 + $0x1510] sm:$0xff] }
  0x4b   : > { %477 = vst [vmem:[%s5775_s15 + $0x380] sm:$0xff] %v476_v48  ;;  %479 = vst [vmem:[%s5775_s15 + $0x388] sm:$0xff] %v478_v49  ;;  %v482_v51 = vld [vmem:[%s5770_s14 + $0x1518] sm:$0xff]  ;;  %v484_v52 = vld [vmem:[%s5770_s14 + $0x1520] sm:$0xff] }
  0x4c   : > { %481 = vst [vmem:[%s5775_s15 + $0x390] sm:$0xff] %v480_v50  ;;  %483 = vst [vmem:[%s5775_s15 + $0x398] sm:$0xff] %v482_v51  ;;  %v486_v53 = vld [vmem:[%s5770_s14 + $0x1528] sm:$0xff]  ;;  %v488_v54 = vld [vmem:[%s5770_s14 + $0x1530] sm:$0xff] }
  0x4d   : > { %485 = vst [vmem:[%s5775_s15 + $0x3a0] sm:$0xff] %v484_v52  ;;  %v490_v55 = vld [vmem:[%s5770_s14 + $0x1538] sm:$0xff]  ;;  %487 = vst [vmem:[%s5775_s15 + $0x3a8] sm:$0xff] %v486_v53  ;;  %v492_v56 = vld [vmem:[%s5770_s14 + $0x1540] sm:$0xff] }
  0x4e   : > { %489 = vst [vmem:[%s5775_s15 + $0x3b0] sm:$0xff] %v488_v54  ;;  %491 = vst [vmem:[%s5775_s15 + $0x3b8] sm:$0xff] %v490_v55  ;;  %v494_v57 = vld [vmem:[%s5770_s14 + $0x1548] sm:$0xff]  ;;  %v496_v58 = vld [vmem:[%s5770_s14 + $0x1550] sm:$0xff] }
  0x4f   : > { %493 = vst [vmem:[%s5775_s15 + $0x3c0] sm:$0xff] %v492_v56  ;;  %495 = vst [vmem:[%s5775_s15 + $0x3c8] sm:$0xff] %v494_v57  ;;  %v498_v59 = vld [vmem:[%s5770_s14 + $0x1558] sm:$0xff]  ;;  %v500_v60 = vld [vmem:[%s5770_s14 + $0x1560] sm:$0xff] }
  0x50   : > { %497 = vst [vmem:[%s5775_s15 + $0x3d0] sm:$0xff] %v496_v58  ;;  %v502_v61 = vld [vmem:[%s5770_s14 + $0x1568] sm:$0xff]  ;;  %499 = vst [vmem:[%s5775_s15 + $0x3d8] sm:$0xff] %v498_v59  ;;  %v504_v62 = vld [vmem:[%s5770_s14 + $0x1570] sm:$0xff] }
  0x51   : > { %501 = vst [vmem:[%s5775_s15 + $0x3e0] sm:$0xff] %v500_v60  ;;  %503 = vst [vmem:[%s5775_s15 + $0x3e8] sm:$0xff] %v502_v61  ;;  %v506_v63 = vld [vmem:[%s5770_s14 + $0x1578] sm:$0xff]  ;;  %v508_v0 = vld [vmem:[%s5770_s14 + $0x1580] sm:$0xff] }
  0x52   : > { %505 = vst [vmem:[%s5775_s15 + $0x3f0] sm:$0xff] %v504_v62  ;;  %507 = vst [vmem:[%s5775_s15 + $0x3f8] sm:$0xff] %v506_v63  ;;  %v510_v1 = vld [vmem:[%s5770_s14 + $0x1588] sm:$0xff]  ;;  %v512_v2 = vld [vmem:[%s5770_s14 + $0x1590] sm:$0xff] }
  0x53   : > { %509 = vst [vmem:[%s5775_s15 + $0x400] sm:$0xff] %v508_v0  ;;  %v514_v3 = vld [vmem:[%s5770_s14 + $0x1598] sm:$0xff]  ;;  %511 = vst [vmem:[%s5775_s15 + $0x408] sm:$0xff] %v510_v1  ;;  %v516_v4 = vld [vmem:[%s5770_s14 + $0x15a0] sm:$0xff] }
  0x54   : > { %513 = vst [vmem:[%s5775_s15 + $0x410] sm:$0xff] %v512_v2  ;;  %515 = vst [vmem:[%s5775_s15 + $0x418] sm:$0xff] %v514_v3  ;;  %v518_v5 = vld [vmem:[%s5770_s14 + $0x15a8] sm:$0xff]  ;;  %v520_v6 = vld [vmem:[%s5770_s14 + $0x15b0] sm:$0xff] }
  0x55   : > { %517 = vst [vmem:[%s5775_s15 + $0x420] sm:$0xff] %v516_v4  ;;  %519 = vst [vmem:[%s5775_s15 + $0x428] sm:$0xff] %v518_v5  ;;  %v522_v7 = vld [vmem:[%s5770_s14 + $0x15b8] sm:$0xff]  ;;  %v524_v8 = vld [vmem:[%s5770_s14 + $0x15c0] sm:$0xff] }
  0x56   : > { %521 = vst [vmem:[%s5775_s15 + $0x430] sm:$0xff] %v520_v6  ;;  %v526_v9 = vld [vmem:[%s5770_s14 + $0x15c8] sm:$0xff]  ;;  %523 = vst [vmem:[%s5775_s15 + $0x438] sm:$0xff] %v522_v7  ;;  %v528_v10 = vld [vmem:[%s5770_s14 + $0x15d0] sm:$0xff] }
  0x57   : > { %525 = vst [vmem:[%s5775_s15 + $0x440] sm:$0xff] %v524_v8  ;;  %527 = vst [vmem:[%s5775_s15 + $0x448] sm:$0xff] %v526_v9  ;;  %v530_v11 = vld [vmem:[%s5770_s14 + $0x15d8] sm:$0xff]  ;;  %v532_v12 = vld [vmem:[%s5770_s14 + $0x1a40] sm:$0xff] }
  0x58   : > { %529 = vst [vmem:[%s5775_s15 + $0x450] sm:$0xff] %v528_v10  ;;  %531 = vst [vmem:[%s5775_s15 + $0x458] sm:$0xff] %v530_v11  ;;  %v534_v13 = vld [vmem:[%s5770_s14 + $0x1a48] sm:$0xff]  ;;  %v536_v14 = vld [vmem:[%s5770_s14 + $0x1a50] sm:$0xff] }
  0x59   : > { %533 = vst [vmem:[%s5775_s15 + $0x460] sm:$0xff] %v532_v12  ;;  %v538_v15 = vld [vmem:[%s5770_s14 + $0x1a58] sm:$0xff]  ;;  %535 = vst [vmem:[%s5775_s15 + $0x468] sm:$0xff] %v534_v13  ;;  %v540_v16 = vld [vmem:[%s5770_s14 + $0x1a60] sm:$0xff] }
  0x5a   : > { %537 = vst [vmem:[%s5775_s15 + $0x470] sm:$0xff] %v536_v14  ;;  %539 = vst [vmem:[%s5775_s15 + $0x478] sm:$0xff] %v538_v15  ;;  %v542_v17 = vld [vmem:[%s5770_s14 + $0x1a68] sm:$0xff]  ;;  %v544_v18 = vld [vmem:[%s5770_s14 + $0x1a70] sm:$0xff] }
  0x5b   : > { %541 = vst [vmem:[%s5775_s15 + $0x480] sm:$0xff] %v540_v16  ;;  %543 = vst [vmem:[%s5775_s15 + $0x488] sm:$0xff] %v542_v17  ;;  %v546_v19 = vld [vmem:[%s5770_s14 + $0x1a78] sm:$0xff]  ;;  %v548_v20 = vld [vmem:[%s5770_s14 + $0x1a80] sm:$0xff] }
  0x5c   : > { %545 = vst [vmem:[%s5775_s15 + $0x490] sm:$0xff] %v544_v18  ;;  %v550_v21 = vld [vmem:[%s5770_s14 + $0x1a88] sm:$0xff]  ;;  %547 = vst [vmem:[%s5775_s15 + $0x498] sm:$0xff] %v546_v19  ;;  %v552_v22 = vld [vmem:[%s5770_s14 + $0x1a90] sm:$0xff] }
  0x5d   : > { %549 = vst [vmem:[%s5775_s15 + $0x4a0] sm:$0xff] %v548_v20  ;;  %551 = vst [vmem:[%s5775_s15 + $0x4a8] sm:$0xff] %v550_v21  ;;  %v554_v23 = vld [vmem:[%s5770_s14 + $0x1a98] sm:$0xff]  ;;  %v556_v24 = vld [vmem:[%s5770_s14 + $0x1aa0] sm:$0xff] }
  0x5e   : > { %553 = vst [vmem:[%s5775_s15 + $0x4b0] sm:$0xff] %v552_v22  ;;  %555 = vst [vmem:[%s5775_s15 + $0x4b8] sm:$0xff] %v554_v23  ;;  %v558_v25 = vld [vmem:[%s5770_s14 + $0x1aa8] sm:$0xff]  ;;  %v560_v26 = vld [vmem:[%s5770_s14 + $0x1ab0] sm:$0xff] }
  0x5f   : > { %557 = vst [vmem:[%s5775_s15 + $0x4c0] sm:$0xff] %v556_v24  ;;  %v562_v27 = vld [vmem:[%s5770_s14 + $0x1ab8] sm:$0xff]  ;;  %559 = vst [vmem:[%s5775_s15 + $0x4c8] sm:$0xff] %v558_v25  ;;  %v564_v28 = vld [vmem:[%s5770_s14 + $0x1ac0] sm:$0xff] }
  0x60   : > { %561 = vst [vmem:[%s5775_s15 + $0x4d0] sm:$0xff] %v560_v26  ;;  %563 = vst [vmem:[%s5775_s15 + $0x4d8] sm:$0xff] %v562_v27  ;;  %v566_v29 = vld [vmem:[%s5770_s14 + $0x1ac8] sm:$0xff]  ;;  %v568_v30 = vld [vmem:[%s5770_s14 + $0x1ad0] sm:$0xff] }
  0x61   : > { %565 = vst [vmem:[%s5775_s15 + $0x4e0] sm:$0xff] %v564_v28  ;;  %567 = vst [vmem:[%s5775_s15 + $0x4e8] sm:$0xff] %v566_v29  ;;  %v570_v31 = vld [vmem:[%s5770_s14 + $0x1ad8] sm:$0xff]  ;;  %v572_v32 = vld [vmem:[%s5770_s14 + $0x1ae0] sm:$0xff] }
  0x62   : > { %569 = vst [vmem:[%s5775_s15 + $0x4f0] sm:$0xff] %v568_v30  ;;  %v574_v33 = vld [vmem:[%s5770_s14 + $0x1ae8] sm:$0xff]  ;;  %571 = vst [vmem:[%s5775_s15 + $0x4f8] sm:$0xff] %v570_v31  ;;  %v576_v34 = vld [vmem:[%s5770_s14 + $0x1af0] sm:$0xff] }
  0x63   : > { %573 = vst [vmem:[%s5775_s15 + $0x500] sm:$0xff] %v572_v32  ;;  %575 = vst [vmem:[%s5775_s15 + $0x508] sm:$0xff] %v574_v33  ;;  %v578_v35 = vld [vmem:[%s5770_s14 + $0x1af8] sm:$0xff]  ;;  %v580_v36 = vld [vmem:[%s5770_s14 + $0x1b00] sm:$0xff] }
  0x64   : > { %577 = vst [vmem:[%s5775_s15 + $0x510] sm:$0xff] %v576_v34  ;;  %579 = vst [vmem:[%s5775_s15 + $0x518] sm:$0xff] %v578_v35  ;;  %v582_v37 = vld [vmem:[%s5770_s14 + $0x1b08] sm:$0xff]  ;;  %v584_v38 = vld [vmem:[%s5770_s14 + $0x1b10] sm:$0xff] }
  0x65   : > { %581 = vst [vmem:[%s5775_s15 + $0x520] sm:$0xff] %v580_v36  ;;  %v586_v39 = vld [vmem:[%s5770_s14 + $0x1b18] sm:$0xff]  ;;  %583 = vst [vmem:[%s5775_s15 + $0x528] sm:$0xff] %v582_v37  ;;  %v588_v40 = vld [vmem:[%s5770_s14 + $0x1f80] sm:$0xff] }
  0x66   : > { %585 = vst [vmem:[%s5775_s15 + $0x530] sm:$0xff] %v584_v38  ;;  %587 = vst [vmem:[%s5775_s15 + $0x538] sm:$0xff] %v586_v39  ;;  %v590_v41 = vld [vmem:[%s5770_s14 + $0x1f88] sm:$0xff]  ;;  %v592_v42 = vld [vmem:[%s5770_s14 + $0x1f90] sm:$0xff] }
  0x67   : > { %589 = vst [vmem:[%s5775_s15 + $0x540] sm:$0xff] %v588_v40  ;;  %591 = vst [vmem:[%s5775_s15 + $0x548] sm:$0xff] %v590_v41  ;;  %v594_v43 = vld [vmem:[%s5770_s14 + $0x1f98] sm:$0xff]  ;;  %v596_v44 = vld [vmem:[%s5770_s14 + $0x1fa0] sm:$0xff] }
  0x68   : > { %593 = vst [vmem:[%s5775_s15 + $0x550] sm:$0xff] %v592_v42  ;;  %v598_v45 = vld [vmem:[%s5770_s14 + $0x1fa8] sm:$0xff]  ;;  %595 = vst [vmem:[%s5775_s15 + $0x558] sm:$0xff] %v594_v43  ;;  %v600_v46 = vld [vmem:[%s5770_s14 + $0x1fb0] sm:$0xff] }
  0x69   : > { %597 = vst [vmem:[%s5775_s15 + $0x560] sm:$0xff] %v596_v44  ;;  %599 = vst [vmem:[%s5775_s15 + $0x568] sm:$0xff] %v598_v45  ;;  %v602_v47 = vld [vmem:[%s5770_s14 + $0x1fb8] sm:$0xff]  ;;  %v604_v48 = vld [vmem:[%s5770_s14 + $0x1fc0] sm:$0xff] }
  0x6a   : > { %601 = vst [vmem:[%s5775_s15 + $0x570] sm:$0xff] %v600_v46  ;;  %603 = vst [vmem:[%s5775_s15 + $0x578] sm:$0xff] %v602_v47  ;;  %v606_v49 = vld [vmem:[%s5770_s14 + $0x1fc8] sm:$0xff]  ;;  %v608_v50 = vld [vmem:[%s5770_s14 + $0x1fd0] sm:$0xff] }
  0x6b   : > { %605 = vst [vmem:[%s5775_s15 + $0x580] sm:$0xff] %v604_v48  ;;  %v610_v51 = vld [vmem:[%s5770_s14 + $0x1fd8] sm:$0xff]  ;;  %607 = vst [vmem:[%s5775_s15 + $0x588] sm:$0xff] %v606_v49  ;;  %v612_v52 = vld [vmem:[%s5770_s14 + $0x1fe0] sm:$0xff] }
  0x6c   : > { %609 = vst [vmem:[%s5775_s15 + $0x590] sm:$0xff] %v608_v50  ;;  %611 = vst [vmem:[%s5775_s15 + $0x598] sm:$0xff] %v610_v51  ;;  %v614_v53 = vld [vmem:[%s5770_s14 + $0x1fe8] sm:$0xff]  ;;  %v616_v54 = vld [vmem:[%s5770_s14 + $0x1ff0] sm:$0xff] }
  0x6d   : > { %613 = vst [vmem:[%s5775_s15 + $0x5a0] sm:$0xff] %v612_v52  ;;  %615 = vst [vmem:[%s5775_s15 + $0x5a8] sm:$0xff] %v614_v53  ;;  %v618_v55 = vld [vmem:[%s5770_s14 + $0x1ff8] sm:$0xff]  ;;  %v620_v56 = vld [vmem:[%s5770_s14 + $0x2000] sm:$0xff] }
  0x6e   : > { %617 = vst [vmem:[%s5775_s15 + $0x5b0] sm:$0xff] %v616_v54  ;;  %v622_v57 = vld [vmem:[%s5770_s14 + $0x2008] sm:$0xff]  ;;  %619 = vst [vmem:[%s5775_s15 + $0x5b8] sm:$0xff] %v618_v55  ;;  %v624_v58 = vld [vmem:[%s5770_s14 + $0x2010] sm:$0xff] }
  0x6f   : > { %621 = vst [vmem:[%s5775_s15 + $0x5c0] sm:$0xff] %v620_v56  ;;  %623 = vst [vmem:[%s5775_s15 + $0x5c8] sm:$0xff] %v622_v57  ;;  %v626_v59 = vld [vmem:[%s5770_s14 + $0x2018] sm:$0xff]  ;;  %v628_v60 = vld [vmem:[%s5770_s14 + $0x2020] sm:$0xff] }
  0x70   : > { %625 = vst [vmem:[%s5775_s15 + $0x5d0] sm:$0xff] %v624_v58  ;;  %627 = vst [vmem:[%s5775_s15 + $0x5d8] sm:$0xff] %v626_v59  ;;  %v630_v61 = vld [vmem:[%s5770_s14 + $0x2028] sm:$0xff]  ;;  %v632_v62 = vld [vmem:[%s5770_s14 + $0x2030] sm:$0xff] }
  0x71   : > { %629 = vst [vmem:[%s5775_s15 + $0x5e0] sm:$0xff] %v628_v60  ;;  %v634_v63 = vld [vmem:[%s5770_s14 + $0x2038] sm:$0xff]  ;;  %631 = vst [vmem:[%s5775_s15 + $0x5e8] sm:$0xff] %v630_v61  ;;  %v636_v0 = vld [vmem:[%s5770_s14 + $0x2040] sm:$0xff] }
  0x72   : > { %633 = vst [vmem:[%s5775_s15 + $0x5f0] sm:$0xff] %v632_v62  ;;  %635 = vst [vmem:[%s5775_s15 + $0x5f8] sm:$0xff] %v634_v63  ;;  %v638_v1 = vld [vmem:[%s5770_s14 + $0x2048] sm:$0xff]  ;;  %v640_v2 = vld [vmem:[%s5770_s14 + $0x2050] sm:$0xff] }
  0x73   : > { %637 = vst [vmem:[%s5775_s15 + $0x600] sm:$0xff] %v636_v0  ;;  %639 = vst [vmem:[%s5775_s15 + $0x608] sm:$0xff] %v638_v1  ;;  %v642_v3 = vld [vmem:[%s5770_s14 + $0x2058] sm:$0xff] }
  0x74   : > { %641 = vst [vmem:[%s5775_s15 + $0x610] sm:$0xff] %v640_v2  ;;  %643 = vst [vmem:[%s5775_s15 + $0x618] sm:$0xff] %v642_v3 }
  0x75 PF: > { %p5019_p5 = scmp.ge.s32.totalorder %s5688_s26, 1  ;;  %p674_p6 = scmp.lt.s32.totalorder %s5688_s26, 7 }
  0x77   : > { %p675_p7 = pnand %p5019_p5, %p674_p6 }
  0x79   : > { %678 = sbr.rel (%p675_p7) target bundleno = 1584 (0x630), region = 67 }
  0x80   : > { %s681_s16 = sand.u32 1, %s5680_s24   ;;  %s722_s17 = smul.u32 28, %s5750_s27 }
  0x81   : > { %s5229_s18 = smul.u32 1568, %s681_s16  ;;  %p5022_p10 = scmp.ne.s32.totalorder %s5750_s27, 0 }
  0x82   : > { %p723_p8 = scmp.lt.s32.totalorder %s722_s17, 167  ;;  %s732_s19 = smul.u32 112, %s5750_s27  ;;  %vm745_vm0 = vcmask (!%p5022_p10), 785408   ;;  %v5690_v4 = vmov (!%p5022_p10), 0.0  }
  0x83   : > { %s6186_s11 = scalar_lea.vmem [#allocation3], %s5229_s18  ;;  %743 = sbr.rel (%p5022_p10) target bundleno = 138 (0x8a), region = 75  ;;  %744 = vst [vmem:[#allocation2] sm:$0xff] (!%p5022_p10), %v5690_v4  ;;  %747 = vst [vmem:[#allocation2 + $0x10] sm:$0xff] (!%p5022_p10), %v5690_v4 }
  0x84   : > { %s8864_s17 = smov (!%p723_p8, %s722_s17), 167  ;;  %p733_p9 = scmp.lt.s32.totalorder %s732_s19, 671  ;;  %749 = vst [vmem:[#allocation2 + $0x20] sm:$0xff] (!%p5022_p10), %v5690_v4  ;;  %751 = vst [vmem:[#allocation2 + $0x30] sm:$0xff] (!%p5022_p10), %v5690_v4 }
  0x85   : > { %s6174_s22 = scalar_lea.vmem %s8547_s2, %s8864_s17  ;;  %s6179_s26 = scalar_lea.vmem %s8548_s3, %s8864_s17  ;;  %753 = vst [vmem:[#allocation2 + $0x40] sm:$0xff] (!%p5022_p10), %v5690_v4  ;;  %755 = vst [vmem:[#allocation2 + $0x50] sm:$0xff] (!%p5022_p10), %v5690_v4 }
  0x86   : > { %s8866_s19 = smov (!%p733_p9, %s732_s19), 671  ;;  %746 = vst.msk [vmem:[#allocation2 + $0x8] sm:$0xff] (!%p5022_p10), %vm745_vm0, %v5690_v4  ;;  %748 = vst.msk [vmem:[#allocation2 + $0x18] sm:$0xff] (!%p5022_p10), %vm745_vm0, %v5690_v4 }
  0x87   : > { %s5071_s30 = sshll.u32 %s8866_s19, 4  ;;  %750 = vst.msk [vmem:[#allocation2 + $0x28] sm:$0xff] (!%p5022_p10), %vm745_vm0, %v5690_v4  ;;  %752 = vst.msk [vmem:[#allocation2 + $0x38] sm:$0xff] (!%p5022_p10), %vm745_vm0, %v5690_v4 }
  0x88   : > { %s6184_s10 = scalar_lea.vmem %s8549_s4, %s5071_s30  ;;  %754 = vst.msk [vmem:[#allocation2 + $0x48] sm:$0xff] (!%p5022_p10), %vm745_vm0, %v5690_v4  ;;  %756 = vst.msk [vmem:[#allocation2 + $0x58] sm:$0xff] (!%p5022_p10), %vm745_vm0, %v5690_v4 }
  0x8a PF: > { %v776_v5 = vld [vmem:[%s6186_s11 + $0x8] sm:$0xff]  ;;  %v778_v6 = vld [vmem:[%s6186_s11 + $0x18] sm:$0xff]  ;;  %v775_v7 = vld [vmem:[%s6186_s11] sm:$0xff]  ;;  %vm1363_vm1 = vcmask 785408   ;;  %p5065_p11 = scmp.ne.s32.totalorder %s5750_s27, 5 }
  0x8b   : > { %v972_v8 = vunpack.c.l.s8.bf16 %v776_v5  ;;  %v1000_v9 = vunpack.c.h.s8.bf16 %v776_v5  ;;  %v974_v10 = vunpack.c.l.s8.bf16 %v778_v6  ;;  %v1002_v11 = vunpack.c.h.s8.bf16 %v778_v6  ;;  %v777_v12 = vld [vmem:[%s6186_s11 + $0x10] sm:$0xff]  ;;  %v804_v15 = vld [vmem:[%s6186_s11 + $0xe8] sm:$0xff]  ;;  %v806_v16 = vld [vmem:[%s6186_s11 + $0xf8] sm:$0xff] }
  0x8c   : > { %v971_v13 = vunpack.c.l.s8.bf16 %v775_v7  ;;  %v973_v14 = vunpack.c.l.s8.bf16 %v777_v12  ;;  %v999_v17 = vunpack.c.h.s8.bf16 %v775_v7  ;;  %v1001_v18 = vunpack.c.h.s8.bf16 %v777_v12  ;;  %v803_v21 = vld [vmem:[%s6186_s11 + $0xe0] sm:$0xff]  ;;  %v805_v22 = vld [vmem:[%s6186_s11 + $0xf0] sm:$0xff]  ;;  %v832_v27 = vld [vmem:[%s6186_s11 + $0x1c8] sm:$0xff] }
  0x8d   : > { %1373 = vmatprep.subr.bf16.mxu0 %v972_v8  ;;  %1436 = vmatprep.subr.bf16.mxu1 %v974_v10  ;;  %v1028_v19 = vunpack.c.l.s8.bf16 %v804_v15  ;;  %v1030_v20 = vunpack.c.l.s8.bf16 %v806_v16  ;;  %v1027_v23 = vunpack.c.l.s8.bf16 %v803_v21  ;;  %v1029_v24 = vunpack.c.l.s8.bf16 %v805_v22  ;;  %v834_v28 = vld [vmem:[%s6186_s11 + $0x1d8] sm:$0xff]  ;;  %v758_v31 = vld [vmem:[%s8545_s0 + $0x8] sm:$0xff]  ;;  %v831_v35 = vld [vmem:[%s6186_s11 + $0x1c0] sm:$0xff] }
  0x8e   : > { %1374 = vmatpush1.bf16.msra.mxu0 %v971_v13  ;;  %1437 = vmatpush1.bf16.msra.mxu1 %v973_v14  ;;  %v1056_v25 = vunpack.c.h.s8.bf16 %v804_v15  ;;  %v1058_v26 = vunpack.c.h.s8.bf16 %v806_v16  ;;  %v1055_v29 = vunpack.c.h.s8.bf16 %v803_v21  ;;  %v1057_v30 = vunpack.c.h.s8.bf16 %v805_v22  ;;  %v760_v32 = vld [vmem:[%s8545_s0 + $0x18] sm:$0xff]  ;;  %v833_v36 = vld [vmem:[%s6186_s11 + $0x1d0] sm:$0xff]  ;;  %v860_v42 = vld [vmem:[%s6186_s11 + $0x2a8] sm:$0xff] }
  0x8f   : > { %1375 = vmatprep.subr.bf16.mxu0 %v1000_v9  ;;  %1438 = vmatprep.subr.bf16.mxu1 %v1002_v11  ;;  %v1084_v33 = vunpack.c.l.s8.bf16 %v832_v27  ;;  %v1086_v34 = vunpack.c.l.s8.bf16 %v834_v28  ;;  %v6207_v37 = vpack.c.bf16 %v760_v32, %v758_v31  ;;  %v1083_v38 = vunpack.c.l.s8.bf16 %v831_v35  ;;  %v862_v43 = vld [vmem:[%s6186_s11 + $0x2b8] sm:$0xff]  ;;  %v859_v48 = vld [vmem:[%s6186_s11 + $0x2a0] sm:$0xff]  ;;  %v861_v49 = vld [vmem:[%s6186_s11 + $0x2b0] sm:$0xff] }
  0x90   : > { %v1085_v39 = vunpack.c.l.s8.bf16 %v833_v36  ;;  %v1112_v40 = vunpack.c.h.s8.bf16 %v832_v27  ;;  %v1114_v41 = vunpack.c.h.s8.bf16 %v834_v28  ;;  %v1111_v44 = vunpack.c.h.s8.bf16 %v831_v35  ;;  %v888_v54 = vld [vmem:[%s6186_s11 + $0x388] sm:$0xff]  ;;  %v890_v55 = vld [vmem:[%s6186_s11 + $0x398] sm:$0xff]  ;;  %v887_v60 = vld [vmem:[%s6186_s11 + $0x380] sm:$0xff] }
  0x91   : > { %5023 = vmatprep.mubr.msk.bf16.mxu0 %vm1363_vm1, %v6207_v37  ;;  %5026 = vmatprep.mubr.msk.bf16.mxu1 %vm1363_vm1, %v6207_v37  ;;  %v1113_v45 = vunpack.c.h.s8.bf16 %v833_v36  ;;  %v1140_v46 = vunpack.c.l.s8.bf16 %v860_v42  ;;  %v1142_v47 = vunpack.c.l.s8.bf16 %v862_v43  ;;  %v1139_v50 = vunpack.c.l.s8.bf16 %v859_v48  ;;  %v889_v61 = vld [vmem:[%s6186_s11 + $0x390] sm:$0xff]  ;;  %v916_v2 = vld [vmem:[%s6186_s11 + $0x468] sm:$0xff]  ;;  %v918_v3 = vld [vmem:[%s6186_s11 + $0x478] sm:$0xff] }
  0x92   : > { %1376 = vmatpush1.bf16.msra.mxu0 %v999_v17  ;;  %1439 = vmatpush1.bf16.msra.mxu1 %v1001_v18  ;;  %v1141_v51 = vunpack.c.l.s8.bf16 %v861_v49  ;;  %v1168_v52 = vunpack.c.h.s8.bf16 %v860_v42  ;;  %v1170_v53 = vunpack.c.h.s8.bf16 %v862_v43  ;;  %v1167_v56 = vunpack.c.h.s8.bf16 %v859_v48  ;;  %v915_v8 = vld [vmem:[%s6186_s11 + $0x460] sm:$0xff]  ;;  %v917_v9 = vld [vmem:[%s6186_s11 + $0x470] sm:$0xff]  ;;  %v944_v14 = vld [vmem:[%s6186_s11 + $0x548] sm:$0xff] }
  0x93   : > { %1377 = vmatprep.subr.bf16.mxu0 %v1028_v19  ;;  %1440 = vmatprep.subr.bf16.mxu1 %v1030_v20  ;;  %v1169_v57 = vunpack.c.h.s8.bf16 %v861_v49  ;;  %v1196_v58 = vunpack.c.l.s8.bf16 %v888_v54  ;;  %v1198_v59 = vunpack.c.l.s8.bf16 %v890_v55  ;;  %v1195_v62 = vunpack.c.l.s8.bf16 %v887_v60  ;;  %v946_v15 = vld [vmem:[%s6186_s11 + $0x558] sm:$0xff]  ;;  %v943_v20 = vld [vmem:[%s6186_s11 + $0x540] sm:$0xff]  ;;  %v945_v21 = vld [vmem:[%s6186_s11 + $0x550] sm:$0xff] }
  0x94   : > { %v1197_v63 = vunpack.c.l.s8.bf16 %v889_v61  ;;  %v1224_v0 = vunpack.c.h.s8.bf16 %v888_v54  ;;  %v1226_v1 = vunpack.c.h.s8.bf16 %v890_v55  ;;  %v1223_v4 = vunpack.c.h.s8.bf16 %v887_v60  ;;  %v782_v27 = vld [vmem:[%s6186_s11 + $0x38] sm:$0xff]  ;;  %v759_v31 = vld [vmem:[%s8545_s0 + $0x10] sm:$0xff]  ;;  %v761_v49 = vld [vmem:[%s8545_s0 + $0x20] sm:$0xff] }
  0x95   : > { %v1225_v5 = vunpack.c.h.s8.bf16 %v889_v61  ;;  %v1252_v6 = vunpack.c.l.s8.bf16 %v916_v2  ;;  %v1254_v7 = vunpack.c.l.s8.bf16 %v918_v3  ;;  %v1251_v10 = vunpack.c.l.s8.bf16 %v915_v8  ;;  %v781_v35 = vld [vmem:[%s6186_s11 + $0x30] sm:$0xff] }
  0x96   : > { %1378 = vmatpush1.bf16.msra.mxu0 %v1027_v23  ;;  %1441 = vmatpush1.bf16.msra.mxu1 %v1029_v24  ;;  %v1253_v11 = vunpack.c.l.s8.bf16 %v917_v9  ;;  %v1280_v12 = vunpack.c.h.s8.bf16 %v916_v2  ;;  %v1282_v13 = vunpack.c.h.s8.bf16 %v918_v3  ;;  %v1279_v16 = vunpack.c.h.s8.bf16 %v915_v8  ;;  %v809_v54 = vld [vmem:[%s6186_s11 + $0x110] sm:$0xff]  ;;  %v765_v3 = vld [vmem:[%s8545_s0 + $0x40] sm:$0xff] }
  0x97   : > { %1379 = vmatprep.subr.bf16.mxu0 %v1056_v25  ;;  %1442 = vmatprep.subr.bf16.mxu1 %v1058_v26  ;;  %v1281_v17 = vunpack.c.h.s8.bf16 %v917_v9  ;;  %v1308_v18 = vunpack.c.l.s8.bf16 %v944_v14  ;;  %v1310_v19 = vunpack.c.l.s8.bf16 %v946_v15  ;;  %v1307_v22 = vunpack.c.l.s8.bf16 %v943_v20  ;;  %v780_v26 = vld [vmem:[%s6186_s11 + $0x28] sm:$0xff]  ;;  %v837_v8 = vld [vmem:[%s6186_s11 + $0x1f0] sm:$0xff] }
  0x98   : > { %v1309_v23 = vunpack.c.l.s8.bf16 %v945_v21  ;;  %v1336_v24 = vunpack.c.h.s8.bf16 %v944_v14  ;;  %v1338_v25 = vunpack.c.h.s8.bf16 %v946_v15  ;;  %v1335_v28 = vunpack.c.h.s8.bf16 %v943_v20  ;;  %v864_v14 = vld [vmem:[%s6186_s11 + $0x2c8] sm:$0xff]  ;;  %v866_v15 = vld [vmem:[%s6186_s11 + $0x2d8] sm:$0xff]  ;;  %v863_v20 = vld [vmem:[%s6186_s11 + $0x2c0] sm:$0xff] }
  0x99   : > { %v976_v32 = vunpack.c.l.s8.bf16 %v780_v26  ;;  %v1004_v42 = vunpack.c.h.s8.bf16 %v780_v26  ;;  %v1006_v43 = vunpack.c.h.s8.bf16 %v782_v27  ;;  %v1005_v48 = vunpack.c.h.s8.bf16 %v781_v35  ;;  %v892_v26 = vld [vmem:[%s6186_s11 + $0x3a8] sm:$0xff] }
  0x9a   : > { %1380 = vmatpush1.bf16.msra.mxu0 %v1055_v29  ;;  %1443 = vmatpush1.bf16.msra.mxu1 %v1057_v30  ;;  %v1337_v29 = vunpack.c.h.s8.bf16 %v945_v21  ;;  %v757_v30 = vld [vmem:[%s8545_s0] sm:$0xff]  ;;  %v1061_v2 = vunpack.c.h.s8.bf16 %v809_v54  ;;  %v865_v21 = vld [vmem:[%s6186_s11 + $0x2d0] sm:$0xff] }
  0x9b   : > { %1381 = vmatprep.subr.bf16.mxu0 %v1084_v33  ;;  %1444 = vmatprep.subr.bf16.mxu1 %v1086_v34  ;;  %v978_v33 = vunpack.c.l.s8.bf16 %v782_v27  ;;  %v779_v34 = vld [vmem:[%s6186_s11 + $0x20] sm:$0xff]  ;;  %v6239_v36 = vpack.c.bf16 %v759_v31, %v757_v30  ;;  %v894_v27 = vld [vmem:[%s6186_s11 + $0x3b8] sm:$0xff]  ;;  %v1200_v30 = vunpack.c.l.s8.bf16 %v892_v26 }
  0x9c   : > { %v1202_v31 = vunpack.c.l.s8.bf16 %v894_v27 }
  0x9e   : > { %1382 = vmatpush1.bf16.msra.mxu0 %v1083_v38  ;;  %1445 = vmatpush1.bf16.msra.mxu1 %v1085_v39  ;;  %v762_v38 = vld [vmem:[%s8545_s0 + $0x28] sm:$0xff]  ;;  %v764_v39 = vld [vmem:[%s8545_s0 + $0x38] sm:$0xff] }
  0x9f   : > { %1383 = vmatprep.subr.bf16.mxu0 %v1112_v40  ;;  %1446 = vmatprep.subr.bf16.mxu1 %v1114_v41  ;;  %v975_v40 = vunpack.c.l.s8.bf16 %v779_v34  ;;  %v977_v41 = vunpack.c.l.s8.bf16 %v781_v35 }
  0xa2   : > { %1384 = vmatpush1.bf16.msra.mxu0 %v1111_v44  ;;  %1447 = vmatpush1.bf16.msra.mxu1 %v1113_v45  ;;  %v808_v44 = vld [vmem:[%s6186_s11 + $0x108] sm:$0xff]  ;;  %v810_v45 = vld [vmem:[%s6186_s11 + $0x118] sm:$0xff] }
  0xa3   : > { %1385 = vmatprep.subr.bf16.mxu0 %v1140_v46  ;;  %1448 = vmatprep.subr.bf16.mxu1 %v1142_v47  ;;  %v6249_v46 = vpack.c.bf16 %v764_v39, %v762_v38  ;;  %v1003_v47 = vunpack.c.h.s8.bf16 %v779_v34  ;;  %v1060_v60 = vunpack.c.h.s8.bf16 %v808_v44  ;;  %v1062_v61 = vunpack.c.h.s8.bf16 %v810_v45 }
  0xa4   : > { %v1228_v38 = vunpack.c.h.s8.bf16 %v892_v26  ;;  %v1230_v39 = vunpack.c.h.s8.bf16 %v894_v27 }
  0xa6   : > { %1386 = vmatpush1.bf16.msra.mxu0 %v1139_v50  ;;  %1449 = vmatpush1.bf16.msra.mxu1 %v1141_v51  ;;  %v763_v50 = vld [vmem:[%s8545_s0 + $0x30] sm:$0xff]  ;;  %v1032_v51 = vunpack.c.l.s8.bf16 %v808_v44 }
  0xa7   : > { %1387 = vmatprep.subr.bf16.mxu0 %v1168_v52  ;;  %1450 = vmatprep.subr.bf16.mxu1 %v1170_v53  ;;  %v1034_v52 = vunpack.c.l.s8.bf16 %v810_v45  ;;  %v807_v53 = vld [vmem:[%s6186_s11 + $0x100] sm:$0xff]  ;;  %v6265_v55 = vpack.c.bf16 %v763_v50, %v761_v49 }
  0xaa   : > { %1388 = vmatpush1.bf16.msra.mxu0 %v1167_v56  ;;  %1451 = vmatpush1.bf16.msra.mxu1 %v1169_v57  ;;  %v766_v56 = vld [vmem:[%s8545_s0 + $0x48] sm:$0xff]  ;;  %v768_v57 = vld [vmem:[%s8545_s0 + $0x58] sm:$0xff] }
  0xab   : > { %1389 = vmatprep.subr.bf16.mxu0 %v1196_v58  ;;  %1452 = vmatprep.subr.bf16.mxu1 %v1198_v59  ;;  %v1031_v58 = vunpack.c.l.s8.bf16 %v807_v53  ;;  %v1033_v59 = vunpack.c.l.s8.bf16 %v809_v54  ;;  %v950_v54 = vld [vmem:[%s6186_s11 + $0x578] sm:$0xff] }
  0xae   : > { %1390 = vmatpush1.bf16.msra.mxu0 %v1195_v62  ;;  %1453 = vmatpush1.bf16.msra.mxu1 %v1197_v63  ;;  %v836_v62 = vld [vmem:[%s6186_s11 + $0x1e8] sm:$0xff]  ;;  %v838_v63 = vld [vmem:[%s6186_s11 + $0x1f8] sm:$0xff] }
  0xaf   : > { %1391 = vmatprep.subr.bf16.mxu0 %v1224_v0  ;;  %1454 = vmatprep.subr.bf16.mxu1 %v1226_v1  ;;  %v6275_v0 = vpack.c.bf16 %v768_v57, %v766_v56  ;;  %v1059_v1 = vunpack.c.h.s8.bf16 %v807_v53  ;;  %v948_v53 = vld [vmem:[%s6186_s11 + $0x568] sm:$0xff] }
  0xb2   : > { %1392 = vmatpush1.bf16.msra.mxu0 %v1223_v4  ;;  %1455 = vmatpush1.bf16.msra.mxu1 %v1225_v5  ;;  %v767_v4 = vld [vmem:[%s8545_s0 + $0x50] sm:$0xff]  ;;  %v1088_v5 = vunpack.c.l.s8.bf16 %v836_v62 }
  0xb3   : > { %1393 = vmatprep.subr.bf16.mxu0 %v1252_v6  ;;  %1456 = vmatprep.subr.bf16.mxu1 %v1254_v7  ;;  %v1090_v6 = vunpack.c.l.s8.bf16 %v838_v63  ;;  %v835_v7 = vld [vmem:[%s6186_s11 + $0x1e0] sm:$0xff]  ;;  %v6291_v9 = vpack.c.bf16 %v767_v4, %v765_v3  ;;  %v784_v3 = vld [vmem:[%s6186_s11 + $0x48] sm:$0xff]  ;;  %v786_v4 = vld [vmem:[%s6186_s11 + $0x58] sm:$0xff] }
  0xb6   : > { %1394 = vmatpush1.bf16.msra.mxu0 %v1251_v10  ;;  %1457 = vmatpush1.bf16.msra.mxu1 %v1253_v11  ;;  %v1087_v10 = vunpack.c.l.s8.bf16 %v835_v7  ;;  %v1089_v11 = vunpack.c.l.s8.bf16 %v837_v8 }
  0xb7   : > { %1395 = vmatprep.subr.bf16.mxu0 %v1280_v12  ;;  %1458 = vmatprep.subr.bf16.mxu1 %v1282_v13  ;;  %v1116_v12 = vunpack.c.h.s8.bf16 %v836_v62  ;;  %v1118_v13 = vunpack.c.h.s8.bf16 %v838_v63 }
  0xba   : > { %1396 = vmatpush1.bf16.msra.mxu0 %v1279_v16  ;;  %1459 = vmatpush1.bf16.msra.mxu1 %v1281_v17  ;;  %v1115_v16 = vunpack.c.h.s8.bf16 %v835_v7  ;;  %v1117_v17 = vunpack.c.h.s8.bf16 %v837_v8  ;;  %v980_v7 = vunpack.c.l.s8.bf16 %v784_v3  ;;  %v982_v8 = vunpack.c.l.s8.bf16 %v786_v4 }
  0xbb   : > { %1397 = vmatprep.subr.bf16.mxu0 %v1308_v18  ;;  %1460 = vmatprep.subr.bf16.mxu1 %v1310_v19  ;;  %v1144_v18 = vunpack.c.l.s8.bf16 %v864_v14  ;;  %v1146_v19 = vunpack.c.l.s8.bf16 %v866_v15 }
  0xbe   : > { %1398 = vmatpush1.bf16.msra.mxu0 %v1307_v22  ;;  %1461 = vmatpush1.bf16.msra.mxu1 %v1309_v23  ;;  %v1143_v22 = vunpack.c.l.s8.bf16 %v863_v20  ;;  %v1145_v23 = vunpack.c.l.s8.bf16 %v865_v21 }
  0xbf   : > { %1399 = vmatprep.subr.bf16.mxu0 %v1336_v24  ;;  %1462 = vmatprep.subr.bf16.mxu1 %v1338_v25  ;;  %v1172_v24 = vunpack.c.h.s8.bf16 %v864_v14  ;;  %v1174_v25 = vunpack.c.h.s8.bf16 %v866_v15  ;;  %v1008_v14 = vunpack.c.h.s8.bf16 %v784_v3  ;;  %v1010_v15 = vunpack.c.h.s8.bf16 %v786_v4 }
  0xc2   : > { %1400 = vmatpush1.bf16.msra.mxu0 %v1335_v28  ;;  %1463 = vmatpush1.bf16.msra.mxu1 %v1337_v29  ;;  %v1171_v28 = vunpack.c.h.s8.bf16 %v863_v20  ;;  %v1173_v29 = vunpack.c.h.s8.bf16 %v865_v21 }
  0xc3   : > { %1499 = vmatprep.subr.bf16.mxu0 %v976_v32  ;;  %1562 = vmatprep.subr.bf16.mxu1 %v978_v33  ;;  %v891_v32 = vld [vmem:[%s6186_s11 + $0x3a0] sm:$0xff]  ;;  %v893_v33 = vld [vmem:[%s6186_s11 + $0x3b0] sm:$0xff] }
  0xc4   : > { %v1199_v34 = vunpack.c.l.s8.bf16 %v891_v32  ;;  %v1201_v35 = vunpack.c.l.s8.bf16 %v893_v33 }
  0xc5   : > { %1406 = vmatmul.mubr.bf16.vlgmr.msra.gmra.mrb[0].mxu0 %v6239_v36  ;;  %1469 = vmatmul.mubr.bf16.vlgmr.msra.gmra.mrb[0].mxu1 %v6239_v36 }
  0xc6   : > { %1500 = vmatpush1.bf16.msra.mxu0 %v975_v40  ;;  %1563 = vmatpush1.bf16.msra.mxu1 %v977_v41  ;;  %v920_v40 = vld [vmem:[%s6186_s11 + $0x488] sm:$0xff]  ;;  %v922_v41 = vld [vmem:[%s6186_s11 + $0x498] sm:$0xff] }
  0xc7   : > { %1501 = vmatprep.subr.bf16.mxu0 %v1004_v42  ;;  %1564 = vmatprep.subr.bf16.mxu1 %v1006_v43  ;;  %v1227_v42 = vunpack.c.h.s8.bf16 %v891_v32  ;;  %v1229_v43 = vunpack.c.h.s8.bf16 %v893_v33  ;;  %v1256_v44 = vunpack.c.l.s8.bf16 %v920_v40  ;;  %v1258_v45 = vunpack.c.l.s8.bf16 %v922_v41 }
  0xc8   : > { %5024 = vmatprep.mubr.msk.bf16.mxu0 %vm1363_vm1, %v6249_v46  ;;  %5027 = vmatprep.mubr.msk.bf16.mxu1 %vm1363_vm1, %v6249_v46 }
  0xca   : > { %1502 = vmatpush1.bf16.msra.mxu0 %v1003_v47  ;;  %1565 = vmatpush1.bf16.msra.mxu1 %v1005_v48  ;;  %v919_v47 = vld [vmem:[%s6186_s11 + $0x480] sm:$0xff]  ;;  %v921_v48 = vld [vmem:[%s6186_s11 + $0x490] sm:$0xff] }
  0xcb   : > { %1503 = vmatprep.subr.bf16.mxu0 %v1032_v51  ;;  %1566 = vmatprep.subr.bf16.mxu1 %v1034_v52  ;;  %v1255_v49 = vunpack.c.l.s8.bf16 %v919_v47  ;;  %v1257_v50 = vunpack.c.l.s8.bf16 %v921_v48  ;;  %v1284_v51 = vunpack.c.h.s8.bf16 %v920_v40  ;;  %v1286_v52 = vunpack.c.h.s8.bf16 %v922_v41 }
  0xcc   : > { %v1283_v56 = vunpack.c.h.s8.bf16 %v919_v47  ;;  %v1285_v57 = vunpack.c.h.s8.bf16 %v921_v48 }
  0xcd   : > { %1416 = vmatmul.mubr.bf16.gmra.mrb[4].mxu0 %v6265_v55  ;;  %1479 = vmatmul.mubr.bf16.gmra.mrb[4].mxu1 %v6265_v55 }
  0xce   : > { %1504 = vmatpush1.bf16.msra.mxu0 %v1031_v58  ;;  %1567 = vmatpush1.bf16.msra.mxu1 %v1033_v59  ;;  %v1312_v58 = vunpack.c.l.s8.bf16 %v948_v53  ;;  %v1314_v59 = vunpack.c.l.s8.bf16 %v950_v54 }
  0xcf   : > { %1505 = vmatprep.subr.bf16.mxu0 %v1060_v60  ;;  %1568 = vmatprep.subr.bf16.mxu1 %v1062_v61  ;;  %v947_v60 = vld [vmem:[%s6186_s11 + $0x560] sm:$0xff]  ;;  %v949_v61 = vld [vmem:[%s6186_s11 + $0x570] sm:$0xff] }
  0xd0   : > { %5025 = vmatprep.mubr.msk.bf16.mxu0 %vm1363_vm1, %v6275_v0  ;;  %5028 = vmatprep.mubr.msk.bf16.mxu1 %vm1363_vm1, %v6275_v0  ;;  %v1311_v62 = vunpack.c.l.s8.bf16 %v947_v60  ;;  %v1313_v63 = vunpack.c.l.s8.bf16 %v949_v61 }
  0xd2   : > { %1506 = vmatpush1.bf16.msra.mxu0 %v1059_v1  ;;  %1569 = vmatpush1.bf16.msra.mxu1 %v1061_v2  ;;  %v1340_v1 = vunpack.c.h.s8.bf16 %v948_v53  ;;  %v1342_v2 = vunpack.c.h.s8.bf16 %v950_v54 }
  0xd3   : > { %1507 = vmatprep.subr.bf16.mxu0 %v1088_v5  ;;  %1570 = vmatprep.subr.bf16.mxu1 %v1090_v6  ;;  %v1339_v5 = vunpack.c.h.s8.bf16 %v947_v60  ;;  %v1341_v6 = vunpack.c.h.s8.bf16 %v949_v61 }
  0xd5   : > { %1426 = vmatmul.mubr.bf16.gmra.mrb[8].mxu0 %v6291_v9  ;;  %1489 = vmatmul.mubr.bf16.gmra.mrb[8].mxu1 %v6291_v9 }
  0xd6   : > { %1508 = vmatpush1.bf16.msra.mxu0 %v1087_v10  ;;  %1571 = vmatpush1.bf16.msra.mxu1 %v1089_v11  ;;  %v783_v10 = vld [vmem:[%s6186_s11 + $0x40] sm:$0xff]  ;;  %v785_v11 = vld [vmem:[%s6186_s11 + $0x50] sm:$0xff] }
  0xd7   : > { %1509 = vmatprep.subr.bf16.mxu0 %v1116_v12  ;;  %1572 = vmatprep.subr.bf16.mxu1 %v1118_v13  ;;  %v979_v12 = vunpack.c.l.s8.bf16 %v783_v10  ;;  %v981_v13 = vunpack.c.l.s8.bf16 %v785_v11 }
  0xd8   : > { %5029 = vmatprep.mubr.msk.bf16.mxu0 %vm1363_vm1, %v6207_v37  ;;  %5032 = vmatprep.mubr.msk.bf16.mxu1 %vm1363_vm1, %v6207_v37 }
  0xda   : > { %1510 = vmatpush1.bf16.msra.mxu0 %v1115_v16  ;;  %1573 = vmatpush1.bf16.msra.mxu1 %v1117_v17  ;;  %v812_v16 = vld [vmem:[%s6186_s11 + $0x128] sm:$0xff]  ;;  %v814_v17 = vld [vmem:[%s6186_s11 + $0x138] sm:$0xff] }
  0xdb   : > { %1511 = vmatprep.subr.bf16.mxu0 %v1144_v18  ;;  %1574 = vmatprep.subr.bf16.mxu1 %v1146_v19  ;;  %v1007_v18 = vunpack.c.h.s8.bf16 %v783_v10  ;;  %v1009_v19 = vunpack.c.h.s8.bf16 %v785_v11  ;;  %v1036_v20 = vunpack.c.l.s8.bf16 %v812_v16  ;;  %v1038_v21 = vunpack.c.l.s8.bf16 %v814_v17 }
  0xdc   : > { %v1064_v26 = vunpack.c.h.s8.bf16 %v812_v16  ;;  %v1066_v27 = vunpack.c.h.s8.bf16 %v814_v17 }
  0xde   : > { %1512 = vmatpush1.bf16.msra.mxu0 %v1143_v22  ;;  %1575 = vmatpush1.bf16.msra.mxu1 %v1145_v23  ;;  %v811_v22 = vld [vmem:[%s6186_s11 + $0x120] sm:$0xff]  ;;  %v813_v23 = vld [vmem:[%s6186_s11 + $0x130] sm:$0xff] }
  0xdf   : > { %1513 = vmatprep.subr.bf16.mxu0 %v1172_v24  ;;  %1576 = vmatprep.subr.bf16.mxu1 %v1174_v25  ;;  %v1035_v24 = vunpack.c.l.s8.bf16 %v811_v22  ;;  %v1037_v25 = vunpack.c.l.s8.bf16 %v813_v23 }
  0xe2   : > { %1514 = vmatpush1.bf16.msra.mxu0 %v1171_v28  ;;  %1577 = vmatpush1.bf16.msra.mxu1 %v1173_v29  ;;  %v840_v28 = vld [vmem:[%s6186_s11 + $0x208] sm:$0xff]  ;;  %v842_v29 = vld [vmem:[%s6186_s11 + $0x218] sm:$0xff] }
  0xe3   : > { %1515 = vmatprep.subr.bf16.mxu0 %v1200_v30  ;;  %1578 = vmatprep.subr.bf16.mxu1 %v1202_v31  ;;  %v1063_v30 = vunpack.c.h.s8.bf16 %v811_v22  ;;  %v1065_v31 = vunpack.c.h.s8.bf16 %v813_v23  ;;  %v1092_v32 = vunpack.c.l.s8.bf16 %v840_v28  ;;  %v1094_v33 = vunpack.c.l.s8.bf16 %v842_v29 }
  0xe4   : > { %v1120_v40 = vunpack.c.h.s8.bf16 %v840_v28  ;;  %v1122_v41 = vunpack.c.h.s8.bf16 %v842_v29 }
  0xe6   : > { %1516 = vmatpush1.bf16.msra.mxu0 %v1199_v34  ;;  %1579 = vmatpush1.bf16.msra.mxu1 %v1201_v35  ;;  %v839_v34 = vld [vmem:[%s6186_s11 + $0x200] sm:$0xff]  ;;  %v841_v35 = vld [vmem:[%s6186_s11 + $0x210] sm:$0xff] }
  0xe7   : > { %1517 = vmatprep.subr.bf16.mxu0 %v1228_v38  ;;  %1580 = vmatprep.subr.bf16.mxu1 %v1230_v39  ;;  %v1091_v38 = vunpack.c.l.s8.bf16 %v839_v34  ;;  %v1093_v39 = vunpack.c.l.s8.bf16 %v841_v35 }
  0xea   : > { %1518 = vmatpush1.bf16.msra.mxu0 %v1227_v42  ;;  %1581 = vmatpush1.bf16.msra.mxu1 %v1229_v43  ;;  %v868_v42 = vld [vmem:[%s6186_s11 + $0x2e8] sm:$0xff]  ;;  %v870_v43 = vld [vmem:[%s6186_s11 + $0x2f8] sm:$0xff] }
  0xeb   : > { %1519 = vmatprep.subr.bf16.mxu0 %v1256_v44  ;;  %1582 = vmatprep.subr.bf16.mxu1 %v1258_v45  ;;  %v1119_v44 = vunpack.c.h.s8.bf16 %v839_v34  ;;  %v1121_v45 = vunpack.c.h.s8.bf16 %v841_v35  ;;  %v1148_v47 = vunpack.c.l.s8.bf16 %v868_v42  ;;  %v1150_v48 = vunpack.c.l.s8.bf16 %v870_v43 }
  0xec   : > { %v1176_v53 = vunpack.c.h.s8.bf16 %v868_v42  ;;  %v1178_v54 = vunpack.c.h.s8.bf16 %v870_v43 }
  0xee   : > { %1520 = vmatpush1.bf16.msra.mxu0 %v1255_v49  ;;  %1583 = vmatpush1.bf16.msra.mxu1 %v1257_v50  ;;  %v867_v49 = vld [vmem:[%s6186_s11 + $0x2e0] sm:$0xff]  ;;  %v869_v50 = vld [vmem:[%s6186_s11 + $0x2f0] sm:$0xff] }
  0xef   : > { %1521 = vmatprep.subr.bf16.mxu0 %v1284_v51  ;;  %1584 = vmatprep.subr.bf16.mxu1 %v1286_v52  ;;  %v1147_v51 = vunpack.c.l.s8.bf16 %v867_v49  ;;  %v1149_v52 = vunpack.c.l.s8.bf16 %v869_v50 }
  0xf2   : > { %1522 = vmatpush1.bf16.msra.mxu0 %v1283_v56  ;;  %1585 = vmatpush1.bf16.msra.mxu1 %v1285_v57  ;;  %v896_v56 = vld [vmem:[%s6186_s11 + $0x3c8] sm:$0xff]  ;;  %v898_v57 = vld [vmem:[%s6186_s11 + $0x3d8] sm:$0xff] }
  0xf3   : > { %1523 = vmatprep.subr.bf16.mxu0 %v1312_v58  ;;  %1586 = vmatprep.subr.bf16.mxu1 %v1314_v59  ;;  %v1175_v58 = vunpack.c.h.s8.bf16 %v867_v49  ;;  %v1177_v59 = vunpack.c.h.s8.bf16 %v869_v50  ;;  %v1204_v60 = vunpack.c.l.s8.bf16 %v896_v56  ;;  %v1206_v61 = vunpack.c.l.s8.bf16 %v898_v57 }
  0xf4   : > { %v1232_v3 = vunpack.c.h.s8.bf16 %v896_v56  ;;  %v1234_v4 = vunpack.c.h.s8.bf16 %v898_v57 }
  0xf6   : > { %1524 = vmatpush1.bf16.msra.mxu0 %v1311_v62  ;;  %1587 = vmatpush1.bf16.msra.mxu1 %v1313_v63  ;;  %v895_v62 = vld [vmem:[%s6186_s11 + $0x3c0] sm:$0xff]  ;;  %v897_v63 = vld [vmem:[%s6186_s11 + $0x3d0] sm:$0xff] }
  0xf7   : > { %1525 = vmatprep.subr.bf16.mxu0 %v1340_v1  ;;  %1588 = vmatprep.subr.bf16.mxu1 %v1342_v2  ;;  %v1203_v1 = vunpack.c.l.s8.bf16 %v895_v62  ;;  %v1205_v2 = vunpack.c.l.s8.bf16 %v897_v63 }
  0xfa   : > { %1526 = vmatpush1.bf16.msra.mxu0 %v1339_v5  ;;  %1589 = vmatpush1.bf16.msra.mxu1 %v1341_v6  ;;  %v924_v5 = vld [vmem:[%s6186_s11 + $0x4a8] sm:$0xff]  ;;  %v926_v6 = vld [vmem:[%s6186_s11 + $0x4b8] sm:$0xff] }
  0xfb   : > { %1625 = vmatprep.subr.bf16.mxu0 %v980_v7  ;;  %1688 = vmatprep.subr.bf16.mxu1 %v982_v8  ;;  %v1231_v7 = vunpack.c.h.s8.bf16 %v895_v62  ;;  %v1233_v8 = vunpack.c.h.s8.bf16 %v897_v63  ;;  %v1260_v10 = vunpack.c.l.s8.bf16 %v924_v5  ;;  %v1262_v11 = vunpack.c.l.s8.bf16 %v926_v6 }
  0xfc   : > { %v1288_v16 = vunpack.c.h.s8.bf16 %v924_v5  ;;  %v1290_v17 = vunpack.c.h.s8.bf16 %v926_v6 }
  0xfd   : > { %1532 = vmatmul.mubr.bf16.vlgmr.msra.gmra.mrb[12].mxu0 %v6239_v36  ;;  %1595 = vmatmul.mubr.bf16.vlgmr.msra.gmra.mrb[12].mxu1 %v6239_v36 }
  0xfe   : > { %1626 = vmatpush1.bf16.msra.mxu0 %v979_v12  ;;  %1689 = vmatpush1.bf16.msra.mxu1 %v981_v13  ;;  %v923_v12 = vld [vmem:[%s6186_s11 + $0x4a0] sm:$0xff]  ;;  %v925_v13 = vld [vmem:[%s6186_s11 + $0x4b0] sm:$0xff] }
  0xff   : > { %1627 = vmatprep.subr.bf16.mxu0 %v1008_v14  ;;  %1690 = vmatprep.subr.bf16.mxu1 %v1010_v15  ;;  %v1259_v14 = vunpack.c.l.s8.bf16 %v923_v12  ;;  %v1261_v15 = vunpack.c.l.s8.bf16 %v925_v13 }
 0x100   : > { %5030 = vmatprep.mubr.msk.bf16.mxu0 %vm1363_vm1, %v6249_v46  ;;  %5033 = vmatprep.mubr.msk.bf16.mxu1 %vm1363_vm1, %v6249_v46 }
 0x102   : > { %1628 = vmatpush1.bf16.msra.mxu0 %v1007_v18  ;;  %1691 = vmatpush1.bf16.msra.mxu1 %v1009_v19  ;;  %v952_v18 = vld [vmem:[%s6186_s11 + $0x588] sm:$0xff]  ;;  %v954_v19 = vld [vmem:[%s6186_s11 + $0x598] sm:$0xff] }
 0x103   : > { %1629 = vmatprep.subr.bf16.mxu0 %v1036_v20  ;;  %1692 = vmatprep.subr.bf16.mxu1 %v1038_v21  ;;  %v1287_v20 = vunpack.c.h.s8.bf16 %v923_v12  ;;  %v1289_v21 = vunpack.c.h.s8.bf16 %v925_v13  ;;  %v1316_v22 = vunpack.c.l.s8.bf16 %v952_v18  ;;  %v1318_v23 = vunpack.c.l.s8.bf16 %v954_v19 }
 0x104   : > { %v1344_v28 = vunpack.c.h.s8.bf16 %v952_v18  ;;  %v1346_v29 = vunpack.c.h.s8.bf16 %v954_v19 }
 0x105   : > { %1542 = vmatmul.mubr.bf16.gmra.mrb[16].mxu0 %v6265_v55  ;;  %1605 = vmatmul.mubr.bf16.gmra.mrb[16].mxu1 %v6265_v55 }
 0x106   : > { %1630 = vmatpush1.bf16.msra.mxu0 %v1035_v24  ;;  %1693 = vmatpush1.bf16.msra.mxu1 %v1037_v25  ;;  %v951_v24 = vld [vmem:[%s6186_s11 + $0x580] sm:$0xff]  ;;  %v953_v25 = vld [vmem:[%s6186_s11 + $0x590] sm:$0xff] }
 0x107   : > { %1631 = vmatprep.subr.bf16.mxu0 %v1064_v26  ;;  %1694 = vmatprep.subr.bf16.mxu1 %v1066_v27  ;;  %v1315_v26 = vunpack.c.l.s8.bf16 %v951_v24  ;;  %v1317_v27 = vunpack.c.l.s8.bf16 %v953_v25 }
 0x108   : > { %5031 = vmatprep.mubr.msk.bf16.mxu0 %vm1363_vm1, %v6275_v0  ;;  %5034 = vmatprep.mubr.msk.bf16.mxu1 %vm1363_vm1, %v6275_v0 }
 0x10a   : > { %1632 = vmatpush1.bf16.msra.mxu0 %v1063_v30  ;;  %1695 = vmatpush1.bf16.msra.mxu1 %v1065_v31  ;;  %v788_v30 = vld [vmem:[%s6186_s11 + $0x68] sm:$0xff]  ;;  %v790_v31 = vld [vmem:[%s6186_s11 + $0x78] sm:$0xff] }
 0x10b   : > { %1633 = vmatprep.subr.bf16.mxu0 %v1092_v32  ;;  %1696 = vmatprep.subr.bf16.mxu1 %v1094_v33  ;;  %v1343_v32 = vunpack.c.h.s8.bf16 %v951_v24  ;;  %v1345_v33 = vunpack.c.h.s8.bf16 %v953_v25  ;;  %v984_v34 = vunpack.c.l.s8.bf16 %v788_v30  ;;  %v986_v35 = vunpack.c.l.s8.bf16 %v790_v31 }
 0x10c   : > { %v1012_v42 = vunpack.c.h.s8.bf16 %v788_v30  ;;  %v1014_v43 = vunpack.c.h.s8.bf16 %v790_v31 }
 0x10d   : > { %1552 = vmatmul.mubr.bf16.gmra.mrb[20].mxu0 %v6291_v9  ;;  %1615 = vmatmul.mubr.bf16.gmra.mrb[20].mxu1 %v6291_v9 }
 0x10e   : > { %1634 = vmatpush1.bf16.msra.mxu0 %v1091_v38  ;;  %1697 = vmatpush1.bf16.msra.mxu1 %v1093_v39  ;;  %v787_v38 = vld [vmem:[%s6186_s11 + $0x60] sm:$0xff]  ;;  %v789_v39 = vld [vmem:[%s6186_s11 + $0x70] sm:$0xff] }
 0x10f   : > { %1635 = vmatprep.subr.bf16.mxu0 %v1120_v40  ;;  %1698 = vmatprep.subr.bf16.mxu1 %v1122_v41  ;;  %v983_v40 = vunpack.c.l.s8.bf16 %v787_v38  ;;  %v985_v41 = vunpack.c.l.s8.bf16 %v789_v39 }
 0x110   : > { %5035 = vmatprep.mubr.msk.bf16.mxu0 %vm1363_vm1, %v6207_v37  ;;  %5038 = vmatprep.mubr.msk.bf16.mxu1 %vm1363_vm1, %v6207_v37 }
 0x112   : > { %1636 = vmatpush1.bf16.msra.mxu0 %v1119_v44  ;;  %1699 = vmatpush1.bf16.msra.mxu1 %v1121_v45  ;;  %v816_v44 = vld [vmem:[%s6186_s11 + $0x148] sm:$0xff]  ;;  %v818_v45 = vld [vmem:[%s6186_s11 + $0x158] sm:$0xff] }
 0x113   : > { %1637 = vmatprep.subr.bf16.mxu0 %v1148_v47  ;;  %1700 = vmatprep.subr.bf16.mxu1 %v1150_v48  ;;  %v1011_v47 = vunpack.c.h.s8.bf16 %v787_v38  ;;  %v1013_v48 = vunpack.c.h.s8.bf16 %v789_v39  ;;  %v1040_v49 = vunpack.c.l.s8.bf16 %v816_v44  ;;  %v1042_v50 = vunpack.c.l.s8.bf16 %v818_v45 }
 0x114   : > { %v1068_v56 = vunpack.c.h.s8.bf16 %v816_v44  ;;  %v1070_v57 = vunpack.c.h.s8.bf16 %v818_v45 }
 0x116   : > { %1638 = vmatpush1.bf16.msra.mxu0 %v1147_v51  ;;  %1701 = vmatpush1.bf16.msra.mxu1 %v1149_v52  ;;  %v815_v51 = vld [vmem:[%s6186_s11 + $0x140] sm:$0xff]  ;;  %v817_v52 = vld [vmem:[%s6186_s11 + $0x150] sm:$0xff] }
 0x117   : > { %1639 = vmatprep.subr.bf16.mxu0 %v1176_v53  ;;  %1702 = vmatprep.subr.bf16.mxu1 %v1178_v54  ;;  %v1039_v53 = vunpack.c.l.s8.bf16 %v815_v51  ;;  %v1041_v54 = vunpack.c.l.s8.bf16 %v817_v52 }
 0x11a   : > { %1640 = vmatpush1.bf16.msra.mxu0 %v1175_v58  ;;  %1703 = vmatpush1.bf16.msra.mxu1 %v1177_v59  ;;  %v844_v58 = vld [vmem:[%s6186_s11 + $0x228] sm:$0xff]  ;;  %v846_v59 = vld [vmem:[%s6186_s11 + $0x238] sm:$0xff] }
 0x11b   : > { %1641 = vmatprep.subr.bf16.mxu0 %v1204_v60  ;;  %1704 = vmatprep.subr.bf16.mxu1 %v1206_v61  ;;  %v1067_v60 = vunpack.c.h.s8.bf16 %v815_v51  ;;  %v1069_v61 = vunpack.c.h.s8.bf16 %v817_v52  ;;  %v1096_v62 = vunpack.c.l.s8.bf16 %v844_v58  ;;  %v1098_v63 = vunpack.c.l.s8.bf16 %v846_v59 }
 0x11c   : > { %v1124_v5 = vunpack.c.h.s8.bf16 %v844_v58  ;;  %v1126_v6 = vunpack.c.h.s8.bf16 %v846_v59 }
 0x11e   : > { %1642 = vmatpush1.bf16.msra.mxu0 %v1203_v1  ;;  %1705 = vmatpush1.bf16.msra.mxu1 %v1205_v2  ;;  %v843_v1 = vld [vmem:[%s6186_s11 + $0x220] sm:$0xff]  ;;  %v845_v2 = vld [vmem:[%s6186_s11 + $0x230] sm:$0xff] }
 0x11f   : > { %1643 = vmatprep.subr.bf16.mxu0 %v1232_v3  ;;  %1706 = vmatprep.subr.bf16.mxu1 %v1234_v4  ;;  %v1095_v3 = vunpack.c.l.s8.bf16 %v843_v1  ;;  %v1097_v4 = vunpack.c.l.s8.bf16 %v845_v2 }
 0x122   : > { %1644 = vmatpush1.bf16.msra.mxu0 %v1231_v7  ;;  %1707 = vmatpush1.bf16.msra.mxu1 %v1233_v8  ;;  %v872_v7 = vld [vmem:[%s6186_s11 + $0x308] sm:$0xff]  ;;  %v874_v8 = vld [vmem:[%s6186_s11 + $0x318] sm:$0xff] }
 0x123   : > { %1645 = vmatprep.subr.bf16.mxu0 %v1260_v10  ;;  %1708 = vmatprep.subr.bf16.mxu1 %v1262_v11  ;;  %v1123_v10 = vunpack.c.h.s8.bf16 %v843_v1  ;;  %v1125_v11 = vunpack.c.h.s8.bf16 %v845_v2  ;;  %v1152_v12 = vunpack.c.l.s8.bf16 %v872_v7  ;;  %v1154_v13 = vunpack.c.l.s8.bf16 %v874_v8 }
 0x124   : > { %v1180_v18 = vunpack.c.h.s8.bf16 %v872_v7  ;;  %v1182_v19 = vunpack.c.h.s8.bf16 %v874_v8 }
 0x126   : > { %1646 = vmatpush1.bf16.msra.mxu0 %v1259_v14  ;;  %1709 = vmatpush1.bf16.msra.mxu1 %v1261_v15  ;;  %v871_v14 = vld [vmem:[%s6186_s11 + $0x300] sm:$0xff]  ;;  %v873_v15 = vld [vmem:[%s6186_s11 + $0x310] sm:$0xff] }
 0x127   : > { %1647 = vmatprep.subr.bf16.mxu0 %v1288_v16  ;;  %1710 = vmatprep.subr.bf16.mxu1 %v1290_v17  ;;  %v1151_v16 = vunpack.c.l.s8.bf16 %v871_v14  ;;  %v1153_v17 = vunpack.c.l.s8.bf16 %v873_v15 }
 0x12a   : > { %1648 = vmatpush1.bf16.msra.mxu0 %v1287_v20  ;;  %1711 = vmatpush1.bf16.msra.mxu1 %v1289_v21  ;;  %v900_v20 = vld [vmem:[%s6186_s11 + $0x3e8] sm:$0xff]  ;;  %v902_v21 = vld [vmem:[%s6186_s11 + $0x3f8] sm:$0xff] }
 0x12b   : > { %1649 = vmatprep.subr.bf16.mxu0 %v1316_v22  ;;  %1712 = vmatprep.subr.bf16.mxu1 %v1318_v23  ;;  %v1179_v22 = vunpack.c.h.s8.bf16 %v871_v14  ;;  %v1181_v23 = vunpack.c.h.s8.bf16 %v873_v15  ;;  %v1208_v24 = vunpack.c.l.s8.bf16 %v900_v20  ;;  %v1210_v25 = vunpack.c.l.s8.bf16 %v902_v21 }
 0x12c   : > { %v1236_v30 = vunpack.c.h.s8.bf16 %v900_v20  ;;  %v1238_v31 = vunpack.c.h.s8.bf16 %v902_v21 }
 0x12e   : > { %1650 = vmatpush1.bf16.msra.mxu0 %v1315_v26  ;;  %1713 = vmatpush1.bf16.msra.mxu1 %v1317_v27  ;;  %v899_v26 = vld [vmem:[%s6186_s11 + $0x3e0] sm:$0xff]  ;;  %v901_v27 = vld [vmem:[%s6186_s11 + $0x3f0] sm:$0xff] }
 0x12f   : > { %1651 = vmatprep.subr.bf16.mxu0 %v1344_v28  ;;  %1714 = vmatprep.subr.bf16.mxu1 %v1346_v29  ;;  %v1207_v28 = vunpack.c.l.s8.bf16 %v899_v26  ;;  %v1209_v29 = vunpack.c.l.s8.bf16 %v901_v27 }
 0x132   : > { %1652 = vmatpush1.bf16.msra.mxu0 %v1343_v32  ;;  %1715 = vmatpush1.bf16.msra.mxu1 %v1345_v33  ;;  %v928_v32 = vld [vmem:[%s6186_s11 + $0x4c8] sm:$0xff]  ;;  %v930_v33 = vld [vmem:[%s6186_s11 + $0x4d8] sm:$0xff] }
 0x133   : > { %1751 = vmatprep.subr.bf16.mxu0 %v984_v34  ;;  %1814 = vmatprep.subr.bf16.mxu1 %v986_v35  ;;  %v1235_v34 = vunpack.c.h.s8.bf16 %v899_v26  ;;  %v1237_v35 = vunpack.c.h.s8.bf16 %v901_v27  ;;  %v1264_v38 = vunpack.c.l.s8.bf16 %v928_v32  ;;  %v1266_v39 = vunpack.c.l.s8.bf16 %v930_v33 }
 0x134   : > { %v1292_v44 = vunpack.c.h.s8.bf16 %v928_v32  ;;  %v1294_v45 = vunpack.c.h.s8.bf16 %v930_v33 }
 0x135   : > { %1658 = vmatmul.mubr.bf16.vlgmr.msra.gmra.mrb[24].mxu0 %v6239_v36  ;;  %1721 = vmatmul.mubr.bf16.vlgmr.msra.gmra.mrb[24].mxu1 %v6239_v36 }
 0x136   : > { %1752 = vmatpush1.bf16.msra.mxu0 %v983_v40  ;;  %1815 = vmatpush1.bf16.msra.mxu1 %v985_v41  ;;  %v927_v40 = vld [vmem:[%s6186_s11 + $0x4c0] sm:$0xff]  ;;  %v929_v41 = vld [vmem:[%s6186_s11 + $0x4d0] sm:$0xff] }
 0x137   : > { %1753 = vmatprep.subr.bf16.mxu0 %v1012_v42  ;;  %1816 = vmatprep.subr.bf16.mxu1 %v1014_v43  ;;  %v1263_v42 = vunpack.c.l.s8.bf16 %v927_v40  ;;  %v1265_v43 = vunpack.c.l.s8.bf16 %v929_v41 }
 0x138   : > { %5039 = vmatprep.mubr.msk.bf16.mxu1 %vm1363_vm1, %v6249_v46  ;;  %5036 = vmatprep.mubr.msk.bf16.mxu0 %vm1363_vm1, %v6249_v46 }
 0x13a   : > { %1754 = vmatpush1.bf16.msra.mxu0 %v1011_v47  ;;  %1817 = vmatpush1.bf16.msra.mxu1 %v1013_v48  ;;  %v956_v47 = vld [vmem:[%s6186_s11 + $0x5a8] sm:$0xff]  ;;  %v958_v48 = vld [vmem:[%s6186_s11 + $0x5b8] sm:$0xff] }
 0x13b   : > { %1755 = vmatprep.subr.bf16.mxu0 %v1040_v49  ;;  %1818 = vmatprep.subr.bf16.mxu1 %v1042_v50  ;;  %v1291_v49 = vunpack.c.h.s8.bf16 %v927_v40  ;;  %v1293_v50 = vunpack.c.h.s8.bf16 %v929_v41  ;;  %v1320_v51 = vunpack.c.l.s8.bf16 %v956_v47  ;;  %v1322_v52 = vunpack.c.l.s8.bf16 %v958_v48 }
 0x13c   : > { %v1348_v58 = vunpack.c.h.s8.bf16 %v956_v47  ;;  %v1350_v59 = vunpack.c.h.s8.bf16 %v958_v48 }
 0x13d   : > { %1731 = vmatmul.mubr.bf16.gmra.mrb[28].mxu1 %v6265_v55  ;;  %1668 = vmatmul.mubr.bf16.gmra.mrb[28].mxu0 %v6265_v55 }
 0x13e   : > { %1756 = vmatpush1.bf16.msra.mxu0 %v1039_v53  ;;  %1819 = vmatpush1.bf16.msra.mxu1 %v1041_v54  ;;  %v955_v53 = vld [vmem:[%s6186_s11 + $0x5a0] sm:$0xff]  ;;  %v957_v54 = vld [vmem:[%s6186_s11 + $0x5b0] sm:$0xff] }
 0x13f   : > { %1757 = vmatprep.subr.bf16.mxu0 %v1068_v56  ;;  %1820 = vmatprep.subr.bf16.mxu1 %v1070_v57  ;;  %v1319_v56 = vunpack.c.l.s8.bf16 %v955_v53  ;;  %v1321_v57 = vunpack.c.l.s8.bf16 %v957_v54 }
 0x140   : > { %5040 = vmatprep.mubr.msk.bf16.mxu1 %vm1363_vm1, %v6275_v0  ;;  %5037 = vmatprep.mubr.msk.bf16.mxu0 %vm1363_vm1, %v6275_v0 }
 0x142   : > { %1758 = vmatpush1.bf16.msra.mxu0 %v1067_v60  ;;  %1821 = vmatpush1.bf16.msra.mxu1 %v1069_v61  ;;  %v792_v60 = vld [vmem:[%s6186_s11 + $0x88] sm:$0xff]  ;;  %v794_v61 = vld [vmem:[%s6186_s11 + $0x98] sm:$0xff] }
 0x143   : > { %1759 = vmatprep.subr.bf16.mxu0 %v1096_v62  ;;  %1822 = vmatprep.subr.bf16.mxu1 %v1098_v63  ;;  %v1347_v62 = vunpack.c.h.s8.bf16 %v955_v53  ;;  %v1349_v63 = vunpack.c.h.s8.bf16 %v957_v54  ;;  %v988_v1 = vunpack.c.l.s8.bf16 %v792_v60  ;;  %v990_v2 = vunpack.c.l.s8.bf16 %v794_v61 }
 0x144   : > { %v1016_v7 = vunpack.c.h.s8.bf16 %v792_v60  ;;  %v1018_v8 = vunpack.c.h.s8.bf16 %v794_v61 }
 0x145   : > { %1741 = vmatmul.mubr.bf16.gmra.mrb[32].mxu1 %v6291_v9  ;;  %1678 = vmatmul.mubr.bf16.gmra.mrb[32].mxu0 %v6291_v9 }
 0x146   : > { %1760 = vmatpush1.bf16.msra.mxu0 %v1095_v3  ;;  %1823 = vmatpush1.bf16.msra.mxu1 %v1097_v4  ;;  %v791_v3 = vld [vmem:[%s6186_s11 + $0x80] sm:$0xff]  ;;  %v793_v4 = vld [vmem:[%s6186_s11 + $0x90] sm:$0xff] }
 0x147   : > { %1761 = vmatprep.subr.bf16.mxu0 %v1124_v5  ;;  %1824 = vmatprep.subr.bf16.mxu1 %v1126_v6  ;;  %v987_v5 = vunpack.c.l.s8.bf16 %v791_v3  ;;  %v989_v6 = vunpack.c.l.s8.bf16 %v793_v4 }
 0x148   : > { %5041 = vmatprep.mubr.msk.bf16.mxu0 %vm1363_vm1, %v6207_v37  ;;  %5044 = vmatprep.mubr.msk.bf16.mxu1 %vm1363_vm1, %v6207_v37 }
 0x14a   : > { %1762 = vmatpush1.bf16.msra.mxu0 %v1123_v10  ;;  %1825 = vmatpush1.bf16.msra.mxu1 %v1125_v11  ;;  %v820_v10 = vld [vmem:[%s6186_s11 + $0x168] sm:$0xff]  ;;  %v822_v11 = vld [vmem:[%s6186_s11 + $0x178] sm:$0xff] }
 0x14b   : > { %1763 = vmatprep.subr.bf16.mxu0 %v1152_v12  ;;  %1826 = vmatprep.subr.bf16.mxu1 %v1154_v13  ;;  %v1015_v12 = vunpack.c.h.s8.bf16 %v791_v3  ;;  %v1017_v13 = vunpack.c.h.s8.bf16 %v793_v4  ;;  %v1044_v14 = vunpack.c.l.s8.bf16 %v820_v10  ;;  %v1046_v15 = vunpack.c.l.s8.bf16 %v822_v11 }
 0x14c   : > { %v1072_v20 = vunpack.c.h.s8.bf16 %v820_v10  ;;  %v1074_v21 = vunpack.c.h.s8.bf16 %v822_v11 }
 0x14e   : > { %1764 = vmatpush1.bf16.msra.mxu0 %v1151_v16  ;;  %1827 = vmatpush1.bf16.msra.mxu1 %v1153_v17  ;;  %v819_v16 = vld [vmem:[%s6186_s11 + $0x160] sm:$0xff]  ;;  %v821_v17 = vld [vmem:[%s6186_s11 + $0x170] sm:$0xff] }
 0x14f   : > { %1765 = vmatprep.subr.bf16.mxu0 %v1180_v18  ;;  %1828 = vmatprep.subr.bf16.mxu1 %v1182_v19  ;;  %v1043_v18 = vunpack.c.l.s8.bf16 %v819_v16  ;;  %v1045_v19 = vunpack.c.l.s8.bf16 %v821_v17 }
 0x152   : > { %1766 = vmatpush1.bf16.msra.mxu0 %v1179_v22  ;;  %1829 = vmatpush1.bf16.msra.mxu1 %v1181_v23  ;;  %v848_v22 = vld [vmem:[%s6186_s11 + $0x248] sm:$0xff]  ;;  %v850_v23 = vld [vmem:[%s6186_s11 + $0x258] sm:$0xff] }
 0x153   : > { %1767 = vmatprep.subr.bf16.mxu0 %v1208_v24  ;;  %1830 = vmatprep.subr.bf16.mxu1 %v1210_v25  ;;  %v1071_v24 = vunpack.c.h.s8.bf16 %v819_v16  ;;  %v1073_v25 = vunpack.c.h.s8.bf16 %v821_v17  ;;  %v1100_v26 = vunpack.c.l.s8.bf16 %v848_v22  ;;  %v1102_v27 = vunpack.c.l.s8.bf16 %v850_v23 }
 0x154   : > { %v1128_v32 = vunpack.c.h.s8.bf16 %v848_v22  ;;  %v1130_v33 = vunpack.c.h.s8.bf16 %v850_v23  ;;  %v962_v23 = vld [vmem:[%s6186_s11 + $0x5d8] sm:$0xff] }
 0x156   : > { %1768 = vmatpush1.bf16.msra.mxu0 %v1207_v28  ;;  %1831 = vmatpush1.bf16.msra.mxu1 %v1209_v29  ;;  %v847_v28 = vld [vmem:[%s6186_s11 + $0x240] sm:$0xff]  ;;  %v849_v29 = vld [vmem:[%s6186_s11 + $0x250] sm:$0xff] }
 0x157   : > { %1769 = vmatprep.subr.bf16.mxu0 %v1236_v30  ;;  %1832 = vmatprep.subr.bf16.mxu1 %v1238_v31  ;;  %v1099_v30 = vunpack.c.l.s8.bf16 %v847_v28  ;;  %v1101_v31 = vunpack.c.l.s8.bf16 %v849_v29 }
 0x15a   : > { %1770 = vmatpush1.bf16.msra.mxu0 %v1235_v34  ;;  %1833 = vmatpush1.bf16.msra.mxu1 %v1237_v35  ;;  %v876_v34 = vld [vmem:[%s6186_s11 + $0x328] sm:$0xff]  ;;  %v878_v35 = vld [vmem:[%s6186_s11 + $0x338] sm:$0xff] }
 0x15b   : > { %1771 = vmatprep.subr.bf16.mxu0 %v1264_v38  ;;  %1834 = vmatprep.subr.bf16.mxu1 %v1266_v39  ;;  %v1127_v38 = vunpack.c.h.s8.bf16 %v847_v28  ;;  %v1129_v39 = vunpack.c.h.s8.bf16 %v849_v29  ;;  %v1156_v40 = vunpack.c.l.s8.bf16 %v876_v34  ;;  %v1158_v41 = vunpack.c.l.s8.bf16 %v878_v35  ;;  %v6490_v28 = vld [vmem:[%s6186_s11 + $0x5c0] sm:$0xff]  ;;  %v6493_v29 = vld [vmem:[%s6186_s11 + $0x5d0] sm:$0xff] }
 0x15c   : > { %v1184_v47 = vunpack.c.h.s8.bf16 %v876_v34  ;;  %v1186_v48 = vunpack.c.h.s8.bf16 %v878_v35 }
 0x15e   : > { %1772 = vmatpush1.bf16.msra.mxu0 %v1263_v42  ;;  %1835 = vmatpush1.bf16.msra.mxu1 %v1265_v43  ;;  %v875_v42 = vld [vmem:[%s6186_s11 + $0x320] sm:$0xff]  ;;  %v877_v43 = vld [vmem:[%s6186_s11 + $0x330] sm:$0xff] }
 0x15f   : > { %1773 = vmatprep.subr.bf16.mxu0 %v1292_v44  ;;  %1836 = vmatprep.subr.bf16.mxu1 %v1294_v45  ;;  %v1155_v44 = vunpack.c.l.s8.bf16 %v875_v42  ;;  %v1157_v45 = vunpack.c.l.s8.bf16 %v877_v43 }
 0x162   : > { %1774 = vmatpush1.bf16.msra.mxu0 %v1291_v49  ;;  %1837 = vmatpush1.bf16.msra.mxu1 %v1293_v50  ;;  %v904_v49 = vld [vmem:[%s6186_s11 + $0x408] sm:$0xff]  ;;  %v906_v50 = vld [vmem:[%s6186_s11 + $0x418] sm:$0xff] }
 0x163   : > { %1775 = vmatprep.subr.bf16.mxu0 %v1320_v51  ;;  %1838 = vmatprep.subr.bf16.mxu1 %v1322_v52  ;;  %v1183_v51 = vunpack.c.h.s8.bf16 %v875_v42  ;;  %v1185_v52 = vunpack.c.h.s8.bf16 %v877_v43  ;;  %v1212_v53 = vunpack.c.l.s8.bf16 %v904_v49  ;;  %v1214_v54 = vunpack.c.l.s8.bf16 %v906_v50 }
 0x164   : > { %v1240_v61 = vunpack.c.h.s8.bf16 %v904_v49 }
 0x166   : > { %1776 = vmatpush1.bf16.msra.mxu0 %v1319_v56  ;;  %1839 = vmatpush1.bf16.msra.mxu1 %v1321_v57  ;;  %v903_v56 = vld [vmem:[%s6186_s11 + $0x400] sm:$0xff]  ;;  %v905_v57 = vld [vmem:[%s6186_s11 + $0x410] sm:$0xff] }
 0x167   : > { %1777 = vmatprep.subr.bf16.mxu0 %v1348_v58  ;;  %1840 = vmatprep.subr.bf16.mxu1 %v1350_v59  ;;  %v2263_v58 = vlaneseq  ;;  %v1211_v59 = vunpack.c.l.s8.bf16 %v903_v56  ;;  %v1213_v60 = vunpack.c.l.s8.bf16 %v905_v57  ;;  %v1239_v3 = vunpack.c.h.s8.bf16 %v903_v56 }
 0x168   : > { %v1241_v4 = vunpack.c.h.s8.bf16 %v905_v57 }
 0x16a   : > { %1778 = vmatpush1.bf16.msra.mxu0 %v1347_v62  ;;  %1841 = vmatpush1.bf16.msra.mxu1 %v1349_v63  ;;  %v1242_v62 = vunpack.c.h.s8.bf16 %v906_v50  ;;  %v932_v63 = vld [vmem:[%s6186_s11 + $0x4e8] sm:$0xff] }
 0x16b   : > { %1877 = vmatprep.subr.bf16.mxu0 %v988_v1  ;;  %1940 = vmatprep.subr.bf16.mxu1 %v990_v2  ;;  %v934_v1 = vld [vmem:[%s6186_s11 + $0x4f8] sm:$0xff]  ;;  %v6447_v2 = vshrl.u32 %v2263_v58, 7  ;;  %v1296_v17 = vunpack.c.h.s8.bf16 %v932_v63 }
 0x16d   : > { %1784 = vmatmul.mubr.bf16.vlgmr.msra.gmra.mrb[36].mxu0 %v6239_v36  ;;  %1847 = vmatmul.mubr.bf16.vlgmr.msra.gmra.mrb[36].mxu1 %v6239_v36  ;;  %v6452_v10 = vsub.s32 0, %v6447_v2  ;;  %v6455_v11 = vsub.s32 2, %v6447_v2  ;;  %v6464_v16 = vsub.s32 3, %v6447_v2 }
 0x16e   : > { %1878 = vmatpush1.bf16.msra.mxu0 %v987_v5  ;;  %1941 = vmatpush1.bf16.msra.mxu1 %v989_v6  ;;  %v1268_v5 = vunpack.c.l.s8.bf16 %v932_v63  ;;  %v1270_v6 = vunpack.c.l.s8.bf16 %v934_v1 }
 0x16f   : > { %1879 = vmatprep.subr.bf16.mxu0 %v1016_v7  ;;  %1942 = vmatprep.subr.bf16.mxu1 %v1018_v8  ;;  %v931_v7 = vld [vmem:[%s6186_s11 + $0x4e0] sm:$0xff]  ;;  %v933_v8 = vld [vmem:[%s6186_s11 + $0x4f0] sm:$0xff]  ;;  %8630 = vst [vmem:[#allocation7_spill] sm:$0xff] %v6452_v10 }
 0x170   : > { %5045 = vmatprep.mubr.msk.bf16.mxu1 %vm1363_vm1, %v6249_v46  ;;  %5042 = vmatprep.mubr.msk.bf16.mxu0 %vm1363_vm1, %v6249_v46 }
 0x172   : > { %1880 = vmatpush1.bf16.msra.mxu0 %v1015_v12  ;;  %1943 = vmatpush1.bf16.msra.mxu1 %v1017_v13  ;;  %v1267_v12 = vunpack.c.l.s8.bf16 %v931_v7  ;;  %v1269_v13 = vunpack.c.l.s8.bf16 %v933_v8 }
 0x173   : > { %1881 = vmatprep.subr.bf16.mxu0 %v1044_v14  ;;  %1944 = vmatprep.subr.bf16.mxu1 %v1046_v15  ;;  %v6458_v14 = vld [vmem:[%s6174_s22] sm:$0xff]  ;;  %v6461_v15 = vsub.s32 1, %v6447_v2 }
 0x174   : > { %v6478_v22 = vrot.slane %v6458_v14, %v6455_v11 }
 0x175   : > { %1857 = vmatmul.mubr.bf16.gmra.mrb[40].mxu1 %v6265_v55  ;;  %1794 = vmatmul.mubr.bf16.gmra.mrb[40].mxu0 %v6265_v55  ;;  %8631 = vst [vmem:[#allocation8_spill] sm:$0xff] %v6461_v15 }
 0x176   : > { %1882 = vmatpush1.bf16.msra.mxu0 %v1043_v18  ;;  %1945 = vmatpush1.bf16.msra.mxu1 %v1045_v19  ;;  %v1298_v18 = vunpack.c.h.s8.bf16 %v934_v1  ;;  %v6467_v19 = vld [vmem:[%s6179_s26] sm:$0xff] }
 0x177   : > { %1883 = vmatprep.subr.bf16.mxu0 %v1072_v20  ;;  %1946 = vmatprep.subr.bf16.mxu1 %v1074_v21  ;;  %v6470_v20 = vld [vmem:[%s6186_s11 + $0x5c8] sm:$0xff]  ;;  %v6474_v21 = vrot.slane %v6458_v14, %v6452_v10  ;;  %v6506_v35 = vrot.slane %v6467_v19, %v6461_v15 }
 0x178   : > { %5046 = vmatprep.mubr.msk.bf16.mxu1 %vm1363_vm1, %v6275_v0  ;;  %5043 = vmatprep.mubr.msk.bf16.mxu0 %vm1363_vm1, %v6275_v0 }
 0x17a   : > { %1884 = vmatpush1.bf16.msra.mxu0 %v1071_v24  ;;  %1947 = vmatpush1.bf16.msra.mxu1 %v1073_v25  ;;  %v6483_v24 = vrot.slane %v6458_v14, %v6461_v15  ;;  %v6487_v25 = vrot.slane %v6458_v14, %v6464_v16 }
 0x17b   : > { %1885 = vmatprep.subr.bf16.mxu0 %v1100_v26  ;;  %1948 = vmatprep.subr.bf16.mxu1 %v1102_v27  ;;  %v1295_v26 = vunpack.c.h.s8.bf16 %v931_v7  ;;  %v1297_v27 = vunpack.c.h.s8.bf16 %v933_v8  ;;  %v1351_v7 = vunpack.c.h.s8.bf16 %v6490_v28  ;;  %v6540_v8 = vld [vmem:[%s6186_s11 + $0xb0] sm:$0xff] }
 0x17d   : > { %1867 = vmatmul.mubr.bf16.gmra.mrb[44].mxu1 %v6291_v9  ;;  %1804 = vmatmul.mubr.bf16.gmra.mrb[44].mxu0 %v6291_v9 }
 0x17e   : > { %1886 = vmatpush1.bf16.msra.mxu0 %v1099_v30  ;;  %1949 = vmatpush1.bf16.msra.mxu1 %v1101_v31  ;;  %v6497_v30 = vrot.slane %v6467_v19, %v6452_v10  ;;  %v6501_v31 = vrot.slane %v6467_v19, %v6455_v11 }
 0x17f   : > { %1887 = vmatprep.subr.bf16.mxu0 %v1128_v32  ;;  %1950 = vmatprep.subr.bf16.mxu1 %v1130_v33  ;;  %v1324_v32 = vunpack.c.l.s8.bf16 %v6470_v20 }
 0x180   : > { %5047 = vmatprep.mubr.msk.bf16.mxu0 %vm1363_vm1, %v6207_v37  ;;  %5050 = vmatprep.mubr.msk.bf16.mxu1 %vm1363_vm1, %v6207_v37 }
 0x182   : > { %1888 = vmatpush1.bf16.msra.mxu0 %v1127_v38  ;;  %1951 = vmatpush1.bf16.msra.mxu1 %v1129_v39  ;;  %v6510_v38 = vrot.slane %v6467_v19, %v6464_v16  ;;  %v1326_v39 = vunpack.c.l.s8.bf16 %v962_v23 }
 0x183   : > { %1889 = vmatprep.subr.bf16.mxu0 %v1156_v40  ;;  %1952 = vmatprep.subr.bf16.mxu1 %v1158_v41 }
 0x186   : > { %1890 = vmatpush1.bf16.msra.mxu0 %v1155_v44  ;;  %1953 = vmatpush1.bf16.msra.mxu1 %v1157_v45  ;;  %v1323_v44 = vunpack.c.l.s8.bf16 %v6490_v28  ;;  %v1325_v45 = vunpack.c.l.s8.bf16 %v6493_v29 }
 0x187   : > { %1891 = vmatprep.subr.bf16.mxu0 %v1184_v47  ;;  %1954 = vmatprep.subr.bf16.mxu1 %v1186_v48 }
 0x18a   : > { %1892 = vmatpush1.bf16.msra.mxu0 %v1183_v51  ;;  %1955 = vmatpush1.bf16.msra.mxu1 %v1185_v52  ;;  %v1352_v51 = vunpack.c.h.s8.bf16 %v6470_v20  ;;  %v1354_v52 = vunpack.c.h.s8.bf16 %v962_v23 }
 0x18b   : > { %1893 = vmatprep.subr.bf16.mxu0 %v1212_v53  ;;  %1956 = vmatprep.subr.bf16.mxu1 %v1214_v54 }
 0x18e   : > { %1894 = vmatpush1.bf16.msra.mxu0 %v1211_v59  ;;  %1957 = vmatpush1.bf16.msra.mxu1 %v1213_v60  ;;  %v6524_v60 = vld [vmem:[%s6186_s11 + $0xa8] sm:$0xff] }
 0x18f   : > { %1895 = vmatprep.subr.bf16.mxu0 %v1240_v61  ;;  %1958 = vmatprep.subr.bf16.mxu1 %v1242_v62 }
 0x192   : > { %1896 = vmatpush1.bf16.msra.mxu0 %v1239_v3  ;;  %1959 = vmatpush1.bf16.msra.mxu1 %v1241_v4  ;;  %v6531_v3 = vld [vmem:[%s6186_s11 + $0xb8] sm:$0xff]  ;;  %v6534_v4 = vld [vmem:[%s6186_s11 + $0xa0] sm:$0xff] }
 0x193   : > { %1897 = vmatprep.subr.bf16.mxu0 %v1268_v5  ;;  %1960 = vmatprep.subr.bf16.mxu1 %v1270_v6  ;;  %v994_v20 = vunpack.c.l.s8.bf16 %v6531_v3  ;;  %v991_v23 = vunpack.c.l.s8.bf16 %v6534_v4  ;;  %v1022_v28 = vunpack.c.h.s8.bf16 %v6531_v3 }
 0x196   : > { %1898 = vmatpush1.bf16.msra.mxu0 %v1267_v12  ;;  %1961 = vmatpush1.bf16.msra.mxu1 %v1269_v13  ;;  %v1353_v13 = vunpack.c.h.s8.bf16 %v6493_v29 }
 0x197   : > { %1899 = vmatprep.subr.bf16.mxu0 %v1296_v17  ;;  %1962 = vmatprep.subr.bf16.mxu1 %v1298_v18  ;;  %v992_v17 = vunpack.c.l.s8.bf16 %v6524_v60 }
 0x198   : > { %v1407_v33 = vpop.f32.mrb[0].mxu0  ;;  %v1470_v34 = vpop.f32.mrb[0].mxu1 }
 0x199   : > { %v2403_v40 = vmul.f32 %v6474_v21, %v1407_v33  ;;  %v2405_v41 = vmul.f32 %v6478_v22, %v1470_v34  ;;  %v1409_v42 = vpop.f32.mrb[1].mxu0  ;;  %v1472_v43 = vpop.f32.mrb[1].mxu1  ;;  %v1019_v33 = vunpack.c.h.s8.bf16 %v6534_v4 }
 0x19a   : > { %v2404_v47 = vmul.f32 %v6483_v24, %v1409_v42  ;;  %v2406_v48 = vmul.f32 %v6487_v25, %v1472_v43  ;;  %v1411_v49 = vpop.f32.mrb[2].mxu0  ;;  %v1474_v50 = vpop.f32.mrb[2].mxu1  ;;  %1900 = vmatpush1.bf16.msra.mxu0 %v1295_v26  ;;  %1963 = vmatpush1.bf16.msra.mxu1 %v1297_v27  ;;  %v993_v26 = vunpack.c.l.s8.bf16 %v6540_v8  ;;  %v1020_v27 = vunpack.c.h.s8.bf16 %v6524_v60  ;;  %v6575_v60 = vld [vmem:[%s6186_s11 + $0x190] sm:$0xff] }
 0x19b   : > { %v2719_v53 = vadd.f32 %v6497_v30, %v2403_v40  ;;  %v2721_v54 = vadd.f32 %v6501_v31, %v2405_v41  ;;  %v2431_v56 = vmul.f32 %v6474_v21, %v1411_v49  ;;  %v2433_v57 = vmul.f32 %v6478_v22, %v1474_v50  ;;  %v1413_v58 = vpop.f32.mrb[3].mxu0  ;;  %v1476_v59 = vpop.f32.mrb[3].mxu1  ;;  %1901 = vmatprep.subr.bf16.mxu0 %v1324_v32  ;;  %v6561_v49 = vld [vmem:[%s6186_s11 + $0x198] sm:$0xff] }
 0x19c   : > { %v2720_v61 = vadd.f32 %v6506_v35, %v2404_v47  ;;  %v2722_v62 = vadd.f32 %v6510_v38, %v2406_v48  ;;  %v2432_v63 = vmul.f32 %v6483_v24, %v1413_v58  ;;  %v2434_v1 = vmul.f32 %v6487_v25, %v1476_v59  ;;  %1964 = vmatprep.subr.bf16.mxu1 %v1326_v39  ;;  %v6558_v48 = vld [vmem:[%s6186_s11 + $0x188] sm:$0xff] }
 0x19d   : > { %5264 = vtanh.f32 %v2719_v53  ;;  %v2747_v5 = vadd.f32 %v6497_v30, %v2431_v56  ;;  %v2749_v6 = vadd.f32 %v6501_v31, %v2433_v57  ;;  %v1021_v42 = vunpack.c.h.s8.bf16 %v6540_v8  ;;  %v6567_v56 = vld [vmem:[%s6186_s11 + $0x180] sm:$0xff] }
 0x19e   : > { %5266 = vtanh.f32 %v2721_v54  ;;  %v2750_v12 = vadd.f32 %v6510_v38, %v2434_v1  ;;  %1902 = vmatpush1.bf16.msra.mxu0 %v1323_v44  ;;  %1965 = vmatpush1.bf16.msra.mxu1 %v1325_v45  ;;  %v2748_v18 = vadd.f32 %v6506_v35, %v2432_v63  ;;  %v1048_v1 = vunpack.c.l.s8.bf16 %v6558_v48 }
 0x19f   : > { %5268 = vtanh.f32 %v2720_v61  ;;  %1903 = vmatprep.subr.bf16.mxu0 %v1352_v51  ;;  %1966 = vmatprep.subr.bf16.mxu1 %v1354_v52  ;;  %v1050_v3 = vunpack.c.l.s8.bf16 %v6561_v49 }
 0x1a0   : > { %5270 = vtanh.f32 %v2722_v62  ;;  %v1417_v32 = vpop.f32.mrb[4].mxu0  ;;  %v1480_v29 = vpop.f32.mrb[4].mxu1 }
 0x1a1   : > { %5272 = vtanh.f32 %v2747_v5  ;;  %v2459_v34 = vmul.f32 %v6474_v21, %v1417_v32  ;;  %v2461_v39 = vmul.f32 %v6478_v22, %v1480_v29  ;;  %v1419_v40 = vpop.f32.mrb[5].mxu0  ;;  %v1482_v41 = vpop.f32.mrb[5].mxu1 }
 0x1a2   : > { %5274 = vtanh.f32 %v2749_v6  ;;  %1904 = vmatpush1.bf16.msra.mxu0 %v1351_v7  ;;  %1967 = vmatpush1.bf16.msra.mxu1 %v1353_v13  ;;  %v2460_v43 = vmul.f32 %v6483_v24, %v1419_v40  ;;  %v2462_v44 = vmul.f32 %v6487_v25, %v1482_v41  ;;  %v1421_v45 = vpop.f32.mrb[6].mxu0  ;;  %v1484_v47 = vpop.f32.mrb[6].mxu1  ;;  %v1047_v7 = vunpack.c.l.s8.bf16 %v6567_v56 }
 0x1a3   : > { %5276 = vtanh.f32 %v2748_v18  ;;  %2003 = vmatprep.subr.bf16.mxu0 %v992_v17  ;;  %2066 = vmatprep.subr.bf16.mxu1 %v994_v20  ;;  %v2775_v50 = vadd.f32 %v6497_v30, %v2459_v34  ;;  %v2777_v51 = vadd.f32 %v6501_v31, %v2461_v39  ;;  %v2487_v52 = vmul.f32 %v6474_v21, %v1421_v45  ;;  %v1423_v53 = vpop.f32.mrb[7].mxu0  ;;  %v1486_v54 = vpop.f32.mrb[7].mxu1 }
 0x1a4   : > { %5278 = vtanh.f32 %v2750_v12  ;;  %v2776_v57 = vadd.f32 %v6506_v35, %v2460_v43  ;;  %v2778_v58 = vadd.f32 %v6510_v38, %v2462_v44  ;;  %v2489_v59 = vmul.f32 %v6478_v22, %v1484_v47 }
 0x1a5   : > { %1910 = vmatmul.mubr.bf16.vlgmr.msra.gmra.mrb[48].mxu0 %v6239_v36  ;;  %1973 = vmatmul.mubr.bf16.vlgmr.msra.gmra.mrb[48].mxu1 %v6239_v36  ;;  %5280 = vtanh.f32 %v2775_v50  ;;  %v2803_v61 = vadd.f32 %v6497_v30, %v2487_v52  ;;  %v2488_v62 = vmul.f32 %v6483_v24, %v1423_v53  ;;  %v2490_v63 = vmul.f32 %v6487_v25, %v1486_v54  ;;  %v6620_v53 = vld [vmem:[%s6186_s11 + $0x278] sm:$0xff] }
 0x1a6   : > { %2004 = vmatpush1.bf16.msra.mxu0 %v991_v23  ;;  %2067 = vmatpush1.bf16.msra.mxu1 %v993_v26  ;;  %5282 = vtanh.f32 %v2777_v51  ;;  %v2805_v5 = vadd.f32 %v6501_v31, %v2489_v59  ;;  %v1049_v17 = vunpack.c.l.s8.bf16 %v6575_v60  ;;  %v1076_v18 = vunpack.c.h.s8.bf16 %v6558_v48 }
 0x1a7   : > { %v6583_v6 = vpop.eup %5264  ;;  %2005 = vmatprep.subr.bf16.mxu0 %v1020_v27  ;;  %2068 = vmatprep.subr.bf16.mxu1 %v1022_v28  ;;  %5284 = vtanh.f32 %v2776_v57  ;;  %v2804_v8 = vadd.f32 %v6506_v35, %v2488_v62  ;;  %v2806_v12 = vadd.f32 %v6510_v38, %v2490_v63  ;;  %v1078_v20 = vunpack.c.h.s8.bf16 %v6561_v49  ;;  %v6612_v49 = vld [vmem:[%s6186_s11 + $0x268] sm:$0xff]  ;;  %v851_v62 = vld [vmem:[%s6186_s11 + $0x260] sm:$0xff] }
 0x1a8   : > { %v6588_v13 = vpop.eup %5266  ;;  %5048 = vmatprep.mubr.msk.bf16.mxu0 %vm1363_vm1, %v6249_v46  ;;  %5286 = vtanh.f32 %v2778_v58  ;;  %v1427_v23 = vpop.f32.mrb[8].mxu0  ;;  %5051 = vmatprep.mubr.msk.bf16.mxu1 %vm1363_vm1, %v6249_v46  ;;  %v1075_v28 = vunpack.c.h.s8.bf16 %v6567_v56  ;;  %v1077_v41 = vunpack.c.h.s8.bf16 %v6575_v60 }
 0x1a9   : > { %8632 = vst [vmem:[#allocation9_spill] sm:$0xff] %v6588_v13  ;;  %v1490_v26 = vpop.f32.mrb[8].mxu1  ;;  %v6597_v27 = vpop.eup %5268  ;;  %5288 = vtanh.f32 %v2803_v61  ;;  %v2515_v32 = vmul.f32 %v6474_v21, %v1427_v23  ;;  %v1132_v23 = vunpack.c.h.s8.bf16 %v6612_v49 }
 0x1aa   : > { %v2517_v29 = vmul.f32 %v6478_v22, %v1490_v26  ;;  %v1429_v34 = vpop.f32.mrb[9].mxu0  ;;  %v1492_v39 = vpop.f32.mrb[9].mxu1  ;;  %2006 = vmatpush1.bf16.msra.mxu0 %v1019_v33  ;;  %2069 = vmatpush1.bf16.msra.mxu1 %v1021_v42  ;;  %5290 = vtanh.f32 %v2805_v5  ;;  %v1134_v26 = vunpack.c.h.s8.bf16 %v6620_v53 }
 0x1ab   : > { %v6602_v40 = vpop.eup %5270  ;;  %v2516_v43 = vmul.f32 %v6483_v24, %v1429_v34  ;;  %v2518_v44 = vmul.f32 %v6487_v25, %v1492_v39  ;;  %v1431_v45 = vpop.f32.mrb[10].mxu0  ;;  %2007 = vmatprep.subr.bf16.mxu0 %v1048_v1  ;;  %2070 = vmatprep.subr.bf16.mxu1 %v1050_v3  ;;  %5292 = vtanh.f32 %v2804_v8  ;;  %v2831_v4 = vadd.f32 %v6497_v30, %v2515_v32 }
 0x1ac   : > { %8633 = vst [vmem:[#allocation10_spill] sm:$0xff] %v6602_v40  ;;  %v1494_v47 = vpop.f32.mrb[10].mxu1  ;;  %v6609_v48 = vpop.eup %5272  ;;  %v2833_v33 = vadd.f32 %v6501_v31, %v2517_v29  ;;  %v2543_v42 = vmul.f32 %v6474_v21, %v1431_v45  ;;  %5294 = vtanh.f32 %v2806_v12  ;;  %v1103_v8 = vunpack.c.l.s8.bf16 %v851_v62  ;;  %v882_v29 = vld [vmem:[%s6186_s11 + $0x358] sm:$0xff] }
 0x1ad   : > { %v1433_v50 = vpop.f32.mrb[11].mxu0  ;;  %v1496_v51 = vpop.f32.mrb[11].mxu1  ;;  %v2832_v54 = vadd.f32 %v6506_v35, %v2516_v43  ;;  %v2834_v56 = vadd.f32 %v6510_v38, %v2518_v44  ;;  %v2545_v57 = vmul.f32 %v6478_v22, %v1494_v47  ;;  %1920 = vmatmul.mubr.bf16.gmra.mrb[52].mxu0 %v6265_v55  ;;  %5296 = vtanh.f32 %v2831_v4  ;;  %1983 = vmatmul.mubr.bf16.gmra.mrb[52].mxu1 %v6265_v55 }
 0x1ae   : > { %v6617_v52 = vpop.eup %5274  ;;  %v2859_v21 = vadd.f32 %v6497_v30, %v2543_v42  ;;  %v2544_v59 = vmul.f32 %v6483_v24, %v1433_v50  ;;  %v2546_v60 = vmul.f32 %v6487_v25, %v1496_v51  ;;  %2008 = vmatpush1.bf16.msra.mxu0 %v1047_v7  ;;  %2071 = vmatpush1.bf16.msra.mxu1 %v1049_v17  ;;  %v1104_v22 = vunpack.c.l.s8.bf16 %v6612_v49  ;;  %v853_v25 = vld [vmem:[%s6186_s11 + $0x270] sm:$0xff]  ;;  %v879_v42 = vld [vmem:[%s6186_s11 + $0x340] sm:$0xff] }
 0x1af   : > { %8634 = vst [vmem:[#allocation11_spill] sm:$0xff] %v6617_v52  ;;  %v6625_v58 = vpop.eup %5276  ;;  %5298 = vtanh.f32 %v2833_v33  ;;  %v2861_v63 = vadd.f32 %v6501_v31, %v2545_v57  ;;  %2009 = vmatprep.subr.bf16.mxu0 %v1076_v18  ;;  %2072 = vmatprep.subr.bf16.mxu1 %v1078_v20  ;;  %v1106_v24 = vunpack.c.l.s8.bf16 %v6620_v53  ;;  %v1131_v44 = vunpack.c.h.s8.bf16 %v851_v62  ;;  %v881_v50 = vld [vmem:[%s6186_s11 + $0x350] sm:$0xff] }
 0x1b0   : > { %v6632_v61 = vpop.eup %5278  ;;  %5300 = vtanh.f32 %v2832_v54  ;;  %v2860_v3 = vadd.f32 %v6506_v35, %v2544_v59  ;;  %v2862_v5 = vadd.f32 %v6510_v38, %v2546_v60  ;;  %5049 = vmatprep.mubr.msk.bf16.mxu0 %vm1363_vm1, %v6275_v0  ;;  %5052 = vmatprep.mubr.msk.bf16.mxu1 %vm1363_vm1, %v6275_v0  ;;  %v1105_v38 = vunpack.c.l.s8.bf16 %v853_v25 }
 0x1b1   : > { %8635 = vst [vmem:[#allocation12_spill] sm:$0xff] %v6632_v61  ;;  %v6639_v1 = vpop.eup %5280  ;;  %5302 = vtanh.f32 %v2834_v56  ;;  %v1133_v45 = vunpack.c.h.s8.bf16 %v853_v25  ;;  %v1162_v33 = vunpack.c.l.s8.bf16 %v882_v29  ;;  %v1159_v57 = vunpack.c.l.s8.bf16 %v879_v42 }
 0x1b2   : > { %v6645_v7 = vpop.eup %5282  ;;  %5304 = vtanh.f32 %v2859_v21  ;;  %2010 = vmatpush1.bf16.msra.mxu0 %v1075_v28  ;;  %2073 = vmatpush1.bf16.msra.mxu1 %v1077_v41  ;;  %v880_v28 = vld [vmem:[%s6186_s11 + $0x348] sm:$0xff]  ;;  %v1161_v21 = vunpack.c.l.s8.bf16 %v881_v50  ;;  %v6722_v51 = vsub.s32 4, %v6447_v2 }
 0x1b3   : > { %8636 = vst [vmem:[#allocation13_spill] sm:$0xff] %v6645_v7  ;;  %v6651_v31 = vpop.eup %5284  ;;  %5306 = vtanh.f32 %v2861_v63  ;;  %2011 = vmatprep.subr.bf16.mxu0 %v1104_v22  ;;  %2074 = vmatprep.subr.bf16.mxu1 %v1106_v24  ;;  %v1160_v4 = vunpack.c.l.s8.bf16 %v880_v28  ;;  %v1188_v60 = vunpack.c.h.s8.bf16 %v880_v28  ;;  %v1190_v22 = vunpack.c.h.s8.bf16 %v882_v29  ;;  %v908_v63 = vld [vmem:[%s6186_s11 + $0x428] sm:$0xff]  ;;  %v910_v24 = vld [vmem:[%s6186_s11 + $0x438] sm:$0xff] }
 0x1b4   : > { %v6655_v35 = vpop.eup %5286  ;;  %5308 = vtanh.f32 %v2860_v3  ;;  %v1216_v28 = vunpack.c.l.s8.bf16 %v908_v63  ;;  %v1218_v29 = vunpack.c.l.s8.bf16 %v910_v24  ;;  %v6761_v18 = vrot.slane %v6467_v19, %v6722_v51 }
 0x1b5   : > { %8637 = vst [vmem:[#allocation14_spill] sm:$0xff] %v6655_v35  ;;  %v6661_v20 = vpop.eup %5288  ;;  %5310 = vtanh.f32 %v2862_v5  ;;  %1930 = vmatmul.mubr.bf16.gmra.mrb[56].mxu0 %v6291_v9  ;;  %1993 = vmatmul.mubr.bf16.gmra.mrb[56].mxu1 %v6291_v9  ;;  %v6801_v35 = vld [vmem:[%s6186_s11 + $0xc0] sm:$0xff] }
 0x1b6   : > { %v6665_v32 = vpop.eup %5290  ;;  %2012 = vmatpush1.bf16.msra.mxu0 %v1103_v8  ;;  %2075 = vmatpush1.bf16.msra.mxu1 %v1105_v38  ;;  %v1187_v38 = vunpack.c.h.s8.bf16 %v879_v42 }
 0x1b7   : > { %8638 = vst [vmem:[#allocation15_spill] sm:$0xff] %v6665_v32  ;;  %v6671_v39 = vpop.eup %5292  ;;  %2013 = vmatprep.subr.bf16.mxu0 %v1132_v23  ;;  %2076 = vmatprep.subr.bf16.mxu1 %v1134_v26  ;;  %v1189_v23 = vunpack.c.h.s8.bf16 %v881_v50  ;;  %v1244_v50 = vunpack.c.h.s8.bf16 %v908_v63  ;;  %v6725_v63 = vsub.s32 6, %v6447_v2 }
 0x1b8   : > { %v6677_v43 = vpop.eup %5294  ;;  %5053 = vmatprep.mubr.msk.bf16.mxu0 %vm1363_vm1, %v6207_v37  ;;  %5056 = vmatprep.mubr.msk.bf16.mxu1 %vm1363_vm1, %v6207_v37 }
 0x1b9   : > { %8639 = vst [vmem:[#allocation16_spill] sm:$0xff] %v6677_v43  ;;  %v6681_v49 = vpop.eup %5296 }
 0x1ba   : > { %v6687_v53 = vpop.eup %5298  ;;  %2014 = vmatpush1.bf16.msra.mxu0 %v1131_v44  ;;  %2077 = vmatpush1.bf16.msra.mxu1 %v1133_v45  ;;  %v907_v44 = vld [vmem:[%s6186_s11 + $0x420] sm:$0xff]  ;;  %v909_v45 = vld [vmem:[%s6186_s11 + $0x430] sm:$0xff] }
 0x1bb   : > { %8640 = vst [vmem:[#allocation17_spill] sm:$0xff] %v6687_v53  ;;  %v6693_v54 = vpop.eup %5300  ;;  %2015 = vmatprep.subr.bf16.mxu0 %v1160_v4  ;;  %2078 = vmatprep.subr.bf16.mxu1 %v1162_v33  ;;  %v1215_v33 = vunpack.c.l.s8.bf16 %v907_v44  ;;  %v1217_v42 = vunpack.c.l.s8.bf16 %v909_v45  ;;  %v1245_v5 = vunpack.c.h.s8.bf16 %v909_v45  ;;  %v937_v4 = vld [vmem:[%s6186_s11 + $0x510] sm:$0xff] }
 0x1bc   : > { %v6695_v56 = vpop.eup %5302 }
 0x1bd   : > { %8641 = vst [vmem:[#allocation18_spill] sm:$0xff] %v6695_v56  ;;  %v6697_v59 = vpop.eup %5304 }
 0x1be   : > { %v6699_v62 = vpop.eup %5306  ;;  %2016 = vmatpush1.bf16.msra.mxu0 %v1159_v57  ;;  %2079 = vmatpush1.bf16.msra.mxu1 %v1161_v21  ;;  %v1246_v57 = vunpack.c.h.s8.bf16 %v910_v24  ;;  %v936_v21 = vld [vmem:[%s6186_s11 + $0x508] sm:$0xff] }
 0x1bf   : > { %8642 = vst [vmem:[#allocation19_spill] sm:$0xff] %v6699_v62  ;;  %v6705_v3 = vpop.eup %5308  ;;  %2017 = vmatprep.subr.bf16.mxu0 %v1188_v60  ;;  %2080 = vmatprep.subr.bf16.mxu1 %v1190_v22  ;;  %v938_v60 = vld [vmem:[%s6186_s11 + $0x518] sm:$0xff]  ;;  %v1243_v22 = vunpack.c.h.s8.bf16 %v907_v44  ;;  %v1272_v41 = vunpack.c.l.s8.bf16 %v936_v21  ;;  %v6731_v44 = vsub.s32 7, %v6447_v2  ;;  %v1300_v45 = vunpack.c.h.s8.bf16 %v936_v21 }
 0x1c0   : > { %v6709_v8 = vpop.eup %5310 }
 0x1c1   : > { %8643 = vst [vmem:[#allocation20_spill] sm:$0xff] %v6709_v8 }
 0x1c2   : > { %2018 = vmatpush1.bf16.msra.mxu0 %v1187_v38  ;;  %2081 = vmatpush1.bf16.msra.mxu1 %v1189_v23  ;;  %v1274_v38 = vunpack.c.l.s8.bf16 %v938_v60  ;;  %v935_v23 = vld [vmem:[%s6186_s11 + $0x500] sm:$0xff] }
 0x1c3   : > { %2019 = vmatprep.subr.bf16.mxu0 %v1216_v28  ;;  %2082 = vmatprep.subr.bf16.mxu1 %v1218_v29  ;;  %v1271_v24 = vunpack.c.l.s8.bf16 %v935_v23  ;;  %v1273_v28 = vunpack.c.l.s8.bf16 %v937_v4  ;;  %v6728_v29 = vsub.s32 5, %v6447_v2  ;;  %v1299_v21 = vunpack.c.h.s8.bf16 %v935_v23 }
 0x1c4   : > { %v6774_v23 = vrot.slane %v6467_v19, %v6731_v44 }
 0x1c5   : > { %v6747_v2 = vrot.slane %v6458_v14, %v6728_v29 }
 0x1c6   : > { %2020 = vmatpush1.bf16.msra.mxu0 %v1215_v33  ;;  %2083 = vmatpush1.bf16.msra.mxu1 %v1217_v42  ;;  %v1302_v33 = vunpack.c.h.s8.bf16 %v938_v60  ;;  %v6734_v42 = vld [vmem:[%s6186_s11 + $0x5e8] sm:$0xff]  ;;  %v1301_v60 = vunpack.c.h.s8.bf16 %v937_v4  ;;  %v6770_v4 = vrot.slane %v6467_v19, %v6728_v29 }
 0x1c7   : > { %2021 = vmatprep.subr.bf16.mxu0 %v1244_v50  ;;  %2084 = vmatprep.subr.bf16.mxu1 %v1246_v57  ;;  %v6738_v50 = vrot.slane %v6458_v14, %v6722_v51  ;;  %v966_v57 = vld [vmem:[%s6186_s11 + $0x5f8] sm:$0xff] }
 0x1c8   : > { %v1330_v25 = vunpack.c.l.s8.bf16 %v966_v57 }
 0x1ca   : > { %2022 = vmatpush1.bf16.msra.mxu0 %v1243_v22  ;;  %2085 = vmatpush1.bf16.msra.mxu1 %v1245_v5  ;;  %v6742_v5 = vrot.slane %v6458_v14, %v6725_v63  ;;  %v6754_v22 = vld [vmem:[%s6186_s11 + $0x5e0] sm:$0xff] }
 0x1cb   : > { %2023 = vmatprep.subr.bf16.mxu0 %v1272_v41  ;;  %2086 = vmatprep.subr.bf16.mxu1 %v1274_v38  ;;  %v6751_v41 = vrot.slane %v6458_v14, %v6731_v44  ;;  %v6757_v38 = vld [vmem:[%s6186_s11 + $0x5f0] sm:$0xff] }
 0x1cc   : > { %v1329_v12 = vunpack.c.l.s8.bf16 %v6757_v38 }
 0x1ce   : > { %2024 = vmatpush1.bf16.msra.mxu0 %v1271_v24  ;;  %2087 = vmatpush1.bf16.msra.mxu1 %v1273_v28  ;;  %v6765_v24 = vrot.slane %v6467_v19, %v6725_v63  ;;  %v1328_v28 = vunpack.c.l.s8.bf16 %v6734_v42  ;;  %v1356_v19 = vunpack.c.h.s8.bf16 %v6734_v42 }
 0x1cf   : > { %2025 = vmatprep.subr.bf16.mxu0 %v1300_v45  ;;  %2088 = vmatprep.subr.bf16.mxu1 %v1302_v33  ;;  %v1327_v33 = vunpack.c.l.s8.bf16 %v6754_v22 }
 0x1d0   : > { %v1533_v14 = vpop.f32.mrb[12].mxu0  ;;  %v1596_v17 = vpop.f32.mrb[12].mxu1 }
 0x1d1   : > { %v2407_v26 = vmul.f32 %v6738_v50, %v1533_v14  ;;  %v2409_v34 = vmul.f32 %v6742_v5, %v1596_v17  ;;  %v1535_v47 = vpop.f32.mrb[13].mxu0  ;;  %v1598_v45 = vpop.f32.mrb[13].mxu1  ;;  %v1358_v14 = vunpack.c.h.s8.bf16 %v966_v57 }
 0x1d2   : > { %v2408_v30 = vmul.f32 %v6747_v2, %v1535_v47  ;;  %v2410_v53 = vmul.f32 %v6751_v41, %v1598_v45  ;;  %v1537_v62 = vpop.f32.mrb[14].mxu0  ;;  %v1600_v56 = vpop.f32.mrb[14].mxu1  ;;  %2026 = vmatpush1.bf16.msra.mxu0 %v1299_v21  ;;  %2089 = vmatpush1.bf16.msra.mxu1 %v1301_v60 }
 0x1d3   : > { %v2723_v17 = vadd.f32 %v6761_v18, %v2407_v26  ;;  %v2725_v8 = vadd.f32 %v6765_v24, %v2409_v34  ;;  %v2435_v7 = vmul.f32 %v6738_v50, %v1537_v62  ;;  %v2437_v47 = vmul.f32 %v6742_v5, %v1600_v56  ;;  %v1539_v45 = vpop.f32.mrb[15].mxu0  ;;  %v1602_v32 = vpop.f32.mrb[15].mxu1  ;;  %2027 = vmatprep.subr.bf16.mxu0 %v1328_v28  ;;  %v6792_v26 = vld [vmem:[%s6186_s11 + $0xc8] sm:$0xff]  ;;  %v6795_v34 = vld [vmem:[%s6186_s11 + $0xd8] sm:$0xff] }
 0x1d4   : > { %v2724_v21 = vadd.f32 %v6770_v4, %v2408_v30  ;;  %v2726_v60 = vadd.f32 %v6774_v23, %v2410_v53  ;;  %v2436_v42 = vmul.f32 %v6747_v2, %v1539_v45  ;;  %v2438_v57 = vmul.f32 %v6751_v41, %v1602_v32  ;;  %2090 = vmatprep.subr.bf16.mxu1 %v1330_v25  ;;  %v6804_v30 = vld [vmem:[%s6186_s11 + $0xd0] sm:$0xff] }
 0x1d5   : > { %5312 = vtanh.f32 %v2723_v17  ;;  %v2751_v56 = vadd.f32 %v6761_v18, %v2435_v7  ;;  %v2753_v62 = vadd.f32 %v6765_v24, %v2437_v47  ;;  %v1355_v28 = vunpack.c.h.s8.bf16 %v6754_v22 }
 0x1d6   : > { %5314 = vtanh.f32 %v2725_v8  ;;  %v2752_v53 = vadd.f32 %v6770_v4, %v2436_v42  ;;  %v2754_v32 = vadd.f32 %v6774_v23, %v2438_v57  ;;  %2028 = vmatpush1.bf16.msra.mxu0 %v1327_v33  ;;  %2091 = vmatpush1.bf16.msra.mxu1 %v1329_v12  ;;  %v1357_v25 = vunpack.c.h.s8.bf16 %v6757_v38 }
 0x1d7   : > { %5316 = vtanh.f32 %v2724_v21  ;;  %2029 = vmatprep.subr.bf16.mxu0 %v1356_v19  ;;  %2092 = vmatprep.subr.bf16.mxu1 %v1358_v14  ;;  %v996_v7 = vunpack.c.l.s8.bf16 %v6792_v26  ;;  %v998_v22 = vunpack.c.l.s8.bf16 %v6795_v34  ;;  %v995_v17 = vunpack.c.l.s8.bf16 %v6801_v35 }
 0x1d8   : > { %5318 = vtanh.f32 %v2726_v60  ;;  %v997_v8 = vunpack.c.l.s8.bf16 %v6804_v30  ;;  %v1024_v47 = vunpack.c.h.s8.bf16 %v6792_v26  ;;  %v1543_v45 = vpop.f32.mrb[16].mxu0  ;;  %v1606_v42 = vpop.f32.mrb[16].mxu1  ;;  %v1026_v12 = vunpack.c.h.s8.bf16 %v6795_v34  ;;  %v6821_v34 = vld [vmem:[%s6186_s11 + $0x1a8] sm:$0xff] }
 0x1d9   : > { %5320 = vtanh.f32 %v2751_v56  ;;  %v2463_v38 = vmul.f32 %v6738_v50, %v1543_v45  ;;  %v2465_v33 = vmul.f32 %v6742_v5, %v1606_v42  ;;  %v1545_v19 = vpop.f32.mrb[17].mxu0  ;;  %v1608_v14 = vpop.f32.mrb[17].mxu1  ;;  %v1023_v21 = vunpack.c.h.s8.bf16 %v6801_v35  ;;  %v6827_v42 = vld [vmem:[%s6186_s11 + $0x1b8] sm:$0xff] }
 0x1da   : > { %5322 = vtanh.f32 %v2753_v62  ;;  %2030 = vmatpush1.bf16.msra.mxu0 %v1355_v28  ;;  %2093 = vmatpush1.bf16.msra.mxu1 %v1357_v25  ;;  %v2464_v60 = vmul.f32 %v6747_v2, %v1545_v19  ;;  %v2466_v57 = vmul.f32 %v6751_v41, %v1608_v14  ;;  %v1547_v26 = vpop.f32.mrb[18].mxu0  ;;  %v1610_v56 = vpop.f32.mrb[18].mxu1 }
 0x1db   : > { %5324 = vtanh.f32 %v2752_v53  ;;  %2129 = vmatprep.subr.bf16.mxu0 %v996_v7  ;;  %2192 = vmatprep.subr.bf16.mxu1 %v998_v22  ;;  %v2779_v62 = vadd.f32 %v6761_v18, %v2463_v38  ;;  %v2781_v28 = vadd.f32 %v6765_v24, %v2465_v33  ;;  %v2491_v25 = vmul.f32 %v6738_v50, %v1547_v26  ;;  %v1549_v35 = vpop.f32.mrb[19].mxu0  ;;  %v1612_v45 = vpop.f32.mrb[19].mxu1  ;;  %v6835_v22 = vld [vmem:[%s6186_s11 + $0x1a0] sm:$0xff]  ;;  %v6838_v38 = vld [vmem:[%s6186_s11 + $0x1b0] sm:$0xff] }
 0x1dc   : > { %5326 = vtanh.f32 %v2754_v32  ;;  %v2780_v19 = vadd.f32 %v6770_v4, %v2464_v60  ;;  %v2782_v53 = vadd.f32 %v6774_v23, %v2466_v57  ;;  %v2493_v7 = vmul.f32 %v6742_v5, %v1610_v56 }
 0x1dd   : > { %2036 = vmatmul.mubr.bf16.vlgmr.msra.gmra.mrb[60].mxu0 %v6239_v36  ;;  %2099 = vmatmul.mubr.bf16.vlgmr.msra.gmra.mrb[60].mxu1 %v6239_v36  ;;  %5328 = vtanh.f32 %v2779_v62  ;;  %v2807_v33 = vadd.f32 %v6761_v18, %v2491_v25  ;;  %v2492_v32 = vmul.f32 %v6747_v2, %v1549_v35  ;;  %v2494_v14 = vmul.f32 %v6751_v41, %v1612_v45 }
 0x1de   : > { %2130 = vmatpush1.bf16.msra.mxu0 %v995_v17  ;;  %2193 = vmatpush1.bf16.msra.mxu1 %v997_v8  ;;  %v1025_v60 = vunpack.c.h.s8.bf16 %v6804_v30  ;;  %v1052_v57 = vunpack.c.l.s8.bf16 %v6821_v34  ;;  %5330 = vtanh.f32 %v2781_v28  ;;  %v2809_v26 = vadd.f32 %v6765_v24, %v2493_v7 }
 0x1df   : > { %v6846_v56 = vpop.eup %5312  ;;  %2131 = vmatprep.subr.bf16.mxu0 %v1024_v47  ;;  %2194 = vmatprep.subr.bf16.mxu1 %v1026_v12  ;;  %v1054_v62 = vunpack.c.l.s8.bf16 %v6827_v42  ;;  %5332 = vtanh.f32 %v2780_v19  ;;  %v2808_v25 = vadd.f32 %v6770_v4, %v2492_v32  ;;  %v2810_v35 = vadd.f32 %v6774_v23, %v2494_v14 }
 0x1e0   : > { %8644 = vst [vmem:[#allocation21_spill] sm:$0xff] %v6846_v56  ;;  %v6851_v17 = vpop.eup %5314  ;;  %v1051_v30 = vunpack.c.l.s8.bf16 %v6835_v22  ;;  %v1053_v8 = vunpack.c.l.s8.bf16 %v6838_v38  ;;  %v1080_v28 = vunpack.c.h.s8.bf16 %v6821_v34  ;;  %5334 = vtanh.f32 %v2782_v53  ;;  %v1553_v45 = vpop.f32.mrb[20].mxu0  ;;  %5054 = vmatprep.mubr.msk.bf16.mxu0 %vm1363_vm1, %v6249_v46  ;;  %5057 = vmatprep.mubr.msk.bf16.mxu1 %vm1363_vm1, %v6249_v46 }
 0x1e1   : > { %8645 = vst [vmem:[#allocation22_spill] sm:$0xff] %v6851_v17  ;;  %v1616_v7 = vpop.f32.mrb[20].mxu1  ;;  %v6860_v47 = vpop.eup %5316  ;;  %v1082_v12 = vunpack.c.h.s8.bf16 %v6827_v42  ;;  %5336 = vtanh.f32 %v2807_v33  ;;  %v2519_v19 = vmul.f32 %v6738_v50, %v1553_v45  ;;  %v1079_v43 = vunpack.c.h.s8.bf16 %v6835_v22 }
 0x1e2   : > { %8646 = vst [vmem:[#allocation23_spill] sm:$0xff] %v6860_v47  ;;  %v2521_v32 = vmul.f32 %v6742_v5, %v1616_v7  ;;  %v1555_v34 = vpop.f32.mrb[21].mxu0  ;;  %v1618_v53 = vpop.f32.mrb[21].mxu1  ;;  %2132 = vmatpush1.bf16.msra.mxu0 %v1023_v21  ;;  %2195 = vmatpush1.bf16.msra.mxu1 %v1025_v60  ;;  %5338 = vtanh.f32 %v2809_v26  ;;  %v6873_v7 = vld [vmem:[%s6186_s11 + $0x288] sm:$0xff] }
 0x1e3   : > { %v6865_v14 = vpop.eup %5318  ;;  %v2520_v13 = vmul.f32 %v6747_v2, %v1555_v34  ;;  %v2522_v42 = vmul.f32 %v6751_v41, %v1618_v53  ;;  %v1557_v33 = vpop.f32.mrb[22].mxu0  ;;  %2133 = vmatprep.subr.bf16.mxu0 %v1052_v57  ;;  %2196 = vmatprep.subr.bf16.mxu1 %v1054_v62  ;;  %5340 = vtanh.f32 %v2808_v25  ;;  %v2835_v21 = vadd.f32 %v6761_v18, %v2519_v19  ;;  %v6881_v53 = vld [vmem:[%s6186_s11 + $0x298] sm:$0xff] }
 0x1e4   : > { %8647 = vst [vmem:[#allocation24_spill] sm:$0xff] %v6865_v14  ;;  %v1620_v52 = vpop.f32.mrb[22].mxu1  ;;  %v6870_v45 = vpop.eup %5320  ;;  %v2837_v60 = vadd.f32 %v6765_v24, %v2521_v32  ;;  %v2547_v22 = vmul.f32 %v6738_v50, %v1557_v33  ;;  %5342 = vtanh.f32 %v2810_v35 }
 0x1e5   : > { %8648 = vst [vmem:[#allocation25_spill] sm:$0xff] %v6870_v45  ;;  %v1559_v26 = vpop.f32.mrb[23].mxu0  ;;  %v1622_v40 = vpop.f32.mrb[23].mxu1  ;;  %v2836_v57 = vadd.f32 %v6770_v4, %v2520_v13  ;;  %v2838_v62 = vadd.f32 %v6774_v23, %v2522_v42  ;;  %v2549_v25 = vmul.f32 %v6742_v5, %v1620_v52  ;;  %5344 = vtanh.f32 %v2835_v21  ;;  %2046 = vmatmul.mubr.bf16.gmra.mrb[64].mxu0 %v6265_v55  ;;  %v855_v5 = vld [vmem:[%s6186_s11 + $0x280] sm:$0xff] }
 0x1e6   : > { %v6878_v34 = vpop.eup %5322  ;;  %v2863_v19 = vadd.f32 %v6761_v18, %v2547_v22  ;;  %v2548_v50 = vmul.f32 %v6747_v2, %v1559_v26  ;;  %v2550_v32 = vmul.f32 %v6751_v41, %v1622_v40  ;;  %2109 = vmatmul.mubr.bf16.gmra.mrb[64].mxu1 %v6265_v55  ;;  %2134 = vmatpush1.bf16.msra.mxu0 %v1051_v30  ;;  %v1081_v13 = vunpack.c.h.s8.bf16 %v6838_v38  ;;  %v857_v41 = vld [vmem:[%s6186_s11 + $0x290] sm:$0xff]  ;;  %v884_v26 = vld [vmem:[%s6186_s11 + $0x368] sm:$0xff] }
 0x1e7   : > { %8649 = vst [vmem:[#allocation26_spill] sm:$0xff] %v6878_v34  ;;  %v6886_v61 = vpop.eup %5324  ;;  %2197 = vmatpush1.bf16.msra.mxu1 %v1053_v8  ;;  %v1108_v52 = vunpack.c.l.s8.bf16 %v6873_v7  ;;  %5346 = vtanh.f32 %v2837_v60  ;;  %v2865_v18 = vadd.f32 %v6765_v24, %v2549_v25  ;;  %2135 = vmatprep.subr.bf16.mxu0 %v1080_v28  ;;  %v1110_v40 = vunpack.c.l.s8.bf16 %v6881_v53 }
 0x1e8   : > { %v6893_v35 = vpop.eup %5326  ;;  %2198 = vmatprep.subr.bf16.mxu1 %v1082_v12  ;;  %5348 = vtanh.f32 %v2836_v57  ;;  %v2864_v42 = vadd.f32 %v6770_v4, %v2548_v50  ;;  %v2866_v30 = vadd.f32 %v6774_v23, %v2550_v32  ;;  %5055 = vmatprep.mubr.msk.bf16.mxu0 %vm1363_vm1, %v6275_v0  ;;  %v1107_v38 = vunpack.c.l.s8.bf16 %v855_v5  ;;  %v886_v57 = vld [vmem:[%s6186_s11 + $0x378] sm:$0xff]  ;;  %v911_v23 = vld [vmem:[%s6186_s11 + $0x440] sm:$0xff] }
 0x1e9   : > { %8650 = vst [vmem:[#allocation27_spill] sm:$0xff] %v6893_v35  ;;  %v6899_v2 = vpop.eup %5328  ;;  %5350 = vtanh.f32 %v2838_v62  ;;  %5058 = vmatprep.mubr.msk.bf16.mxu1 %vm1363_vm1, %v6275_v0  ;;  %v1109_v4 = vunpack.c.l.s8.bf16 %v857_v41  ;;  %v1136_v21 = vunpack.c.h.s8.bf16 %v6873_v7  ;;  %v1138_v60 = vunpack.c.h.s8.bf16 %v6881_v53  ;;  %v912_v62 = vld [vmem:[%s6186_s11 + $0x448] sm:$0xff] }
 0x1ea   : > { %8651 = vst [vmem:[#allocation28_spill] sm:$0xff] %v6899_v2  ;;  %v6905_v8 = vpop.eup %5330  ;;  %5352 = vtanh.f32 %v2863_v19  ;;  %2136 = vmatpush1.bf16.msra.mxu0 %v1079_v43  ;;  %v1135_v50 = vunpack.c.h.s8.bf16 %v855_v5  ;;  %v1137_v32 = vunpack.c.h.s8.bf16 %v857_v41  ;;  %v1194_v53 = vunpack.c.h.s8.bf16 %v886_v57 }
 0x1eb   : > { %8652 = vst [vmem:[#allocation29_spill] sm:$0xff] %v6905_v8  ;;  %v6911_v24 = vpop.eup %5332  ;;  %2199 = vmatpush1.bf16.msra.mxu1 %v1081_v13  ;;  %5354 = vtanh.f32 %v2865_v18  ;;  %2137 = vmatprep.subr.bf16.mxu0 %v1108_v52  ;;  %v1164_v18 = vunpack.c.l.s8.bf16 %v884_v26  ;;  %v913_v8 = vld [vmem:[%s6186_s11 + $0x450] sm:$0xff] }
 0x1ec   : > { %8653 = vst [vmem:[#allocation30_spill] sm:$0xff] %v6911_v24  ;;  %v6913_v28 = vpop.eup %5334  ;;  %2200 = vmatprep.subr.bf16.mxu1 %v1110_v40  ;;  %5356 = vtanh.f32 %v2864_v42  ;;  %v1166_v40 = vunpack.c.l.s8.bf16 %v886_v57  ;;  %v883_v42 = vld [vmem:[%s6186_s11 + $0x360] sm:$0xff] }
 0x1ed   : > { %8654 = vst [vmem:[#allocation31_spill] sm:$0xff] %v6913_v28  ;;  %v6919_v33 = vpop.eup %5336  ;;  %5358 = vtanh.f32 %v2866_v30  ;;  %2056 = vmatmul.mubr.bf16.gmra.mrb[68].mxu0 %v6291_v9  ;;  %v885_v30 = vld [vmem:[%s6186_s11 + $0x370] sm:$0xff] }
 0x1ee   : > { %8655 = vst [vmem:[#allocation32_spill] sm:$0xff] %v6919_v33  ;;  %v6925_v22 = vpop.eup %5338  ;;  %2119 = vmatmul.mubr.bf16.gmra.mrb[68].mxu1 %v6291_v9  ;;  %2138 = vmatpush1.bf16.msra.mxu0 %v1107_v38  ;;  %v1163_v38 = vunpack.c.l.s8.bf16 %v883_v42  ;;  %v1193_v57 = vunpack.c.h.s8.bf16 %v885_v30 }
 0x1ef   : > { %8656 = vst [vmem:[#allocation33_spill] sm:$0xff] %v6925_v22  ;;  %v6931_v25 = vpop.eup %5340  ;;  %2201 = vmatpush1.bf16.msra.mxu1 %v1109_v4  ;;  %2139 = vmatprep.subr.bf16.mxu0 %v1136_v21  ;;  %v1165_v4 = vunpack.c.l.s8.bf16 %v885_v30  ;;  %v1248_v30 = vunpack.c.h.s8.bf16 %v912_v62 }
 0x1f0   : > { %8657 = vst [vmem:[#allocation34_spill] sm:$0xff] %v6931_v25  ;;  %v6939_v19 = vpop.eup %5342  ;;  %2202 = vmatprep.subr.bf16.mxu1 %v1138_v60  ;;  %5059 = vmatprep.mubr.msk.bf16.mxu0 %vm1363_vm1, %v6207_v37  ;;  %v1192_v60 = vunpack.c.h.s8.bf16 %v884_v26  ;;  %v1191_v26 = vunpack.c.h.s8.bf16 %v883_v42  ;;  %v1221_v42 = vunpack.c.l.s8.bf16 %v913_v8  ;;  %v7057_v25 = vld [vmem:[%s6184_s10] sm:$0xff] }
 0x1f1   : > { %8658 = vst [vmem:[#allocation35_spill] sm:$0xff] %v6939_v19  ;;  %v6943_v52 = vpop.eup %5344  ;;  %5062 = vmatprep.mubr.msk.bf16.mxu1 %vm1363_vm1, %v6207_v37  ;;  %v914_v37 = vld [vmem:[%s6186_s11 + $0x458] sm:$0xff] }
 0x1f2   : > { %8659 = vst [vmem:[#allocation36_spill] sm:$0xff] %v6943_v52  ;;  %v6949_v7 = vpop.eup %5346  ;;  %2140 = vmatpush1.bf16.msra.mxu0 %v1135_v50  ;;  %v1222_v13 = vunpack.c.l.s8.bf16 %v914_v37  ;;  %v939_v50 = vld [vmem:[%s6186_s11 + $0x520] sm:$0xff] }
 0x1f3   : > { %8660 = vst [vmem:[#allocation37_spill] sm:$0xff] %v6949_v7  ;;  %v6955_v5 = vpop.eup %5348  ;;  %2203 = vmatpush1.bf16.msra.mxu1 %v1137_v32  ;;  %2141 = vmatprep.subr.bf16.mxu0 %v1164_v18  ;;  %v1247_v18 = vunpack.c.h.s8.bf16 %v911_v23  ;;  %v1249_v7 = vunpack.c.h.s8.bf16 %v913_v8 }
 0x1f4   : > { %8661 = vst [vmem:[#allocation38_spill] sm:$0xff] %v6955_v5  ;;  %v6957_v41 = vpop.eup %5350  ;;  %2204 = vmatprep.subr.bf16.mxu1 %v1166_v40  ;;  %v1220_v40 = vunpack.c.l.s8.bf16 %v912_v62  ;;  %v1275_v62 = vunpack.c.l.s8.bf16 %v939_v50 }
 0x1f5   : > { %8662 = vst [vmem:[#allocation39_spill] sm:$0xff] %v6957_v41  ;;  %v6959_v21 = vpop.eup %5352 }
 0x1f6   : > { %8663 = vst [vmem:[#allocation40_spill] sm:$0xff] %v6959_v21  ;;  %v6961_v43 = vpop.eup %5354  ;;  %2142 = vmatpush1.bf16.msra.mxu0 %v1163_v38  ;;  %v1219_v38 = vunpack.c.l.s8.bf16 %v911_v23 }
 0x1f7   : > { %8664 = vst [vmem:[#allocation41_spill] sm:$0xff] %v6961_v43  ;;  %v6967_v12 = vpop.eup %5356  ;;  %2205 = vmatpush1.bf16.msra.mxu1 %v1165_v4  ;;  %2143 = vmatprep.subr.bf16.mxu0 %v1192_v60  ;;  %v1250_v4 = vunpack.c.h.s8.bf16 %v914_v37  ;;  %v940_v60 = vld [vmem:[%s6186_s11 + $0x528] sm:$0xff]  ;;  %v941_v43 = vld [vmem:[%s6186_s11 + $0x530] sm:$0xff] }
 0x1f8   : > { %8665 = vst [vmem:[#allocation42_spill] sm:$0xff] %v6967_v12  ;;  %v6971_v32 = vpop.eup %5358  ;;  %2206 = vmatprep.subr.bf16.mxu1 %v1194_v53  ;;  %v942_v53 = vld [vmem:[%s6186_s11 + $0x538] sm:$0xff]  ;;  %v6984_v37 = vld [vmem:[%s6174_s22 + $0x8] sm:$0xff]  ;;  %v1304_v8 = vunpack.c.h.s8.bf16 %v940_v60 }
 0x1f9   : > { %8666 = vst [vmem:[#allocation43_spill] sm:$0xff] %v6971_v32  ;;  %v1306_v23 = vunpack.c.h.s8.bf16 %v942_v53 }
 0x1fa   : > { %2144 = vmatpush1.bf16.msra.mxu0 %v1191_v26  ;;  %v1276_v26 = vunpack.c.l.s8.bf16 %v940_v60  ;;  %v1303_v60 = vunpack.c.h.s8.bf16 %v939_v50 }
 0x1fb   : > { %2207 = vmatpush1.bf16.msra.mxu1 %v1193_v57  ;;  %2145 = vmatprep.subr.bf16.mxu0 %v1220_v40  ;;  %v1278_v57 = vunpack.c.l.s8.bf16 %v942_v53  ;;  %v6987_v40 = vld [vmem:[%s6179_s26 + $0x8] sm:$0xff]  ;;  %v1305_v53 = vunpack.c.h.s8.bf16 %v941_v43 }
 0x1fc   : > { %2208 = vmatprep.subr.bf16.mxu1 %v1222_v13  ;;  %v1277_v13 = vunpack.c.l.s8.bf16 %v941_v43  ;;  %v7017_v41 = vrot.slane %v6987_v40, %v6452_v10  ;;  %v7026_v43 = vrot.slane %v6987_v40, %v6461_v15  ;;  %v7030_v50 = vrot.slane %v6987_v40, %v6464_v16 }
 0x1fe   : > { %2146 = vmatpush1.bf16.msra.mxu0 %v1219_v38  ;;  %v6990_v38 = vld [vmem:[%s6186_s11 + $0x608] sm:$0xff] }
 0x1ff   : > { %2209 = vmatpush1.bf16.msra.mxu1 %v1221_v42  ;;  %2147 = vmatprep.subr.bf16.mxu0 %v1248_v30  ;;  %v6994_v42 = vrot.slane %v6984_v37, %v6452_v10  ;;  %v7003_v30 = vrot.slane %v6984_v37, %v6461_v15 }
 0x200   : > { %2210 = vmatprep.subr.bf16.mxu1 %v1250_v4  ;;  %v7007_v4 = vrot.slane %v6984_v37, %v6464_v16 }
 0x202   : > { %2148 = vmatpush1.bf16.msra.mxu0 %v1247_v18  ;;  %v970_v18 = vld [vmem:[%s6186_s11 + $0x618] sm:$0xff] }
 0x203   : > { %2211 = vmatpush1.bf16.msra.mxu1 %v1249_v7  ;;  %2149 = vmatprep.subr.bf16.mxu0 %v1276_v26  ;;  %v6998_v7 = vrot.slane %v6984_v37, %v6455_v11  ;;  %v7010_v26 = vld [vmem:[%s6186_s11 + $0x600] sm:$0xff]  ;;  %v1334_v28 = vunpack.c.l.s8.bf16 %v970_v18  ;;  %v1362_v12 = vunpack.c.h.s8.bf16 %v970_v18 }
 0x204   : > { %2212 = vmatprep.subr.bf16.mxu1 %v1278_v57  ;;  %v7013_v57 = vld [vmem:[%s6186_s11 + $0x610] sm:$0xff] }
 0x205   : > { %v1333_v14 = vunpack.c.l.s8.bf16 %v7013_v57 }
 0x206   : > { %2150 = vmatpush1.bf16.msra.mxu0 %v1275_v62  ;;  %v7021_v62 = vrot.slane %v6987_v40, %v6455_v11 }
 0x207   : > { %2213 = vmatpush1.bf16.msra.mxu1 %v1277_v13  ;;  %2151 = vmatprep.subr.bf16.mxu0 %v1304_v8  ;;  %v1332_v13 = vunpack.c.l.s8.bf16 %v6990_v38 }
 0x208   : > { %2214 = vmatprep.subr.bf16.mxu1 %v1306_v23  ;;  %v1659_v32 = vpop.f32.mrb[24].mxu0  ;;  %v1722_v22 = vpop.f32.mrb[24].mxu1  ;;  %v1331_v23 = vunpack.c.l.s8.bf16 %v7010_v26 }
 0x209   : > { %v2411_v19 = vmul.f32 %v6994_v42, %v1659_v32  ;;  %v2413_v17 = vmul.f32 %v6998_v7, %v1722_v22  ;;  %v1661_v34 = vpop.f32.mrb[25].mxu0  ;;  %v1724_v8 = vpop.f32.mrb[25].mxu1  ;;  %v1360_v32 = vunpack.c.h.s8.bf16 %v6990_v38 }
 0x20a   : > { %v2412_v35 = vmul.f32 %v7003_v30, %v1661_v34  ;;  %v2414_v52 = vmul.f32 %v7007_v4, %v1724_v8  ;;  %v1663_v21 = vpop.f32.mrb[26].mxu0  ;;  %v1726_v5 = vpop.f32.mrb[26].mxu1  ;;  %2152 = vmatpush1.bf16.msra.mxu0 %v1303_v60 }
 0x20b   : > { %2215 = vmatpush1.bf16.msra.mxu1 %v1305_v53  ;;  %v2727_v22 = vadd.f32 %v7017_v41, %v2411_v19  ;;  %v2729_v2 = vadd.f32 %v7021_v62, %v2413_v17  ;;  %v2439_v33 = vmul.f32 %v6994_v42, %v1663_v21  ;;  %v2441_v34 = vmul.f32 %v6998_v7, %v1726_v5  ;;  %v1665_v8 = vpop.f32.mrb[27].mxu0  ;;  %v1728_v24 = vpop.f32.mrb[27].mxu1  ;;  %v7048_v19 = vld [vmem:[%s6184_s10 + $0x8] sm:$0xff] }
 0x20c   : > { %2153 = vmatprep.subr.bf16.mxu0 %v1332_v13  ;;  %v2728_v60 = vadd.f32 %v7026_v43, %v2412_v35  ;;  %v2730_v53 = vadd.f32 %v7030_v50, %v2414_v52  ;;  %v2440_v38 = vmul.f32 %v7003_v30, %v1665_v8  ;;  %v2442_v18 = vmul.f32 %v7007_v4, %v1728_v24  ;;  %v7051_v17 = vld [vmem:[%s6184_s10 + $0x388] sm:$0xff]  ;;  %v7060_v35 = vld [vmem:[%s6184_s10 + $0x380] sm:$0xff] }
 0x20d   : > { %2216 = vmatprep.subr.bf16.mxu1 %v1334_v28  ;;  %5360 = vtanh.f32 %v2727_v22  ;;  %v2755_v5 = vadd.f32 %v7017_v41, %v2439_v33  ;;  %v2757_v21 = vadd.f32 %v7021_v62, %v2441_v34  ;;  %v1359_v13 = vunpack.c.h.s8.bf16 %v7010_v26 }
 0x20e   : > { %5362 = vtanh.f32 %v2729_v2  ;;  %v2756_v52 = vadd.f32 %v7026_v43, %v2440_v38  ;;  %v2758_v24 = vadd.f32 %v7030_v50, %v2442_v18  ;;  %2154 = vmatpush1.bf16.msra.mxu0 %v1331_v23  ;;  %v1361_v28 = vunpack.c.h.s8.bf16 %v7013_v57 }
 0x20f   : > { %2217 = vmatpush1.bf16.msra.mxu1 %v1333_v14  ;;  %5364 = vtanh.f32 %v2728_v60  ;;  %2155 = vmatprep.subr.bf16.mxu0 %v1360_v32  ;;  %v3376_v33 = vunpack.c.l.s8.bf16 %v7048_v19  ;;  %v3600_v26 = vunpack.c.l.s8.bf16 %v7051_v17  ;;  %v3375_v22 = vunpack.c.l.s8.bf16 %v7057_v25 }
 0x210   : > { %2218 = vmatprep.subr.bf16.mxu1 %v1362_v12  ;;  %5366 = vtanh.f32 %v2730_v53  ;;  %v3599_v2 = vunpack.c.l.s8.bf16 %v7060_v35  ;;  %v3378_v34 = vunpack.c.h.s8.bf16 %v7048_v19  ;;  %v1732_v8 = vpop.f32.mrb[28].mxu1  ;;  %v1669_v38 = vpop.f32.mrb[28].mxu0  ;;  %v3602_v14 = vunpack.c.h.s8.bf16 %v7051_v17  ;;  %v7077_v17 = vld [vmem:[%s6184_s10 + $0x18] sm:$0xff] }
 0x211   : > { %5368 = vtanh.f32 %v2755_v5  ;;  %v2469_v57 = vmul.f32 %v6998_v7, %v1732_v8  ;;  %v2467_v12 = vmul.f32 %v6994_v42, %v1669_v38  ;;  %v1734_v23 = vpop.f32.mrb[29].mxu1  ;;  %v1671_v32 = vpop.f32.mrb[29].mxu0  ;;  %v3377_v60 = vunpack.c.h.s8.bf16 %v7057_v25  ;;  %v7083_v38 = vld [vmem:[%s6184_s10 + $0x398] sm:$0xff] }
 0x212   : > { %5370 = vtanh.f32 %v2757_v21  ;;  %2156 = vmatpush1.bf16.msra.mxu0 %v1359_v13  ;;  %v2470_v53 = vmul.f32 %v7007_v4, %v1734_v23  ;;  %v2468_v18 = vmul.f32 %v7003_v30, %v1671_v32  ;;  %v1736_v19 = vpop.f32.mrb[30].mxu1  ;;  %v1673_v5 = vpop.f32.mrb[30].mxu0 }
 0x213   : > { %2219 = vmatpush1.bf16.msra.mxu1 %v1361_v28  ;;  %5372 = vtanh.f32 %v2756_v52  ;;  %4264 = vmatprep.subr.bf16.mxu0 %v3600_v26  ;;  %v2785_v21 = vadd.f32 %v7021_v62, %v2469_v57  ;;  %v2783_v13 = vadd.f32 %v7017_v41, %v2467_v12  ;;  %v2497_v28 = vmul.f32 %v6998_v7, %v1736_v19  ;;  %v1738_v25 = vpop.f32.mrb[31].mxu1  ;;  %v1675_v8 = vpop.f32.mrb[31].mxu0  ;;  %v7091_v26 = vld [vmem:[%s6184_s10 + $0x10] sm:$0xff] }
 0x214   : > { %3823 = vmatprep.subr.bf16.mxu1 %v3376_v33  ;;  %5374 = vtanh.f32 %v2758_v24  ;;  %v2786_v23 = vadd.f32 %v7030_v50, %v2470_v53  ;;  %v2784_v52 = vadd.f32 %v7026_v43, %v2468_v18  ;;  %v2495_v33 = vmul.f32 %v6994_v42, %v1673_v5  ;;  %v7094_v57 = vld [vmem:[%s6184_s10 + $0x390] sm:$0xff] }
 0x215   : > { %2162 = vmatmul.mubr.bf16.vlgmr.msra.gmra.mrb[72].mxu0 %v6239_v36  ;;  %5376 = vtanh.f32 %v2785_v21  ;;  %v2813_v12 = vadd.f32 %v7021_v62, %v2497_v28  ;;  %v2498_v24 = vmul.f32 %v7007_v4, %v1738_v25  ;;  %v2496_v32 = vmul.f32 %v7003_v30, %v1675_v8 }
 0x216   : > { %2225 = vmatmul.mubr.bf16.vlgmr.msra.gmra.mrb[72].mxu1 %v6239_v36  ;;  %4265 = vmatpush1.bf16.msra.mxu0 %v3599_v2  ;;  %v3601_v53 = vunpack.c.h.s8.bf16 %v7060_v35  ;;  %v3380_v18 = vunpack.c.l.s8.bf16 %v7077_v17  ;;  %5378 = vtanh.f32 %v2783_v13  ;;  %v2811_v36 = vadd.f32 %v7017_v41, %v2495_v33 }
 0x217   : > { %3824 = vmatpush1.bf16.msra.mxu1 %v3375_v22  ;;  %v7102_v19 = vpop.eup %5360  ;;  %4266 = vmatprep.subr.bf16.mxu0 %v3602_v14  ;;  %v3604_v5 = vunpack.c.l.s8.bf16 %v7083_v38  ;;  %5380 = vtanh.f32 %v2786_v23  ;;  %v2814_v21 = vadd.f32 %v7030_v50, %v2498_v24  ;;  %v2812_v28 = vadd.f32 %v7026_v43, %v2496_v32 }
 0x218   : > { %3825 = vmatprep.subr.bf16.mxu1 %v3378_v34  ;;  %v7107_v22 = vpop.eup %5362  ;;  %5063 = vmatprep.mubr.msk.bf16.mxu1 %vm1363_vm1, %v6249_v46  ;;  %v3379_v35 = vunpack.c.l.s8.bf16 %v7091_v26  ;;  %v3603_v2 = vunpack.c.l.s8.bf16 %v7094_v57  ;;  %v3382_v13 = vunpack.c.h.s8.bf16 %v7077_v17  ;;  %5382 = vtanh.f32 %v2784_v52  ;;  %v1742_v34 = vpop.f32.mrb[32].mxu1 }
 0x219   : > { %8667 = vst [vmem:[#allocation44_spill] sm:$0xff] %v7107_v22  ;;  %v1679_v14 = vpop.f32.mrb[32].mxu0  ;;  %5060 = vmatprep.mubr.msk.bf16.mxu0 %vm1363_vm1, %v6249_v46  ;;  %v7116_v25 = vpop.eup %5364  ;;  %v3606_v8 = vunpack.c.h.s8.bf16 %v7083_v38  ;;  %5384 = vtanh.f32 %v2813_v12  ;;  %v2525_v23 = vmul.f32 %v6998_v7, %v1742_v34  ;;  %v3381_v17 = vunpack.c.h.s8.bf16 %v7091_v26 }
 0x21a   : > { %v2523_v33 = vmul.f32 %v6994_v42, %v1679_v14  ;;  %v1744_v24 = vpop.f32.mrb[33].mxu1  ;;  %v1681_v32 = vpop.f32.mrb[33].mxu0  ;;  %4267 = vmatpush1.bf16.msra.mxu0 %v3601_v53  ;;  %5386 = vtanh.f32 %v2811_v36  ;;  %v7129_v14 = vld [vmem:[%s6184_s10 + $0x28] sm:$0xff] }
 0x21b   : > { %v7121_v56 = vpop.eup %5366  ;;  %3826 = vmatpush1.bf16.msra.mxu1 %v3377_v60  ;;  %v2526_v46 = vmul.f32 %v7007_v4, %v1744_v24  ;;  %v2524_v38 = vmul.f32 %v7003_v30, %v1681_v32  ;;  %v1746_v52 = vpop.f32.mrb[34].mxu1  ;;  %4268 = vmatprep.subr.bf16.mxu0 %v3604_v5  ;;  %5388 = vtanh.f32 %v2814_v21  ;;  %v2841_v60 = vadd.f32 %v7021_v62, %v2525_v23  ;;  %v7137_v32 = vld [vmem:[%s6184_s10 + $0x3a8] sm:$0xff] }
 0x21c   : > { %8668 = vst [vmem:[#allocation45_spill] sm:$0xff] %v7121_v56  ;;  %v1683_v12 = vpop.f32.mrb[34].mxu0  ;;  %v7126_v34 = vpop.eup %5368  ;;  %3827 = vmatprep.subr.bf16.mxu1 %v3380_v18  ;;  %v2839_v53 = vadd.f32 %v7017_v41, %v2523_v33  ;;  %v2553_v26 = vmul.f32 %v6998_v7, %v1746_v52  ;;  %5390 = vtanh.f32 %v2812_v28 }
 0x21d   : > { %v1748_v36 = vpop.f32.mrb[35].mxu1  ;;  %v1685_v45 = vpop.f32.mrb[35].mxu0  ;;  %v2842_v18 = vadd.f32 %v7030_v50, %v2526_v46  ;;  %v2840_v5 = vadd.f32 %v7026_v43, %v2524_v38  ;;  %v2551_v21 = vmul.f32 %v6994_v42, %v1683_v12  ;;  %5392 = vtanh.f32 %v2841_v60  ;;  %2172 = vmatmul.mubr.bf16.gmra.mrb[76].mxu0 %v6265_v55  ;;  %v3155_v38 = vld [vmem:[%s6184_s10 + $0x20] sm:$0xff] }
 0x21e   : > { %v7134_v24 = vpop.eup %5370  ;;  %2235 = vmatmul.mubr.bf16.gmra.mrb[76].mxu1 %v6265_v55  ;;  %v2869_v7 = vadd.f32 %v7021_v62, %v2553_v26  ;;  %v2554_v23 = vmul.f32 %v7007_v4, %v1748_v36  ;;  %v2552_v33 = vmul.f32 %v7003_v30, %v1685_v45  ;;  %4269 = vmatpush1.bf16.msra.mxu0 %v3603_v2  ;;  %v3605_v42 = vunpack.c.h.s8.bf16 %v7094_v57  ;;  %v3267_v57 = vld [vmem:[%s6184_s10 + $0x3a0] sm:$0xff]  ;;  %v3158_v26 = vld [vmem:[%s6184_s10 + $0x38] sm:$0xff] }
 0x21f   : > { %8669 = vst [vmem:[#allocation46_spill] sm:$0xff] %v7134_v24  ;;  %v7142_v47 = vpop.eup %5372  ;;  %3828 = vmatpush1.bf16.msra.mxu1 %v3379_v35  ;;  %v3384_v46 = vunpack.c.l.s8.bf16 %v7129_v14  ;;  %5394 = vtanh.f32 %v2839_v53  ;;  %v2867_v52 = vadd.f32 %v7017_v41, %v2551_v21  ;;  %4270 = vmatprep.subr.bf16.mxu0 %v3606_v8  ;;  %v3608_v45 = vunpack.c.l.s8.bf16 %v7137_v32 }
 0x220   : > { %v7149_v28 = vpop.eup %5374  ;;  %3829 = vmatprep.subr.bf16.mxu1 %v3382_v13  ;;  %5396 = vtanh.f32 %v2842_v18  ;;  %v2870_v55 = vadd.f32 %v7030_v50, %v2554_v23  ;;  %v2868_v30 = vadd.f32 %v7026_v43, %v2552_v33  ;;  %5064 = vmatprep.mubr.msk.bf16.mxu1 %vm1363_vm1, %v6275_v0  ;;  %v3383_v35 = vunpack.c.l.s8.bf16 %v3155_v38  ;;  %v3270_v18 = vld [vmem:[%s6184_s10 + $0x3b8] sm:$0xff]  ;;  %v3271_v13 = vld [vmem:[%s6184_s10 + $0x3c0] sm:$0xff] }
 0x221   : > { %8670 = vst [vmem:[#allocation47_spill] sm:$0xff] %v7149_v28  ;;  %v7155_v62 = vpop.eup %5376  ;;  %5398 = vtanh.f32 %v2840_v5  ;;  %5061 = vmatprep.mubr.msk.bf16.mxu0 %vm1363_vm1, %v6275_v0  ;;  %v3607_v12 = vunpack.c.l.s8.bf16 %v3267_v57  ;;  %v3386_v60 = vunpack.c.h.s8.bf16 %v7129_v14  ;;  %v3610_v53 = vunpack.c.h.s8.bf16 %v7137_v32  ;;  %v3159_v14 = vld [vmem:[%s6184_s10 + $0x40] sm:$0xff] }
 0x222   : > { %8671 = vst [vmem:[#allocation48_spill] sm:$0xff] %v7155_v62  ;;  %v7160_v4 = vpop.eup %5378  ;;  %5400 = vtanh.f32 %v2869_v7  ;;  %4271 = vmatpush1.bf16.msra.mxu0 %v3605_v42  ;;  %v8676_v32 = vpack.c.bf16 %v6625_v58, %v6597_v27  ;;  %v3385_v7 = vunpack.c.h.s8.bf16 %v3155_v38  ;;  %v3388_v42 = vunpack.c.l.s8.bf16 %v3158_v26  ;;  %v3269_v58 = vld [vmem:[%s6184_s10 + $0x3b0] sm:$0xff] }
 0x223   : > { %8672 = vst [vmem:[#allocation49_spill] sm:$0xff] %v7160_v4  ;;  %v7167_v41 = vpop.eup %5380  ;;  %3830 = vmatpush1.bf16.msra.mxu1 %v3381_v17  ;;  %5402 = vtanh.f32 %v2867_v52  ;;  %4272 = vmatprep.subr.bf16.mxu0 %v3608_v45  ;;  %v3612_v27 = vunpack.c.l.s8.bf16 %v3270_v18  ;;  %v3393_v52 = vunpack.c.h.s8.bf16 %v3159_v14  ;;  %v3617_v0 = vunpack.c.h.s8.bf16 %v3271_v13 }
 0x224   : > { %8673 = vst [vmem:[#allocation50_spill] sm:$0xff] %v7167_v41  ;;  %v7171_v50 = vpop.eup %5382  ;;  %3831 = vmatprep.subr.bf16.mxu1 %v3384_v46  ;;  %5404 = vtanh.f32 %v2870_v55  ;;  %v3157_v46 = vld [vmem:[%s6184_s10 + $0x30] sm:$0xff] }
 0x225   : > { %v7179_v8 = vpop.eup %5384  ;;  %5406 = vtanh.f32 %v2868_v30  ;;  %2182 = vmatmul.mubr.bf16.gmra.mrb[80].mxu0 %v6291_v9  ;;  %v3387_v30 = vunpack.c.l.s8.bf16 %v3157_v46 }
 0x226   : > { %8674 = vst [vmem:[#allocation51_spill] sm:$0xff] %v7179_v8  ;;  %v7182_v17 = vpop.eup %5386  ;;  %2245 = vmatmul.mubr.bf16.gmra.mrb[80].mxu1 %v6291_v9  ;;  %4273 = vmatpush1.bf16.msra.mxu0 %v3607_v12  ;;  %v3609_v9 = vunpack.c.h.s8.bf16 %v3267_v57  ;;  %v3611_v57 = vunpack.c.l.s8.bf16 %v3269_v58  ;;  %v3390_v12 = vunpack.c.h.s8.bf16 %v3158_v26  ;;  %v3389_v26 = vunpack.c.h.s8.bf16 %v3157_v46 }
 0x227   : > { %v7186_v36 = vpop.eup %5388  ;;  %3832 = vmatpush1.bf16.msra.mxu1 %v3383_v35  ;;  %3855 = vmatprep.mubr.bf16.mxu1 %v8676_v32  ;;  %v3160_v32 = vld [vmem:[%s6184_s10 + $0x48] sm:$0xff]  ;;  %v3615_v46 = vunpack.c.l.s8.bf16 %v3271_v13  ;;  %v7240_v13 = vrot.slane %v6984_v37, %v6722_v51 }
 0x228   : > { %8675 = vst [vmem:[#allocation52_spill] sm:$0xff] %v7186_v36  ;;  %v7195_v21 = vpop.eup %5390  ;;  %3833 = vmatprep.subr.bf16.mxu1 %v3386_v60  ;;  %4274 = vmatprep.subr.bf16.mxu0 %v3610_v53  ;;  %v3614_v53 = vunpack.c.h.s8.bf16 %v3270_v18  ;;  %v3613_v18 = vunpack.c.h.s8.bf16 %v3269_v58  ;;  %v3162_v58 = vld [vmem:[%s6184_s10 + $0x58] sm:$0xff] }
 0x229   : > { %v7202_v33 = vpop.eup %5392 }
 0x22a   : > { %8677 = vst [vmem:[#allocation53_spill] sm:$0xff] %v7202_v33  ;;  %v7207_v45 = vpop.eup %5394  ;;  %4275 = vmatpush1.bf16.msra.mxu0 %v3609_v9 }
 0x22b   : > { %8678 = vst [vmem:[#allocation54_spill] sm:$0xff] %v7207_v45  ;;  %v7210_v38 = vpop.eup %5396  ;;  %3834 = vmatpush1.bf16.msra.mxu1 %v3385_v7  ;;  %4276 = vmatprep.subr.bf16.mxu0 %v3612_v27  ;;  %v3272_v7 = vld [vmem:[%s6184_s10 + $0x3c8] sm:$0xff]  ;;  %v3392_v27 = vunpack.c.l.s8.bf16 %v3160_v32 }
 0x22c   : > { %8679 = vst [vmem:[#allocation55_spill] sm:$0xff] %v7210_v38  ;;  %v7212_v55 = vpop.eup %5398  ;;  %3835 = vmatprep.subr.bf16.mxu1 %v3388_v42  ;;  %v3616_v5 = vunpack.c.l.s8.bf16 %v3272_v7  ;;  %v3274_v42 = vld [vmem:[%s6184_s10 + $0x3d8] sm:$0xff] }
 0x22d   : > { %8680 = vst [vmem:[#allocation56_spill] sm:$0xff] %v7212_v55  ;;  %v7214_v35 = vpop.eup %5400  ;;  %v3620_v43 = vunpack.c.l.s8.bf16 %v3274_v42 }
 0x22e   : > { %8681 = vst [vmem:[#allocation57_spill] sm:$0xff] %v7214_v35  ;;  %v7216_v60 = vpop.eup %5402  ;;  %4277 = vmatpush1.bf16.msra.mxu0 %v3611_v57  ;;  %v3394_v57 = vunpack.c.h.s8.bf16 %v3160_v32  ;;  %v3398_v32 = vunpack.c.h.s8.bf16 %v3162_v58 }
 0x22f   : > { %8682 = vst [vmem:[#allocation58_spill] sm:$0xff] %v7216_v60  ;;  %v7221_v23 = vpop.eup %5404  ;;  %3836 = vmatpush1.bf16.msra.mxu1 %v3387_v30  ;;  %4278 = vmatprep.subr.bf16.mxu0 %v3614_v53  ;;  %v3391_v30 = vunpack.c.l.s8.bf16 %v3159_v14  ;;  %v3396_v53 = vunpack.c.l.s8.bf16 %v3162_v58  ;;  %v3622_v14 = vunpack.c.h.s8.bf16 %v3274_v42  ;;  %v7259_v42 = vld [vmem:[%s6184_s10 + $0x60] sm:$0xff]  ;;  %v7270_v58 = vrot.slane %v6987_v40, %v6725_v63 }
 0x230   : > { %8683 = vst [vmem:[#allocation59_spill] sm:$0xff] %v7221_v23  ;;  %v7226_v9 = vpop.eup %5406  ;;  %3837 = vmatprep.subr.bf16.mxu1 %v3390_v12  ;;  %v3618_v12 = vunpack.c.h.s8.bf16 %v3272_v7  ;;  %v7244_v7 = vrot.slane %v6984_v37, %v6725_v63  ;;  %v3399_v23 = vunpack.c.l.s8.bf16 %v7259_v42 }
 0x231   : > { %8684 = vst [vmem:[#allocation60_spill] sm:$0xff] %v7226_v9 }
 0x232   : > { %4279 = vmatpush1.bf16.msra.mxu0 %v3613_v18  ;;  %v3273_v18 = vld [vmem:[%s6184_s10 + $0x3d0] sm:$0xff] }
 0x233   : > { %3838 = vmatpush1.bf16.msra.mxu1 %v3389_v26  ;;  %4280 = vmatprep.subr.bf16.mxu0 %v3616_v5  ;;  %v3161_v26 = vld [vmem:[%s6184_s10 + $0x50] sm:$0xff]  ;;  %v3619_v5 = vunpack.c.l.s8.bf16 %v3273_v18 }
 0x234   : > { %3839 = vmatprep.subr.bf16.mxu1 %v3392_v27  ;;  %v3395_v27 = vunpack.c.l.s8.bf16 %v3161_v26 }
 0x236   : > { %4281 = vmatpush1.bf16.msra.mxu0 %v3615_v46  ;;  %v7248_v46 = vld [vmem:[%s6184_s10 + $0x3e8] sm:$0xff] }
 0x237   : > { %3840 = vmatpush1.bf16.msra.mxu1 %v3391_v30  ;;  %4282 = vmatprep.subr.bf16.mxu0 %v3618_v12  ;;  %v3164_v30 = vld [vmem:[%s6184_s10 + $0x68] sm:$0xff]  ;;  %v7266_v12 = vrot.slane %v6987_v40, %v6722_v51  ;;  %v3624_v33 = vunpack.c.l.s8.bf16 %v7248_v46 }
 0x238   : > { %3841 = vmatprep.subr.bf16.mxu1 %v3394_v57  ;;  %v7262_v57 = vld [vmem:[%s6184_s10 + $0x3e0] sm:$0xff] }
 0x239   : > { %v3623_v62 = vunpack.c.l.s8.bf16 %v7262_v57 }
 0x23a   : > { %4283 = vmatpush1.bf16.msra.mxu0 %v3617_v0  ;;  %v7252_v0 = vrot.slane %v6984_v37, %v6728_v29 }
 0x23b   : > { %3842 = vmatpush1.bf16.msra.mxu1 %v3393_v52  ;;  %4284 = vmatprep.subr.bf16.mxu0 %v3620_v43  ;;  %v7256_v43 = vrot.slane %v6984_v37, %v6731_v44  ;;  %v3397_v52 = vunpack.c.h.s8.bf16 %v3161_v26  ;;  %v7274_v37 = vrot.slane %v6987_v40, %v6728_v29  ;;  %v7278_v26 = vrot.slane %v6987_v40, %v6731_v44 }
 0x23c   : > { %3843 = vmatprep.subr.bf16.mxu1 %v3396_v53  ;;  %v3621_v53 = vunpack.c.h.s8.bf16 %v3273_v18 }
 0x23e   : > { %4285 = vmatpush1.bf16.msra.mxu0 %v3619_v5  ;;  %v3400_v5 = vunpack.c.l.s8.bf16 %v3164_v30 }
 0x23f   : > { %3844 = vmatpush1.bf16.msra.mxu1 %v3395_v27  ;;  %4286 = vmatprep.subr.bf16.mxu0 %v3622_v14  ;;  %v3402_v14 = vunpack.c.h.s8.bf16 %v3164_v30 }
 0x240   : > { %3845 = vmatprep.subr.bf16.mxu1 %v3398_v32  ;;  %v1785_v27 = vpop.f32.mrb[36].mxu0  ;;  %v1848_v2 = vpop.f32.mrb[36].mxu1 }
 0x241   : > { %v2415_v35 = vmul.f32 %v7240_v13, %v1785_v27  ;;  %v2417_v38 = vmul.f32 %v7244_v7, %v1848_v2  ;;  %v1787_v32 = vpop.f32.mrb[37].mxu0  ;;  %v1850_v18 = vpop.f32.mrb[37].mxu1  ;;  %v3626_v27 = vunpack.c.h.s8.bf16 %v7248_v46 }
 0x242   : > { %v2416_v8 = vmul.f32 %v7252_v0, %v1787_v32  ;;  %v2418_v41 = vmul.f32 %v7256_v43, %v1850_v18  ;;  %v1789_v40 = vpop.f32.mrb[38].mxu0  ;;  %v1852_v36 = vpop.f32.mrb[38].mxu1  ;;  %4287 = vmatpush1.bf16.msra.mxu0 %v3621_v53  ;;  %v7307_v53 = vld [vmem:[%s6184_s10 + $0x3f0] sm:$0xff] }
 0x243   : > { %3846 = vmatpush1.bf16.msra.mxu1 %v3397_v52  ;;  %v2731_v2 = vadd.f32 %v7266_v12, %v2415_v35  ;;  %v2733_v22 = vadd.f32 %v7270_v58, %v2417_v38  ;;  %v2443_v24 = vmul.f32 %v7240_v13, %v1789_v40  ;;  %v2445_v32 = vmul.f32 %v7244_v7, %v1852_v36  ;;  %v1791_v18 = vpop.f32.mrb[39].mxu0  ;;  %v1854_v56 = vpop.f32.mrb[39].mxu1  ;;  %v7297_v35 = vld [vmem:[%s6184_s10 + $0x78] sm:$0xff]  ;;  %v7304_v36 = vld [vmem:[%s6184_s10 + $0x70] sm:$0xff] }
 0x244   : > { %v2732_v28 = vadd.f32 %v7274_v37, %v2416_v8  ;;  %v2734_v52 = vadd.f32 %v7278_v26, %v2418_v41  ;;  %v2444_v30 = vmul.f32 %v7252_v0, %v1791_v18  ;;  %v2446_v46 = vmul.f32 %v7256_v43, %v1854_v56  ;;  %3847 = vmatprep.subr.bf16.mxu1 %v3400_v5  ;;  %v7300_v38 = vld [vmem:[%s6184_s10 + $0x3f8] sm:$0xff] }
 0x245   : > { %5408 = vtanh.f32 %v2731_v2  ;;  %v2759_v40 = vadd.f32 %v7266_v12, %v2443_v24  ;;  %4288 = vmatprep.subr.bf16.mxu0 %v3624_v33  ;;  %v2761_v41 = vadd.f32 %v7270_v58, %v2445_v32  ;;  %v3401_v56 = vunpack.c.h.s8.bf16 %v7259_v42 }
 0x246   : > { %5410 = vtanh.f32 %v2733_v22  ;;  %v2760_v8 = vadd.f32 %v7274_v37, %v2444_v30  ;;  %4289 = vmatpush1.bf16.msra.mxu0 %v3623_v62  ;;  %v3625_v5 = vunpack.c.h.s8.bf16 %v7262_v57  ;;  %v3404_v24 = vunpack.c.l.s8.bf16 %v7297_v35 }
 0x247   : > { %3848 = vmatpush1.bf16.msra.mxu1 %v3399_v23  ;;  %5412 = vtanh.f32 %v2732_v28  ;;  %v3628_v33 = vunpack.c.l.s8.bf16 %v7300_v38  ;;  %v2762_v2 = vadd.f32 %v7278_v26, %v2446_v46  ;;  %4290 = vmatprep.subr.bf16.mxu0 %v3626_v27  ;;  %v3403_v22 = vunpack.c.l.s8.bf16 %v7304_v36 }
 0x248   : > { %3849 = vmatprep.subr.bf16.mxu1 %v3402_v14  ;;  %5414 = vtanh.f32 %v2734_v52  ;;  %v3627_v32 = vunpack.c.l.s8.bf16 %v7307_v53  ;;  %v1858_v23 = vpop.f32.mrb[40].mxu1  ;;  %v1795_v18 = vpop.f32.mrb[40].mxu0  ;;  %v3406_v28 = vunpack.c.h.s8.bf16 %v7297_v35  ;;  %v3630_v27 = vunpack.c.h.s8.bf16 %v7300_v38  ;;  %v7328_v38 = vld [vmem:[%s6184_s10 + $0x88] sm:$0xff] }
 0x249   : > { %5416 = vtanh.f32 %v2759_v40  ;;  %v2473_v62 = vmul.f32 %v7244_v7, %v1858_v23  ;;  %v2471_v42 = vmul.f32 %v7240_v13, %v1795_v18  ;;  %v1860_v57 = vpop.f32.mrb[41].mxu1  ;;  %v1797_v14 = vpop.f32.mrb[41].mxu0 }
 0x24a   : > { %5418 = vtanh.f32 %v2761_v41  ;;  %v2474_v52 = vmul.f32 %v7256_v43, %v1860_v57  ;;  %v2472_v30 = vmul.f32 %v7252_v0, %v1797_v14  ;;  %v1862_v46 = vpop.f32.mrb[42].mxu1  ;;  %v1799_v40 = vpop.f32.mrb[42].mxu0  ;;  %4291 = vmatpush1.bf16.msra.mxu0 %v3625_v5  ;;  %v7334_v5 = vld [vmem:[%s6184_s10 + $0x408] sm:$0xff] }
 0x24b   : > { %3850 = vmatpush1.bf16.msra.mxu1 %v3401_v56  ;;  %5420 = vtanh.f32 %v2760_v8  ;;  %v2789_v35 = vadd.f32 %v7270_v58, %v2473_v62  ;;  %v2787_v23 = vadd.f32 %v7266_v12, %v2471_v42  ;;  %v2501_v41 = vmul.f32 %v7244_v7, %v1862_v46  ;;  %v1864_v56 = vpop.f32.mrb[43].mxu1  ;;  %v1801_v18 = vpop.f32.mrb[43].mxu0  ;;  %4292 = vmatprep.subr.bf16.mxu0 %v3628_v33  ;;  %v7345_v46 = vld [vmem:[%s6184_s10 + $0x400] sm:$0xff] }
 0x24c   : > { %3851 = vmatprep.subr.bf16.mxu1 %v3404_v24  ;;  %5422 = vtanh.f32 %v2762_v2  ;;  %v2790_v57 = vadd.f32 %v7278_v26, %v2474_v52  ;;  %v2788_v14 = vadd.f32 %v7274_v37, %v2472_v30  ;;  %v2499_v8 = vmul.f32 %v7240_v13, %v1799_v40  ;;  %v7337_v24 = vld [vmem:[%s6184_s10 + $0x80] sm:$0xff] }
 0x24d   : > { %5424 = vtanh.f32 %v2789_v35  ;;  %v2817_v62 = vadd.f32 %v7270_v58, %v2501_v41  ;;  %v2502_v42 = vmul.f32 %v7256_v43, %v1864_v56  ;;  %v2500_v2 = vmul.f32 %v7252_v0, %v1801_v18 }
 0x24e   : > { %v3405_v33 = vunpack.c.h.s8.bf16 %v7304_v36  ;;  %v3629_v52 = vunpack.c.h.s8.bf16 %v7307_v53  ;;  %5426 = vtanh.f32 %v2787_v23  ;;  %v2815_v30 = vadd.f32 %v7266_v12, %v2499_v8  ;;  %4293 = vmatpush1.bf16.msra.mxu0 %v3627_v32 }
 0x24f   : > { %3852 = vmatpush1.bf16.msra.mxu1 %v3403_v22  ;;  %v7348_v40 = vpop.eup %5408  ;;  %v3408_v35 = vunpack.c.l.s8.bf16 %v7328_v38  ;;  %5428 = vtanh.f32 %v2790_v57  ;;  %v2818_v41 = vadd.f32 %v7278_v26, %v2502_v42  ;;  %v2816_v22 = vadd.f32 %v7274_v37, %v2500_v2  ;;  %4294 = vmatprep.subr.bf16.mxu0 %v3630_v27 }
 0x250   : > { %8685 = vst [vmem:[#allocation61_spill] sm:$0xff] %v7348_v40  ;;  %3853 = vmatprep.subr.bf16.mxu1 %v3406_v28  ;;  %v7353_v56 = vpop.eup %5410  ;;  %v3632_v36 = vunpack.c.l.s8.bf16 %v7334_v5  ;;  %v3407_v53 = vunpack.c.l.s8.bf16 %v7337_v24  ;;  %5430 = vtanh.f32 %v2788_v14  ;;  %v1868_v23 = vpop.f32.mrb[44].mxu1  ;;  %v3410_v27 = vunpack.c.h.s8.bf16 %v7328_v38 }
 0x251   : > { %v1805_v18 = vpop.f32.mrb[44].mxu0  ;;  %v7357_v8 = vpop.eup %5412  ;;  %5432 = vtanh.f32 %v2817_v62  ;;  %v2529_v28 = vmul.f32 %v7244_v7, %v1868_v23 }
 0x252   : > { %8686 = vst [vmem:[#allocation62_spill] sm:$0xff] %v7357_v8  ;;  %v2527_v57 = vmul.f32 %v7240_v13, %v1805_v18  ;;  %v1870_v42 = vpop.f32.mrb[45].mxu1  ;;  %v1807_v2 = vpop.f32.mrb[45].mxu0  ;;  %5434 = vtanh.f32 %v2815_v30  ;;  %4295 = vmatpush1.bf16.msra.mxu0 %v3629_v52 }
 0x253   : > { %v5415_v45 = vpop.eup %5414  ;;  %3854 = vmatpush1.bf16.msra.mxu1 %v3405_v33  ;;  %v2530_v14 = vmul.f32 %v7256_v43, %v1870_v42  ;;  %v2528_v60 = vmul.f32 %v7252_v0, %v1807_v2  ;;  %v1872_v55 = vpop.f32.mrb[46].mxu1  ;;  %5436 = vtanh.f32 %v2818_v41  ;;  %v2845_v62 = vadd.f32 %v7270_v58, %v2529_v28  ;;  %4327 = vmatprep.subr.bf16.mxu0 %v3632_v36  ;;  %v7371_v42 = vld [vmem:[%s6184_s10 + $0x98] sm:$0xff] }
 0x254   : > { %v1809_v9 = vpop.f32.mrb[46].mxu0  ;;  %v7365_v32 = vpop.eup %5416  ;;  %3886 = vmatprep.subr.bf16.mxu1 %v3408_v35  ;;  %v2843_v23 = vadd.f32 %v7266_v12, %v2527_v57  ;;  %v2557_v33 = vmul.f32 %v7244_v7, %v1872_v55  ;;  %5438 = vtanh.f32 %v2816_v22  ;;  %v8689_v41 = vpack.c.bf16 %v6609_v48, %v6583_v6 }
 0x255   : > { %8687 = vst [vmem:[#allocation63_spill] sm:$0xff] %v7365_v32  ;;  %v1874_v38 = vpop.f32.mrb[47].mxu1  ;;  %v1811_v30 = vpop.f32.mrb[47].mxu0  ;;  %v2846_v2 = vadd.f32 %v7278_v26, %v2530_v14  ;;  %v2844_v4 = vadd.f32 %v7274_v37, %v2528_v60  ;;  %v2555_v52 = vmul.f32 %v7240_v13, %v1809_v9  ;;  %5440 = vtanh.f32 %v2845_v62 }
 0x256   : > { %v5419_v18 = vpop.eup %5418  ;;  %3856 = vmatmul.mubr.bf16.vlgmr.msra.gmra.mrb[84].mxu1 %v8689_v41  ;;  %v2873_v7 = vadd.f32 %v7270_v58, %v2557_v33  ;;  %v2558_v22 = vmul.f32 %v7256_v43, %v1874_v38  ;;  %v8690_v60 = vpack.c.bf16 %v6671_v39, %v6651_v31  ;;  %v3409_v9 = vunpack.c.h.s8.bf16 %v7337_v24  ;;  %v3169_v43 = vld [vmem:[%s6184_s10 + $0x90] sm:$0xff]  ;;  %v3172_v33 = vld [vmem:[%s6184_s10 + $0xa8] sm:$0xff] }
 0x257   : > { %v7376_v35 = vpop.eup %5420  ;;  %v3081_v55 = vpack.c.bf16 %v5419_v18, %v7353_v56  ;;  %3887 = vmatpush1.bf16.msra.mxu1 %v3407_v53  ;;  %5442 = vtanh.f32 %v2843_v23  ;;  %v2871_v6 = vadd.f32 %v7266_v12, %v2555_v52  ;;  %v2556_v48 = vmul.f32 %v7252_v0, %v1811_v30  ;;  %v3282_v12 = vld [vmem:[%s6184_s10 + $0x418] sm:$0xff]  ;;  %v3281_v23 = vld [vmem:[%s6184_s10 + $0x410] sm:$0xff] }
 0x258   : > { %8688 = vst [vmem:[#allocation64_spill] sm:$0xff] %v7376_v35  ;;  %v5423_v36 = vpop.eup %5422  ;;  %3865 = vmatprep.mubr.bf16.mxu1 %v8690_v60  ;;  %3888 = vmatprep.subr.bf16.mxu1 %v3410_v27  ;;  %v3412_v58 = vunpack.c.l.s8.bf16 %v7371_v42  ;;  %5444 = vtanh.f32 %v2846_v2  ;;  %v2874_v28 = vadd.f32 %v7278_v26, %v2558_v22  ;;  %v3634_v39 = vunpack.c.h.s8.bf16 %v7334_v5  ;;  %v3314_v35 = vld [vmem:[%s6184_s10 + $0x518] sm:$0xff] }
 0x259   : > { %v5425_v13 = vpop.eup %5424  ;;  %v3082_v56 = vpack.c.bf16 %v5423_v36, %v5415_v45  ;;  %5446 = vtanh.f32 %v2844_v4  ;;  %v2872_v24 = vadd.f32 %v7274_v37, %v2556_v48  ;;  %v3411_v5 = vunpack.c.l.s8.bf16 %v3169_v43  ;;  %v7521_v45 = vld [vmem:[%s6184_s10 + $0xe8] sm:$0xff] }
 0x25a   : > { %v7393_v31 = vpop.eup %5426  ;;  %5448 = vtanh.f32 %v2873_v7  ;;  %v8693_v37 = vunpack.c.l.s8.bf16 %v7345_v46  ;;  %v3633_v57 = vunpack.c.h.s8.bf16 %v7345_v46  ;;  %v3414_v27 = vunpack.c.h.s8.bf16 %v7371_v42 }
 0x25b   : > { %8691 = vst [vmem:[#allocation65_spill] sm:$0xff] %v7393_v31  ;;  %v5429_v53 = vpop.eup %5428  ;;  %4296 = vmatprep.mubr.bf16.mxu0 %v3082_v56  ;;  %3889 = vmatpush1.bf16.msra.mxu1 %v3409_v9  ;;  %5450 = vtanh.f32 %v2871_v6  ;;  %v3636_v62 = vunpack.c.l.s8.bf16 %v3282_v12  ;;  %v8695_v18 = vpack.c.bf16 %v6661_v20, %v6639_v1  ;;  %v8697_v42 = vpack.c.bf16 %v6705_v3, %v6693_v54  ;;  %v3171_v1 = vld [vmem:[%s6184_s10 + $0xa0] sm:$0xff]  ;;  %v3284_v3 = vld [vmem:[%s6184_s10 + $0x428] sm:$0xff] }
 0x25c   : > { %v7402_v26 = vpop.eup %5430  ;;  %4297 = vmatmul.mubr.bf16.vlgmr.msra.gmra.mrb[84].mxu0 %v3081_v55  ;;  %3890 = vmatprep.subr.bf16.mxu1 %v3412_v58  ;;  %5452 = vtanh.f32 %v2874_v28  ;;  %v3413_v52 = vunpack.c.h.s8.bf16 %v3169_v43  ;;  %v3635_v7 = vunpack.c.l.s8.bf16 %v3281_v23  ;;  %v3416_v22 = vunpack.c.l.s8.bf16 %v3172_v33  ;;  %v3283_v28 = vld [vmem:[%s6184_s10 + $0x420] sm:$0xff] }
 0x25d   : > { %8692 = vst [vmem:[#allocation66_spill] sm:$0xff] %v7402_v26  ;;  %v5433_v4 = vpop.eup %5432  ;;  %4328 = vmatpush1.bf16.msra.mxu0 %v8693_v37  ;;  %5454 = vtanh.f32 %v2872_v24  ;;  %v3638_v60 = vunpack.c.h.s8.bf16 %v3282_v12  ;;  %v3415_v6 = vunpack.c.l.s8.bf16 %v3171_v1  ;;  %v3418_v56 = vunpack.c.h.s8.bf16 %v3172_v33  ;;  %v8703_v37 = vld [vmem:[#allocation12_spill] sm:$0xff] }
 0x25e   : > { %v7408_v14 = vpop.eup %5434  ;;  %4329 = vmatprep.subr.bf16.mxu0 %v3634_v39  ;;  %v3109_v38 = vpack.c.bf16 %v5433_v4, %v5425_v13  ;;  %3866 = vmatmul.mubr.bf16.gmra.mrb[88].mxu1 %v8695_v18  ;;  %v3637_v13 = vunpack.c.h.s8.bf16 %v3281_v23  ;;  %v3640_v43 = vunpack.c.l.s8.bf16 %v3284_v3  ;;  %v3174_v39 = vld [vmem:[%s6184_s10 + $0xb8] sm:$0xff]  ;;  %v8701_v12 = vpack.c.bf16 %v6697_v59, %v6681_v49  ;;  %v3173_v49 = vld [vmem:[%s6184_s10 + $0xb0] sm:$0xff] }
 0x25f   : > { %8694 = vst [vmem:[#allocation67_spill] sm:$0xff] %v7408_v14  ;;  %v5437_v30 = vpop.eup %5436  ;;  %3875 = vmatprep.mubr.bf16.mxu1 %v8697_v42  ;;  %3891 = vmatpush1.bf16.msra.mxu1 %v3411_v5  ;;  %v3639_v33 = vunpack.c.l.s8.bf16 %v3283_v28  ;;  %v3286_v18 = vld [vmem:[%s6184_s10 + $0x438] sm:$0xff]  ;;  %v3419_v42 = vunpack.c.l.s8.bf16 %v3173_v49 }
 0x260   : > { %v7417_v2 = vpop.eup %5438  ;;  %v3110_v41 = vpack.c.bf16 %v5437_v30, %v5429_v53  ;;  %3892 = vmatprep.subr.bf16.mxu1 %v3414_v27  ;;  %v3642_v30 = vunpack.c.h.s8.bf16 %v3284_v3  ;;  %v3175_v3 = vld [vmem:[%s6184_s10 + $0xc0] sm:$0xff] }
 0x261   : > { %8696 = vst [vmem:[#allocation68_spill] sm:$0xff] %v7417_v2  ;;  %v5441_v55 = vpop.eup %5440  ;;  %4330 = vmatpush1.bf16.msra.mxu0 %v3633_v57  ;;  %v8704_v57 = vld [vmem:[#allocation10_spill] sm:$0xff] }
 0x262   : > { %v7425_v36 = vpop.eup %5442  ;;  %4331 = vmatprep.subr.bf16.mxu0 %v3636_v62  ;;  %4306 = vmatprep.mubr.bf16.mxu0 %v3110_v41  ;;  %v8705_v27 = vpack.c.bf16 %v8703_v37, %v8704_v57  ;;  %v3417_v62 = vunpack.c.h.s8.bf16 %v3171_v1  ;;  %v3422_v41 = vunpack.c.h.s8.bf16 %v3174_v39  ;;  %v3421_v1 = vunpack.c.h.s8.bf16 %v3173_v49  ;;  %v7470_v57 = vld [vmem:[%s6184_s10 + $0xd8] sm:$0xff] }
 0x263   : > { %8698 = vst [vmem:[#allocation69_spill] sm:$0xff] %v7425_v36  ;;  %v5445_v54 = vpop.eup %5444  ;;  %3893 = vmatpush1.bf16.msra.mxu1 %v3413_v52  ;;  %v3641_v52 = vunpack.c.h.s8.bf16 %v3283_v28 }
 0x264   : > { %v7428_v9 = vpop.eup %5446  ;;  %4307 = vmatmul.mubr.bf16.gmra.mrb[88].mxu0 %v3109_v38  ;;  %3894 = vmatprep.subr.bf16.mxu1 %v3416_v22  ;;  %v3420_v38 = vunpack.c.l.s8.bf16 %v3174_v39  ;;  %v3176_v22 = vld [vmem:[%s6184_s10 + $0xc8] sm:$0xff] }
 0x265   : > { %8699 = vst [vmem:[#allocation70_spill] sm:$0xff] %v7428_v9  ;;  %v5449_v48 = vpop.eup %5448  ;;  %4332 = vmatpush1.bf16.msra.mxu0 %v3635_v7  ;;  %v3285_v7 = vld [vmem:[%s6184_s10 + $0x430] sm:$0xff]  ;;  %v3426_v28 = vunpack.c.h.s8.bf16 %v3176_v22 }
 0x266   : > { %v7430_v58 = vpop.eup %5450  ;;  %4333 = vmatprep.subr.bf16.mxu0 %v3638_v60  ;;  %v3137_v24 = vpack.c.bf16 %v5449_v48, %v5441_v55  ;;  %3876 = vmatmul.mubr.bf16.gmra.mrb[92].mxu1 %v8701_v12  ;;  %v3644_v55 = vunpack.c.l.s8.bf16 %v3286_v18  ;;  %v3643_v60 = vunpack.c.l.s8.bf16 %v3285_v7  ;;  %v3288_v48 = vld [vmem:[%s6184_s10 + $0x448] sm:$0xff] }
 0x267   : > { %8700 = vst [vmem:[#allocation71_spill] sm:$0xff] %v7430_v58  ;;  %v5453_v53 = vpop.eup %5452  ;;  %3895 = vmatpush1.bf16.msra.mxu1 %v3415_v6  ;;  %3918 = vmatprep.mubr.bf16.mxu1 %v8705_v27  ;;  %v3646_v6 = vunpack.c.h.s8.bf16 %v3286_v18  ;;  %v3648_v39 = vunpack.c.l.s8.bf16 %v3288_v48 }
 0x268   : > { %v7439_v4 = vpop.eup %5454  ;;  %v3138_v23 = vpack.c.bf16 %v5453_v53, %v5445_v54  ;;  %3896 = vmatprep.subr.bf16.mxu1 %v3418_v56  ;;  %v3424_v54 = vunpack.c.l.s8.bf16 %v3176_v22  ;;  %v7453_v56 = vld [vmem:[%s6174_s22 + $0x10] sm:$0xff]  ;;  %v3650_v22 = vunpack.c.h.s8.bf16 %v3288_v48 }
 0x269   : > { %8702 = vst [vmem:[#allocation72_spill] sm:$0xff] %v7439_v4  ;;  %4334 = vmatpush1.bf16.msra.mxu0 %v3637_v13  ;;  %v3423_v13 = vunpack.c.l.s8.bf16 %v3175_v3  ;;  %v7459_v53 = vld [vmem:[%s6179_s26 + $0x10] sm:$0xff]  ;;  %v7463_v12 = vrot.slane %v7453_v56, %v6452_v10  ;;  %v7467_v37 = vrot.slane %v7453_v56, %v6455_v11  ;;  %v7474_v27 = vrot.slane %v7453_v56, %v6461_v15 }
 0x26a   : > { %4335 = vmatprep.subr.bf16.mxu0 %v3640_v43  ;;  %4316 = vmatprep.mubr.bf16.mxu0 %v3138_v23  ;;  %v3645_v43 = vunpack.c.h.s8.bf16 %v3285_v7  ;;  %v3425_v23 = vunpack.c.h.s8.bf16 %v3175_v3  ;;  %v7493_v18 = vrot.slane %v7459_v53, %v6455_v11  ;;  %v7504_v7 = vrot.slane %v7459_v53, %v6464_v16 }
 0x26b   : > { %3897 = vmatpush1.bf16.msra.mxu1 %v3417_v62  ;;  %v7478_v62 = vrot.slane %v7453_v56, %v6464_v16 }
 0x26c   : > { %4317 = vmatmul.mubr.bf16.gmra.mrb[92].mxu0 %v3137_v24  ;;  %3898 = vmatprep.subr.bf16.mxu1 %v3420_v38  ;;  %v7456_v24 = vld [vmem:[%s6184_s10 + $0x440] sm:$0xff]  ;;  %v7484_v38 = vld [vmem:[%s6184_s10 + $0xd0] sm:$0xff] }
 0x26d   : > { %4336 = vmatpush1.bf16.msra.mxu0 %v3639_v33  ;;  %v7481_v33 = vld [vmem:[%s6184_s10 + $0x458] sm:$0xff]  ;;  %v3647_v49 = vunpack.c.l.s8.bf16 %v7456_v24 }
 0x26e   : > { %4337 = vmatprep.subr.bf16.mxu0 %v3642_v30  ;;  %v7489_v30 = vrot.slane %v7459_v53, %v6452_v10  ;;  %v3654_v58 = vunpack.c.h.s8.bf16 %v7481_v33 }
 0x26f   : > { %3899 = vmatpush1.bf16.msra.mxu1 %v3419_v42  ;;  %v7497_v42 = vrot.slane %v7459_v53, %v6461_v15 }
 0x270   : > { %3900 = vmatprep.subr.bf16.mxu1 %v3422_v41 }
 0x271   : > { %4338 = vmatpush1.bf16.msra.mxu0 %v3641_v52  ;;  %v7500_v52 = vld [vmem:[%s6184_s10 + $0x450] sm:$0xff] }
 0x272   : > { %4339 = vmatprep.subr.bf16.mxu0 %v3644_v55 }
 0x273   : > { %3901 = vmatpush1.bf16.msra.mxu1 %v3421_v1  ;;  %v3649_v1 = vunpack.c.h.s8.bf16 %v7456_v24  ;;  %v3651_v24 = vunpack.c.l.s8.bf16 %v7500_v52 }
 0x274   : > { %3902 = vmatprep.subr.bf16.mxu1 %v3424_v54 }
 0x275   : > { %4340 = vmatpush1.bf16.msra.mxu0 %v3643_v60  ;;  %v3428_v60 = vunpack.c.l.s8.bf16 %v7470_v57 }
 0x276   : > { %4341 = vmatprep.subr.bf16.mxu0 %v3646_v6 }
 0x277   : > { %3903 = vmatpush1.bf16.msra.mxu1 %v3423_v13 }
 0x278   : > { %3904 = vmatprep.subr.bf16.mxu1 %v3426_v28  ;;  %v1911_v41 = vpop.f32.mrb[48].mxu0  ;;  %v1974_v55 = vpop.f32.mrb[48].mxu1  ;;  %v3427_v28 = vunpack.c.l.s8.bf16 %v7484_v38 }
 0x279   : > { %4342 = vmatpush1.bf16.msra.mxu0 %v3645_v43  ;;  %v2419_v54 = vmul.f32 %v7463_v12, %v1911_v41  ;;  %v2421_v3 = vmul.f32 %v7467_v37, %v1974_v55  ;;  %v1913_v6 = vpop.f32.mrb[49].mxu0  ;;  %v1976_v13 = vpop.f32.mrb[49].mxu1  ;;  %v3652_v43 = vunpack.c.l.s8.bf16 %v7481_v33  ;;  %v3430_v41 = vunpack.c.h.s8.bf16 %v7470_v57 }
 0x27a   : > { %4343 = vmatprep.subr.bf16.mxu0 %v3648_v39  ;;  %v2420_v39 = vmul.f32 %v7474_v27, %v1913_v6  ;;  %v2422_v5 = vmul.f32 %v7478_v62, %v1976_v13  ;;  %v1915_v48 = vpop.f32.mrb[50].mxu0  ;;  %v1978_v59 = vpop.f32.mrb[50].mxu1 }
 0x27b   : > { %3905 = vmatpush1.bf16.msra.mxu1 %v3425_v23  ;;  %v2735_v55 = vadd.f32 %v7489_v30, %v2419_v54  ;;  %v2737_v46 = vadd.f32 %v7493_v18, %v2421_v3  ;;  %v2447_v20 = vmul.f32 %v7463_v12, %v1915_v48  ;;  %v2449_v6 = vmul.f32 %v7467_v37, %v1978_v59  ;;  %v1917_v13 = vpop.f32.mrb[51].mxu0  ;;  %v1980_v0 = vpop.f32.mrb[51].mxu1  ;;  %v7528_v54 = vld [vmem:[%s6184_s10 + $0x468] sm:$0xff]  ;;  %v7531_v3 = vld [vmem:[%s6184_s10 + $0xe0] sm:$0xff] }
 0x27c   : > { %v2736_v23 = vadd.f32 %v7497_v42, %v2420_v39  ;;  %v2738_v36 = vadd.f32 %v7504_v7, %v2422_v5  ;;  %v2448_v57 = vmul.f32 %v7474_v27, %v1917_v13  ;;  %3906 = vmatprep.subr.bf16.mxu1 %v3428_v60  ;;  %v7537_v39 = vld [vmem:[%s6184_s10 + $0x460] sm:$0xff]  ;;  %v3429_v5 = vunpack.c.h.s8.bf16 %v7484_v38 }
 0x27d   : > { %4344 = vmatpush1.bf16.msra.mxu0 %v3647_v49  ;;  %v2450_v49 = vmul.f32 %v7478_v62, %v1980_v0  ;;  %5456 = vtanh.f32 %v2735_v55  ;;  %v2763_v59 = vadd.f32 %v7489_v30, %v2447_v20  ;;  %v2765_v48 = vadd.f32 %v7493_v18, %v2449_v6 }
 0x27e   : > { %4345 = vmatprep.subr.bf16.mxu0 %v3650_v22  ;;  %5458 = vtanh.f32 %v2737_v46  ;;  %v3653_v0 = vunpack.c.h.s8.bf16 %v7500_v52  ;;  %v3432_v22 = vunpack.c.l.s8.bf16 %v7521_v45  ;;  %v2764_v55 = vadd.f32 %v7497_v42, %v2448_v57 }
 0x27f   : > { %3907 = vmatpush1.bf16.msra.mxu1 %v3427_v28  ;;  %5460 = vtanh.f32 %v2736_v23  ;;  %v3656_v20 = vunpack.c.l.s8.bf16 %v7528_v54  ;;  %v3431_v60 = vunpack.c.l.s8.bf16 %v7531_v3  ;;  %v2766_v33 = vadd.f32 %v7504_v7, %v2450_v49 }
 0x280   : > { %3908 = vmatprep.subr.bf16.mxu1 %v3430_v41  ;;  %5462 = vtanh.f32 %v2738_v36  ;;  %v1921_v38 = vpop.f32.mrb[52].mxu0  ;;  %v3434_v52 = vunpack.c.h.s8.bf16 %v7521_v45  ;;  %v1984_v28 = vpop.f32.mrb[52].mxu1  ;;  %v3433_v57 = vunpack.c.h.s8.bf16 %v7531_v3 }
 0x281   : > { %4346 = vmatpush1.bf16.msra.mxu0 %v3649_v1  ;;  %5464 = vtanh.f32 %v2763_v59  ;;  %v2475_v1 = vmul.f32 %v7463_v12, %v1921_v38  ;;  %v1923_v6 = vpop.f32.mrb[53].mxu0  ;;  %v2477_v13 = vmul.f32 %v7467_v37, %v1984_v28  ;;  %v1986_v23 = vpop.f32.mrb[53].mxu1 }
 0x282   : > { %4347 = vmatprep.subr.bf16.mxu0 %v3652_v43  ;;  %5466 = vtanh.f32 %v2765_v48  ;;  %v2476_v36 = vmul.f32 %v7474_v27, %v1923_v6  ;;  %v1925_v43 = vpop.f32.mrb[54].mxu0  ;;  %v2478_v45 = vmul.f32 %v7478_v62, %v1986_v23  ;;  %v1988_v49 = vpop.f32.mrb[54].mxu1 }
 0x283   : > { %3909 = vmatpush1.bf16.msra.mxu1 %v3429_v5  ;;  %5468 = vtanh.f32 %v2764_v55  ;;  %v2791_v59 = vadd.f32 %v7489_v30, %v2475_v1  ;;  %v2503_v38 = vmul.f32 %v7463_v12, %v1925_v43  ;;  %v1927_v48 = vpop.f32.mrb[55].mxu0  ;;  %v7557_v5 = vld [vmem:[%s6184_s10 + $0xf8] sm:$0xff]  ;;  %v2793_v28 = vadd.f32 %v7493_v18, %v2477_v13  ;;  %v1990_v6 = vpop.f32.mrb[55].mxu1  ;;  %v7567_v55 = vld [vmem:[%s6184_s10 + $0xf0] sm:$0xff] }
 0x284   : > { %3910 = vmatprep.subr.bf16.mxu1 %v3432_v22  ;;  %5470 = vtanh.f32 %v2766_v33  ;;  %v2792_v3 = vadd.f32 %v7497_v42, %v2476_v36  ;;  %v2504_v23 = vmul.f32 %v7474_v27, %v1927_v48  ;;  %v7564_v22 = vld [vmem:[%s6184_s10 + $0x478] sm:$0xff]  ;;  %v7571_v43 = vld [vmem:[%s6184_s10 + $0x470] sm:$0xff]  ;;  %v2505_v13 = vmul.f32 %v7467_v37, %v1988_v49  ;;  %v7583_v49 = vld [vmem:[%s6184_s10 + $0x108] sm:$0xff] }
 0x285   : > { %4348 = vmatpush1.bf16.msra.mxu0 %v3651_v24  ;;  %5472 = vtanh.f32 %v2791_v59  ;;  %v2819_v1 = vadd.f32 %v7489_v30, %v2503_v38  ;;  %v3436_v36 = vunpack.c.l.s8.bf16 %v7557_v5  ;;  %v2794_v48 = vadd.f32 %v7504_v7, %v2478_v45 }
 0x286   : > { %4349 = vmatprep.subr.bf16.mxu0 %v3654_v58  ;;  %v2506_v58 = vmul.f32 %v7478_v62, %v1990_v6  ;;  %5474 = vtanh.f32 %v2792_v3  ;;  %v2820_v33 = vadd.f32 %v7497_v42, %v2504_v23  ;;  %v3660_v59 = vunpack.c.l.s8.bf16 %v7564_v22 }
 0x287   : > { %3911 = vmatpush1.bf16.msra.mxu1 %v3431_v60  ;;  %v7578_v24 = vpop.eup %5456  ;;  %5476 = vtanh.f32 %v2819_v1  ;;  %v3435_v38 = vunpack.c.l.s8.bf16 %v7567_v55  ;;  %v2821_v60 = vadd.f32 %v7493_v18, %v2505_v13  ;;  %v3438_v23 = vunpack.c.h.s8.bf16 %v7557_v5 }
 0x288   : > { %3912 = vmatprep.subr.bf16.mxu1 %v3434_v52  ;;  %v7586_v6 = vpop.eup %5458  ;;  %5478 = vtanh.f32 %v2820_v33  ;;  %v1931_v45 = vpop.f32.mrb[56].mxu0  ;;  %v3437_v9 = vunpack.c.h.s8.bf16 %v7567_v55  ;;  %v3440_v5 = vunpack.c.l.s8.bf16 %v7583_v49  ;;  %v8706_v55 = vunpack.c.l.s8.bf16 %v7537_v39 }
 0x289   : > { %4350 = vmatpush1.bf16.msra.mxu0 %v3653_v0  ;;  %v2822_v0 = vadd.f32 %v7504_v7, %v2506_v58  ;;  %v1994_v52 = vpop.f32.mrb[56].mxu1  ;;  %v5461_v1 = vpop.eup %5460  ;;  %v2531_v41 = vmul.f32 %v7463_v12, %v1931_v45  ;;  %5480 = vtanh.f32 %v2793_v28 }
 0x28a   : > { %4351 = vmatprep.subr.bf16.mxu0 %v3656_v20  ;;  %v1933_v46 = vpop.f32.mrb[57].mxu0  ;;  %v2533_v13 = vmul.f32 %v7467_v37, %v1994_v52  ;;  %v1996_v4 = vpop.f32.mrb[57].mxu1  ;;  %5482 = vtanh.f32 %v2794_v48 }
 0x28b   : > { %v7594_v20 = vpop.eup %5462  ;;  %3913 = vmatpush1.bf16.msra.mxu1 %v3433_v57  ;;  %v2532_v33 = vmul.f32 %v7474_v27, %v1933_v46  ;;  %v1935_v3 = vpop.f32.mrb[58].mxu0  ;;  %v2534_v58 = vmul.f32 %v7478_v62, %v1996_v4  ;;  %v2847_v28 = vadd.f32 %v7489_v30, %v2531_v41  ;;  %5484 = vtanh.f32 %v2821_v60 }
 0x28c   : > { %v1998_v31 = vpop.f32.mrb[58].mxu1  ;;  %v7599_v45 = vpop.eup %5464  ;;  %3914 = vmatprep.subr.bf16.mxu1 %v3436_v36  ;;  %v2559_v52 = vmul.f32 %v7463_v12, %v1935_v3  ;;  %v2849_v46 = vadd.f32 %v7493_v18, %v2533_v13  ;;  %v8707_v4 = vunpack.c.h.s8.bf16 %v7528_v54  ;;  %5486 = vtanh.f32 %v2822_v0 }
 0x28d   : > { %4352 = vmatpush1.bf16.msra.mxu0 %v8706_v55  ;;  %v1937_v57 = vpop.f32.mrb[59].mxu0  ;;  %v2000_v14 = vpop.f32.mrb[59].mxu1  ;;  %v2848_v48 = vadd.f32 %v7497_v42, %v2532_v33  ;;  %v3083_v36 = vpack.c.bf16 %v7599_v45, %v7578_v24  ;;  %5488 = vtanh.f32 %v2847_v28  ;;  %v2850_v60 = vadd.f32 %v7504_v7, %v2534_v58  ;;  %v3297_v24 = vld [vmem:[%s6184_s10 + $0x490] sm:$0xff] }
 0x28e   : > { %v7606_v26 = vpop.eup %5466  ;;  %4353 = vmatprep.subr.bf16.mxu0 %v8707_v4  ;;  %v2560_v2 = vmul.f32 %v7474_v27, %v1937_v57  ;;  %v2875_v41 = vadd.f32 %v7489_v30, %v2559_v52  ;;  %v2561_v3 = vmul.f32 %v7467_v37, %v1998_v31  ;;  %v2562_v33 = vmul.f32 %v7478_v62, %v2000_v14  ;;  %v3183_v30 = vld [vmem:[%s6184_s10 + $0x100] sm:$0xff] }
 0x28f   : > { %v5469_v12 = vpop.eup %5468  ;;  %3915 = vmatpush1.bf16.msra.mxu1 %v3435_v38  ;;  %5490 = vtanh.f32 %v2848_v48  ;;  %v8708_v55 = vunpack.c.h.s8.bf16 %v7537_v39  ;;  %v3662_v14 = vunpack.c.h.s8.bf16 %v7564_v22  ;;  %v3296_v39 = vld [vmem:[%s6184_s10 + $0x488] sm:$0xff]  ;;  %v8709_v22 = vunpack.c.l.s8.bf16 %v7571_v43  ;;  %v3295_v57 = vld [vmem:[%s6184_s10 + $0x480] sm:$0xff]  ;;  %v8711_v48 = vld [vmem:[#allocation9_spill] sm:$0xff] }
 0x290   : > { %v7617_v13 = vpop.eup %5470  ;;  %v3084_v54 = vpack.c.bf16 %v5469_v12, %v5461_v1  ;;  %v2876_v27 = vadd.f32 %v7497_v42, %v2560_v2  ;;  %5492 = vtanh.f32 %v2875_v41  ;;  %3916 = vmatprep.subr.bf16.mxu1 %v3438_v23  ;;  %v2877_v37 = vadd.f32 %v7493_v18, %v2561_v3  ;;  %v8710_v4 = vld [vmem:[#allocation11_spill] sm:$0xff]  ;;  %v3186_v41 = vld [vmem:[%s6184_s10 + $0x118] sm:$0xff] }
 0x291   : > { %v7621_v0 = vpop.eup %5472  ;;  %4354 = vmatpush1.bf16.msra.mxu0 %v8708_v55  ;;  %v3086_v31 = vpack.c.bf16 %v7617_v13, %v7594_v20  ;;  %v2878_v62 = vadd.f32 %v7504_v7, %v2562_v33  ;;  %v3439_v1 = vunpack.c.l.s8.bf16 %v3183_v30  ;;  %v3661_v7 = vunpack.c.h.s8.bf16 %v7571_v43  ;;  %v3185_v55 = vld [vmem:[%s6184_s10 + $0x110] sm:$0xff] }
 0x292   : > { %v5475_v2 = vpop.eup %5474  ;;  %4355 = vmatprep.subr.bf16.mxu0 %v3660_v59  ;;  %4359 = vmatprep.mubr.bf16.mxu0 %v3084_v54  ;;  %5494 = vtanh.f32 %v2876_v27  ;;  %v3442_v58 = vunpack.c.h.s8.bf16 %v7583_v49  ;;  %v8712_v12 = vpack.c.bf16 %v8710_v4, %v8711_v48  ;;  %v8714_v49 = vld [vmem:[#allocation14_spill] sm:$0xff]  ;;  %v3441_v3 = vunpack.c.h.s8.bf16 %v3183_v30 }
 0x293   : > { %v7633_v42 = vpop.eup %5476  ;;  %5496 = vtanh.f32 %v2849_v46  ;;  %3917 = vmatpush1.bf16.msra.mxu1 %v3437_v9  ;;  %v3664_v9 = vunpack.c.l.s8.bf16 %v3296_v39  ;;  %v3663_v33 = vunpack.c.l.s8.bf16 %v3295_v57  ;;  %v3665_v4 = vunpack.c.h.s8.bf16 %v3295_v57  ;;  %v8720_v57 = vld [vmem:[#allocation18_spill] sm:$0xff] }
 0x294   : > { %v5479_v23 = vpop.eup %5478  ;;  %v3111_v18 = vpack.c.bf16 %v7633_v42, %v7621_v0  ;;  %5498 = vtanh.f32 %v2850_v60  ;;  %3949 = vmatprep.subr.bf16.mxu1 %v3440_v5  ;;  %v8713_v5 = vld [vmem:[#allocation16_spill] sm:$0xff]  ;;  %v8725_v0 = vld [vmem:[#allocation23_spill] sm:$0xff]  ;;  %v7722_v20 = vrot.slane %v7453_v56, %v6728_v29  ;;  %v7726_v13 = vrot.slane %v7453_v56, %v6731_v44  ;;  %v7828_v54 = vld [vmem:[%s6184_s10 + $0x178] sm:$0xff] }
 0x295   : > { %v7638_v59 = vpop.eup %5480  ;;  %4356 = vmatpush1.bf16.msra.mxu0 %v8709_v22  ;;  %v3112_v28 = vpack.c.bf16 %v5479_v23, %v5475_v2  ;;  %5500 = vtanh.f32 %v2877_v37  ;;  %v8715_v60 = vpack.c.bf16 %v8713_v5, %v8714_v49  ;;  %v3298_v22 = vld [vmem:[%s6184_s10 + $0x498] sm:$0xff]  ;;  %v8717_v5 = vld [vmem:[#allocation13_spill] sm:$0xff]  ;;  %v8726_v42 = vpack.c.bf16 %v6886_v61, %v8725_v0 }
 0x296   : > { %v7644_v52 = vpop.eup %5482  ;;  %4357 = vmatprep.subr.bf16.mxu0 %v3662_v14  ;;  %5502 = vtanh.f32 %v2878_v62  ;;  %3919 = vmatmul.mubr.bf16.vlgmr.msra.gmra.mrb[84].mxu1 %v8712_v12  ;;  %v3666_v14 = vunpack.c.h.s8.bf16 %v3296_v39  ;;  %v3444_v62 = vunpack.c.l.s8.bf16 %v3186_v41  ;;  %v3446_v39 = vunpack.c.h.s8.bf16 %v3186_v41 }
 0x297   : > { %v7647_v46 = vpop.eup %5484  ;;  %3928 = vmatprep.mubr.bf16.mxu1 %v8715_v60  ;;  %3950 = vmatpush1.bf16.msra.mxu1 %v3439_v1  ;;  %v3443_v1 = vunpack.c.l.s8.bf16 %v3185_v55  ;;  %v3668_v12 = vunpack.c.l.s8.bf16 %v3298_v22  ;;  %v3188_v60 = vld [vmem:[%s6184_s10 + $0x128] sm:$0xff] }
 0x298   : > { %v7653_v43 = vpop.eup %5486  ;;  %3951 = vmatprep.subr.bf16.mxu1 %v3442_v58 }
 0x299   : > { %v7660_v27 = vpop.eup %5488  ;;  %4358 = vmatpush1.bf16.msra.mxu0 %v3661_v7 }
 0x29a   : > { %v5491_v2 = vpop.eup %5490  ;;  %4390 = vmatprep.subr.bf16.mxu0 %v3664_v9 }
 0x29b   : > { %v5493_v23 = vpop.eup %5492  ;;  %3952 = vmatpush1.bf16.msra.mxu1 %v3441_v3 }
 0x29c   : > { %v5495_v30 = vpop.eup %5494  ;;  %4360 = vmatmul.mubr.bf16.vlgmr.msra.gmra.mrb[84].mxu0 %v3083_v36  ;;  %v3139_v7 = vpack.c.bf16 %v5493_v23, %v7660_v27  ;;  %3953 = vmatprep.subr.bf16.mxu1 %v3444_v62  ;;  %v8716_v36 = vld [vmem:[#allocation15_spill] sm:$0xff]  ;;  %v3445_v27 = vunpack.c.h.s8.bf16 %v3185_v55  ;;  %v3670_v23 = vunpack.c.h.s8.bf16 %v3298_v22  ;;  %v8723_v22 = vld [vmem:[#allocation17_spill] sm:$0xff] }
 0x29d   : > { %v7670_v58 = vpop.eup %5496  ;;  %4391 = vmatpush1.bf16.msra.mxu0 %v3663_v33  ;;  %4369 = vmatprep.mubr.bf16.mxu0 %v3112_v28  ;;  %v3140_v9 = vpack.c.bf16 %v5495_v30, %v5491_v2  ;;  %v8718_v49 = vpack.c.bf16 %v8716_v36, %v8717_v5  ;;  %v8719_v28 = vld [vmem:[#allocation20_spill] sm:$0xff]  ;;  %v3667_v2 = vunpack.c.l.s8.bf16 %v3297_v24  ;;  %v3448_v30 = vunpack.c.l.s8.bf16 %v3188_v60  ;;  %v8722_v5 = vld [vmem:[#allocation19_spill] sm:$0xff] }
 0x29e   : > { %v7672_v48 = vpop.eup %5498  ;;  %4392 = vmatprep.subr.bf16.mxu0 %v3666_v14  ;;  %v8721_v41 = vpack.c.bf16 %v8719_v28, %v8720_v57  ;;  %v3187_v14 = vld [vmem:[%s6184_s10 + $0x120] sm:$0xff]  ;;  %v3300_v36 = vld [vmem:[%s6184_s10 + $0x4a8] sm:$0xff]  ;;  %v3190_v28 = vld [vmem:[%s6184_s10 + $0x138] sm:$0xff] }
 0x29f   : > { %v7675_v45 = vpop.eup %5500  ;;  %3929 = vmatmul.mubr.bf16.gmra.mrb[88].mxu1 %v8718_v49  ;;  %v3447_v55 = vunpack.c.l.s8.bf16 %v3187_v14  ;;  %v8724_v49 = vpack.c.bf16 %v8722_v5, %v8723_v22  ;;  %v3452_v57 = vunpack.c.l.s8.bf16 %v3190_v28  ;;  %v7748_v5 = vld [vmem:[%s6184_s10 + $0x4c0] sm:$0xff] }
 0x2a0   : > { %v7681_v3 = vpop.eup %5502  ;;  %3938 = vmatprep.mubr.bf16.mxu1 %v8721_v41  ;;  %3954 = vmatpush1.bf16.msra.mxu1 %v3443_v1  ;;  %v3669_v1 = vunpack.c.h.s8.bf16 %v3297_v24  ;;  %v3302_v41 = vld [vmem:[%s6184_s10 + $0x4b8] sm:$0xff] }
 0x2a1   : > { %4393 = vmatpush1.bf16.msra.mxu0 %v3665_v4  ;;  %3955 = vmatprep.subr.bf16.mxu1 %v3446_v39  ;;  %v3450_v4 = vunpack.c.h.s8.bf16 %v3188_v60  ;;  %v3672_v39 = vunpack.c.l.s8.bf16 %v3300_v36  ;;  %v3674_v60 = vunpack.c.h.s8.bf16 %v3300_v36  ;;  %v3192_v36 = vld [vmem:[%s6184_s10 + $0x148] sm:$0xff] }
 0x2a2   : > { %4394 = vmatprep.subr.bf16.mxu0 %v3668_v12  ;;  %v3299_v12 = vld [vmem:[%s6184_s10 + $0x4a0] sm:$0xff] }
 0x2a3   : > { %v3671_v24 = vunpack.c.l.s8.bf16 %v3299_v12  ;;  %v3673_v61 = vunpack.c.h.s8.bf16 %v3299_v12  ;;  %v7741_v12 = vrot.slane %v7459_v53, %v6725_v63 }
 0x2a4   : > { %4370 = vmatmul.mubr.bf16.gmra.mrb[88].mxu0 %v3111_v18  ;;  %3956 = vmatpush1.bf16.msra.mxu1 %v3445_v27  ;;  %v3449_v18 = vunpack.c.h.s8.bf16 %v3187_v14  ;;  %v3676_v14 = vunpack.c.l.s8.bf16 %v3302_v41 }
 0x2a5   : > { %4395 = vmatpush1.bf16.msra.mxu0 %v3667_v2  ;;  %4379 = vmatprep.mubr.bf16.mxu0 %v3140_v9  ;;  %v3189_v9 = vld [vmem:[%s6184_s10 + $0x130] sm:$0xff]  ;;  %v3454_v2 = vunpack.c.h.s8.bf16 %v3190_v28  ;;  %v7752_v28 = vrot.slane %v7459_v53, %v6731_v44 }
 0x2a6   : > { %4396 = vmatprep.subr.bf16.mxu0 %v3670_v23  ;;  %3957 = vmatprep.subr.bf16.mxu1 %v3448_v30  ;;  %v3451_v27 = vunpack.c.l.s8.bf16 %v3189_v9  ;;  %v7709_v23 = vld [vmem:[%s6184_s10 + $0x4b0] sm:$0xff]  ;;  %v7717_v30 = vrot.slane %v7453_v56, %v6725_v63 }
 0x2a7   : > { %3939 = vmatmul.mubr.bf16.gmra.mrb[92].mxu1 %v8724_v49  ;;  %v3677_v0 = vunpack.c.h.s8.bf16 %v7709_v23 }
 0x2a8   : > { %3958 = vmatpush1.bf16.msra.mxu1 %v3447_v55  ;;  %3981 = vmatprep.mubr.bf16.mxu1 %v8726_v42  ;;  %v7729_v55 = vld [vmem:[%s6184_s10 + $0x4c8] sm:$0xff]  ;;  %v3456_v42 = vunpack.c.l.s8.bf16 %v3192_v36 }
 0x2a9   : > { %4397 = vmatpush1.bf16.msra.mxu0 %v3669_v1  ;;  %3959 = vmatprep.subr.bf16.mxu1 %v3450_v4  ;;  %v7732_v1 = vld [vmem:[%s6184_s10 + $0x140] sm:$0xff]  ;;  %v3675_v4 = vunpack.c.l.s8.bf16 %v7709_v23  ;;  %v3682_v33 = vunpack.c.h.s8.bf16 %v7729_v55 }
 0x2aa   : > { %4398 = vmatprep.subr.bf16.mxu0 %v3672_v39  ;;  %v7737_v39 = vrot.slane %v7459_v53, %v6722_v51 }
 0x2ac   : > { %4380 = vmatmul.mubr.bf16.gmra.mrb[92].mxu0 %v3139_v7  ;;  %3960 = vmatpush1.bf16.msra.mxu1 %v3449_v18  ;;  %v7713_v7 = vrot.slane %v7453_v56, %v6722_v51  ;;  %v7745_v56 = vrot.slane %v7459_v53, %v6728_v29  ;;  %v3678_v51 = vunpack.c.h.s8.bf16 %v3302_v41  ;;  %v3679_v41 = vunpack.c.l.s8.bf16 %v7748_v5 }
 0x2ad   : > { %4399 = vmatpush1.bf16.msra.mxu0 %v3671_v24  ;;  %4422 = vmatprep.mubr.bf16.mxu0 %v3086_v31  ;;  %v3453_v31 = vunpack.c.h.s8.bf16 %v3189_v9  ;;  %v3680_v9 = vunpack.c.l.s8.bf16 %v7729_v55 }
 0x2ae   : > { %4400 = vmatprep.subr.bf16.mxu0 %v3674_v60  ;;  %3961 = vmatprep.subr.bf16.mxu1 %v3452_v57  ;;  %v3455_v60 = vunpack.c.l.s8.bf16 %v7732_v1 }
 0x2b0   : > { %3962 = vmatpush1.bf16.msra.mxu1 %v3451_v27  ;;  %v2037_v22 = vpop.f32.mrb[60].mxu0  ;;  %v2100_v49 = vpop.f32.mrb[60].mxu1 }
 0x2b1   : > { %4401 = vmatpush1.bf16.msra.mxu0 %v3673_v61  ;;  %3963 = vmatprep.subr.bf16.mxu1 %v3454_v2  ;;  %v2423_v63 = vmul.f32 %v7713_v7, %v2037_v22  ;;  %v2425_v18 = vmul.f32 %v7717_v30, %v2100_v49  ;;  %v2039_v29 = vpop.f32.mrb[61].mxu0  ;;  %v2102_v24 = vpop.f32.mrb[61].mxu1  ;;  %v3458_v61 = vunpack.c.h.s8.bf16 %v3192_v36 }
 0x2b2   : > { %4402 = vmatprep.subr.bf16.mxu0 %v3676_v14  ;;  %v2424_v57 = vmul.f32 %v7722_v20, %v2039_v29  ;;  %v2426_v27 = vmul.f32 %v7726_v13, %v2102_v24  ;;  %v2041_v44 = vpop.f32.mrb[62].mxu0  ;;  %v2104_v53 = vpop.f32.mrb[62].mxu1 }
 0x2b3   : > { %v2739_v2 = vadd.f32 %v7737_v39, %v2423_v63  ;;  %v2741_v14 = vadd.f32 %v7741_v12, %v2425_v18  ;;  %v2451_v23 = vmul.f32 %v7713_v7, %v2041_v44  ;;  %v2453_v22 = vmul.f32 %v7717_v30, %v2104_v53  ;;  %v2043_v49 = vpop.f32.mrb[63].mxu0  ;;  %v2106_v29 = vpop.f32.mrb[63].mxu1  ;;  %v7771_v63 = vld [vmem:[%s6184_s10 + $0x158] sm:$0xff] }
 0x2b4   : > { %3964 = vmatpush1.bf16.msra.mxu1 %v3453_v31  ;;  %v2740_v24 = vadd.f32 %v7745_v56, %v2424_v57  ;;  %v2742_v31 = vadd.f32 %v7752_v28, %v2426_v27  ;;  %v2452_v36 = vmul.f32 %v7722_v20, %v2043_v49  ;;  %v7774_v18 = vld [vmem:[%s6184_s10 + $0x4d8] sm:$0xff]  ;;  %v7780_v57 = vld [vmem:[%s6184_s10 + $0x150] sm:$0xff] }
 0x2b5   : > { %4403 = vmatpush1.bf16.msra.mxu0 %v3675_v4  ;;  %v2454_v4 = vmul.f32 %v7726_v13, %v2106_v29  ;;  %5504 = vtanh.f32 %v2739_v2  ;;  %v2767_v44 = vadd.f32 %v7737_v39, %v2451_v23  ;;  %v2769_v53 = vadd.f32 %v7741_v12, %v2453_v22  ;;  %3965 = vmatprep.subr.bf16.mxu1 %v3456_v42  ;;  %v7783_v27 = vld [vmem:[%s6184_s10 + $0x4d0] sm:$0xff] }
 0x2b6   : > { %4404 = vmatprep.subr.bf16.mxu0 %v3678_v51  ;;  %5506 = vtanh.f32 %v2741_v14  ;;  %v2768_v51 = vadd.f32 %v7745_v56, %v2452_v36  ;;  %v3457_v29 = vunpack.c.h.s8.bf16 %v7732_v1  ;;  %v3681_v2 = vunpack.c.h.s8.bf16 %v7748_v5 }
 0x2b7   : > { %v2770_v49 = vadd.f32 %v7752_v28, %v2454_v4  ;;  %5508 = vtanh.f32 %v2740_v24  ;;  %v3460_v42 = vunpack.c.l.s8.bf16 %v7771_v63  ;;  %v3684_v55 = vunpack.c.l.s8.bf16 %v7774_v18 }
 0x2b8   : > { %3966 = vmatpush1.bf16.msra.mxu1 %v3455_v60  ;;  %5510 = vtanh.f32 %v2742_v31  ;;  %v3459_v14 = vunpack.c.l.s8.bf16 %v7780_v57  ;;  %v3462_v22 = vunpack.c.h.s8.bf16 %v7771_v63  ;;  %v2047_v60 = vpop.f32.mrb[64].mxu0 }
 0x2b9   : > { %4405 = vmatpush1.bf16.msra.mxu0 %v3677_v0  ;;  %3967 = vmatprep.subr.bf16.mxu1 %v3458_v61  ;;  %v2110_v36 = vpop.f32.mrb[64].mxu1  ;;  %5512 = vtanh.f32 %v2767_v44  ;;  %v2479_v5 = vmul.f32 %v7713_v7, %v2047_v60  ;;  %v2049_v61 = vpop.f32.mrb[65].mxu0  ;;  %v7801_v60 = vld [vmem:[%s6184_s10 + $0x168] sm:$0xff] }
 0x2ba   : > { %4406 = vmatprep.subr.bf16.mxu0 %v3680_v9  ;;  %v2481_v0 = vmul.f32 %v7717_v30, %v2110_v36  ;;  %v2112_v24 = vpop.f32.mrb[65].mxu1  ;;  %5514 = vtanh.f32 %v2769_v53  ;;  %v3461_v9 = vunpack.c.h.s8.bf16 %v7780_v57  ;;  %v2480_v31 = vmul.f32 %v7722_v20, %v2049_v61  ;;  %v2051_v63 = vpop.f32.mrb[66].mxu0  ;;  %v7807_v61 = vld [vmem:[%s6184_s10 + $0x4e8] sm:$0xff] }
 0x2bb   : > { %v2482_v4 = vmul.f32 %v7726_v13, %v2112_v24  ;;  %v2114_v44 = vpop.f32.mrb[66].mxu1  ;;  %5516 = vtanh.f32 %v2768_v51  ;;  %v2795_v36 = vadd.f32 %v7737_v39, %v2479_v5  ;;  %v2507_v57 = vmul.f32 %v7713_v7, %v2051_v63  ;;  %v7816_v5 = vld [vmem:[%s6184_s10 + $0x4e0] sm:$0xff] }
 0x2bc   : > { %3968 = vmatpush1.bf16.msra.mxu1 %v3457_v29  ;;  %v2797_v53 = vadd.f32 %v7741_v12, %v2481_v0  ;;  %v2053_v29 = vpop.f32.mrb[67].mxu0  ;;  %v2116_v62 = vpop.f32.mrb[67].mxu1  ;;  %5518 = vtanh.f32 %v2770_v49  ;;  %v2796_v24 = vadd.f32 %v7745_v56, %v2480_v31  ;;  %v3685_v49 = vunpack.c.h.s8.bf16 %v7783_v27 }
 0x2bd   : > { %4407 = vmatpush1.bf16.msra.mxu0 %v3679_v41  ;;  %3969 = vmatprep.subr.bf16.mxu1 %v3460_v42  ;;  %v2798_v51 = vadd.f32 %v7752_v28, %v2482_v4  ;;  %v2509_v41 = vmul.f32 %v7717_v30, %v2114_v44  ;;  %v7813_v42 = vld [vmem:[%s6184_s10 + $0x160] sm:$0xff]  ;;  %5520 = vtanh.f32 %v2795_v36  ;;  %v2823_v0 = vadd.f32 %v7737_v39, %v2507_v57 }
 0x2be   : > { %4408 = vmatprep.subr.bf16.mxu0 %v3682_v33  ;;  %v2508_v63 = vmul.f32 %v7722_v20, %v2053_v29  ;;  %v2510_v33 = vmul.f32 %v7726_v13, %v2116_v62  ;;  %v3464_v31 = vunpack.c.l.s8.bf16 %v7801_v60  ;;  %5522 = vtanh.f32 %v2797_v53 }
 0x2bf   : > { %v2825_v4 = vadd.f32 %v7741_v12, %v2509_v41  ;;  %v7824_v44 = vpop.eup %5504  ;;  %v3688_v36 = vunpack.c.l.s8.bf16 %v7807_v61  ;;  %5524 = vtanh.f32 %v2796_v24  ;;  %v3463_v53 = vunpack.c.l.s8.bf16 %v7813_v42 }
 0x2c0   : > { %3970 = vmatpush1.bf16.msra.mxu1 %v3459_v14  ;;  %v2824_v57 = vadd.f32 %v7745_v56, %v2508_v63  ;;  %v2826_v62 = vadd.f32 %v7752_v28, %v2510_v33  ;;  %v7832_v14 = vpop.eup %5506  ;;  %v3466_v41 = vunpack.c.h.s8.bf16 %v7801_v60  ;;  %5526 = vtanh.f32 %v2798_v51 }
 0x2c1   : > { %4409 = vmatpush1.bf16.msra.mxu0 %v3681_v2  ;;  %3971 = vmatprep.subr.bf16.mxu1 %v3462_v22  ;;  %v2057_v2 = vpop.f32.mrb[68].mxu0  ;;  %v2120_v22 = vpop.f32.mrb[68].mxu1  ;;  %v3465_v24 = vunpack.c.h.s8.bf16 %v7813_v42  ;;  %5528 = vtanh.f32 %v2823_v0  ;;  %v3468_v29 = vunpack.c.l.s8.bf16 %v7828_v54  ;;  %v8727_v0 = vunpack.c.l.s8.bf16 %v7783_v27 }
 0x2c2   : > { %4410 = vmatprep.subr.bf16.mxu0 %v3684_v55  ;;  %v7837_v37 = vpop.eup %5508  ;;  %v2535_v63 = vmul.f32 %v7713_v7, %v2057_v2  ;;  %v2537_v33 = vmul.f32 %v7717_v30, %v2120_v22  ;;  %v2059_v38 = vpop.f32.mrb[69].mxu0  ;;  %5530 = vtanh.f32 %v2825_v4 }
 0x2c3   : > { %v2122_v55 = vpop.f32.mrb[69].mxu1  ;;  %v7842_v1 = vpop.eup %5510  ;;  %v2536_v60 = vmul.f32 %v7722_v20, %v2059_v38  ;;  %5532 = vtanh.f32 %v2824_v57 }
 0x2c4   : > { %3972 = vmatpush1.bf16.msra.mxu1 %v3461_v9  ;;  %v2538_v51 = vmul.f32 %v7726_v13, %v2122_v55  ;;  %v2061_v23 = vpop.f32.mrb[70].mxu0  ;;  %v2124_v40 = vpop.f32.mrb[70].mxu1  ;;  %v2851_v2 = vadd.f32 %v7737_v39, %v2535_v63  ;;  %v2853_v9 = vadd.f32 %v7741_v12, %v2537_v33  ;;  %v8728_v55 = vunpack.c.h.s8.bf16 %v7774_v18 }
 0x2c5   : > { %v7847_v42 = vpop.eup %5512  ;;  %4411 = vmatpush1.bf16.msra.mxu0 %v8727_v0  ;;  %3973 = vmatprep.subr.bf16.mxu1 %v3464_v31  ;;  %v2563_v22 = vmul.f32 %v7713_v7, %v2061_v23  ;;  %v2063_v4 = vpop.f32.mrb[71].mxu0  ;;  %5534 = vtanh.f32 %v2826_v62  ;;  %v2852_v8 = vadd.f32 %v7745_v56, %v2536_v60  ;;  %v2565_v31 = vmul.f32 %v7717_v30, %v2124_v40 }
 0x2c6   : > { %v2126_v32 = vpop.f32.mrb[71].mxu1  ;;  %v7854_v38 = vpop.eup %5514  ;;  %4412 = vmatprep.subr.bf16.mxu0 %v8728_v55  ;;  %v2854_v27 = vadd.f32 %v7752_v28, %v2538_v51  ;;  %5536 = vtanh.f32 %v2851_v2  ;;  %v2564_v23 = vmul.f32 %v7722_v20, %v2063_v4  ;;  %v3197_v20 = vld [vmem:[%s6184_s10 + $0x170] sm:$0xff]  ;;  %v3310_v51 = vld [vmem:[%s6184_s10 + $0x4f8] sm:$0xff] }
 0x2c7   : > { %v7861_v57 = vpop.eup %5516  ;;  %v2879_v7 = vadd.f32 %v7737_v39, %v2563_v22  ;;  %v2566_v63 = vmul.f32 %v7726_v13, %v2126_v32  ;;  %5538 = vtanh.f32 %v2853_v9  ;;  %v2881_v18 = vadd.f32 %v7741_v12, %v2565_v31  ;;  %v3309_v2 = vld [vmem:[%s6184_s10 + $0x4f0] sm:$0xff]  ;;  %v3200_v9 = vld [vmem:[%s6184_s10 + $0x188] sm:$0xff] }
 0x2c8   : > { %v7866_v33 = vpop.eup %5518  ;;  %3974 = vmatpush1.bf16.msra.mxu1 %v3463_v53  ;;  %5540 = vtanh.f32 %v2852_v8  ;;  %v2880_v32 = vadd.f32 %v7745_v56, %v2564_v23  ;;  %v3690_v53 = vunpack.c.h.s8.bf16 %v7807_v61  ;;  %v3467_v56 = vunpack.c.l.s8.bf16 %v3197_v20  ;;  %v3199_v23 = vld [vmem:[%s6184_s10 + $0x180] sm:$0xff]  ;;  %v8735_v39 = vld [vmem:[#allocation25_spill] sm:$0xff] }
 0x2c9   : > { %v7873_v30 = vpop.eup %5520  ;;  %4413 = vmatpush1.bf16.msra.mxu0 %v3685_v49  ;;  %3975 = vmatprep.subr.bf16.mxu1 %v3466_v41  ;;  %v2882_v13 = vadd.f32 %v7752_v28, %v2566_v63  ;;  %5542 = vtanh.f32 %v2854_v27  ;;  %v3689_v61 = vunpack.c.h.s8.bf16 %v7816_v5  ;;  %v3470_v41 = vunpack.c.h.s8.bf16 %v7828_v54 }
 0x2ca   : > { %v7880_v12 = vpop.eup %5522  ;;  %4414 = vmatprep.subr.bf16.mxu0 %v3688_v36  ;;  %5544 = vtanh.f32 %v2879_v7  ;;  %v8730_v36 = vunpack.c.l.s8.bf16 %v7816_v5  ;;  %v3469_v54 = vunpack.c.h.s8.bf16 %v3197_v20  ;;  %v3691_v31 = vunpack.c.l.s8.bf16 %v3309_v2  ;;  %v3312_v20 = vld [vmem:[%s6184_s10 + $0x508] sm:$0xff] }
 0x2cb   : > { %8729 = vst [vmem:[#allocation12_spill] sm:$0xff] %v7880_v12  ;;  %v7883_v60 = vpop.eup %5524  ;;  %5546 = vtanh.f32 %v2881_v18  ;;  %v3472_v7 = vunpack.c.l.s8.bf16 %v3200_v9  ;;  %v3473_v40 = vunpack.c.h.s8.bf16 %v3199_v23 }
 0x2cc   : > { %v7886_v8 = vpop.eup %5526  ;;  %3976 = vmatpush1.bf16.msra.mxu1 %v3465_v24  ;;  %5548 = vtanh.f32 %v2880_v32  ;;  %v3692_v24 = vunpack.c.l.s8.bf16 %v3310_v51  ;;  %v3694_v32 = vunpack.c.h.s8.bf16 %v3310_v51  ;;  %v3311_v51 = vld [vmem:[%s6184_s10 + $0x500] sm:$0xff] }
 0x2cd   : > { %v7890_v49 = vpop.eup %5528  ;;  %4415 = vmatpush1.bf16.msra.mxu0 %v8730_v36  ;;  %3977 = vmatprep.subr.bf16.mxu1 %v3468_v29  ;;  %5550 = vtanh.f32 %v2882_v13  ;;  %v3695_v62 = vunpack.c.l.s8.bf16 %v3311_v51 }
 0x2ce   : > { %v7896_v0 = vpop.eup %5530  ;;  %4416 = vmatprep.subr.bf16.mxu0 %v3690_v53 }
 0x2cf   : > { %8731 = vst [vmem:[#allocation10_spill] sm:$0xff] %v7896_v0  ;;  %v7902_v4 = vpop.eup %5532 }
 0x2d0   : > { %v7906_v29 = vpop.eup %5534  ;;  %3978 = vmatpush1.bf16.msra.mxu1 %v3467_v56  ;;  %v3471_v56 = vunpack.c.l.s8.bf16 %v3199_v23 }
 0x2d1   : > { %v7910_v27 = vpop.eup %5536  ;;  %4417 = vmatpush1.bf16.msra.mxu0 %v3689_v61  ;;  %3979 = vmatprep.subr.bf16.mxu1 %v3470_v41  ;;  %v3693_v61 = vunpack.c.h.s8.bf16 %v3309_v2  ;;  %v3474_v41 = vunpack.c.h.s8.bf16 %v3200_v9 }
 0x2d2   : > { %v7915_v18 = vpop.eup %5538  ;;  %4418 = vmatprep.subr.bf16.mxu0 %v3692_v24  ;;  %v3696_v24 = vunpack.c.l.s8.bf16 %v3312_v20 }
 0x2d3   : > { %8732 = vst [vmem:[#allocation11_spill] sm:$0xff] %v7915_v18  ;;  %v7917_v13 = vpop.eup %5540 }
 0x2d4   : > { %v7920_v53 = vpop.eup %5542  ;;  %3980 = vmatpush1.bf16.msra.mxu1 %v3469_v54  ;;  %v8736_v54 = vld [vmem:[#allocation21_spill] sm:$0xff] }
 0x2d5   : > { %8733 = vst [vmem:[#allocation9_spill] sm:$0xff] %v7920_v53  ;;  %v7922_v36 = vpop.eup %5544  ;;  %4419 = vmatpush1.bf16.msra.mxu0 %v3691_v31  ;;  %4012 = vmatprep.subr.bf16.mxu1 %v3472_v7  ;;  %v8737_v22 = vpack.c.bf16 %v8735_v39, %v8736_v54  ;;  %v3202_v31 = vld [vmem:[%s6184_s10 + $0x198] sm:$0xff]  ;;  %v3201_v39 = vld [vmem:[%s6184_s10 + $0x190] sm:$0xff]  ;;  %v3698_v54 = vunpack.c.h.s8.bf16 %v3312_v20  ;;  %v3700_v20 = vunpack.c.l.s8.bf16 %v3314_v35 }
 0x2d6   : > { %v7924_v5 = vpop.eup %5546  ;;  %4420 = vmatprep.subr.bf16.mxu0 %v3694_v32  ;;  %v8739_v7 = vld [vmem:[#allocation34_spill] sm:$0xff]  ;;  %v3476_v2 = vunpack.c.l.s8.bf16 %v3202_v31  ;;  %v3475_v23 = vunpack.c.l.s8.bf16 %v3201_v39 }
 0x2d7   : > { %8734 = vst [vmem:[#allocation16_spill] sm:$0xff] %v7924_v5  ;;  %v7929_v28 = vpop.eup %5548  ;;  %3982 = vmatmul.mubr.bf16.vlgmr.msra.gmra.mrb[84].mxu1 %v8737_v22  ;;  %v8740_v32 = vld [vmem:[#allocation30_spill] sm:$0xff] }
 0x2d8   : > { %v7937_v9 = vpop.eup %5550  ;;  %v8741_v55 = vpack.c.bf16 %v8739_v7, %v8740_v32  ;;  %4013 = vmatpush1.bf16.msra.mxu1 %v3471_v56  ;;  %v8743_v56 = vpack.c.bf16 %v7653_v43, %v7644_v52  ;;  %v8744_v7 = vld [vmem:[#allocation32_spill] sm:$0xff]  ;;  %v3477_v52 = vunpack.c.h.s8.bf16 %v3201_v39  ;;  %v8751_v39 = vpack.c.bf16 %v7681_v3, %v7672_v48  ;;  %v8755_v3 = vld [vmem:[#allocation27_spill] sm:$0xff] }
 0x2d9   : > { %8738 = vst [vmem:[#allocation14_spill] sm:$0xff] %v7937_v9  ;;  %4421 = vmatpush1.bf16.msra.mxu0 %v3693_v61  ;;  %4014 = vmatprep.subr.bf16.mxu1 %v3474_v41  ;;  %v3697_v61 = vunpack.c.h.s8.bf16 %v3311_v51  ;;  %v3478_v41 = vunpack.c.h.s8.bf16 %v3202_v31  ;;  %v8745_v32 = vld [vmem:[#allocation28_spill] sm:$0xff]  ;;  %v3702_v51 = vunpack.c.h.s8.bf16 %v3314_v35 }
 0x2da   : > { %3991 = vmatprep.mubr.bf16.mxu1 %v8741_v55  ;;  %4453 = vmatprep.subr.bf16.mxu0 %v3696_v24  ;;  %v8742_v55 = vpack.c.bf16 %v7606_v26, %v7586_v6  ;;  %v3313_v24 = vld [vmem:[%s6184_s10 + $0x510] sm:$0xff]  ;;  %v8746_v22 = vpack.c.bf16 %v8744_v7, %v8745_v32  ;;  %v3204_v26 = vld [vmem:[%s6184_s10 + $0x1a8] sm:$0xff]  ;;  %v8747_v6 = vld [vmem:[#allocation42_spill] sm:$0xff] }
 0x2db   : > { %v3699_v43 = vunpack.c.l.s8.bf16 %v3313_v24  ;;  %v3480_v31 = vunpack.c.l.s8.bf16 %v3204_v26 }
 0x2dc   : > { %4423 = vmatmul.mubr.bf16.vlgmr.msra.gmra.mrb[84].mxu0 %v8742_v55  ;;  %4015 = vmatpush1.bf16.msra.mxu1 %v3473_v40  ;;  %v8748_v40 = vld [vmem:[#allocation38_spill] sm:$0xff] }
 0x2dd   : > { %4432 = vmatprep.mubr.bf16.mxu0 %v8743_v56  ;;  %4454 = vmatpush1.bf16.msra.mxu0 %v3695_v62  ;;  %v8749_v55 = vpack.c.bf16 %v8747_v6, %v8748_v40  ;;  %v3203_v62 = vld [vmem:[%s6184_s10 + $0x1a0] sm:$0xff]  ;;  %v2258_v56 = vld [vmem:[%s6174_s22 + $0x18] sm:$0xf] }
 0x2de   : > { %4455 = vmatprep.subr.bf16.mxu0 %v3698_v54  ;;  %4016 = vmatprep.subr.bf16.mxu1 %v3476_v2  ;;  %v3316_v2 = vld [vmem:[%s6184_s10 + $0x528] sm:$0xff]  ;;  %v3479_v54 = vunpack.c.l.s8.bf16 %v3203_v62  ;;  %v7979_v32 = vrot.slane %v2258_v56, %v6452_v10  ;;  %v7982_v48 = vrot.slane %v2258_v56, %v6455_v11  ;;  %v7988_v6 = vrot.slane %v2258_v56, %v6461_v15 }
 0x2df   : > { %3992 = vmatmul.mubr.bf16.gmra.mrb[88].mxu1 %v8746_v22  ;;  %v8750_v22 = vpack.c.bf16 %v7647_v46, %v7638_v59  ;;  %v3704_v35 = vunpack.c.l.s8.bf16 %v3316_v2  ;;  %v8752_v59 = vld [vmem:[#allocation40_spill] sm:$0xff]  ;;  %v7991_v40 = vrot.slane %v2258_v56, %v6464_v16 }
 0x2e0   : > { %4001 = vmatprep.mubr.bf16.mxu1 %v8749_v55  ;;  %4017 = vmatpush1.bf16.msra.mxu1 %v3475_v23  ;;  %v3701_v23 = vunpack.c.h.s8.bf16 %v3313_v24  ;;  %v8753_v46 = vld [vmem:[#allocation36_spill] sm:$0xff]  ;;  %v3481_v55 = vunpack.c.h.s8.bf16 %v3203_v62 }
 0x2e1   : > { %4456 = vmatpush1.bf16.msra.mxu0 %v3697_v61  ;;  %4018 = vmatprep.subr.bf16.mxu1 %v3478_v41  ;;  %v3482_v61 = vunpack.c.h.s8.bf16 %v3204_v26  ;;  %v7972_v41 = vld [vmem:[%s6184_s10 + $0x520] sm:$0xff]  ;;  %v8754_v7 = vpack.c.bf16 %v8752_v59, %v8753_v46  ;;  %v8756_v24 = vld [vmem:[#allocation24_spill] sm:$0xff]  ;;  %v3706_v59 = vunpack.c.h.s8.bf16 %v3316_v2 }
 0x2e2   : > { %4457 = vmatprep.subr.bf16.mxu0 %v3700_v20  ;;  %v2574_v20 = vld [vmem:[%s6179_s26 + $0x18] sm:$0xf]  ;;  %v8757_v26 = vpack.c.bf16 %v8755_v3, %v8756_v24  ;;  %v3705_v3 = vunpack.c.h.s8.bf16 %v7972_v41 }
 0x2e3   : > { %v8008_v62 = vrot.slane %v2574_v20, %v6461_v15 }
 0x2e4   : > { %4433 = vmatmul.mubr.bf16.gmra.mrb[88].mxu0 %v8750_v22  ;;  %4019 = vmatpush1.bf16.msra.mxu1 %v3477_v52  ;;  %v3206_v52 = vld [vmem:[%s6184_s10 + $0x1b8] sm:$0xff] }
 0x2e5   : > { %4442 = vmatprep.mubr.bf16.mxu0 %v8751_v39  ;;  %4458 = vmatpush1.bf16.msra.mxu0 %v3699_v43  ;;  %v3703_v43 = vunpack.c.l.s8.bf16 %v7972_v41  ;;  %v8002_v22 = vld [vmem:[%s6184_s10 + $0x538] sm:$0xff]  ;;  %v3484_v24 = vunpack.c.l.s8.bf16 %v3206_v52  ;;  %v8759_v41 = vpack.c.bf16 %v7861_v57, %v7837_v37 }
 0x2e6   : > { %4459 = vmatprep.subr.bf16.mxu0 %v3702_v51  ;;  %4020 = vmatprep.subr.bf16.mxu1 %v3480_v31  ;;  %v7996_v51 = vrot.slane %v2574_v20, %v6452_v10  ;;  %v7999_v31 = vrot.slane %v2574_v20, %v6455_v11  ;;  %v3708_v2 = vunpack.c.l.s8.bf16 %v8002_v22 }
 0x2e7   : > { %4002 = vmatmul.mubr.bf16.gmra.mrb[92].mxu1 %v8754_v7 }
 0x2e8   : > { %4021 = vmatpush1.bf16.msra.mxu1 %v3479_v54  ;;  %4044 = vmatprep.mubr.bf16.mxu1 %v8757_v26  ;;  %v8005_v54 = vld [vmem:[%s6184_s10 + $0x1b0] sm:$0xff]  ;;  %v2163_v39 = vpop.f32.mrb[72].mxu0 }
 0x2e9   : > { %4460 = vmatpush1.bf16.msra.mxu0 %v3701_v23  ;;  %4022 = vmatprep.subr.bf16.mxu1 %v3482_v61  ;;  %v2226_v56 = vpop.f32.mrb[72].mxu1  ;;  %v8011_v23 = vrot.slane %v2574_v20, %v6464_v16  ;;  %v2427_v46 = vmul.f32 %v7979_v32, %v2163_v39  ;;  %v2165_v61 = vpop.f32.mrb[73].mxu0  ;;  %v3483_v39 = vunpack.c.l.s8.bf16 %v8005_v54 }
 0x2ea   : > { %4461 = vmatprep.subr.bf16.mxu0 %v3704_v35  ;;  %v2429_v11 = vmul.f32 %v7982_v48, %v2226_v56  ;;  %v2228_v7 = vpop.f32.mrb[73].mxu1  ;;  %v8758_v35 = vpack.c.bf16 %v7675_v45, %v7670_v58  ;;  %v2428_v26 = vmul.f32 %v7988_v6, %v2165_v61  ;;  %v2167_v20 = vpop.f32.mrb[74].mxu0  ;;  %v8024_v56 = vld [vmem:[%s6184_s10 + $0x530] sm:$0xff] }
 0x2eb   : > { %v2430_v16 = vmul.f32 %v7991_v40, %v2228_v7  ;;  %v2230_v63 = vpop.f32.mrb[74].mxu1  ;;  %v2743_v58 = vadd.f32 %v7996_v51, %v2427_v46  ;;  %v2455_v61 = vmul.f32 %v7979_v32, %v2167_v20  ;;  %v8043_v20 = vld [vmem:[%s6184_s10 + $0x548] sm:$0xff] }
 0x2ec   : > { %4443 = vmatmul.mubr.bf16.gmra.mrb[92].mxu0 %v8758_v35  ;;  %4023 = vmatpush1.bf16.msra.mxu1 %v3481_v55  ;;  %v2745_v45 = vadd.f32 %v7999_v31, %v2429_v11  ;;  %v2169_v55 = vpop.f32.mrb[75].mxu0  ;;  %v2232_v7 = vpop.f32.mrb[75].mxu1  ;;  %v3486_v35 = vunpack.c.h.s8.bf16 %v3206_v52  ;;  %v2744_v15 = vadd.f32 %v8008_v62, %v2428_v26  ;;  %v2457_v37 = vmul.f32 %v7982_v48, %v2230_v63  ;;  %v8046_v26 = vld [vmem:[%s6184_s10 + $0x1c0] sm:$0xff] }
 0x2ed   : > { %4462 = vmatpush1.bf16.msra.mxu0 %v3703_v43  ;;  %4485 = vmatprep.mubr.bf16.mxu0 %v8759_v41  ;;  %v2746_v10 = vadd.f32 %v8011_v23, %v2430_v16  ;;  %v2456_v57 = vmul.f32 %v7988_v6, %v2169_v55  ;;  %v8037_v43 = vld [vmem:[%s6184_s10 + $0x1c8] sm:$0xff]  ;;  %5552 = vtanh.f32 %v2743_v58  ;;  %v2771_v46 = vadd.f32 %v7996_v51, %v2455_v61  ;;  %v8052_v41 = vld [vmem:[%s6184_s10 + $0x540] sm:$0xff] }
 0x2ee   : > { %4463 = vmatprep.subr.bf16.mxu0 %v3706_v59  ;;  %v2458_v11 = vmul.f32 %v7991_v40, %v2232_v7  ;;  %4024 = vmatprep.subr.bf16.mxu1 %v3484_v24  ;;  %v3707_v52 = vunpack.c.l.s8.bf16 %v8024_v56  ;;  %5554 = vtanh.f32 %v2745_v45  ;;  %v2773_v59 = vadd.f32 %v7999_v31, %v2457_v37 }
 0x2ef   : > { %v3710_v63 = vunpack.c.h.s8.bf16 %v8002_v22  ;;  %v3485_v16 = vunpack.c.h.s8.bf16 %v8005_v54  ;;  %5556 = vtanh.f32 %v2744_v15  ;;  %v2772_v24 = vadd.f32 %v8008_v62, %v2456_v57 }
 0x2f0   : > { %4025 = vmatpush1.bf16.msra.mxu1 %v3483_v39  ;;  %v2774_v58 = vadd.f32 %v8011_v23, %v2458_v11  ;;  %v3488_v61 = vunpack.c.l.s8.bf16 %v8037_v43  ;;  %5558 = vtanh.f32 %v2746_v10  ;;  %v3709_v45 = vunpack.c.h.s8.bf16 %v8024_v56  ;;  %v2173_v54 = vpop.f32.mrb[76].mxu0 }
 0x2f1   : > { %4464 = vmatpush1.bf16.msra.mxu0 %v3705_v3  ;;  %4026 = vmatprep.subr.bf16.mxu1 %v3486_v35  ;;  %v3712_v39 = vunpack.c.l.s8.bf16 %v8043_v20  ;;  %v3487_v22 = vunpack.c.l.s8.bf16 %v8046_v26  ;;  %v2236_v55 = vpop.f32.mrb[76].mxu1  ;;  %5560 = vtanh.f32 %v2771_v46  ;;  %v2483_v3 = vmul.f32 %v7979_v32, %v2173_v54  ;;  %v2175_v35 = vpop.f32.mrb[77].mxu0 }
 0x2f2   : > { %4465 = vmatprep.subr.bf16.mxu0 %v3708_v2  ;;  %v2485_v7 = vmul.f32 %v7982_v48, %v2236_v55  ;;  %v2238_v37 = vpop.f32.mrb[77].mxu1  ;;  %5562 = vtanh.f32 %v2773_v59  ;;  %v3490_v10 = vunpack.c.h.s8.bf16 %v8037_v43  ;;  %v2484_v2 = vmul.f32 %v7988_v6, %v2175_v35  ;;  %v2177_v57 = vpop.f32.mrb[78].mxu0  ;;  %v8070_v43 = vld [vmem:[%s6184_s10 + $0x1d8] sm:$0xff] }
 0x2f3   : > { %v2486_v56 = vmul.f32 %v7991_v40, %v2238_v37  ;;  %v2240_v46 = vpop.f32.mrb[78].mxu1  ;;  %5564 = vtanh.f32 %v2772_v24  ;;  %v2799_v11 = vadd.f32 %v7996_v51, %v2483_v3  ;;  %v2511_v59 = vmul.f32 %v7979_v32, %v2177_v57  ;;  %v8076_v24 = vld [vmem:[%s6184_s10 + $0x558] sm:$0xff]  ;;  %v8087_v57 = vld [vmem:[%s6184_s10 + $0x550] sm:$0xff] }
 0x2f4   : > { %4027 = vmatpush1.bf16.msra.mxu1 %v3485_v16  ;;  %v2801_v54 = vadd.f32 %v7999_v31, %v2485_v7  ;;  %v2179_v16 = vpop.f32.mrb[79].mxu0  ;;  %v2242_v55 = vpop.f32.mrb[79].mxu1  ;;  %5566 = vtanh.f32 %v2774_v58  ;;  %v2800_v35 = vadd.f32 %v8008_v62, %v2484_v2  ;;  %v3489_v2 = vunpack.c.h.s8.bf16 %v8046_v26 }
 0x2f5   : > { %4466 = vmatpush1.bf16.msra.mxu0 %v3707_v52  ;;  %4028 = vmatprep.subr.bf16.mxu1 %v3488_v61  ;;  %v2802_v37 = vadd.f32 %v8011_v23, %v2486_v56  ;;  %v2513_v52 = vmul.f32 %v7982_v48, %v2240_v46  ;;  %v8079_v61 = vld [vmem:[%s6184_s10 + $0x1d0] sm:$0xff]  ;;  %5568 = vtanh.f32 %v2799_v11  ;;  %v2827_v3 = vadd.f32 %v7996_v51, %v2511_v59 }
 0x2f6   : > { %4467 = vmatprep.subr.bf16.mxu0 %v3710_v63  ;;  %v2512_v7 = vmul.f32 %v7988_v6, %v2179_v16  ;;  %v2514_v58 = vmul.f32 %v7991_v40, %v2242_v55  ;;  %v3714_v63 = vunpack.c.h.s8.bf16 %v8043_v20  ;;  %5570 = vtanh.f32 %v2801_v54 }
 0x2f7   : > { %v2829_v56 = vadd.f32 %v7999_v31, %v2513_v52  ;;  %v8090_v46 = vpop.eup %5552  ;;  %v3492_v11 = vunpack.c.l.s8.bf16 %v8070_v43  ;;  %5572 = vtanh.f32 %v2800_v35  ;;  %v3713_v20 = vunpack.c.h.s8.bf16 %v8052_v41 }
 0x2f8   : > { %4029 = vmatpush1.bf16.msra.mxu1 %v3487_v22  ;;  %v2828_v59 = vadd.f32 %v8008_v62, %v2512_v7  ;;  %v2830_v22 = vadd.f32 %v8011_v23, %v2514_v58  ;;  %v8095_v16 = vpop.eup %5554  ;;  %v3716_v26 = vunpack.c.l.s8.bf16 %v8076_v24  ;;  %v3491_v54 = vunpack.c.l.s8.bf16 %v8079_v61  ;;  %v2183_v55 = vpop.f32.mrb[80].mxu0 }
 0x2f9   : > { %4468 = vmatpush1.bf16.msra.mxu0 %v3709_v45  ;;  %4030 = vmatprep.subr.bf16.mxu1 %v3490_v10  ;;  %5574 = vtanh.f32 %v2802_v37  ;;  %v2246_v45 = vpop.f32.mrb[80].mxu1  ;;  %v8100_v10 = vpop.eup %5556  ;;  %v3715_v35 = vunpack.c.l.s8.bf16 %v8087_v57  ;;  %v2539_v52 = vmul.f32 %v7979_v32, %v2183_v55  ;;  %v3494_v18 = vunpack.c.h.s8.bf16 %v8070_v43 }
 0x2fa   : > { %4469 = vmatprep.subr.bf16.mxu0 %v3712_v39  ;;  %5576 = vtanh.f32 %v2827_v3  ;;  %v2541_v7 = vmul.f32 %v7982_v48, %v2246_v45  ;;  %v2185_v58 = vpop.f32.mrb[81].mxu0  ;;  %v2248_v39 = vpop.f32.mrb[81].mxu1  ;;  %v8760_v55 = vunpack.c.l.s8.bf16 %v8052_v41 }
 0x2fb   : > { %v8105_v15 = vpop.eup %5558  ;;  %5578 = vtanh.f32 %v2829_v56  ;;  %v2540_v37 = vmul.f32 %v7988_v6, %v2185_v58  ;;  %v2542_v5 = vmul.f32 %v7991_v40, %v2248_v39  ;;  %v2187_v53 = vpop.f32.mrb[82].mxu0  ;;  %v2855_v45 = vadd.f32 %v7996_v51, %v2539_v52  ;;  %v3212_v39 = vld [vmem:[%s6184_s10 + $0x1e8] sm:$0xff] }
 0x2fc   : > { %4031 = vmatpush1.bf16.msra.mxu1 %v3489_v2  ;;  %v2250_v9 = vpop.f32.mrb[82].mxu1  ;;  %v8110_v3 = vpop.eup %5560  ;;  %5580 = vtanh.f32 %v2828_v59  ;;  %v2857_v2 = vadd.f32 %v7999_v31, %v2541_v7  ;;  %v2567_v43 = vmul.f32 %v7979_v32, %v2187_v53 }
 0x2fd   : > { %4470 = vmatpush1.bf16.msra.mxu0 %v8760_v55  ;;  %4032 = vmatprep.subr.bf16.mxu1 %v3492_v11  ;;  %v2189_v56 = vpop.f32.mrb[83].mxu0  ;;  %v2252_v12 = vpop.f32.mrb[83].mxu1  ;;  %5582 = vtanh.f32 %v2830_v22  ;;  %v2856_v0 = vadd.f32 %v8008_v62, %v2540_v37  ;;  %v2858_v41 = vadd.f32 %v8011_v23, %v2542_v5  ;;  %v2569_v11 = vmul.f32 %v7982_v48, %v2250_v9 }
 0x2fe   : > { %v8117_v58 = vpop.eup %5562  ;;  %4471 = vmatprep.subr.bf16.mxu0 %v3714_v63  ;;  %5584 = vtanh.f32 %v2855_v45  ;;  %v2883_v52 = vadd.f32 %v7996_v51, %v2567_v43  ;;  %v2568_v53 = vmul.f32 %v7988_v6, %v2189_v56  ;;  %v2570_v32 = vmul.f32 %v7991_v40, %v2252_v12  ;;  %v3211_v6 = vld [vmem:[%s6184_s10 + $0x1e0] sm:$0xff]  ;;  %v3214_v43 = vld [vmem:[%s6184_s10 + $0x1f8] sm:$0xff] }
 0x2ff   : > { %v8123_v59 = vpop.eup %5564  ;;  %v3493_v63 = vunpack.c.h.s8.bf16 %v8079_v61  ;;  %5586 = vtanh.f32 %v2857_v2  ;;  %v2885_v5 = vadd.f32 %v7999_v31, %v2569_v11  ;;  %v3496_v51 = vunpack.c.l.s8.bf16 %v3212_v39  ;;  %v3323_v2 = vld [vmem:[%s6184_s10 + $0x560] sm:$0xff] }
 0x300   : > { %v8128_v7 = vpop.eup %5566  ;;  %4033 = vmatpush1.bf16.msra.mxu1 %v3491_v54  ;;  %5588 = vtanh.f32 %v2856_v0  ;;  %v2884_v12 = vadd.f32 %v8008_v62, %v2568_v53  ;;  %v2886_v40 = vadd.f32 %v8011_v23, %v2570_v32  ;;  %v3718_v61 = vunpack.c.h.s8.bf16 %v8076_v24  ;;  %v3324_v54 = vld [vmem:[%s6184_s10 + $0x568] sm:$0xff]  ;;  %v3215_v11 = vld [vmem:[%s6184_s10 + $0x200] sm:$0xff] }
 0x301   : > { %v8134_v48 = vpop.eup %5568  ;;  %4472 = vmatpush1.bf16.msra.mxu0 %v3713_v20  ;;  %4034 = vmatprep.subr.bf16.mxu1 %v3494_v18  ;;  %5590 = vtanh.f32 %v2858_v41  ;;  %v3495_v0 = vunpack.c.l.s8.bf16 %v3211_v6  ;;  %v3717_v24 = vunpack.c.h.s8.bf16 %v8087_v57  ;;  %v3498_v20 = vunpack.c.h.s8.bf16 %v3212_v39  ;;  %v8767_v62 = vld [vmem:[#allocation35_spill] sm:$0xff] }
 0x302   : > { %v8139_v22 = vpop.eup %5570  ;;  %4473 = vmatprep.subr.bf16.mxu0 %v3716_v26  ;;  %5592 = vtanh.f32 %v2883_v52  ;;  %v3720_v45 = vunpack.c.l.s8.bf16 %v3324_v54  ;;  %v3497_v41 = vunpack.c.h.s8.bf16 %v3211_v6  ;;  %v3719_v53 = vunpack.c.l.s8.bf16 %v3323_v2  ;;  %v3325_v26 = vld [vmem:[%s6184_s10 + $0x570] sm:$0xff] }
 0x303   : > { %8761 = vst [vmem:[#allocation15_spill] sm:$0xff] %v8139_v22  ;;  %v8142_v31 = vpop.eup %5572  ;;  %5594 = vtanh.f32 %v2885_v5  ;;  %v3500_v32 = vunpack.c.l.s8.bf16 %v3214_v43  ;;  %v3502_v57 = vunpack.c.h.s8.bf16 %v3214_v43  ;;  %v3503_v9 = vunpack.c.l.s8.bf16 %v3215_v11  ;;  %v8764_v43 = vld [vmem:[#allocation26_spill] sm:$0xff] }
 0x304   : > { %v8145_v37 = vpop.eup %5574  ;;  %4035 = vmatpush1.bf16.msra.mxu1 %v3493_v63  ;;  %5596 = vtanh.f32 %v2884_v12  ;;  %v3213_v63 = vld [vmem:[%s6184_s10 + $0x1f0] sm:$0xff]  ;;  %v3722_v12 = vunpack.c.h.s8.bf16 %v3324_v54  ;;  %v3216_v54 = vld [vmem:[%s6184_s10 + $0x208] sm:$0xff]  ;;  %v3218_v22 = vld [vmem:[%s6184_s10 + $0x218] sm:$0xff] }
 0x305   : > { %v8151_v23 = vpop.eup %5576  ;;  %4474 = vmatpush1.bf16.msra.mxu0 %v3715_v35  ;;  %4036 = vmatprep.subr.bf16.mxu1 %v3496_v51  ;;  %5598 = vtanh.f32 %v2886_v40  ;;  %v3326_v40 = vld [vmem:[%s6184_s10 + $0x578] sm:$0xff] }
 0x306   : > { %v8156_v55 = vpop.eup %5578  ;;  %4475 = vmatprep.subr.bf16.mxu0 %v3718_v61  ;;  %v3726_v18 = vunpack.c.h.s8.bf16 %v3326_v40 }
 0x307   : > { %v8162_v35 = vpop.eup %5580 }
 0x308   : > { %v8166_v39 = vpop.eup %5582  ;;  %4037 = vmatpush1.bf16.msra.mxu1 %v3495_v0  ;;  %v3499_v0 = vunpack.c.l.s8.bf16 %v3213_v63 }
 0x309   : > { %v8170_v52 = vpop.eup %5584  ;;  %4476 = vmatpush1.bf16.msra.mxu0 %v3717_v24  ;;  %4038 = vmatprep.subr.bf16.mxu1 %v3498_v20  ;;  %v3721_v20 = vunpack.c.h.s8.bf16 %v3323_v2  ;;  %v3501_v2 = vunpack.c.h.s8.bf16 %v3213_v63  ;;  %v3725_v63 = vunpack.c.h.s8.bf16 %v3325_v26 }
 0x30a   : > { %v8175_v51 = vpop.eup %5586  ;;  %4477 = vmatprep.subr.bf16.mxu0 %v3720_v45  ;;  %v3724_v45 = vunpack.c.l.s8.bf16 %v3326_v40 }
 0x30b   : > { %8762 = vst [vmem:[#allocation13_spill] sm:$0xff] %v8175_v51  ;;  %v8177_v6 = vpop.eup %5588  ;;  %v8765_v51 = vld [vmem:[#allocation22_spill] sm:$0xff] }
 0x30c   : > { %v8180_v61 = vpop.eup %5590  ;;  %4039 = vmatpush1.bf16.msra.mxu1 %v3497_v41  ;;  %v3328_v41 = vld [vmem:[%s6184_s10 + $0x588] sm:$0xff] }
 0x30d   : > { %v8182_v24 = vpop.eup %5592  ;;  %4478 = vmatpush1.bf16.msra.mxu0 %v3719_v53  ;;  %4040 = vmatprep.subr.bf16.mxu1 %v3500_v32  ;;  %v3723_v32 = vunpack.c.l.s8.bf16 %v3325_v26  ;;  %v3217_v26 = vld [vmem:[%s6184_s10 + $0x210] sm:$0xff] }
 0x30e   : > { %v8184_v5 = vpop.eup %5594  ;;  %4479 = vmatprep.subr.bf16.mxu0 %v3722_v12  ;;  %v3504_v12 = vunpack.c.l.s8.bf16 %v3216_v54 }
 0x30f   : > { %8763 = vst [vmem:[#allocation20_spill] sm:$0xff] %v8184_v5  ;;  %v8190_v56 = vpop.eup %5596  ;;  %v8766_v5 = vpack.c.bf16 %v8764_v43, %v8765_v51  ;;  %v3507_v51 = vunpack.c.l.s8.bf16 %v3217_v26  ;;  %v3329_v43 = vld [vmem:[%s6184_s10 + $0x590] sm:$0xff] }
 0x310   : > { %v8194_v53 = vpop.eup %5598  ;;  %4041 = vmatpush1.bf16.msra.mxu1 %v3499_v0  ;;  %v3506_v0 = vunpack.c.h.s8.bf16 %v3216_v54  ;;  %v3508_v54 = vunpack.c.l.s8.bf16 %v3218_v22 }
 0x311   : > { %4480 = vmatpush1.bf16.msra.mxu0 %v3721_v20  ;;  %4042 = vmatprep.subr.bf16.mxu1 %v3502_v57  ;;  %v3728_v20 = vunpack.c.l.s8.bf16 %v3328_v41  ;;  %v3327_v57 = vld [vmem:[%s6184_s10 + $0x580] sm:$0xff] }
 0x312   : > { %4481 = vmatprep.subr.bf16.mxu0 %v3724_v45  ;;  %v8768_v45 = vld [vmem:[#allocation31_spill] sm:$0xff] }
 0x313   : > { %v8769_v40 = vpack.c.bf16 %v8767_v62, %v8768_v45  ;;  %v3729_v62 = vunpack.c.h.s8.bf16 %v3327_v57  ;;  %v8776_v45 = vld [vmem:[#allocation39_spill] sm:$0xff] }
 0x314   : > { %4043 = vmatpush1.bf16.msra.mxu1 %v3501_v2  ;;  %v3505_v2 = vunpack.c.h.s8.bf16 %v3215_v11  ;;  %v3510_v11 = vunpack.c.h.s8.bf16 %v3218_v22  ;;  %v3219_v22 = vld [vmem:[%s6184_s10 + $0x220] sm:$0xff] }
 0x315   : > { %4482 = vmatpush1.bf16.msra.mxu0 %v3723_v32  ;;  %4075 = vmatprep.subr.bf16.mxu1 %v3504_v12  ;;  %v3727_v32 = vunpack.c.l.s8.bf16 %v3327_v57  ;;  %v3330_v12 = vld [vmem:[%s6184_s10 + $0x598] sm:$0xff] }
 0x316   : > { %4483 = vmatprep.subr.bf16.mxu0 %v3726_v18  ;;  %v3730_v18 = vunpack.c.h.s8.bf16 %v3328_v41  ;;  %v3732_v41 = vunpack.c.l.s8.bf16 %v3330_v12  ;;  %v3734_v57 = vunpack.c.h.s8.bf16 %v3330_v12 }
 0x317   : > { %4045 = vmatmul.mubr.bf16.vlgmr.msra.gmra.mrb[84].mxu1 %v8766_v5  ;;  %v8770_v5 = vpack.c.bf16 %v7847_v42, %v7824_v44  ;;  %v3220_v44 = vld [vmem:[%s6184_s10 + $0x228] sm:$0xff]  ;;  %v8775_v42 = vld [vmem:[#allocation43_spill] sm:$0xff] }
 0x318   : > { %4054 = vmatprep.mubr.bf16.mxu1 %v8769_v40  ;;  %4076 = vmatpush1.bf16.msra.mxu1 %v3503_v9  ;;  %v8771_v9 = vpack.c.bf16 %v7902_v4, %v7883_v60  ;;  %v8777_v40 = vpack.c.bf16 %v8775_v42, %v8776_v45  ;;  %v3509_v60 = vunpack.c.h.s8.bf16 %v3217_v26  ;;  %v3731_v4 = vunpack.c.l.s8.bf16 %v3329_v43 }
 0x319   : > { %4484 = vmatpush1.bf16.msra.mxu0 %v3725_v63  ;;  %4077 = vmatprep.subr.bf16.mxu1 %v3506_v0  ;;  %v8772_v63 = vld [vmem:[#allocation33_spill] sm:$0xff]  ;;  %v3733_v26 = vunpack.c.h.s8.bf16 %v3329_v43 }
 0x31a   : > { %4516 = vmatprep.subr.bf16.mxu0 %v3728_v20  ;;  %v8773_v0 = vld [vmem:[#allocation29_spill] sm:$0xff] }
 0x31b   : > { %v8774_v20 = vpack.c.bf16 %v8772_v63, %v8773_v0  ;;  %v3221_v43 = vld [vmem:[%s6184_s10 + $0x230] sm:$0xff] }
 0x31c   : > { %4486 = vmatmul.mubr.bf16.vlgmr.msra.gmra.mrb[84].mxu0 %v8770_v5  ;;  %4078 = vmatpush1.bf16.msra.mxu1 %v3505_v2  ;;  %v3512_v2 = vunpack.c.l.s8.bf16 %v3220_v44  ;;  %v8779_v5 = vpack.c.bf16 %v7929_v28, %v7917_v13  ;;  %v3513_v28 = vunpack.c.h.s8.bf16 %v3219_v22  ;;  %v3515_v42 = vunpack.c.l.s8.bf16 %v3221_v43 }
 0x31d   : > { %4495 = vmatprep.mubr.bf16.mxu0 %v8771_v9  ;;  %4517 = vmatpush1.bf16.msra.mxu0 %v3727_v32  ;;  %v3332_v32 = vld [vmem:[%s6184_s10 + $0x5a8] sm:$0xff]  ;;  %v3331_v9 = vld [vmem:[%s6184_s10 + $0x5a0] sm:$0xff] }
 0x31e   : > { %4518 = vmatprep.subr.bf16.mxu0 %v3730_v18  ;;  %4079 = vmatprep.subr.bf16.mxu1 %v3508_v54  ;;  %v8778_v18 = vpack.c.bf16 %v7890_v49, %v7873_v30  ;;  %v3511_v54 = vunpack.c.l.s8.bf16 %v3219_v22  ;;  %v3736_v12 = vunpack.c.l.s8.bf16 %v3332_v32  ;;  %v3222_v30 = vld [vmem:[%s6184_s10 + $0x238] sm:$0xff]  ;;  %v8783_v49 = vpack.c.bf16 %v7142_v47, %v7116_v25 }
 0x31f   : > { %4055 = vmatmul.mubr.bf16.gmra.mrb[88].mxu1 %v8774_v20  ;;  %v3735_v13 = vunpack.c.l.s8.bf16 %v3331_v9  ;;  %v3738_v63 = vunpack.c.h.s8.bf16 %v3332_v32  ;;  %v3516_v0 = vunpack.c.l.s8.bf16 %v3222_v30  ;;  %v3334_v20 = vld [vmem:[%s6184_s10 + $0x5b8] sm:$0xff]  ;;  %v8785_v47 = vpack.c.bf16 %v7866_v33, %v7842_v1  ;;  %v3336_v33 = vld [vmem:[%s6184_s10 + $0x5c8] sm:$0xff] }
 0x320   : > { %4064 = vmatprep.mubr.bf16.mxu1 %v8777_v40  ;;  %4080 = vmatpush1.bf16.msra.mxu1 %v3507_v51  ;;  %v3514_v51 = vunpack.c.h.s8.bf16 %v3220_v44  ;;  %v8784_v44 = vpack.c.bf16 %v7922_v36, %v7910_v27  ;;  %v3737_v25 = vunpack.c.h.s8.bf16 %v3331_v9  ;;  %v3518_v45 = vunpack.c.h.s8.bf16 %v3222_v30 }
 0x321   : > { %4519 = vmatpush1.bf16.msra.mxu0 %v3729_v62  ;;  %4081 = vmatprep.subr.bf16.mxu1 %v3510_v11  ;;  %v8780_v62 = vld [vmem:[#allocation41_spill] sm:$0xff]  ;;  %v3740_v40 = vunpack.c.l.s8.bf16 %v3334_v20  ;;  %v3517_v22 = vunpack.c.h.s8.bf16 %v3221_v43  ;;  %v3742_v1 = vunpack.c.h.s8.bf16 %v3334_v20 }
 0x322   : > { %4520 = vmatprep.subr.bf16.mxu0 %v3732_v41  ;;  %v8781_v11 = vld [vmem:[#allocation37_spill] sm:$0xff] }
 0x323   : > { %v8782_v41 = vpack.c.bf16 %v8780_v62, %v8781_v11  ;;  %v3225_v62 = vld [vmem:[%s6184_s10 + $0x250] sm:$0xff]  ;;  %v3746_v11 = vunpack.c.h.s8.bf16 %v3336_v33 }
 0x324   : > { %4496 = vmatmul.mubr.bf16.gmra.mrb[88].mxu0 %v8778_v18  ;;  %4082 = vmatpush1.bf16.msra.mxu1 %v3509_v60  ;;  %v3333_v60 = vld [vmem:[%s6184_s10 + $0x5b0] sm:$0xff]  ;;  %v3523_v30 = vunpack.c.l.s8.bf16 %v3225_v62 }
 0x325   : > { %4505 = vmatprep.mubr.bf16.mxu0 %v8779_v5  ;;  %4521 = vmatpush1.bf16.msra.mxu0 %v3731_v4  ;;  %v3224_v4 = vld [vmem:[%s6184_s10 + $0x248] sm:$0xff]  ;;  %v3739_v27 = vunpack.c.l.s8.bf16 %v3333_v60  ;;  %v3741_v32 = vunpack.c.h.s8.bf16 %v3333_v60  ;;  %v3335_v5 = vld [vmem:[%s6184_s10 + $0x5c0] sm:$0xff]  ;;  %v3337_v43 = vld [vmem:[%s6184_s10 + $0x5d0] sm:$0xff] }
 0x326   : > { %4522 = vmatprep.subr.bf16.mxu0 %v3734_v57  ;;  %4083 = vmatprep.subr.bf16.mxu1 %v3512_v2  ;;  %v3520_v36 = vunpack.c.l.s8.bf16 %v3224_v4  ;;  %v3223_v57 = vld [vmem:[%s6184_s10 + $0x240] sm:$0xff]  ;;  %v3522_v18 = vunpack.c.h.s8.bf16 %v3224_v4  ;;  %v3747_v20 = vunpack.c.l.s8.bf16 %v3337_v43 }
 0x327   : > { %4065 = vmatmul.mubr.bf16.gmra.mrb[92].mxu1 %v8782_v41  ;;  %v3519_v2 = vunpack.c.l.s8.bf16 %v3223_v57  ;;  %v3338_v41 = vld [vmem:[%s6184_s10 + $0x5d8] sm:$0xff] }
 0x328   : > { %4084 = vmatpush1.bf16.msra.mxu1 %v3511_v54  ;;  %4107 = vmatprep.mubr.bf16.mxu1 %v8783_v49  ;;  %v3744_v54 = vunpack.c.l.s8.bf16 %v3336_v33  ;;  %v3745_v49 = vunpack.c.h.s8.bf16 %v3335_v5  ;;  %v3229_v33 = vld [vmem:[%s6184_s10 + $0x270] sm:$0xff] }
 0x329   : > { %4523 = vmatpush1.bf16.msra.mxu0 %v3733_v26  ;;  %4085 = vmatprep.subr.bf16.mxu1 %v3514_v51  ;;  %v3226_v26 = vld [vmem:[%s6184_s10 + $0x258] sm:$0xff]  ;;  %v3521_v51 = vunpack.c.h.s8.bf16 %v3223_v57 }
 0x32a   : > { %4524 = vmatprep.subr.bf16.mxu0 %v3736_v12  ;;  %v3743_v12 = vunpack.c.l.s8.bf16 %v3335_v5  ;;  %v3524_v9 = vunpack.c.l.s8.bf16 %v3226_v26 }
 0x32c   : > { %4506 = vmatmul.mubr.bf16.gmra.mrb[92].mxu0 %v8784_v44  ;;  %4086 = vmatpush1.bf16.msra.mxu1 %v3513_v28  ;;  %v3526_v28 = vunpack.c.h.s8.bf16 %v3226_v26 }
 0x32d   : > { %4525 = vmatpush1.bf16.msra.mxu0 %v3735_v13  ;;  %4548 = vmatprep.mubr.bf16.mxu0 %v8785_v47  ;;  %v3748_v13 = vunpack.c.l.s8.bf16 %v3338_v41  ;;  %v3750_v47 = vunpack.c.h.s8.bf16 %v3338_v41  ;;  %v3231_v41 = vld [vmem:[%s6184_s10 + $0x280] sm:$0xff] }
 0x32e   : > { %4526 = vmatprep.subr.bf16.mxu0 %v3738_v63  ;;  %4087 = vmatprep.subr.bf16.mxu1 %v3516_v0  ;;  %v3228_v63 = vld [vmem:[%s6184_s10 + $0x268] sm:$0xff]  ;;  %v3525_v0 = vunpack.c.h.s8.bf16 %v3225_v62 }
 0x32f   : > { %v3528_v44 = vunpack.c.l.s8.bf16 %v3228_v63  ;;  %v3530_v60 = vunpack.c.h.s8.bf16 %v3228_v63 }
 0x330   : > { %4088 = vmatpush1.bf16.msra.mxu1 %v3515_v42  ;;  %v3227_v42 = vld [vmem:[%s6184_s10 + $0x260] sm:$0xff] }
 0x331   : > { %4527 = vmatpush1.bf16.msra.mxu0 %v3737_v25  ;;  %4089 = vmatprep.subr.bf16.mxu1 %v3518_v45  ;;  %v3340_v25 = vld [vmem:[%s6184_s10 + $0x5e8] sm:$0xff]  ;;  %v3527_v45 = vunpack.c.l.s8.bf16 %v3227_v42 }
 0x332   : > { %4528 = vmatprep.subr.bf16.mxu0 %v3740_v40  ;;  %v3749_v40 = vunpack.c.h.s8.bf16 %v3337_v43  ;;  %v3752_v4 = vunpack.c.l.s8.bf16 %v3340_v25 }
 0x334   : > { %4090 = vmatpush1.bf16.msra.mxu1 %v3517_v22  ;;  %v3339_v22 = vld [vmem:[%s6184_s10 + $0x5e0] sm:$0xff] }
 0x335   : > { %4529 = vmatpush1.bf16.msra.mxu0 %v3739_v27  ;;  %4091 = vmatprep.subr.bf16.mxu1 %v3520_v36  ;;  %v3230_v27 = vld [vmem:[%s6184_s10 + $0x278] sm:$0xff]  ;;  %v3529_v36 = vunpack.c.h.s8.bf16 %v3227_v42  ;;  %v3751_v57 = vunpack.c.l.s8.bf16 %v3339_v22  ;;  %v8787_v42 = vpack.c.bf16 %v7195_v21, %v7171_v50  ;;  %v8789_v50 = vpack.c.bf16 %v7906_v29, %v7886_v8 }
 0x336   : > { %4530 = vmatprep.subr.bf16.mxu0 %v3742_v1  ;;  %v3532_v1 = vunpack.c.l.s8.bf16 %v3230_v27  ;;  %v3534_v5 = vunpack.c.h.s8.bf16 %v3230_v27 }
 0x338   : > { %4092 = vmatpush1.bf16.msra.mxu1 %v3519_v2  ;;  %v3754_v2 = vunpack.c.h.s8.bf16 %v3340_v25 }
 0x339   : > { %4531 = vmatpush1.bf16.msra.mxu0 %v3741_v32  ;;  %4093 = vmatprep.subr.bf16.mxu1 %v3522_v18  ;;  %v3342_v32 = vld [vmem:[%s6184_s10 + $0x5f8] sm:$0xff]  ;;  %v3531_v18 = vunpack.c.l.s8.bf16 %v3229_v33 }
 0x33a   : > { %4532 = vmatprep.subr.bf16.mxu0 %v3744_v54  ;;  %v3753_v54 = vunpack.c.h.s8.bf16 %v3339_v22  ;;  %v3756_v26 = vunpack.c.l.s8.bf16 %v3342_v32 }
 0x33c   : > { %4094 = vmatpush1.bf16.msra.mxu1 %v3521_v51  ;;  %v3341_v51 = vld [vmem:[%s6184_s10 + $0x5f0] sm:$0xff] }
 0x33d   : > { %4533 = vmatpush1.bf16.msra.mxu0 %v3743_v12  ;;  %4095 = vmatprep.subr.bf16.mxu1 %v3524_v9  ;;  %v3232_v12 = vld [vmem:[%s6184_s10 + $0x288] sm:$0xff]  ;;  %v3533_v9 = vunpack.c.h.s8.bf16 %v3229_v33  ;;  %v3755_v62 = vunpack.c.l.s8.bf16 %v3341_v51 }
 0x33e   : > { %4534 = vmatprep.subr.bf16.mxu0 %v3746_v11  ;;  %v3536_v11 = vunpack.c.l.s8.bf16 %v3232_v12  ;;  %v3538_v43 = vunpack.c.h.s8.bf16 %v3232_v12  ;;  %v8793_v33 = vld [vmem:[#allocation56_spill] sm:$0xff] }
 0x340   : > { %4096 = vmatpush1.bf16.msra.mxu1 %v3523_v30  ;;  %v3758_v30 = vunpack.c.h.s8.bf16 %v3342_v32  ;;  %v3235_v32 = vld [vmem:[%s6184_s10 + $0x2a0] sm:$0xff] }
 0x341   : > { %4535 = vmatpush1.bf16.msra.mxu0 %v3745_v49  ;;  %4097 = vmatprep.subr.bf16.mxu1 %v3526_v28  ;;  %v3344_v49 = vld [vmem:[%s6184_s10 + $0x608] sm:$0xff]  ;;  %v3535_v28 = vunpack.c.l.s8.bf16 %v3231_v41  ;;  %v3543_v12 = vunpack.c.l.s8.bf16 %v3235_v32 }
 0x342   : > { %4536 = vmatprep.subr.bf16.mxu0 %v3748_v13  ;;  %v3757_v13 = vunpack.c.h.s8.bf16 %v3341_v51  ;;  %v3760_v63 = vunpack.c.l.s8.bf16 %v3344_v49 }
 0x344   : > { %4098 = vmatpush1.bf16.msra.mxu1 %v3525_v0  ;;  %v3343_v0 = vld [vmem:[%s6184_s10 + $0x600] sm:$0xff] }
 0x345   : > { %4537 = vmatpush1.bf16.msra.mxu0 %v3747_v20  ;;  %4099 = vmatprep.subr.bf16.mxu1 %v3528_v44  ;;  %v8786_v20 = vpack.c.bf16 %v7126_v34, %v7102_v19  ;;  %v3234_v44 = vld [vmem:[%s6184_s10 + $0x298] sm:$0xff]  ;;  %v3759_v25 = vunpack.c.l.s8.bf16 %v3343_v0  ;;  %v8788_v19 = vpack.c.bf16 %v7854_v38, %v7832_v14  ;;  %v3761_v21 = vunpack.c.h.s8.bf16 %v3343_v0  ;;  %v3236_v14 = vld [vmem:[%s6184_s10 + $0x2a8] sm:$0xff] }
 0x346   : > { %4538 = vmatprep.subr.bf16.mxu0 %v3750_v47  ;;  %v3537_v47 = vunpack.c.h.s8.bf16 %v3231_v41  ;;  %v3542_v22 = vunpack.c.h.s8.bf16 %v3234_v44  ;;  %v8792_v38 = vld [vmem:[#allocation60_spill] sm:$0xff]  ;;  %v3238_v0 = vld [vmem:[%s6184_s10 + $0x2b8] sm:$0xff] }
 0x348   : > { %4100 = vmatpush1.bf16.msra.mxu1 %v3527_v45  ;;  %v3233_v45 = vld [vmem:[%s6184_s10 + $0x290] sm:$0xff] }
 0x349   : > { %4539 = vmatpush1.bf16.msra.mxu0 %v3749_v40  ;;  %4101 = vmatprep.subr.bf16.mxu1 %v3530_v60  ;;  %v3762_v40 = vunpack.c.h.s8.bf16 %v3344_v49  ;;  %v3540_v60 = vunpack.c.l.s8.bf16 %v3234_v44  ;;  %v3539_v34 = vunpack.c.l.s8.bf16 %v3233_v45  ;;  %v3541_v8 = vunpack.c.h.s8.bf16 %v3233_v45  ;;  %v8805_v44 = vld [vmem:[#allocation45_spill] sm:$0xff] }
 0x34a   : > { %4540 = vmatprep.subr.bf16.mxu0 %v3752_v4  ;;  %v3346_v4 = vld [vmem:[%s6184_s10 + $0x618] sm:$0xff]  ;;  %v3237_v45 = vld [vmem:[%s6184_s10 + $0x2b0] sm:$0xff] }
 0x34b   : > { %v3764_v27 = vunpack.c.l.s8.bf16 %v3346_v4 }
 0x34c   : > { %4102 = vmatpush1.bf16.msra.mxu1 %v3529_v36  ;;  %v3345_v36 = vld [vmem:[%s6184_s10 + $0x610] sm:$0xff] }
 0x34d   : > { %4541 = vmatpush1.bf16.msra.mxu0 %v3751_v57  ;;  %4103 = vmatprep.subr.bf16.mxu1 %v3532_v1  ;;  %v8790_v57 = vld [vmem:[#allocation49_spill] sm:$0xff]  ;;  %v3763_v29 = vunpack.c.l.s8.bf16 %v3345_v36  ;;  %v3765_v41 = vunpack.c.h.s8.bf16 %v3345_v36  ;;  %v3550_v36 = vunpack.c.h.s8.bf16 %v3238_v0 }
 0x34e   : > { %4542 = vmatprep.subr.bf16.mxu0 %v3754_v2  ;;  %v8791_v1 = vpack.c.bf16 %v7182_v17, %v8790_v57  ;;  %v8794_v2 = vpack.c.bf16 %v8792_v38, %v8793_v33  ;;  %v8796_v17 = vld [vmem:[#allocation12_spill] sm:$0xff]  ;;  %v3549_v38 = vunpack.c.h.s8.bf16 %v3237_v45 }
 0x350   : > { %4104 = vmatpush1.bf16.msra.mxu1 %v3531_v18  ;;  %v3766_v18 = vunpack.c.h.s8.bf16 %v3346_v4  ;;  %v3350_v4 = vld [vmem:[%s6184_s10 + $0x638] sm:$0xff] }
 0x351   : > { %4543 = vmatpush1.bf16.msra.mxu0 %v3753_v54  ;;  %4105 = vmatprep.subr.bf16.mxu1 %v3534_v5  ;;  %v3544_v54 = vunpack.c.l.s8.bf16 %v3236_v14  ;;  %v3348_v5 = vld [vmem:[%s6184_s10 + $0x628] sm:$0xff]  ;;  %v3772_v57 = vunpack.c.l.s8.bf16 %v3350_v4 }
 0x352   : > { %4544 = vmatprep.subr.bf16.mxu0 %v3756_v26  ;;  %v8795_v26 = vld [vmem:[#allocation10_spill] sm:$0xff]  ;;  %v3768_v49 = vunpack.c.l.s8.bf16 %v3348_v5 }
 0x353   : > { %v8797_v51 = vpack.c.bf16 %v8795_v26, %v8796_v17  ;;  %v3242_v26 = vld [vmem:[%s6184_s10 + $0x2d8] sm:$0xff] }
 0x354   : > { %4106 = vmatpush1.bf16.msra.mxu1 %v3533_v9  ;;  %v8798_v9 = vld [vmem:[#allocation14_spill] sm:$0xff] }
 0x355   : > { %4545 = vmatpush1.bf16.msra.mxu0 %v3755_v62  ;;  %4138 = vmatprep.subr.bf16.mxu1 %v3536_v11  ;;  %v8799_v62 = vld [vmem:[#allocation9_spill] sm:$0xff] }
 0x356   : > { %4546 = vmatprep.subr.bf16.mxu0 %v3758_v30  ;;  %v8800_v11 = vpack.c.bf16 %v8798_v9, %v8799_v62  ;;  %v3546_v30 = vunpack.c.h.s8.bf16 %v3236_v14  ;;  %v3240_v14 = vld [vmem:[%s6184_s10 + $0x2c8] sm:$0xff]  ;;  %v3241_v9 = vld [vmem:[%s6184_s10 + $0x2d0] sm:$0xff] }
 0x357   : > { %4108 = vmatmul.mubr.bf16.vlgmr.msra.gmra.mrb[84].mxu1 %v8786_v20  ;;  %v8804_v20 = vld [vmem:[#allocation47_spill] sm:$0xff] }
 0x358   : > { %4117 = vmatprep.mubr.bf16.mxu1 %v8787_v42  ;;  %4139 = vmatpush1.bf16.msra.mxu1 %v3535_v28  ;;  %v3347_v28 = vld [vmem:[%s6184_s10 + $0x620] sm:$0xff]  ;;  %v8806_v42 = vpack.c.bf16 %v8804_v20, %v8805_v44 }
 0x359   : > { %4547 = vmatpush1.bf16.msra.mxu0 %v3757_v13  ;;  %4140 = vmatprep.subr.bf16.mxu1 %v3538_v43  ;;  %v8801_v13 = vld [vmem:[#allocation58_spill] sm:$0xff]  ;;  %v3243_v44 = vld [vmem:[%s6184_s10 + $0x2e0] sm:$0xff] }
 0x35a   : > { %4579 = vmatprep.subr.bf16.mxu0 %v3760_v63  ;;  %v8802_v43 = vld [vmem:[#allocation54_spill] sm:$0xff] }
 0x35b   : > { %v8803_v63 = vpack.c.bf16 %v8801_v13, %v8802_v43  ;;  %v3353_v13 = vld [vmem:[%s6184_s10 + $0x650] sm:$0xff]  ;;  %v3244_v43 = vld [vmem:[%s6184_s10 + $0x2e8] sm:$0xff] }
 0x35c   : > { %4549 = vmatmul.mubr.bf16.vlgmr.msra.gmra.mrb[84].mxu0 %v8788_v19  ;;  %4141 = vmatpush1.bf16.msra.mxu1 %v3537_v47  ;;  %v3545_v47 = vunpack.c.h.s8.bf16 %v3235_v32  ;;  %v8807_v19 = vld [vmem:[#allocation16_spill] sm:$0xff]  ;;  %v3560_v20 = vunpack.c.l.s8.bf16 %v3244_v43 }
 0x35d   : > { %4558 = vmatprep.mubr.bf16.mxu0 %v8789_v50  ;;  %4580 = vmatpush1.bf16.msra.mxu0 %v3759_v25  ;;  %v3767_v25 = vunpack.c.l.s8.bf16 %v3347_v28 }
 0x35e   : > { %4581 = vmatprep.subr.bf16.mxu0 %v3762_v40  ;;  %4142 = vmatprep.subr.bf16.mxu1 %v3540_v60  ;;  %v3770_v40 = vunpack.c.h.s8.bf16 %v3348_v5  ;;  %v3548_v60 = vunpack.c.l.s8.bf16 %v3238_v0  ;;  %v3351_v5 = vld [vmem:[%s6184_s10 + $0x640] sm:$0xff]  ;;  %v3779_v0 = vunpack.c.l.s8.bf16 %v3353_v13 }
 0x35f   : > { %4118 = vmatmul.mubr.bf16.gmra.mrb[88].mxu1 %v8791_v1  ;;  %v3349_v1 = vld [vmem:[%s6184_s10 + $0x630] sm:$0xff] }
 0x360   : > { %4127 = vmatprep.mubr.bf16.mxu1 %v8794_v2  ;;  %4143 = vmatpush1.bf16.msra.mxu1 %v3539_v34  ;;  %v8808_v34 = vld [vmem:[#allocation11_spill] sm:$0xff]  ;;  %v3771_v33 = vunpack.c.l.s8.bf16 %v3349_v1  ;;  %v3552_v2 = vunpack.c.l.s8.bf16 %v3240_v14  ;;  %v3773_v32 = vunpack.c.h.s8.bf16 %v3349_v1 }
 0x361   : > { %4582 = vmatpush1.bf16.msra.mxu0 %v3761_v21  ;;  %4144 = vmatprep.subr.bf16.mxu1 %v3542_v22  ;;  %v8809_v50 = vpack.c.bf16 %v8807_v19, %v8808_v34  ;;  %v3547_v21 = vunpack.c.l.s8.bf16 %v3237_v45  ;;  %v8810_v22 = vpack.c.bf16 %v8123_v59, %v8100_v10  ;;  %v3774_v10 = vunpack.c.h.s8.bf16 %v3350_v4  ;;  %v3352_v59 = vld [vmem:[%s6184_s10 + $0x648] sm:$0xff]  ;;  %v3355_v4 = vld [vmem:[%s6184_s10 + $0x660] sm:$0xff]  ;;  %v3246_v19 = vld [vmem:[%s6184_s10 + $0x2f8] sm:$0xff] }
 0x362   : > { %4583 = vmatprep.subr.bf16.mxu0 %v3764_v27  ;;  %v3769_v27 = vunpack.c.h.s8.bf16 %v3347_v28  ;;  %v3778_v62 = vunpack.c.h.s8.bf16 %v3352_v59  ;;  %v3781_v45 = vunpack.c.h.s8.bf16 %v3353_v13  ;;  %v3561_v34 = vunpack.c.h.s8.bf16 %v3243_v44 }
 0x363   : > { %v3785_v1 = vunpack.c.h.s8.bf16 %v3355_v4 }
 0x364   : > { %4559 = vmatmul.mubr.bf16.gmra.mrb[88].mxu0 %v8797_v51  ;;  %4145 = vmatpush1.bf16.msra.mxu1 %v3541_v8  ;;  %v3239_v8 = vld [vmem:[%s6184_s10 + $0x2c0] sm:$0xff]  ;;  %v3775_v51 = vunpack.c.l.s8.bf16 %v3351_v5 }
 0x365   : > { %4568 = vmatprep.mubr.bf16.mxu0 %v8800_v11  ;;  %4584 = vmatpush1.bf16.msra.mxu0 %v3763_v29  ;;  %v3551_v29 = vunpack.c.l.s8.bf16 %v3239_v8  ;;  %v3553_v17 = vunpack.c.h.s8.bf16 %v3239_v8  ;;  %v3354_v11 = vld [vmem:[%s6184_s10 + $0x658] sm:$0xff] }
 0x366   : > { %4585 = vmatprep.subr.bf16.mxu0 %v3766_v18  ;;  %4146 = vmatprep.subr.bf16.mxu1 %v3544_v54  ;;  %v3554_v18 = vunpack.c.h.s8.bf16 %v3240_v14  ;;  %v3776_v54 = vunpack.c.l.s8.bf16 %v3352_v59  ;;  %v3780_v28 = vunpack.c.l.s8.bf16 %v3354_v11  ;;  %v3566_v14 = vunpack.c.h.s8.bf16 %v3246_v19 }
 0x367   : > { %4128 = vmatmul.mubr.bf16.gmra.mrb[92].mxu1 %v8803_v63  ;;  %v3557_v63 = vunpack.c.h.s8.bf16 %v3241_v9 }
 0x368   : > { %4147 = vmatpush1.bf16.msra.mxu1 %v3543_v12  ;;  %4170 = vmatprep.mubr.bf16.mxu1 %v8806_v42  ;;  %v3556_v12 = vunpack.c.l.s8.bf16 %v3242_v26  ;;  %v3782_v42 = vunpack.c.h.s8.bf16 %v3354_v11  ;;  %v3250_v11 = vld [vmem:[%s6184_s10 + $0x318] sm:$0xff] }
 0x369   : > { %4586 = vmatpush1.bf16.msra.mxu0 %v3765_v41  ;;  %4148 = vmatprep.subr.bf16.mxu1 %v3546_v30  ;;  %v3555_v41 = vunpack.c.l.s8.bf16 %v3241_v9  ;;  %v3777_v30 = vunpack.c.h.s8.bf16 %v3351_v5  ;;  %v8812_v9 = vld [vmem:[#allocation44_spill] sm:$0xff] }
 0x36a   : > { %4587 = vmatprep.subr.bf16.mxu0 %v3768_v49  ;;  %v3558_v49 = vunpack.c.h.s8.bf16 %v3242_v26 }
 0x36c   : > { %4569 = vmatmul.mubr.bf16.gmra.mrb[92].mxu0 %v8809_v50  ;;  %4149 = vmatpush1.bf16.msra.mxu1 %v3545_v47  ;;  %v3356_v47 = vld [vmem:[%s6184_s10 + $0x668] sm:$0xff]  ;;  %v3783_v50 = vunpack.c.l.s8.bf16 %v3355_v4  ;;  %v8819_v4 = vld [vmem:[#allocation51_spill] sm:$0xff] }
 0x36d   : > { %4588 = vmatpush1.bf16.msra.mxu0 %v3767_v25  ;;  %4611 = vmatprep.mubr.bf16.mxu0 %v8810_v22  ;;  %v3559_v25 = vunpack.c.l.s8.bf16 %v3243_v44  ;;  %v3245_v22 = vld [vmem:[%s6184_s10 + $0x2f0] sm:$0xff]  ;;  %v8817_v44 = vpack.c.bf16 %v8110_v3, %v8090_v46  ;;  %v3252_v46 = vld [vmem:[%s6184_s10 + $0x328] sm:$0xff]  ;;  %v8822_v3 = vld [vmem:[#allocation59_spill] sm:$0xff] }
 0x36e   : > { %4589 = vmatprep.subr.bf16.mxu0 %v3770_v40  ;;  %4150 = vmatprep.subr.bf16.mxu1 %v3548_v60  ;;  %v3562_v40 = vunpack.c.h.s8.bf16 %v3244_v43  ;;  %v3784_v60 = vunpack.c.l.s8.bf16 %v3356_v47  ;;  %v3565_v8 = vunpack.c.h.s8.bf16 %v3245_v22  ;;  %v3249_v43 = vld [vmem:[%s6184_s10 + $0x310] sm:$0xff] }
 0x370   : > { %4151 = vmatpush1.bf16.msra.mxu1 %v3547_v21  ;;  %v3564_v21 = vunpack.c.l.s8.bf16 %v3246_v19  ;;  %v8820_v19 = vld [vmem:[#allocation48_spill] sm:$0xff] }
 0x371   : > { %4590 = vmatpush1.bf16.msra.mxu0 %v3769_v27  ;;  %4152 = vmatprep.subr.bf16.mxu1 %v3550_v36  ;;  %v3786_v27 = vunpack.c.h.s8.bf16 %v3356_v47  ;;  %v3358_v36 = vld [vmem:[%s6184_s10 + $0x678] sm:$0xff]  ;;  %v8818_v47 = vpack.c.bf16 %v8162_v35, %v8142_v31  ;;  %v3573_v31 = vunpack.c.h.s8.bf16 %v3249_v43 }
 0x372   : > { %4591 = vmatprep.subr.bf16.mxu0 %v3772_v57  ;;  %v3563_v57 = vunpack.c.l.s8.bf16 %v3245_v22  ;;  %v3251_v22 = vld [vmem:[%s6184_s10 + $0x320] sm:$0xff] }
 0x374   : > { %4153 = vmatpush1.bf16.msra.mxu1 %v3549_v38  ;;  %v3788_v38 = vunpack.c.l.s8.bf16 %v3358_v36 }
 0x375   : > { %4592 = vmatpush1.bf16.msra.mxu0 %v3771_v33  ;;  %4154 = vmatprep.subr.bf16.mxu1 %v3552_v2  ;;  %v3357_v33 = vld [vmem:[%s6184_s10 + $0x670] sm:$0xff]  ;;  %v3248_v2 = vld [vmem:[%s6184_s10 + $0x308] sm:$0xff] }
 0x376   : > { %4593 = vmatprep.subr.bf16.mxu0 %v3774_v10  ;;  %v3787_v10 = vunpack.c.l.s8.bf16 %v3357_v33  ;;  %v3568_v59 = vunpack.c.l.s8.bf16 %v3248_v2  ;;  %v3789_v5 = vunpack.c.h.s8.bf16 %v3357_v33  ;;  %v3570_v26 = vunpack.c.h.s8.bf16 %v3248_v2 }
 0x377   : > { %v3578_v2 = vunpack.c.h.s8.bf16 %v3252_v46 }
 0x378   : > { %4155 = vmatpush1.bf16.msra.mxu1 %v3551_v29  ;;  %v3247_v29 = vld [vmem:[%s6184_s10 + $0x300] sm:$0xff] }
 0x379   : > { %4594 = vmatpush1.bf16.msra.mxu0 %v3773_v32  ;;  %4156 = vmatprep.subr.bf16.mxu1 %v3554_v18  ;;  %v3790_v32 = vunpack.c.h.s8.bf16 %v3358_v36  ;;  %v3360_v18 = vld [vmem:[%s6184_s10 + $0x688] sm:$0xff]  ;;  %v3576_v36 = vunpack.c.l.s8.bf16 %v3252_v46 }
 0x37a   : > { %4595 = vmatprep.subr.bf16.mxu0 %v3776_v54  ;;  %v3567_v54 = vunpack.c.l.s8.bf16 %v3247_v29 }
 0x37c   : > { %4157 = vmatpush1.bf16.msra.mxu1 %v3553_v17  ;;  %v3792_v17 = vunpack.c.l.s8.bf16 %v3360_v18 }
 0x37d   : > { %4596 = vmatpush1.bf16.msra.mxu0 %v3775_v51  ;;  %4158 = vmatprep.subr.bf16.mxu1 %v3556_v12  ;;  %v3359_v51 = vld [vmem:[%s6184_s10 + $0x680] sm:$0xff]  ;;  %v8811_v12 = vld [vmem:[#allocation46_spill] sm:$0xff] }
 0x37e   : > { %4597 = vmatprep.subr.bf16.mxu0 %v3778_v62  ;;  %v8813_v62 = vpack.c.bf16 %v8811_v12, %v8812_v9  ;;  %v3791_v13 = vunpack.c.l.s8.bf16 %v3359_v51  ;;  %v8833_v12 = vpack.c.bf16 %v8182_v24, %v8170_v52 }
 0x380   : > { %4159 = vmatpush1.bf16.msra.mxu1 %v3555_v41  ;;  %v8814_v41 = vld [vmem:[#allocation52_spill] sm:$0xff] }
 0x381   : > { %4598 = vmatpush1.bf16.msra.mxu0 %v3777_v30  ;;  %4160 = vmatprep.subr.bf16.mxu1 %v3558_v49  ;;  %v8815_v30 = vld [vmem:[#allocation50_spill] sm:$0xff] }
 0x382   : > { %4599 = vmatprep.subr.bf16.mxu0 %v3780_v28  ;;  %v8816_v49 = vpack.c.bf16 %v8814_v41, %v8815_v30  ;;  %v3569_v28 = vunpack.c.h.s8.bf16 %v3247_v29  ;;  %v8828_v29 = vld [vmem:[#allocation53_spill] sm:$0xff] }
 0x384   : > { %4161 = vmatpush1.bf16.msra.mxu1 %v3557_v63  ;;  %v3794_v63 = vunpack.c.h.s8.bf16 %v3360_v18  ;;  %v8831_v18 = vld [vmem:[#allocation62_spill] sm:$0xff] }
 0x385   : > { %4600 = vmatpush1.bf16.msra.mxu0 %v3779_v0  ;;  %4162 = vmatprep.subr.bf16.mxu1 %v3560_v20  ;;  %v3572_v0 = vunpack.c.l.s8.bf16 %v3250_v11  ;;  %v3362_v20 = vld [vmem:[%s6184_s10 + $0x698] sm:$0xff] }
 0x386   : > { %4601 = vmatprep.subr.bf16.mxu0 %v3782_v42  ;;  %v3571_v42 = vunpack.c.l.s8.bf16 %v3249_v43  ;;  %v3255_v43 = vld [vmem:[%s6184_s10 + $0x340] sm:$0xff] }
 0x388   : > { %4163 = vmatpush1.bf16.msra.mxu1 %v3559_v25  ;;  %v3793_v25 = vunpack.c.h.s8.bf16 %v3359_v51  ;;  %v3366_v51 = vld [vmem:[%s6184_s10 + $0x6b8] sm:$0xff] }
 0x389   : > { %4602 = vmatpush1.bf16.msra.mxu0 %v3781_v45  ;;  %4164 = vmatprep.subr.bf16.mxu1 %v3562_v40  ;;  %v3574_v45 = vunpack.c.h.s8.bf16 %v3250_v11  ;;  %v3796_v40 = vunpack.c.l.s8.bf16 %v3362_v20  ;;  %v3804_v30 = vunpack.c.l.s8.bf16 %v3366_v51 }
 0x38a   : > { %4603 = vmatprep.subr.bf16.mxu0 %v3784_v60  ;;  %v3361_v60 = vld [vmem:[%s6184_s10 + $0x690] sm:$0xff] }
 0x38b   : > { %v3795_v35 = vunpack.c.l.s8.bf16 %v3361_v60  ;;  %v3797_v33 = vunpack.c.h.s8.bf16 %v3361_v60  ;;  %v3257_v60 = vld [vmem:[%s6184_s10 + $0x350] sm:$0xff] }
 0x38c   : > { %4165 = vmatpush1.bf16.msra.mxu1 %v3561_v34  ;;  %v8821_v34 = vpack.c.bf16 %v8819_v4, %v8820_v19  ;;  %v3370_v19 = vld [vmem:[%s6184_s10 + $0x6d8] sm:$0xff] }
 0x38d   : > { %4604 = vmatpush1.bf16.msra.mxu0 %v3783_v50  ;;  %4166 = vmatprep.subr.bf16.mxu1 %v3564_v21  ;;  %v8823_v50 = vld [vmem:[#allocation55_spill] sm:$0xff] }
 0x38e   : > { %4605 = vmatprep.subr.bf16.mxu0 %v3786_v27  ;;  %v8824_v21 = vpack.c.bf16 %v8822_v3, %v8823_v50  ;;  %v3798_v27 = vunpack.c.h.s8.bf16 %v3362_v20  ;;  %v3812_v50 = vunpack.c.l.s8.bf16 %v3370_v19 }
 0x390   : > { %4167 = vmatpush1.bf16.msra.mxu1 %v3563_v57  ;;  %v3364_v57 = vld [vmem:[%s6184_s10 + $0x6a8] sm:$0xff] }
 0x391   : > { %4606 = vmatpush1.bf16.msra.mxu0 %v3785_v1  ;;  %4168 = vmatprep.subr.bf16.mxu1 %v3566_v14  ;;  %v8825_v1 = vpack.c.bf16 %v8151_v23, %v8134_v48  ;;  %v3575_v14 = vunpack.c.l.s8.bf16 %v3251_v22  ;;  %v3254_v48 = vld [vmem:[%s6184_s10 + $0x338] sm:$0xff]  ;;  %v8830_v23 = vld [vmem:[#allocation64_spill] sm:$0xff] }
 0x392   : > { %4607 = vmatprep.subr.bf16.mxu0 %v3788_v38  ;;  %v8826_v38 = vpack.c.bf16 %v8190_v56, %v8177_v6  ;;  %v3577_v56 = vunpack.c.h.s8.bf16 %v3251_v22  ;;  %v3582_v41 = vunpack.c.h.s8.bf16 %v3254_v48 }
 0x394   : > { %4169 = vmatpush1.bf16.msra.mxu1 %v3565_v8  ;;  %v3800_v8 = vunpack.c.l.s8.bf16 %v3364_v57 }
 0x395   : > { %4608 = vmatpush1.bf16.msra.mxu0 %v3787_v10  ;;  %4201 = vmatprep.subr.bf16.mxu1 %v3568_v59  ;;  %v3363_v10 = vld [vmem:[%s6184_s10 + $0x6a0] sm:$0xff]  ;;  %v8827_v59 = vld [vmem:[#allocation57_spill] sm:$0xff] }
 0x396   : > { %4609 = vmatprep.subr.bf16.mxu0 %v3790_v32  ;;  %v8829_v32 = vpack.c.bf16 %v8827_v59, %v8828_v29  ;;  %v3799_v6 = vunpack.c.l.s8.bf16 %v3363_v10  ;;  %v3801_v11 = vunpack.c.h.s8.bf16 %v3363_v10  ;;  %v3262_v10 = vld [vmem:[%s6184_s10 + $0x378] sm:$0xff] }
 0x397   : > { %4171 = vmatmul.mubr.bf16.vlgmr.msra.gmra.mrb[84].mxu1 %v8813_v62  ;;  %v8834_v62 = vpack.c.bf16 %v8128_v7, %v8105_v15  ;;  %v3806_v15 = vunpack.c.h.s8.bf16 %v3366_v51  ;;  %v3368_v7 = vld [vmem:[%s6184_s10 + $0x6c8] sm:$0xff] }
 0x398   : > { %4180 = vmatprep.mubr.bf16.mxu1 %v8816_v49  ;;  %4202 = vmatpush1.bf16.msra.mxu1 %v3567_v54  ;;  %v8832_v54 = vpack.c.bf16 %v8830_v23, %v8831_v18  ;;  %v3365_v49 = vld [vmem:[%s6184_s10 + $0x6b0] sm:$0xff]  ;;  %v3810_v4 = vunpack.c.h.s8.bf16 %v3368_v7  ;;  %v3374_v18 = vld [vmem:[%s6184_s10 + $0x6f8] sm:$0xff] }
 0x399   : > { %4610 = vmatpush1.bf16.msra.mxu0 %v3789_v5  ;;  %4203 = vmatprep.subr.bf16.mxu1 %v3570_v26  ;;  %v3253_v5 = vld [vmem:[%s6184_s10 + $0x330] sm:$0xff]  ;;  %v3802_v26 = vunpack.c.h.s8.bf16 %v3364_v57  ;;  %v3803_v52 = vunpack.c.l.s8.bf16 %v3365_v49  ;;  %v3814_v57 = vunpack.c.h.s8.bf16 %v3370_v19  ;;  %v3055_v19 = vld [vmem:[#allocation2] sm:$0xff] }
 0x39a   : > { %4642 = vmatprep.subr.bf16.mxu0 %v3792_v17  ;;  %v3580_v17 = vunpack.c.l.s8.bf16 %v3254_v48  ;;  %v3579_v9 = vunpack.c.l.s8.bf16 %v3253_v5  ;;  %v3261_v48 = vld [vmem:[%s6184_s10 + $0x370] sm:$0xff] }
 0x39c   : > { %4612 = vmatmul.mubr.bf16.vlgmr.msra.gmra.mrb[84].mxu0 %v8817_v44  ;;  %4204 = vmatpush1.bf16.msra.mxu1 %v3569_v28  ;;  %v3256_v28 = vld [vmem:[%s6184_s10 + $0x348] sm:$0xff]  ;;  %v3808_v44 = vunpack.c.l.s8.bf16 %v3368_v7 }
 0x39d   : > { %4621 = vmatprep.mubr.bf16.mxu0 %v8818_v47  ;;  %4643 = vmatpush1.bf16.msra.mxu0 %v3791_v13  ;;  %v3581_v13 = vunpack.c.h.s8.bf16 %v3253_v5  ;;  %v3584_v24 = vunpack.c.l.s8.bf16 %v3256_v28  ;;  %v3586_v20 = vunpack.c.h.s8.bf16 %v3256_v28  ;;  %v3258_v47 = vld [vmem:[%s6184_s10 + $0x358] sm:$0xff]  ;;  %v3820_v5 = vunpack.c.l.s8.bf16 %v3374_v18  ;;  %v8846_v7 = vld [vmem:[#allocation72_spill] sm:$0xff] }
 0x39e   : > { %4644 = vmatprep.subr.bf16.mxu0 %v3794_v63  ;;  %4205 = vmatprep.subr.bf16.mxu1 %v3572_v0  ;;  %v3583_v63 = vunpack.c.l.s8.bf16 %v3255_v43  ;;  %v3805_v0 = vunpack.c.h.s8.bf16 %v3365_v49  ;;  %v3590_v3 = vunpack.c.h.s8.bf16 %v3258_v47  ;;  %v8839_v49 = vld [vmem:[#allocation66_spill] sm:$0xff] }
 0x39f   : > { %4181 = vmatmul.mubr.bf16.gmra.mrb[88].mxu1 %v8821_v34  ;;  %v3587_v34 = vunpack.c.l.s8.bf16 %v3257_v60 }
 0x3a0   : > { %4190 = vmatprep.mubr.bf16.mxu1 %v8824_v21  ;;  %4206 = vmatpush1.bf16.msra.mxu1 %v3571_v42  ;;  %v3367_v42 = vld [vmem:[%s6184_s10 + $0x6c0] sm:$0xff]  ;;  %v3369_v21 = vld [vmem:[%s6184_s10 + $0x6d0] sm:$0xff] }
 0x3a1   : > { %4645 = vmatpush1.bf16.msra.mxu0 %v3793_v25  ;;  %4207 = vmatprep.subr.bf16.mxu1 %v3574_v45  ;;  %v3585_v25 = vunpack.c.h.s8.bf16 %v3255_v43  ;;  %v3807_v45 = vunpack.c.l.s8.bf16 %v3367_v42  ;;  %v3809_v46 = vunpack.c.h.s8.bf16 %v3367_v42  ;;  %v3811_v22 = vunpack.c.l.s8.bf16 %v3369_v21  ;;  %v8844_v43 = vld [vmem:[#allocation65_spill] sm:$0xff] }
 0x3a2   : > { %4646 = vmatprep.subr.bf16.mxu0 %v3796_v40  ;;  %v3588_v40 = vunpack.c.l.s8.bf16 %v3258_v47  ;;  %v8853_v42 = vld [vmem:[#allocation69_spill] sm:$0xff] }
 0x3a3   : > { %v8856_v47 = vld [vmem:[#allocation13_spill] sm:$0xff] }
 0x3a4   : > { %4622 = vmatmul.mubr.bf16.gmra.mrb[88].mxu0 %v8825_v1  ;;  %4208 = vmatpush1.bf16.msra.mxu1 %v3573_v31  ;;  %v3260_v31 = vld [vmem:[%s6184_s10 + $0x368] sm:$0xff] }
 0x3a5   : > { %4631 = vmatprep.mubr.bf16.mxu0 %v8826_v38  ;;  %4647 = vmatpush1.bf16.msra.mxu0 %v3795_v35  ;;  %v3589_v35 = vunpack.c.h.s8.bf16 %v3257_v60  ;;  %v3372_v1 = vld [vmem:[%s6184_s10 + $0x6e8] sm:$0xff]  ;;  %v3813_v38 = vunpack.c.h.s8.bf16 %v3369_v21 }
 0x3a6   : > { %4648 = vmatprep.subr.bf16.mxu0 %v3798_v27  ;;  %4209 = vmatprep.subr.bf16.mxu1 %v3576_v36  ;;  %v3592_v27 = vunpack.c.l.s8.bf16 %v3260_v31  ;;  %v3259_v36 = vld [vmem:[%s6184_s10 + $0x360] sm:$0xff]  ;;  %v3818_v23 = vunpack.c.h.s8.bf16 %v3372_v1 }
 0x3a7   : > { %4191 = vmatmul.mubr.bf16.gmra.mrb[92].mxu1 %v8829_v32  ;;  %v3593_v59 = vunpack.c.h.s8.bf16 %v3259_v36  ;;  %v3596_v32 = vunpack.c.l.s8.bf16 %v3262_v10 }
 0x3a8   : > { %4210 = vmatpush1.bf16.msra.mxu1 %v3575_v14  ;;  %4233 = vmatprep.mubr.bf16.mxu1 %v8832_v54  ;;  %v3591_v14 = vunpack.c.l.s8.bf16 %v3259_v36  ;;  %v3595_v54 = vunpack.c.l.s8.bf16 %v3261_v48 }
 0x3a9   : > { %4649 = vmatpush1.bf16.msra.mxu0 %v3797_v33  ;;  %4211 = vmatprep.subr.bf16.mxu1 %v3578_v2  ;;  %v3594_v33 = vunpack.c.h.s8.bf16 %v3260_v31  ;;  %v3816_v2 = vunpack.c.l.s8.bf16 %v3372_v1 }
 0x3aa   : > { %4650 = vmatprep.subr.bf16.mxu0 %v3800_v8  ;;  %v3371_v8 = vld [vmem:[%s6184_s10 + $0x6e0] sm:$0xff] }
 0x3ab   : > { %v3815_v29 = vunpack.c.l.s8.bf16 %v3371_v8 }
 0x3ac   : > { %4632 = vmatmul.mubr.bf16.gmra.mrb[92].mxu0 %v8833_v12  ;;  %4212 = vmatpush1.bf16.msra.mxu1 %v3577_v56  ;;  %v3817_v56 = vunpack.c.h.s8.bf16 %v3371_v8  ;;  %v3822_v12 = vunpack.c.h.s8.bf16 %v3374_v18  ;;  %v3059_v8 = vld [vmem:[#allocation2 + $0x20] sm:$0xff] }
 0x3ad   : > { %4651 = vmatpush1.bf16.msra.mxu0 %v3799_v6  ;;  %4674 = vmatprep.mubr.bf16.mxu0 %v8834_v62  ;;  %v3598_v6 = vunpack.c.h.s8.bf16 %v3262_v10  ;;  %v8835_v62 = vld [vmem:[#allocation63_spill] sm:$0xff] }
 0x3ae   : > { %4652 = vmatprep.subr.bf16.mxu0 %v3802_v26  ;;  %4213 = vmatprep.subr.bf16.mxu1 %v3580_v17  ;;  %v3373_v26 = vld [vmem:[%s6184_s10 + $0x6f0] sm:$0xff]  ;;  %v3597_v17 = vunpack.c.h.s8.bf16 %v3261_v48 }
 0x3af   : > { %v3819_v51 = vunpack.c.l.s8.bf16 %v3373_v26 }
 0x3b0   : > { %4214 = vmatpush1.bf16.msra.mxu1 %v3579_v9  ;;  %v3821_v9 = vunpack.c.h.s8.bf16 %v3373_v26 }
 0x3b1   : > { %4653 = vmatpush1.bf16.msra.mxu0 %v3801_v11  ;;  %4215 = vmatprep.subr.bf16.mxu1 %v3582_v41  ;;  %v8836_v11 = vld [vmem:[#allocation61_spill] sm:$0xff] }
 0x3b2   : > { %4654 = vmatprep.subr.bf16.mxu0 %v3804_v30  ;;  %v8837_v41 = vpack.c.bf16 %v8835_v62, %v8836_v11  ;;  %v8838_v30 = vld [vmem:[#allocation68_spill] sm:$0xff] }
 0x3b3   : > { %v8840_v28 = vpack.c.bf16 %v8838_v30, %v8839_v49  ;;  %v3063_v30 = vld [vmem:[#allocation2 + $0x40] sm:$0xff] }
 0x3b4   : > { %4216 = vmatpush1.bf16.msra.mxu1 %v3581_v13  ;;  %v8841_v13 = vpack.c.bf16 %v8117_v58, %v8095_v16  ;;  %v8851_v16 = vpack.c.bf16 %v8194_v53, %v8180_v61  ;;  %v8852_v58 = vld [vmem:[#allocation71_spill] sm:$0xff]  ;;  %v3057_v61 = vld [vmem:[#allocation2 + $0x10] sm:$0xff] }
 0x3b5   : > { %4655 = vmatpush1.bf16.msra.mxu0 %v3803_v52  ;;  %4217 = vmatprep.subr.bf16.mxu1 %v3584_v24  ;;  %v8842_v52 = vpack.c.bf16 %v8166_v39, %v8145_v37  ;;  %v8843_v24 = vld [vmem:[#allocation67_spill] sm:$0xff]  ;;  %v8854_v37 = vpack.c.bf16 %v8852_v58, %v8853_v42  ;;  %v8855_v39 = vld [vmem:[#allocation20_spill] sm:$0xff] }
 0x3b6   : > { %4656 = vmatprep.subr.bf16.mxu0 %v3806_v15  ;;  %v8845_v15 = vpack.c.bf16 %v8843_v24, %v8844_v43  ;;  %v3065_v43 = vld [vmem:[#allocation2 + $0x50] sm:$0xff] }
 0x3b8   : > { %4218 = vmatpush1.bf16.msra.mxu1 %v3583_v63  ;;  %v8847_v63 = vld [vmem:[#allocation70_spill] sm:$0xff] }
 0x3b9   : > { %4657 = vmatpush1.bf16.msra.mxu0 %v3805_v0  ;;  %4219 = vmatprep.subr.bf16.mxu1 %v3586_v20  ;;  %v8848_v0 = vpack.c.bf16 %v8846_v7, %v8847_v63  ;;  %v8849_v20 = vld [vmem:[#allocation15_spill] sm:$0xff] }
 0x3ba   : > { %4658 = vmatprep.subr.bf16.mxu0 %v3808_v44  ;;  %v8850_v44 = vpack.c.bf16 %v8156_v55, %v8849_v20 }
 0x3bc   : > { %4220 = vmatpush1.bf16.msra.mxu1 %v3585_v25  ;;  %v8857_v25 = vpack.c.bf16 %v8855_v39, %v8856_v47  ;;  %v4745_v47 = vld [vmem:[%s8550_s5] sm:$0x3] (!%p5065_p11) }
 0x3bd   : > { %4659 = vmatpush1.bf16.msra.mxu0 %v3807_v45  ;;  %4221 = vmatprep.subr.bf16.mxu1 %v3588_v40 }
 0x3be   : > { %4660 = vmatprep.subr.bf16.mxu0 %v3810_v4 }
 0x3c0   : > { %4222 = vmatpush1.bf16.msra.mxu1 %v3587_v34 }
 0x3c1   : > { %4661 = vmatpush1.bf16.msra.mxu0 %v3809_v46  ;;  %4223 = vmatprep.subr.bf16.mxu1 %v3590_v3  ;;  %v3056_v46 = vld [vmem:[#allocation2 + $0x8] sm:$0xff] }
 0x3c2   : > { %4662 = vmatprep.subr.bf16.mxu0 %v3812_v50 }
 0x3c4   : > { %4224 = vmatpush1.bf16.msra.mxu1 %v3589_v35  ;;  %v3058_v35 = vld [vmem:[#allocation2 + $0x18] sm:$0xff] }
 0x3c5   : > { %4663 = vmatpush1.bf16.msra.mxu0 %v3811_v22  ;;  %4225 = vmatprep.subr.bf16.mxu1 %v3592_v27 }
 0x3c6   : > { %4664 = vmatprep.subr.bf16.mxu0 %v3814_v57 }
 0x3c8   : > { %4226 = vmatpush1.bf16.msra.mxu1 %v3591_v14 }
 0x3c9   : > { %4665 = vmatpush1.bf16.msra.mxu0 %v3813_v38  ;;  %4227 = vmatprep.subr.bf16.mxu1 %v3594_v33 }
 0x3ca   : > { %4666 = vmatprep.subr.bf16.mxu0 %v3816_v2 }
 0x3cc   : > { %4228 = vmatpush1.bf16.msra.mxu1 %v3593_v59 }
 0x3cd   : > { %4667 = vmatpush1.bf16.msra.mxu0 %v3815_v29  ;;  %4229 = vmatprep.subr.bf16.mxu1 %v3596_v32  ;;  %v3060_v29 = vld [vmem:[#allocation2 + $0x28] sm:$0xff] }
 0x3ce   : > { %4668 = vmatprep.subr.bf16.mxu0 %v3818_v23  ;;  %v3061_v23 = vld [vmem:[#allocation2 + $0x30] sm:$0xff] }
 0x3d0   : > { %4230 = vmatpush1.bf16.msra.mxu1 %v3595_v54 }
 0x3d1   : > { %4669 = vmatpush1.bf16.msra.mxu0 %v3817_v56  ;;  %4231 = vmatprep.subr.bf16.mxu1 %v3598_v6  ;;  %v3062_v6 = vld [vmem:[#allocation2 + $0x38] sm:$0xff] }
 0x3d2   : > { %4670 = vmatprep.subr.bf16.mxu0 %v3820_v5 }
 0x3d4   : > { %4232 = vmatpush1.bf16.msra.mxu1 %v3597_v17 }
 0x3d5   : > { %4671 = vmatpush1.bf16.msra.mxu0 %v3819_v51 }
 0x3d6   : > { %4672 = vmatprep.subr.bf16.mxu0 %v3822_v12 }
 0x3d7   : > { %4234 = vmatmul.mubr.bf16.vlgmr.msra.gmra.mrb[84].mxu1 %v8837_v41 }
 0x3d8   : > { %4243 = vmatprep.mubr.bf16.mxu1 %v8840_v28 }
 0x3d9   : > { %4673 = vmatpush1.bf16.msra.mxu0 %v3821_v9 }
 0x3dc   : > { %4675 = vmatmul.mubr.bf16.vlgmr.msra.gmra.mrb[84].mxu0 %v8841_v13  ;;  %v3064_v13 = vld [vmem:[#allocation2 + $0x48] sm:$0xff] }
 0x3dd   : > { %4684 = vmatprep.mubr.bf16.mxu0 %v8842_v52 }
 0x3df   : > { %4244 = vmatmul.mubr.bf16.gmra.mrb[88].mxu1 %v8845_v15 }
 0x3e0   : > { %4253 = vmatprep.mubr.bf16.mxu1 %v8848_v0  ;;  %v3066_v0 = vld [vmem:[#allocation2 + $0x58] sm:$0xff] }
 0x3e4   : > { %4685 = vmatmul.mubr.bf16.gmra.mrb[88].mxu0 %v8850_v44 }
 0x3e5   : > { %4694 = vmatprep.mubr.bf16.mxu0 %v8851_v16 }
 0x3e7   : > { %4254 = vmatmul.mubr.bf16.gmra.mrb[92].mxu1 %v8854_v37 }
 0x3ec   : > { %4695 = vmatmul.mubr.bf16.gmra.mrb[92].mxu0 %v8857_v25  ;;  %v8858_v25 = vld [vmem:[#allocation7_spill] sm:$0xff] (!%p5065_p11) }
 0x4aa   : > { %v4235_v45 = vpop.f32.mrb[84].mxu1 }
 0x4ab   : > { %v4237_v40 = vpop.f32.mrb[85].mxu1 }
 0x4ac   : > { %v4239_v60 = vpop.f32.mrb[86].mxu1 }
 0x4ad   : > { %v4241_v4 = vpop.f32.mrb[87].mxu1 }
 0x4af   : > { %v4676_v34 = vpop.f32.mrb[84].mxu0 }
 0x4b0   : > { %v5072_v55 = vadd.f32 %v4676_v34, %v4235_v45  ;;  %v4678_v3 = vpop.f32.mrb[85].mxu0  ;;  %v4750_v45 = vrot.slane (!%p5065_p11), %v4745_v47, %v8858_v25 }
 0x4b1   : > { %v5073_v50 = vadd.f32 %v4678_v3, %v4237_v40  ;;  %v4680_v53 = vpop.f32.mrb[86].mxu0  ;;  %v8859_v40 = vld [vmem:[#allocation8_spill] sm:$0xff] (!%p5065_p11) }
 0x4b2   : > { %v4705_v21 = vadd.f32 %v5072_v55, %v3055_v19  ;;  %v5074_v31 = vadd.f32 %v4680_v53, %v4239_v60  ;;  %v4682_v22 = vpop.f32.mrb[87].mxu0  ;;  %v4245_v27 = vpop.f32.mrb[88].mxu1  ;;  %v4754_v60 = vrot.slane (!%p5065_p11), %v4745_v47, %v8859_v40 }
 0x4b3   : > { %v4706_v36 = vadd.f32 %v5073_v50, %v3056_v46  ;;  %v5075_v57 = vadd.f32 %v4682_v22, %v4241_v4  ;;  %v4247_v1 = vpop.f32.mrb[89].mxu1  ;;  %v4769_v4 = vld [vmem:[%s8551_s6] sm:$0x3] (!%p5065_p11) }
 0x4b4   : > { %4717 = vst [vmem:[#allocation2] sm:$0xff] %v4705_v21  ;;  %v4707_v14 = vadd.f32 %v5074_v31, %v3057_v61  ;;  %v4249_v38 = vpop.f32.mrb[90].mxu1  ;;  %v4774_v55 = vrot.slane (!%p5065_p11), %v4769_v4, %v8858_v25  ;;  %v4778_v46 = vrot.slane (!%p5065_p11), %v4769_v4, %v8859_v40 }
 0x4b5   : > { %4718 = vst.msk [vmem:[#allocation2 + $0x8] sm:$0xff] %vm1363_vm1, %v4706_v36  ;;  %v4708_v33 = vadd.f32 %v5075_v57, %v3058_v35  ;;  %v4251_v2 = vpop.f32.mrb[91].mxu1 }
 0x4b6   : > { %4719 = vst [vmem:[#allocation2 + $0x10] sm:$0xff] %v4707_v14 }
 0x4b7   : > { %4720 = vst.msk [vmem:[#allocation2 + $0x18] sm:$0xff] %vm1363_vm1, %v4708_v33  ;;  %v4686_v10 = vpop.f32.mrb[88].mxu0 }
 0x4b8   : > { %v5076_v59 = vadd.f32 %v4686_v10, %v4245_v27  ;;  %v4688_v32 = vpop.f32.mrb[89].mxu0 }
 0x4b9   : > { %v5077_v48 = vadd.f32 %v4688_v32, %v4247_v1  ;;  %v4690_v18 = vpop.f32.mrb[90].mxu0 }
 0x4ba   : > { %v4709_v54 = vadd.f32 %v5076_v59, %v3059_v8  ;;  %v5078_v56 = vadd.f32 %v4690_v18, %v4249_v38  ;;  %v4692_v5 = vpop.f32.mrb[91].mxu0  ;;  %v4255_v26 = vpop.f32.mrb[92].mxu1 }
 0x4bb   : > { %v4710_v17 = vadd.f32 %v5077_v48, %v3060_v29  ;;  %v5079_v51 = vadd.f32 %v4692_v5, %v4251_v2  ;;  %v4257_v12 = vpop.f32.mrb[93].mxu1  ;;  %v4733_v37 = vld [vmem:[#allocation2] sm:$0xff] (!%p5065_p11) }
 0x4bc   : > { %4721 = vst [vmem:[#allocation2 + $0x20] sm:$0xff] %v4709_v54  ;;  %v4711_v9 = vadd.f32 %v5078_v56, %v3061_v23  ;;  %v4259_v62 = vpop.f32.mrb[94].mxu1  ;;  %v4734_v39 = vld [vmem:[#allocation2 + $0x8] sm:$0xff] (!%p5065_p11)  ;;  %v4757_v53 = vmul.f32 (!%p5065_p11), %v4750_v45, %v4733_v37 }
 0x4bd   : > { %4722 = vst.msk [vmem:[#allocation2 + $0x28] sm:$0xff] %vm1363_vm1, %v4710_v17  ;;  %v4712_v11 = vadd.f32 %v5079_v51, %v3062_v6  ;;  %v4261_v41 = vpop.f32.mrb[95].mxu1  ;;  %v4735_v3 = vld [vmem:[#allocation2 + $0x10] sm:$0xff] (!%p5065_p11)  ;;  %v4758_v21 = vmul.f32 (!%p5065_p11), %v4754_v60, %v4734_v39 }
 0x4be   : > { %4723 = vst [vmem:[#allocation2 + $0x30] sm:$0xff] %v4711_v9  ;;  %v4736_v50 = vld [vmem:[#allocation2 + $0x18] sm:$0xff] (!%p5065_p11)  ;;  %v4759_v27 = vmul.f32 (!%p5065_p11), %v4750_v45, %v4735_v3  ;;  %v4781_v33 = vadd.f32 (!%p5065_p11), %v4774_v55, %v4757_v53 }
 0x4bf   : > { %4724 = vst.msk [vmem:[#allocation2 + $0x38] sm:$0xff] %vm1363_vm1, %v4712_v11  ;;  %v4696_v49 = vpop.f32.mrb[92].mxu0  ;;  %v4760_v36 = vmul.f32 (!%p5065_p11), %v4754_v60, %v4736_v50  ;;  %v4782_v2 = vadd.f32 (!%p5065_p11), %v4778_v46, %v4758_v21 }
 0x4c0   : > { %v5080_v28 = vadd.f32 %v4696_v49, %v4255_v26  ;;  %v4698_v52 = vpop.f32.mrb[93].mxu0  ;;  %v4783_v59 = vadd.f32 (!%p5065_p11), %v4774_v55, %v4759_v27 }
 0x4c1   : > { %v5081_v24 = vadd.f32 %v4698_v52, %v4257_v12  ;;  %v4700_v15 = vpop.f32.mrb[94].mxu0  ;;  %4732 = sbr.rel (%p5065_p11) target bundleno = 1558 (0x616), region = 79  ;;  %v4784_v29 = vadd.f32 (!%p5065_p11), %v4778_v46, %v4760_v36  ;;  %v4793_v23 = vsel (!%p5065_p11), %vm1363_vm1, %v4782_v2, -inf }
 0x4c2   : > { %v4713_v7 = vadd.f32 %v5080_v28, %v3063_v30  ;;  %v5082_v63 = vadd.f32 %v4700_v15, %v4259_v62  ;;  %v4702_v20 = vpop.f32.mrb[95].mxu0  ;;  %v4794_v26 = vmax.f32 (!%p5065_p11), %v4781_v33, %v4793_v23 }
 0x4c3   : > { %v4714_v44 = vadd.f32 %v5081_v24, %v3064_v13  ;;  %v5083_v16 = vadd.f32 %v4702_v20, %v4261_v41  ;;  %v4737_v19 = vld [vmem:[#allocation2 + $0x20] sm:$0xff] (!%p5065_p11)  ;;  %v4797_v51 = vsel (!%p5065_p11), %vm1363_vm1, %v4784_v29, -inf }
 0x4c4   : > { %4725 = vst [vmem:[#allocation2 + $0x40] sm:$0xff] %v4713_v7  ;;  %v4715_v58 = vadd.f32 %v5082_v63, %v3065_v43  ;;  %v4738_v34 = vld [vmem:[#allocation2 + $0x28] sm:$0xff] (!%p5065_p11)  ;;  %v4761_v31 = vmul.f32 (!%p5065_p11), %v4750_v45, %v4737_v19  ;;  %v4798_v9 = vmax.f32 (!%p5065_p11), %v4783_v59, %v4797_v51  ;;  %4795 = vmax.xlane.f32.xlu0 (!%p5065_p11), %v4794_v26 }
 0x4c5   : > { %4726 = vst.msk [vmem:[#allocation2 + $0x48] sm:$0xff] %vm1363_vm1, %v4714_v44  ;;  %v4716_v42 = vadd.f32 %v5083_v16, %v3066_v0  ;;  %v4739_v61 = vld [vmem:[#allocation2 + $0x30] sm:$0xff] (!%p5065_p11)  ;;  %v4762_v35 = vmul.f32 (!%p5065_p11), %v4754_v60, %v4738_v34 }
 0x4c6   : > { %4727 = vst [vmem:[#allocation2 + $0x50] sm:$0xff] %v4715_v58  ;;  %v4740_v22 = vld [vmem:[#allocation2 + $0x38] sm:$0xff] (!%p5065_p11)  ;;  %v4763_v57 = vmul.f32 (!%p5065_p11), %v4750_v45, %v4739_v61  ;;  %v4785_v8 = vadd.f32 (!%p5065_p11), %v4774_v55, %v4761_v31 }
 0x4c7   : > { %4728 = vst.msk [vmem:[#allocation2 + $0x58] sm:$0xff] %vm1363_vm1, %v4716_v42  ;;  %v4764_v1 = vmul.f32 (!%p5065_p11), %v4754_v60, %v4740_v22  ;;  %v4786_v10 = vadd.f32 (!%p5065_p11), %v4778_v46, %v4762_v35 }
 0x4c8   : > { %v4787_v32 = vadd.f32 %v4774_v55, %v4763_v57  ;;  %4799 = vmax.xlane.f32.xlu0 %v4798_v9 }
 0x4c9   : > { %v4788_v48 = vadd.f32 %v4778_v46, %v4764_v1  ;;  %v4801_v18 = vsel %vm1363_vm1, %v4786_v10, -inf }
 0x4ca   : > { %v4802_v17 = vmax.f32 %v4785_v8, %v4801_v18 }
 0x4cb   : > { %v4741_v14 = vld [vmem:[#allocation2 + $0x40] sm:$0xff]  ;;  %v4805_v12 = vsel %vm1363_vm1, %v4788_v48, -inf }
 0x4cc   : > { %v4742_v38 = vld [vmem:[#allocation2 + $0x48] sm:$0xff]  ;;  %v4765_v54 = vmul.f32 %v4750_v45, %v4741_v14  ;;  %v4806_v62 = vmax.f32 %v4787_v32, %v4805_v12  ;;  %4803 = vmax.xlane.f32.xlu1 %v4802_v17 }
 0x4cd   : > { %v4766_v56 = vmul.f32 %v4754_v60, %v4742_v38  ;;  %v4743_v6 = vld [vmem:[#allocation2 + $0x50] sm:$0xff] }
 0x4ce   : > { %v4744_v5 = vld [vmem:[#allocation2 + $0x58] sm:$0xff]  ;;  %v4789_v41 = vadd.f32 %v4774_v55, %v4765_v54  ;;  %v4767_v30 = vmul.f32 %v4750_v45, %v4743_v6 }
 0x4cf   : > { %v4790_v11 = vadd.f32 %v4778_v46, %v4766_v56  ;;  %v4768_v49 = vmul.f32 %v4754_v60, %v4744_v5 }
 0x4d0   : > { %v4791_v13 = vadd.f32 %v4774_v55, %v4767_v30  ;;  %4807 = vmax.xlane.f32.xlu1 %v4806_v62 }
 0x4d1   : > { %v4809_v28 = vsel %vm1363_vm1, %v4790_v11, -inf  ;;  %v4792_v52 = vadd.f32 %v4778_v46, %v4768_v49 }
 0x4d2   : > { %v4810_v24 = vmax.f32 %v4789_v41, %v4809_v28 }
 0x4d3   : > { %v4813_v43 = vsel %vm1363_vm1, %v4792_v52, -inf }
 0x4d4   : > { %v4814_v15 = vmax.f32 %v4791_v13, %v4813_v43  ;;  %4811 = vmax.xlane.f32.xlu0 %v4810_v24  ;;  %v4896_v24 = vld [vmem:[%s8545_s0 + $0x8] sm:$0xff] }
 0x4d6   : > { %4815 = vmax.xlane.f32.xlu1 %v4814_v15 }
 0x551   : > { %v4796_v7 = vpop.xlane.xlu0 %4795 }
 0x552   : > { %v4817_v0 = vsub.f32 %v4781_v33, %v4796_v7  ;;  %v4818_v20 = vsub.f32 %v4782_v2, %v4796_v7 }
 0x554   : > { %v4829_v58 = vmul.f32 1.442695, %v4817_v0  ;;  %v4831_v42 = vmul.f32 1.442695, %v4818_v20 }
 0x555   : > { %v4800_v47 = vpop.xlane.xlu0 %4799 }
 0x556   : > { %5600 = vpow2.f32 %v4829_v58  ;;  %v4819_v45 = vsub.f32 %v4783_v59, %v4800_v47  ;;  %v4820_v40 = vsub.f32 %v4784_v29, %v4800_v47  ;;  %v4900_v47 = vld [vmem:[%s8545_s0 + $0x28] sm:$0xff] }
 0x557   : > { %5602 = vpow2.f32 %v4831_v42 }
 0x558   : > { %v4833_v19 = vmul.f32 1.442695, %v4819_v45  ;;  %v4835_v34 = vmul.f32 1.442695, %v4820_v40 }
 0x559   : > { %v4804_v63 = vpop.xlane.xlu1 %4803 }
 0x55a   : > { %v4821_v44 = vsub.f32 %v4785_v8, %v4804_v63  ;;  %v4822_v16 = vsub.f32 %v4786_v10, %v4804_v63 }
 0x55c   : > { %v4837_v37 = vmul.f32 1.442695, %v4821_v44  ;;  %v4839_v39 = vmul.f32 1.442695, %v4822_v16  ;;  %v4897_v44 = vld [vmem:[%s8545_s0 + $0x10] sm:$0xff]  ;;  %v4898_v16 = vld [vmem:[%s8545_s0 + $0x18] sm:$0xff] }
 0x55d   : > { %v4808_v25 = vpop.xlane.xlu1 %4807 }
 0x55e   : > { %v4823_v60 = vsub.f32 %v4787_v32, %v4808_v25  ;;  %v4824_v4 = vsub.f32 %v4788_v48, %v4808_v25  ;;  %5604 = vpow2.f32 %v4837_v37 }
 0x55f   : > { %5606 = vpow2.f32 %v4839_v39  ;;  %v4899_v39 = vld [vmem:[%s8545_s0 + $0x20] sm:$0xff] }
 0x560   : > { %v4841_v55 = vmul.f32 1.442695, %v4823_v60  ;;  %v4843_v46 = vmul.f32 1.442695, %v4824_v4  ;;  %5608 = vpow2.f32 %v4833_v19  ;;  %v5601_v57 = vpop.eup %5600 }
 0x561   : > { %v4812_v3 = vpop.xlane.xlu0 %4811  ;;  %5610 = vpow2.f32 %v4835_v34  ;;  %v5603_v1 = vpop.eup %5602 }
 0x562   : > { %v4825_v61 = vsub.f32 %v4789_v41, %v4812_v3  ;;  %v4826_v53 = vsub.f32 %v4790_v11, %v4812_v3  ;;  %5612 = vpow2.f32 %v4841_v55  ;;  %v4853_v38 = vsel %vm1363_vm1, %v5603_v1, 0.0  ;;  %v4901_v55 = vld [vmem:[%s8545_s0 + $0x30] sm:$0xff] }
 0x563   : > { %v4816_v50 = vpop.xlane.xlu1 %4815  ;;  %5614 = vpow2.f32 %v4843_v46  ;;  %v4854_v2 = vadd.f32 %v5601_v57, %v4853_v38  ;;  %v4902_v46 = vld [vmem:[%s8545_s0 + $0x38] sm:$0xff] }
 0x564   : > { %v4827_v21 = vsub.f32 %v4791_v13, %v4816_v50  ;;  %v4828_v31 = vsub.f32 %v4792_v52, %v4816_v50  ;;  %v4845_v35 = vmul.f32 1.442695, %v4825_v61  ;;  %v4847_v22 = vmul.f32 1.442695, %v4826_v53  ;;  %v4895_v52 = vld [vmem:[%s8545_s0] sm:$0xff]  ;;  %v4906_v38 = vld [vmem:[%s8545_s0 + $0x58] sm:$0xff] }
 0x565   : > { %4855 = vadd.xlane.f32.xlu0 %v4854_v2  ;;  %v4903_v53 = vld [vmem:[%s8545_s0 + $0x40] sm:$0xff] }
 0x566   : > { %v4849_v27 = vmul.f32 1.442695, %v4827_v21  ;;  %v4851_v36 = vmul.f32 1.442695, %v4828_v31  ;;  %5616 = vpow2.f32 %v4845_v35  ;;  %v4904_v21 = vld [vmem:[%s8545_s0 + $0x48] sm:$0xff] }
 0x567   : > { %5618 = vpow2.f32 %v4847_v22 }
 0x568   : > { %5620 = vpow2.f32 %v4849_v27  ;;  %v5605_v14 = vpop.eup %5604 }
 0x569   : > { %5622 = vpow2.f32 %v4851_v36  ;;  %v5607_v33 = vpop.eup %5606 }
 0x56a   : > { %v5609_v8 = vpop.eup %5608  ;;  %v4861_v10 = vsel %vm1363_vm1, %v5607_v33, 0.0 }
 0x56b   : > { %v5611_v59 = vpop.eup %5610  ;;  %v4862_v29 = vadd.f32 %v5605_v14, %v4861_v10 }
 0x56c   : > { %v5613_v32 = vpop.eup %5612  ;;  %v4857_v48 = vsel %vm1363_vm1, %v5611_v59, 0.0 }
 0x56d   : > { %v5615_v23 = vpop.eup %5614  ;;  %v4858_v18 = vadd.f32 %v5609_v8, %v4857_v48  ;;  %4863 = vadd.xlane.f32.xlu0 %v4862_v29 }
 0x56e   : > { %v4865_v56 = vsel %vm1363_vm1, %v5615_v23, 0.0 }
 0x56f   : > { %4859 = vadd.xlane.f32.xlu1 %v4858_v18  ;;  %v4866_v5 = vadd.f32 %v5613_v32, %v4865_v56 }
 0x570   : > { %v5617_v54 = vpop.eup %5616 }
 0x571   : > { %v5619_v6 = vpop.eup %5618 }
 0x572   : > { %v8460_v26 = vpop.eup %5620  ;;  %v4869_v17 = vsel %vm1363_vm1, %v5619_v6, 0.0 }
 0x573   : > { %v8463_v51 = vpop.eup %5622  ;;  %v4870_v12 = vadd.f32 %v5617_v54, %v4869_v17  ;;  %4867 = vadd.xlane.f32.xlu1 %v4866_v5 }
 0x574   : > { %v4873_v9 = vsel %vm1363_vm1, %v8463_v51, 0.0 }
 0x575   : > { %4871 = vadd.xlane.f32.xlu0 %v4870_v12  ;;  %v4874_v62 = vadd.f32 %v8460_v26, %v4873_v9 }
 0x577   : > { %4875 = vadd.xlane.f32.xlu1 %v4874_v62 }
 0x5f2   : > { %v4856_v11 = vpop.xlane.xlu0 %4855 }
 0x5f3   : > { %5624 = vrcp.f32 %v4856_v11 }
 0x5fa   : > { %v4864_v30 = vpop.xlane.xlu0 %4863 }
 0x5fc   : > { %v4860_v41 = vpop.xlane.xlu1 %4859 }
 0x5fd   : > { %5626 = vrcp.f32 %v4860_v41  ;;  %v5625_v13 = vpop.eup %5624 }
 0x5fe   : > { %5628 = vrcp.f32 %v4864_v30  ;;  %v4883_v43 = vmul.f32 %v5625_v13, %v5601_v57  ;;  %v4884_v15 = vmul.f32 %v5625_v13, %v5603_v1 }
 0x600   : > { %v4868_v49 = vpop.xlane.xlu1 %4867  ;;  %v4907_v63 = vadd.f32 %v4895_v52, %v4883_v43  ;;  %v4908_v0 = vadd.f32 %v4896_v24, %v4884_v15 }
 0x601   : > { %5630 = vrcp.f32 %v4868_v49 }
 0x602   : > { %v4872_v28 = vpop.xlane.xlu0 %4871  ;;  %4919 = vst [vmem:[#allocation4] sm:$0xff] %v4907_v63  ;;  %4920 = vst.msk [vmem:[#allocation4 + $0x8] sm:$0xff] %vm1363_vm1, %v4908_v0 }
 0x603   : > { %5632 = vrcp.f32 %v4872_v28 }
 0x604   : > { %v4876_v7 = vpop.xlane.xlu1 %4875 }
 0x605   : > { %5634 = vrcp.f32 %v4876_v7 }
 0x607   : > { %v5627_v20 = vpop.eup %5626 }
 0x608   : > { %v5629_v58 = vpop.eup %5628  ;;  %v4885_v42 = vmul.f32 %v5627_v20, %v5609_v8  ;;  %v4886_v37 = vmul.f32 %v5627_v20, %v5611_v59 }
 0x609   : > { %v4887_v25 = vmul.f32 %v5629_v58, %v5605_v14  ;;  %v4888_v45 = vmul.f32 %v5629_v58, %v5607_v33  ;;  %v4905_v14 = vld [vmem:[%s8545_s0 + $0x50] sm:$0xff] }
 0x60a   : > { %v4909_v40 = vadd.f32 %v4897_v44, %v4885_v42  ;;  %v4910_v60 = vadd.f32 %v4898_v16, %v4886_v37 }
 0x60b   : > { %v5631_v4 = vpop.eup %5630  ;;  %v4911_v19 = vadd.f32 %v4899_v39, %v4887_v25  ;;  %v4912_v34 = vadd.f32 %v4900_v47, %v4888_v45 }
 0x60c   : > { %4921 = vst [vmem:[#allocation4 + $0x10] sm:$0xff] %v4909_v40  ;;  %4922 = vst.msk [vmem:[#allocation4 + $0x18] sm:$0xff] %vm1363_vm1, %v4910_v60  ;;  %v4889_v50 = vmul.f32 %v5631_v4, %v5613_v32  ;;  %v4890_v61 = vmul.f32 %v5631_v4, %v5615_v23 }
 0x60d   : > { %v5633_v3 = vpop.eup %5632  ;;  %4923 = vst [vmem:[#allocation4 + $0x20] sm:$0xff] %v4911_v19  ;;  %4924 = vst.msk [vmem:[#allocation4 + $0x28] sm:$0xff] %vm1363_vm1, %v4912_v34 }
 0x60e   : > { %v4891_v31 = vmul.f32 %v5633_v3, %v5617_v54  ;;  %v4892_v35 = vmul.f32 %v5633_v3, %v5619_v6  ;;  %v4913_v22 = vadd.f32 %v4901_v55, %v4889_v50  ;;  %v4914_v27 = vadd.f32 %v4902_v46, %v4890_v61 }
 0x60f   : > { %v5635_v36 = vpop.eup %5634 }
 0x610   : > { %v4915_v57 = vadd.f32 %v4903_v53, %v4891_v31  ;;  %v4916_v1 = vadd.f32 %v4904_v21, %v4892_v35  ;;  %4925 = vst [vmem:[#allocation4 + $0x30] sm:$0xff] %v4913_v22  ;;  %4926 = vst.msk [vmem:[#allocation4 + $0x38] sm:$0xff] %vm1363_vm1, %v4914_v27  ;;  %v4893_v33 = vmul.f32 %v5635_v36, %v8460_v26 }
 0x611   : > { %v4894_v2 = vmul.f32 %v5635_v36, %v8463_v51 }
 0x612   : > { %4927 = vst [vmem:[#allocation4 + $0x40] sm:$0xff] %v4915_v57  ;;  %4928 = vst.msk [vmem:[#allocation4 + $0x48] sm:$0xff] %vm1363_vm1, %v4916_v1  ;;  %v4917_v8 = vadd.f32 %v4905_v14, %v4893_v33 }
 0x613   : > { %v4918_v10 = vadd.f32 %v4906_v38, %v4894_v2 }
 0x614   : > { %4929 = vst [vmem:[#allocation4 + $0x50] sm:$0xff] %v4917_v8 }
 0x615   : > { %4930 = vst.msk [vmem:[#allocation4 + $0x58] sm:$0xff] %vm1363_vm1, %v4918_v10 }
 0x616 PF: > { %p5234_p12 = scmp.eq.s32.totalorder %s5750_s27, 5  ;;  %s5691_s24 = smov [#allocation4]  }
 0x617   : > { %s4937_s12 = sshll.u32 %s5691_s24, 4  ;;  %s4938_s12 = int_to_ptr.vmem [resolvable:$true] %s4937_s12 }
 0x618   : > { %s5636_s13 = scalar_lea.vmem %s4938_s12, 1536  ;;  %p5643_p2 = scmp.lt.s32.totalorder %s4938_s12, %s4938_s12 }
 0x619   : > { %p5637_p13 = scmp.ne.s32.totalorder %s4938_s12, %s5636_s13  ;;  %p5644_p3 = scmp.lt.s32.totalorder %s5636_s13, %s5636_s13 }
 0x61b   : > { %p5638_p0 = pnand %p5637_p13, %p5234_p12  ;;  %p5645_p4 = por %p5644_p3, %p5643_p2 }
 0x61d   : > { %p5639_p1 = pneg %p5638_p0 }
 0x61f   : > { %p5646_p5 = pnand %p5645_p4, %p5639_p1 }
 0x621   : > { %5649 = shalt.err (!%p5646_p5)
}
 0x622   : > { %s5650_s16 = scalar_lea.hbm %s8552_s7, 1536 }
 0x623   : > { %p5651_p6 = scmp.ne.s32.totalorder %s8552_s7, %s5650_s16  ;;  %p5656_p9 = scmp.lt.u32.totalorder %s5650_s16, %s8552_s7 }
 0x625   : > { %p5652_p7 = pnand %p5651_p6, %p5234_p12 }
 0x627   : > { %p5653_p8 = pneg %p5652_p7 }
 0x629   : > { %p5658_p10 = pnand %p5656_p9, %p5653_p8 }
 0x62b   : > { %5661 = shalt.err (!%p5658_p10)
}
 0x62c   : > { %s5692_s22 = smov 256   ;;  %s5693_s26 = smov 16  }
 0x62d   : > { %5231 = dma.vmem_to_hbm [thread:$0]  (%p5234_p12), %s4938_s12, 1536, %s8552_s7, [#allocation5], %s5692_s22, %s5692_s22, %s5693_s26  }
 0x62e   : > { %5675 = dma.done.wait (%p5234_p12), [#allocation5], 1536  }
 0x62f   : > { %5677 = vsyncadd (%p5234_p12), [#allocation5], 4294965760 }
 0x630 PF: > { %p15_p11 = scmp.ge.s32.totalorder %s5753_s28, 8   ;;  %s8860_s24 = smov %s5684_s25 }
 0x631   : > { %s8861_s25 = smov %s5762_s8  ;;  %s8862_s26 = smov %s5753_s28 }
 0x632   :  { %17 = sbr.rel (!%p15_p11) target bundleno = 2 (0x2), region = 120 }
 0x639   :  { %4953 = vsyncpa [#allocation5], 1 }
 0x63a   :  { %4955 = vsyncpa [#allocation5 + $0x1], 1 }

</bundles_post_ra>
